<compile_context>
chip_gen: v7x
topology: tpu7x:2x2x1
jax: 0.10.0
libtpu: 0.0.40
codegen_flags: <defaults>
</compile_context>

<pallas_src>
import functools
import math

import jax
import jax.numpy as jnp
from jax.experimental import pallas as pl
from jax.experimental.pallas import tpu as pltpu


# ----------------------------------------------------------------------------
# Generic (M-tiled) linear kernel:  y = relu?(x @ w + b)
# ----------------------------------------------------------------------------
def _linear_kernel(x_ref, w_ref, b_ref, o_ref, *, relu, use_mxu):
    x = x_ref[...]
    w = w_ref[...]
    if use_mxu:
        y = jnp.dot(x, w, preferred_element_type=jnp.float32)
    else:
        # tiny-K path (e.g. conv1 with K=3): VPU broadcast MACs, keep the MXU free
        y = x[:, 0:1] * w[0:1, :]
        for k in range(1, x.shape[1]):
            y = y + x[:, k:k + 1] * w[k:k + 1, :]
    y = y + b_ref[...]
    if relu:
        y = jnp.maximum(y, 0.0)
    o_ref[...] = y


def pallas_linear(x, w, b, relu=False, use_mxu=True, tile_m=512):
    """x:(M,K) f32, w:(K,N), b:(1,N) -> (M,N).  Tiled over M, K/N kept whole."""
    M, K = x.shape
    N = w.shape[1]
    if M <= tile_m:
        tm, Mp, xp = M, M, x
    else:
        tm = tile_m
        Mp = -(-M // tm) * tm
        xp = jnp.pad(x, ((0, Mp - M), (0, 0))) if Mp != M else x
    out = pl.pallas_call(
        functools.partial(_linear_kernel, relu=relu, use_mxu=use_mxu),
        out_shape=jax.ShapeDtypeStruct((Mp, N), jnp.float32),
        grid=(Mp // tm,),
        in_specs=[
            pl.BlockSpec((tm, K), lambda i: (i, 0)),
            pl.BlockSpec((K, N), lambda i: (0, 0)),
            pl.BlockSpec((1, N), lambda i: (0, 0)),
        ],
        out_specs=pl.BlockSpec((tm, N), lambda i: (i, 0)),
        compiler_params=pltpu.CompilerParams(dimension_semantics=("parallel",)),
    )(xp, w, b)
    return out[:M] if Mp != M else out


# ----------------------------------------------------------------------------
# MaxPool1d(kernel=2, stride=2) — elementwise max of lane-halves (VPU only)
# ----------------------------------------------------------------------------
def _maxpool2_kernel(x_ref, o_ref):
    c = o_ref.shape[1]
    x = x_ref[...]                                 # (tm, 2C): row t = [x[2t,:] | x[2t+1,:]]
    o_ref[...] = jnp.maximum(x[:, :c], x[:, c:])


def pallas_maxpool2(x):
    """x: (B, L, C) -> (B, L//2, C).  Requires even L (PyTorch drops a trailing odd element)."""
    B, L, C = x.shape
    assert L % 2 == 0, "MaxPool1d(2,2): odd L not supported here"
    Lh = L // 2
    x2 = x.reshape(B * Lh, 2 * C)                  # contiguous reshape: pairs land side-by-side
    M = B * Lh
    tile = 1024
    tm = M if (M <= tile or M % tile != 0) else tile
    out = pl.pallas_call(
        _maxpool2_kernel,
        out_shape=jax.ShapeDtypeStruct((M, C), jnp.float32),
        grid=(M // tm,),
        in_specs=[pl.BlockSpec((tm, 2 * C), lambda i: (i, 0))],
        out_specs=pl.BlockSpec((tm, C), lambda i: (i, 0)),
        compiler_params=pltpu.CompilerParams(dimension_semantics=("parallel",)),
    )(x2)
    return out.reshape(B, Lh, C)


# ----------------------------------------------------------------------------
# Fused bidirectional GRU layer (PyTorch gate order r, z, n)
# ----------------------------------------------------------------------------
def _bigru_kernel(gxf_ref, gxb_ref, whf_ref, bhf_ref, whb_ref, bhb_ref,
                  of_ref, ob_ref, hf_scr, hb_scr, *, ct):
    c = pl.program_id(0)

    @pl.when(c == 0)
    def _():
        hf_scr[...] = jnp.zeros_like(hf_scr)
        hb_scr[...] = jnp.zeros_like(hb_scr)

    H = hf_scr.shape[-1]
    whf = whf_ref[...]
    bhf = bhf_ref[...]
    whb = whb_ref[...]
    bhb = bhb_ref[...]
    hf = hf_scr[...]                               # (B, H) forward hidden state
    hb = hb_scr[...]                               # (B, H) backward hidden state

    for j in range(ct):                            # static unroll over the time chunk
        # ---- forward direction: local time j ----
        gxf = gxf_ref[:, j, :]                     # (B, 3H)
        ghf = jnp.dot(hf, whf, preferred_element_type=jnp.float32) + bhf
        rf = jax.nn.sigmoid(gxf[:, 0:H] + ghf[:, 0:H])
        zf = jax.nn.sigmoid(gxf[:, H:2 * H] + ghf[:, H:2 * H])
        nf = jnp.tanh(gxf[:, 2 * H:] + rf * ghf[:, 2 * H:])
        hf = (1.0 - zf) * nf + zf * hf
        of_ref[:, j, :] = hf

        # ---- backward direction: local time ct-1-j (chunk order reversed by index_map) ----
        jb = ct - 1 - j
        gxb = gxb_ref[:, jb, :]
        ghb = jnp.dot(hb, whb, preferred_element_type=jnp.float32) + bhb
        rb = jax.nn.sigmoid(gxb[:, 0:H] + ghb[:, 0:H])
        zb = jax.nn.sigmoid(gxb[:, H:2 * H] + ghb[:, H:2 * H])
        nb = jnp.tanh(gxb[:, 2 * H:] + rb * ghb[:, 2 * H:])
        hb = (1.0 - zb) * nb + zb * hb
        ob_ref[:, jb, :] = hb

    hf_scr[...] = hf
    hb_scr[...] = hb


def pallas_bigru_layer(gxf, gxb, whhf, bhhf, whhb, bhhb, max_chunk=32):
    """One bidirectional GRU layer, both directions fused in a single pallas_call.

    gxf/gxb: (B, T, 3H) precomputed x @ W_ih^T + b_ih (batch-major, natural time order)
    whh*:    (H, 3H) = W_hh^T ;  bhh*: (1, 3H)
    Returns (h_fwd, h_bwd), each (B, T, H).
    """
    B, T, G = gxf.shape
    H = G // 3
    # chunk size: whole sequence if short, else largest multiple-of-8 divisor <= max_chunk
    if T <= max_chunk:
        ct = T
    else:
        ct = 8 if T % 8 == 0 else T
        for d in range(max_chunk, 7, -1):
            if T % d == 0 and d % 8 == 0:
                ct = d
                break
    nchunks = T // ct

    return pl.pallas_call(
        functools.partial(_bigru_kernel, ct=ct),
        out_shape=(jax.ShapeDtypeStruct((B, T, H), jnp.float32),
                   jax.ShapeDtypeStruct((B, T, H), jnp.float32)),
        grid=(nchunks,),
        in_specs=[
            pl.BlockSpec((B, ct, G), lambda c: (0, c, 0)),
            pl.BlockSpec((B, ct, G), lambda c: (0, nchunks - 1 - c, 0)),
            pl.BlockSpec((H, G), lambda c: (0, 0)),
            pl.BlockSpec((1, G), lambda c: (0, 0)),
            pl.BlockSpec((H, G), lambda c: (0, 0)),
            pl.BlockSpec((1, G), lambda c: (0, 0)),
        ],
        out_specs=(pl.BlockSpec((B, ct, H), lambda c: (0, c, 0)),
                   pl.BlockSpec((B, ct, H), lambda c: (0, nchunks - 1 - c, 0))),
        scratch_shapes=[pltpu.VMEM((B, H), jnp.float32),
                        pltpu.VMEM((B, H), jnp.float32)],
        compiler_params=pltpu.CompilerParams(dimension_semantics=("arbitrary",)),
    )(gxf, gxb, whhf, bhhf, whhb, bhhb)


# ----------------------------------------------------------------------------
# Glue (plain JAX): im2col, layer wiring, parameters
# ----------------------------------------------------------------------------
def im2col_k3_p1(x):
    """x: (B, L, C) -> patches (B, L, 3*C) for a k=3, pad=1 Conv1d."""
    B, L, C = x.shape
    xp = jnp.pad(x, ((0, 0), (1, 1), (0, 0)))
    return jnp.concatenate([xp[:, k:k + L, :] for k in range(3)], axis=-1)


def conv1d_k3_p1(x, w_torch, b, relu):
    """Conv1d(k=3, pad=1) as im2col + Pallas matmul (VPU path when K is tiny).

    x: (B, L, Cin) channels-last; w_torch: (Cout, Cin, 3) (PyTorch layout)."""
    B, L, Cin = x.shape
    Cout = w_torch.shape[0]
    # Wmat[k*Cin + ci, co] = w_torch[co, ci, k]  (matches im2col column order)
    wmat = jnp.transpose(w_torch, (2, 1, 0)).reshape(3 * Cin, Cout)
    patches = im2col_k3_p1(x).reshape(B * L, 3 * Cin)
    y = pallas_linear(patches, wmat, b.reshape(1, -1), relu=relu,
                      use_mxu=(3 * Cin) >= 16)
    return y.reshape(B, L, Cout)


def naive_caller_forward(params, x_ncl):
    """x_ncl: (B, 1, L) float32  ->  logits (B, L//2, num_classes)."""
    B, Cin, L = x_ncl.shape
    x = jnp.transpose(x_ncl, (0, 2, 1))                             # (B, L, Cin) NLC

    # conv1 + relu  (K=3 -> VPU broadcast MACs inside the linear kernel)
    h = conv1d_k3_p1(x, params["w_conv1"], params["b_conv1"], relu=True)   # (B, L, 32)
    # maxpool k=2 s=2
    h = pallas_maxpool2(h)                                          # (B, T, 32)
    T = L // 2
    # conv2 + relu
    h = conv1d_k3_p1(h, params["w_conv2"], params["b_conv2"], relu=True)   # (B, T, 64)
    # fc + relu   (permute(0,2,1) is implicit in the NLC layout)
    hidden = params["w_fc"].shape[0]                                # static from array shape
    h = pallas_linear(h.reshape(B * T, 64), params["w_fc"].T,
                      params["b_fc"].reshape(1, -1), relu=True)
    inp = h.reshape(B, T, hidden)

    # 3-layer bidirectional GRU, eval mode.
    # TODO(synk): inter-layer dropout (p=0.2) is train-only; not applied here.
    for layer_params in params["gru"]:
        (wif, whf, bif, bhf), (wib, whb, bib, bhb) = layer_params
        din = inp.shape[-1]
        # fused fwd+bwd input projection: one (B*T, din) @ (din, 6H) matmul
        w_ih = jnp.concatenate([wif.T, wib.T], axis=1)              # (din, 6H)
        b_ih = jnp.concatenate([bif, bib]).reshape(1, -1)           # (1, 6H)
        gx = pallas_linear(inp.reshape(B * T, din), w_ih, b_ih)
        gx = gx.reshape(B, T, 6 * hidden)
        gxf = gx[..., :3 * hidden]
        gxb = gx[..., 3 * hidden:]
        hf, hb = pallas_bigru_layer(gxf, gxb, whf.T, bhf.reshape(1, -1),
                                    whb.T, bhb.reshape(1, -1))
        inp = jnp.concatenate([hf, hb], axis=-1)                    # (B, T, 2H)

    # output head: lane-dense (pad N up to a 128-multiple, slice afterwards)
    nc = params["w_out"].shape[0]
    npad = -(-nc // 128) * 128
    wo = jnp.pad(params["w_out"].T, ((0, 0), (0, npad - nc)))       # (2H, npad)
    bo = jnp.pad(params["b_out"], (0, npad - nc)).reshape(1, -1)
    y = pallas_linear(inp.reshape(B * T, 2 * hidden), wo, bo)[:, :nc]
    return y.reshape(B, T, nc)


def init_params(key, input_dim=1, hidden_dim=128, num_layers=3, num_classes=5):
    def unif(k, shape, bound):
        return jax.random.uniform(k, shape, jnp.float32, -bound, bound)

    keys = iter(jax.random.split(key, 64))
    p = {}

    b1 = 1.0 / math.sqrt(input_dim * 3)
    p["w_conv1"] = unif(next(keys), (32, input_dim, 3), b1)
    p["b_conv1"] = unif(next(keys), (32,), b1)

    b2 = 1.0 / math.sqrt(32 * 3)
    p["w_conv2"] = unif(next(keys), (64, 32, 3), b2)
    p["b_conv2"] = unif(next(keys), (64,), b2)

    bf = 1.0 / math.sqrt(64)
    p["w_fc"] = unif(next(keys), (hidden_dim, 64), bf)              # torch Linear: (out, in)
    p["b_fc"] = unif(next(keys), (hidden_dim,), bf)

    bg = 1.0 / math.sqrt(hidden_dim)
    gru = []
    for layer in range(num_layers):
        din = hidden_dim if layer == 0 else 2 * hidden_dim
        dirs = []
        for _ in range(2):                                          # forward, backward
            w_ih = unif(next(keys), (3 * hidden_dim, din), bg)
            w_hh = unif(next(keys), (3 * hidden_dim, hidden_dim), bg)
            b_ih = unif(next(keys), (3 * hidden_dim,), bg)
            b_hh = unif(next(keys), (3 * hidden_dim,), bg)
            dirs.append((w_ih, w_hh, b_ih, b_hh))
        gru.append(dirs)
    p["gru"] = gru

    bo = 1.0 / math.sqrt(2 * hidden_dim)
    p["w_out"] = unif(next(keys), (num_classes, 2 * hidden_dim), bo)
    p["b_out"] = unif(next(keys), (num_classes,), bo)
    return p


if __name__ == "__main__":
    key = jax.random.PRNGKey(0)
    kp, kx = jax.random.split(key)

    B, Cin, L = 2, 1, 32                                            # (batch, input_dim, seq_len)
    params = init_params(kp, input_dim=Cin)
    x = jax.random.normal(kx, (B, Cin, L), dtype=jnp.float32)

    fwd = jax.jit(naive_caller_forward)
    out = jax.block_until_ready(fwd(params, x))

    assert out.shape == (B, L // 2, 5), out.shape
    assert bool(jnp.all(jnp.isfinite(out)))
    print("KERNEL_OK")
</pallas_src>

<mosaic_0001>
module attributes {stable_mosaic.version = 11 : i64} {
  func.func @_linear_kernel(%arg0: i32, %arg1: memref<64x3xf32, #tpu.memory_space<vmem>>, %arg2: memref<3x32xf32, #tpu.memory_space<vmem>>, %arg3: memref<1x32xf32, #tpu.memory_space<vmem>>, %arg4: memref<64x32xf32, #tpu.memory_space<vmem>>) attributes {dimension_semantics = [#tpu.dimension_semantics<parallel>], iteration_bounds = array<i64: 1>, scalar_prefetch = 0 : i64, scratch_operands = 0 : i64, tpu.core_type = #tpu.core_type<tc>, window_params = [{transform_indices = @transform_0, window_bounds = array<i64: 64, 3>}, {pipeline_mode = #tpu.pipeline_mode<synchronous>, transform_indices = @transform_1, window_bounds = array<i64: 3, 32>}, {pipeline_mode = #tpu.pipeline_mode<synchronous>, transform_indices = @transform_2, window_bounds = array<i64: 1, 32>}, {transform_indices = @transform_3, window_bounds = array<i64: 64, 32>}]} {
    %c0 = arith.constant 0 : index
    %c0_0 = arith.constant 0 : index
    %0 = vector.load %arg1[%c0, %c0_0] : memref<64x3xf32, #tpu.memory_space<vmem>>, vector<64x3xf32>
    %c0_1 = arith.constant 0 : index
    %c0_2 = arith.constant 0 : index
    %1 = vector.load %arg2[%c0_1, %c0_2] : memref<3x32xf32, #tpu.memory_space<vmem>>, vector<3x32xf32>
    %2 = vector.extract_strided_slice %0 {offsets = [0, 0], sizes = [64, 1], strides = [1, 1]} : vector<64x3xf32> to vector<64x1xf32>
    %3 = vector.extract_strided_slice %1 {offsets = [0, 0], sizes = [1, 32], strides = [1, 1]} : vector<3x32xf32> to vector<1x32xf32>
    %4 = vector.broadcast %2 : vector<64x1xf32> to vector<64x32xf32>
    %5 = vector.broadcast %3 : vector<1x32xf32> to vector<64x32xf32>
    %6 = arith.mulf %4, %5 : vector<64x32xf32>
    %7 = vector.extract_strided_slice %0 {offsets = [0, 1], sizes = [64, 1], strides = [1, 1]} : vector<64x3xf32> to vector<64x1xf32>
    %8 = vector.extract_strided_slice %1 {offsets = [1, 0], sizes = [1, 32], strides = [1, 1]} : vector<3x32xf32> to vector<1x32xf32>
    %9 = vector.broadcast %7 : vector<64x1xf32> to vector<64x32xf32>
    %10 = vector.broadcast %8 : vector<1x32xf32> to vector<64x32xf32>
    %11 = arith.mulf %9, %10 : vector<64x32xf32>
    %12 = arith.addf %6, %11 : vector<64x32xf32>
    %13 = vector.extract_strided_slice %0 {offsets = [0, 2], sizes = [64, 1], strides = [1, 1]} : vector<64x3xf32> to vector<64x1xf32>
    %14 = vector.extract_strided_slice %1 {offsets = [2, 0], sizes = [1, 32], strides = [1, 1]} : vector<3x32xf32> to vector<1x32xf32>
    %15 = vector.broadcast %13 : vector<64x1xf32> to vector<64x32xf32>
    %16 = vector.broadcast %14 : vector<1x32xf32> to vector<64x32xf32>
    %17 = arith.mulf %15, %16 : vector<64x32xf32>
    %18 = arith.addf %12, %17 : vector<64x32xf32>
    %c0_3 = arith.constant 0 : index
    %c0_4 = arith.constant 0 : index
    %19 = vector.load %arg3[%c0_3, %c0_4] : memref<1x32xf32, #tpu.memory_space<vmem>>, vector<1x32xf32>
    %20 = vector.broadcast %19 : vector<1x32xf32> to vector<64x32xf32>
    %21 = arith.addf %18, %20 : vector<64x32xf32>
    %cst = arith.constant 0.000000e+00 : f32
    %22 = vector.broadcast %cst : f32 to vector<64x32xf32>
    %23 = arith.maximumf %21, %22 : vector<64x32xf32>
    %c0_5 = arith.constant 0 : index
    %c0_6 = arith.constant 0 : index
    %24 = vector.load %arg4[%c0_5, %c0_6] : memref<64x32xf32, #tpu.memory_space<vmem>>, vector<64x32xf32>
    tpu.vector_store %arg4[%c0_5, %c0_6], %23 {strides = array<i32>} : memref<64x32xf32, #tpu.memory_space<vmem>>, vector<64x32xf32>,
    return
  }
  func.func @transform_0(%arg0: i32) -> (i32, i32) {
    %c0_i32 = arith.constant 0 : i32
    %c0_i32_0 = arith.constant 0 : i32
    return %arg0, %c0_i32 : i32, i32
  }
  func.func @transform_1(%arg0: i32) -> (i32, i32) {
    %c0_i32 = arith.constant 0 : i32
    %c0_i32_0 = arith.constant 0 : i32
    %c0_i32_1 = arith.constant 0 : i32
    return %c0_i32, %c0_i32_0 : i32, i32
  }
  func.func @transform_2(%arg0: i32) -> (i32, i32) {
    %c0_i32 = arith.constant 0 : i32
    %c0_i32_0 = arith.constant 0 : i32
    %c0_i32_1 = arith.constant 0 : i32
    return %c0_i32, %c0_i32_0 : i32, i32
  }
  func.func @transform_3(%arg0: i32) -> (i32, i32) {
    %c0_i32 = arith.constant 0 : i32
    %c0_i32_0 = arith.constant 0 : i32
    return %arg0, %c0_i32 : i32, i32
  }
}

module attributes {stable_mosaic.version = 11 : i64} {
  func.func @_maxpool2_kernel(%arg0: i32, %arg1: memref<32x64xf32, #tpu.memory_space<vmem>>, %arg2: memref<32x32xf32, #tpu.memory_space<vmem>>) attributes {dimension_semantics = [#tpu.dimension_semantics<parallel>], iteration_bounds = array<i64: 1>, scalar_prefetch = 0 : i64, scratch_operands = 0 : i64, tpu.core_type = #tpu.core_type<tc>, window_params = [{transform_indices = @transform_0, window_bounds = array<i64: 32, 64>}, {transform_indices = @transform_1, window_bounds = array<i64: 32, 32>}]} {
    %c0 = arith.constant 0 : index
    %c0_0 = arith.constant 0 : index
    %0 = vector.load %arg1[%c0, %c0_0] : memref<32x64xf32, #tpu.memory_space<vmem>>, vector<32x64xf32>
    %1 = vector.extract_strided_slice %0 {offsets = [0, 0], sizes = [32, 32], strides = [1, 1]} : vector<32x64xf32> to vector<32x32xf32>
    %2 = vector.extract_strided_slice %0 {offsets = [0, 32], sizes = [32, 32], strides = [1, 1]} : vector<32x64xf32> to vector<32x32xf32>
    %3 = arith.maximumf %1, %2 : vector<32x32xf32>
    %c0_1 = arith.constant 0 : index
    %c0_2 = arith.constant 0 : index
    %4 = vector.load %arg2[%c0_1, %c0_2] : memref<32x32xf32, #tpu.memory_space<vmem>>, vector<32x32xf32>
    tpu.vector_store %arg2[%c0_1, %c0_2], %3 {strides = array<i32>} : memref<32x32xf32, #tpu.memory_space<vmem>>, vector<32x32xf32>,
    return
  }
  func.func @transform_0(%arg0: i32) -> (i32, i32) {
    %c0_i32 = arith.constant 0 : i32
    %c0_i32_0 = arith.constant 0 : i32
    return %arg0, %c0_i32 : i32, i32
  }
  func.func @transform_1(%arg0: i32) -> (i32, i32) {
    %c0_i32 = arith.constant 0 : i32
    %c0_i32_0 = arith.constant 0 : i32
    return %arg0, %c0_i32 : i32, i32
  }
}

module attributes {stable_mosaic.version = 11 : i64} {
  func.func @_linear_kernel(%arg0: i32, %arg1: memref<32x96xf32, #tpu.memory_space<vmem>>, %arg2: memref<96x64xf32, #tpu.memory_space<vmem>>, %arg3: memref<1x64xf32, #tpu.memory_space<vmem>>, %arg4: memref<32x64xf32, #tpu.memory_space<vmem>>) attributes {dimension_semantics = [#tpu.dimension_semantics<parallel>], iteration_bounds = array<i64: 1>, scalar_prefetch = 0 : i64, scratch_operands = 0 : i64, tpu.core_type = #tpu.core_type<tc>, window_params = [{transform_indices = @transform_0, window_bounds = array<i64: 32, 96>}, {pipeline_mode = #tpu.pipeline_mode<synchronous>, transform_indices = @transform_1, window_bounds = array<i64: 96, 64>}, {pipeline_mode = #tpu.pipeline_mode<synchronous>, transform_indices = @transform_2, window_bounds = array<i64: 1, 64>}, {transform_indices = @transform_3, window_bounds = array<i64: 32, 64>}]} {
    %c0 = arith.constant 0 : index
    %c0_0 = arith.constant 0 : index
    %0 = vector.load %arg1[%c0, %c0_0] : memref<32x96xf32, #tpu.memory_space<vmem>>, vector<32x96xf32>
    %c0_1 = arith.constant 0 : index
    %c0_2 = arith.constant 0 : index
    %1 = vector.load %arg2[%c0_1, %c0_2] : memref<96x64xf32, #tpu.memory_space<vmem>>, vector<96x64xf32>
    %cst = arith.constant dense<0.000000e+00> : vector<32x64xf32>
    %2 = tpu.matmul %0, %1, %cst {dimension_numbers = #tpu.dot_dimension_numbers<[1], [0], [0], [1], [0, 0, 1, 1], [], []>} : vector<32x96xf32>, vector<96x64xf32>, vector<32x64xf32> -> vector<32x64xf32>
    %c0_3 = arith.constant 0 : index
    %c0_4 = arith.constant 0 : index
    %3 = vector.load %arg3[%c0_3, %c0_4] : memref<1x64xf32, #tpu.memory_space<vmem>>, vector<1x64xf32>
    %4 = vector.broadcast %3 : vector<1x64xf32> to vector<32x64xf32>
    %5 = arith.addf %2, %4 : vector<32x64xf32>
    %cst_5 = arith.constant 0.000000e+00 : f32
    %6 = vector.broadcast %cst_5 : f32 to vector<32x64xf32>
    %7 = arith.maximumf %5, %6 : vector<32x64xf32>
    %c0_6 = arith.constant 0 : index
    %c0_7 = arith.constant 0 : index
    %8 = vector.load %arg4[%c0_6, %c0_7] : memref<32x64xf32, #tpu.memory_space<vmem>>, vector<32x64xf32>
    tpu.vector_store %arg4[%c0_6, %c0_7], %7 {strides = array<i32>} : memref<32x64xf32, #tpu.memory_space<vmem>>, vector<32x64xf32>,
    return
  }
  func.func @transform_0(%arg0: i32) -> (i32, i32) {
    %c0_i32 = arith.constant 0 : i32
    %c0_i32_0 = arith.constant 0 : i32
    return %arg0, %c0_i32 : i32, i32
  }
  func.func @transform_1(%arg0: i32) -> (i32, i32) {
    %c0_i32 = arith.constant 0 : i32
    %c0_i32_0 = arith.constant 0 : i32
    %c0_i32_1 = arith.constant 0 : i32
    return %c0_i32, %c0_i32_0 : i32, i32
  }
  func.func @transform_2(%arg0: i32) -> (i32, i32) {
    %c0_i32 = arith.constant 0 : i32
    %c0_i32_0 = arith.constant 0 : i32
    %c0_i32_1 = arith.constant 0 : i32
    return %c0_i32, %c0_i32_0 : i32, i32
  }
  func.func @transform_3(%arg0: i32) -> (i32, i32) {
    %c0_i32 = arith.constant 0 : i32
    %c0_i32_0 = arith.constant 0 : i32
    return %arg0, %c0_i32 : i32, i32
  }
}

module attributes {stable_mosaic.version = 11 : i64} {
  func.func @_linear_kernel(%arg0: i32, %arg1: memref<32x64xf32, #tpu.memory_space<vmem>>, %arg2: memref<64x128xf32, #tpu.memory_space<vmem>>, %arg3: memref<1x128xf32, #tpu.memory_space<vmem>>, %arg4: memref<32x128xf32, #tpu.memory_space<vmem>>) attributes {dimension_semantics = [#tpu.dimension_semantics<parallel>], iteration_bounds = array<i64: 1>, scalar_prefetch = 0 : i64, scratch_operands = 0 : i64, tpu.core_type = #tpu.core_type<tc>, window_params = [{transform_indices = @transform_0, window_bounds = array<i64: 32, 64>}, {pipeline_mode = #tpu.pipeline_mode<synchronous>, transform_indices = @transform_1, window_bounds = array<i64: 64, 128>}, {pipeline_mode = #tpu.pipeline_mode<synchronous>, transform_indices = @transform_2, window_bounds = array<i64: 1, 128>}, {transform_indices = @transform_3, window_bounds = array<i64: 32, 128>}]} {
    %c0 = arith.constant 0 : index
    %c0_0 = arith.constant 0 : index
    %0 = vector.load %arg1[%c0, %c0_0] : memref<32x64xf32, #tpu.memory_space<vmem>>, vector<32x64xf32>
    %c0_1 = arith.constant 0 : index
    %c0_2 = arith.constant 0 : index
    %1 = vector.load %arg2[%c0_1, %c0_2] : memref<64x128xf32, #tpu.memory_space<vmem>>, vector<64x128xf32>
    %cst = arith.constant dense<0.000000e+00> : vector<32x128xf32>
    %2 = tpu.matmul %0, %1, %cst {dimension_numbers = #tpu.dot_dimension_numbers<[1], [0], [0], [1], [0, 0, 1, 1], [], []>} : vector<32x64xf32>, vector<64x128xf32>, vector<32x128xf32> -> vector<32x128xf32>
    %c0_3 = arith.constant 0 : index
    %c0_4 = arith.constant 0 : index
    %3 = vector.load %arg3[%c0_3, %c0_4] : memref<1x128xf32, #tpu.memory_space<vmem>>, vector<1x128xf32>
    %4 = vector.broadcast %3 : vector<1x128xf32> to vector<32x128xf32>
    %5 = arith.addf %2, %4 : vector<32x128xf32>
    %cst_5 = arith.constant 0.000000e+00 : f32
    %6 = vector.broadcast %cst_5 : f32 to vector<32x128xf32>
    %7 = arith.maximumf %5, %6 : vector<32x128xf32>
    %c0_6 = arith.constant 0 : index
    %c0_7 = arith.constant 0 : index
    %8 = vector.load %arg4[%c0_6, %c0_7] : memref<32x128xf32, #tpu.memory_space<vmem>>, vector<32x128xf32>
    tpu.vector_store %arg4[%c0_6, %c0_7], %7 {strides = array<i32>} : memref<32x128xf32, #tpu.memory_space<vmem>>, vector<32x128xf32>,
    return
  }
  func.func @transform_0(%arg0: i32) -> (i32, i32) {
    %c0_i32 = arith.constant 0 : i32
    %c0_i32_0 = arith.constant 0 : i32
    return %arg0, %c0_i32 : i32, i32
  }
  func.func @transform_1(%arg0: i32) -> (i32, i32) {
    %c0_i32 = arith.constant 0 : i32
    %c0_i32_0 = arith.constant 0 : i32
    %c0_i32_1 = arith.constant 0 : i32
    return %c0_i32, %c0_i32_0 : i32, i32
  }
  func.func @transform_2(%arg0: i32) -> (i32, i32) {
    %c0_i32 = arith.constant 0 : i32
    %c0_i32_0 = arith.constant 0 : i32
    %c0_i32_1 = arith.constant 0 : i32
    return %c0_i32, %c0_i32_0 : i32, i32
  }
  func.func @transform_3(%arg0: i32) -> (i32, i32) {
    %c0_i32 = arith.constant 0 : i32
    %c0_i32_0 = arith.constant 0 : i32
    return %arg0, %c0_i32 : i32, i32
  }
}

module attributes {stable_mosaic.version = 11 : i64} {
  func.func @_linear_kernel(%arg0: i32, %arg1: memref<32x128xf32, #tpu.memory_space<vmem>>, %arg2: memref<128x768xf32, #tpu.memory_space<vmem>>, %arg3: memref<1x768xf32, #tpu.memory_space<vmem>>, %arg4: memref<32x768xf32, #tpu.memory_space<vmem>>) attributes {dimension_semantics = [#tpu.dimension_semantics<parallel>], iteration_bounds = array<i64: 1>, scalar_prefetch = 0 : i64, scratch_operands = 0 : i64, tpu.core_type = #tpu.core_type<tc>, window_params = [{transform_indices = @transform_0, window_bounds = array<i64: 32, 128>}, {pipeline_mode = #tpu.pipeline_mode<synchronous>, transform_indices = @transform_1, window_bounds = array<i64: 128, 768>}, {pipeline_mode = #tpu.pipeline_mode<synchronous>, transform_indices = @transform_2, window_bounds = array<i64: 1, 768>}, {transform_indices = @transform_3, window_bounds = array<i64: 32, 768>}]} {
    %c0 = arith.constant 0 : index
    %c0_0 = arith.constant 0 : index
    %0 = vector.load %arg1[%c0, %c0_0] : memref<32x128xf32, #tpu.memory_space<vmem>>, vector<32x128xf32>
    %c0_1 = arith.constant 0 : index
    %c0_2 = arith.constant 0 : index
    %1 = vector.load %arg2[%c0_1, %c0_2] : memref<128x768xf32, #tpu.memory_space<vmem>>, vector<128x768xf32>
    %cst = arith.constant dense<0.000000e+00> : vector<32x768xf32>
    %2 = tpu.matmul %0, %1, %cst {dimension_numbers = #tpu.dot_dimension_numbers<[1], [0], [0], [1], [0, 0, 1, 1], [], []>} : vector<32x128xf32>, vector<128x768xf32>, vector<32x768xf32> -> vector<32x768xf32>
    %c0_3 = arith.constant 0 : index
    %c0_4 = arith.constant 0 : index
    %3 = vector.load %arg3[%c0_3, %c0_4] : memref<1x768xf32, #tpu.memory_space<vmem>>, vector<1x768xf32>
    %4 = vector.broadcast %3 : vector<1x768xf32> to vector<32x768xf32>
    %5 = arith.addf %2, %4 : vector<32x768xf32>
    %c0_5 = arith.constant 0 : index
    %c0_6 = arith.constant 0 : index
    %6 = vector.load %arg4[%c0_5, %c0_6] : memref<32x768xf32, #tpu.memory_space<vmem>>, vector<32x768xf32>
    tpu.vector_store %arg4[%c0_5, %c0_6], %5 {strides = array<i32>} : memref<32x768xf32, #tpu.memory_space<vmem>>, vector<32x768xf32>,
    return
  }
  func.func @transform_0(%arg0: i32) -> (i32, i32) {
    %c0_i32 = arith.constant 0 : i32
    %c0_i32_0 = arith.constant 0 : i32
    return %arg0, %c0_i32 : i32, i32
  }
  func.func @transform_1(%arg0: i32) -> (i32, i32) {
    %c0_i32 = arith.constant 0 : i32
    %c0_i32_0 = arith.constant 0 : i32
    %c0_i32_1 = arith.constant 0 : i32
    return %c0_i32, %c0_i32_0 : i32, i32
  }
  func.func @transform_2(%arg0: i32) -> (i32, i32) {
    %c0_i32 = arith.constant 0 : i32
    %c0_i32_0 = arith.constant 0 : i32
    %c0_i32_1 = arith.constant 0 : i32
    return %c0_i32, %c0_i32_0 : i32, i32
  }
  func.func @transform_3(%arg0: i32) -> (i32, i32) {
    %c0_i32 = arith.constant 0 : i32
    %c0_i32_0 = arith.constant 0 : i32
    return %arg0, %c0_i32 : i32, i32
  }
}

module attributes {stable_mosaic.version = 11 : i64} {
  func.func @_bigru_kernel(%arg0: i32, %arg1: memref<2x16x384xf32, #tpu.memory_space<vmem>>, %arg2: memref<2x16x384xf32, #tpu.memory_space<vmem>>, %arg3: memref<128x384xf32, #tpu.memory_space<vmem>>, %arg4: memref<1x384xf32, #tpu.memory_space<vmem>>, %arg5: memref<128x384xf32, #tpu.memory_space<vmem>>, %arg6: memref<1x384xf32, #tpu.memory_space<vmem>>, %arg7: memref<2x16x128xf32, #tpu.memory_space<vmem>>, %arg8: memref<2x16x128xf32, #tpu.memory_space<vmem>>, %arg9: memref<2x128xf32, #tpu.memory_space<vmem>>, %arg10: memref<2x128xf32, #tpu.memory_space<vmem>>) attributes {dimension_semantics = [#tpu.dimension_semantics<arbitrary>], iteration_bounds = array<i64: 1>, scalar_prefetch = 0 : i64, scratch_operands = 2 : i64, tpu.core_type = #tpu.core_type<tc>, window_params = [{transform_indices = @transform_0, window_bounds = array<i64: 2, 16, 384>}, {transform_indices = @transform_1, window_bounds = array<i64: 2, 16, 384>}, {pipeline_mode = #tpu.pipeline_mode<synchronous>, transform_indices = @transform_2, window_bounds = array<i64: 128, 384>}, {pipeline_mode = #tpu.pipeline_mode<synchronous>, transform_indices = @transform_3, window_bounds = array<i64: 1, 384>}, {pipeline_mode = #tpu.pipeline_mode<synchronous>, transform_indices = @transform_4, window_bounds = array<i64: 128, 384>}, {pipeline_mode = #tpu.pipeline_mode<synchronous>, transform_indices = @transform_5, window_bounds = array<i64: 1, 384>}, {transform_indices = @transform_6, window_bounds = array<i64: 2, 16, 128>}, {transform_indices = @transform_7, window_bounds = array<i64: 2, 16, 128>}]} {
    %c0_i32 = arith.constant 0 : i32
    %0 = arith.cmpi eq, %arg0, %c0_i32 : i32
    %1 = arith.extui %0 : i1 to i32
    %c0_i32_0 = arith.constant 0 : i32
    %2 = arith.cmpi ne, %1, %c0_i32_0 : i32
    scf.if %2 {
      %cst_320 = arith.constant 0.000000e+00 : f32
      %1099 = vector.broadcast %cst_320 : f32 to vector<2x128xf32>
      %c0_321 = arith.constant 0 : index
      %c0_322 = arith.constant 0 : index
      %1100 = vector.load %arg9[%c0_321, %c0_322] : memref<2x128xf32, #tpu.memory_space<vmem>>, vector<2x128xf32>
      tpu.vector_store %arg9[%c0_321, %c0_322], %1099 {strides = array<i32>} : memref<2x128xf32, #tpu.memory_space<vmem>>, vector<2x128xf32>,
      %cst_323 = arith.constant 0.000000e+00 : f32
      %1101 = vector.broadcast %cst_323 : f32 to vector<2x128xf32>
      %c0_324 = arith.constant 0 : index
      %c0_325 = arith.constant 0 : index
      %1102 = vector.load %arg10[%c0_324, %c0_325] : memref<2x128xf32, #tpu.memory_space<vmem>>, vector<2x128xf32>
      tpu.vector_store %arg10[%c0_324, %c0_325], %1101 {strides = array<i32>} : memref<2x128xf32, #tpu.memory_space<vmem>>, vector<2x128xf32>,
    } else {
    }
    %c0 = arith.constant 0 : index
    %c0_1 = arith.constant 0 : index
    %3 = vector.load %arg3[%c0, %c0_1] : memref<128x384xf32, #tpu.memory_space<vmem>>, vector<128x384xf32>
    %c0_2 = arith.constant 0 : index
    %c0_3 = arith.constant 0 : index
    %4 = vector.load %arg4[%c0_2, %c0_3] : memref<1x384xf32, #tpu.memory_space<vmem>>, vector<1x384xf32>
    %c0_4 = arith.constant 0 : index
    %c0_5 = arith.constant 0 : index
    %5 = vector.load %arg5[%c0_4, %c0_5] : memref<128x384xf32, #tpu.memory_space<vmem>>, vector<128x384xf32>
    %c0_6 = arith.constant 0 : index
    %c0_7 = arith.constant 0 : index
    %6 = vector.load %arg6[%c0_6, %c0_7] : memref<1x384xf32, #tpu.memory_space<vmem>>, vector<1x384xf32>
    %c0_8 = arith.constant 0 : index
    %c0_9 = arith.constant 0 : index
    %7 = vector.load %arg9[%c0_8, %c0_9] : memref<2x128xf32, #tpu.memory_space<vmem>>, vector<2x128xf32>
    %c0_10 = arith.constant 0 : index
    %c0_11 = arith.constant 0 : index
    %8 = vector.load %arg10[%c0_10, %c0_11] : memref<2x128xf32, #tpu.memory_space<vmem>>, vector<2x128xf32>
    %c0_12 = arith.constant 0 : index
    %c0_13 = arith.constant 0 : index
    %c0_14 = arith.constant 0 : index
    %9 = vector.load %arg1[%c0_12, %c0_13, %c0_14] : memref<2x16x384xf32, #tpu.memory_space<vmem>>, vector<2x1x384xf32>
    %10 = vector.shape_cast %9 : vector<2x1x384xf32> to vector<2x384xf32>
    %cst = arith.constant dense<0.000000e+00> : vector<2x384xf32>
    %11 = tpu.matmul %7, %3, %cst {dimension_numbers = #tpu.dot_dimension_numbers<[1], [0], [0], [1], [0, 0, 1, 1], [], []>} : vector<2x128xf32>, vector<128x384xf32>, vector<2x384xf32> -> vector<2x384xf32>
    %12 = vector.broadcast %4 : vector<1x384xf32> to vector<2x384xf32>
    %13 = arith.addf %11, %12 : vector<2x384xf32>
    %14 = vector.extract_strided_slice %10 {offsets = [0, 0], sizes = [2, 128], strides = [1, 1]} : vector<2x384xf32> to vector<2x128xf32>
    %15 = vector.extract_strided_slice %13 {offsets = [0, 0], sizes = [2, 128], strides = [1, 1]} : vector<2x384xf32> to vector<2x128xf32>
    %16 = arith.addf %14, %15 : vector<2x128xf32>
    %17 = arith.negf %16 : vector<2x128xf32>
    %18 = math.exp %17 : vector<2x128xf32>
    %cst_15 = arith.constant 1.000000e+00 : f32
    %19 = vector.broadcast %cst_15 : f32 to vector<2x128xf32>
    %20 = arith.addf %19, %18 : vector<2x128xf32>
    %21 = arith.divf %19, %20 : vector<2x128xf32>
    %22 = vector.extract_strided_slice %10 {offsets = [0, 128], sizes = [2, 128], strides = [1, 1]} : vector<2x384xf32> to vector<2x128xf32>
    %23 = vector.extract_strided_slice %13 {offsets = [0, 128], sizes = [2, 128], strides = [1, 1]} : vector<2x384xf32> to vector<2x128xf32>
    %24 = arith.addf %22, %23 : vector<2x128xf32>
    %25 = arith.negf %24 : vector<2x128xf32>
    %26 = math.exp %25 : vector<2x128xf32>
    %cst_16 = arith.constant 1.000000e+00 : f32
    %27 = vector.broadcast %cst_16 : f32 to vector<2x128xf32>
    %28 = arith.addf %27, %26 : vector<2x128xf32>
    %29 = arith.divf %27, %28 : vector<2x128xf32>
    %30 = vector.extract_strided_slice %10 {offsets = [0, 256], sizes = [2, 128], strides = [1, 1]} : vector<2x384xf32> to vector<2x128xf32>
    %31 = vector.extract_strided_slice %13 {offsets = [0, 256], sizes = [2, 128], strides = [1, 1]} : vector<2x384xf32> to vector<2x128xf32>
    %32 = arith.mulf %21, %31 : vector<2x128xf32>
    %33 = arith.addf %30, %32 : vector<2x128xf32>
    %34 = math.tanh %33 : vector<2x128xf32>
    %cst_17 = arith.constant 1.000000e+00 : f32
    %35 = vector.broadcast %cst_17 : f32 to vector<2x128xf32>
    %36 = arith.subf %35, %29 : vector<2x128xf32>
    %37 = arith.mulf %36, %34 : vector<2x128xf32>
    %38 = arith.mulf %29, %7 : vector<2x128xf32>
    %39 = arith.addf %37, %38 : vector<2x128xf32>
    %c0_18 = arith.constant 0 : index
    %c0_19 = arith.constant 0 : index
    %c0_20 = arith.constant 0 : index
    %40 = vector.load %arg7[%c0_18, %c0_19, %c0_20] : memref<2x16x128xf32, #tpu.memory_space<vmem>>, vector<2x1x128xf32>
    %41 = vector.shape_cast %40 : vector<2x1x128xf32> to vector<2x128xf32>
    %42 = vector.shape_cast %39 : vector<2x128xf32> to vector<2x1x128xf32>
    tpu.vector_store %arg7[%c0_18, %c0_19, %c0_20], %42 {strides = array<i32>} : memref<2x16x128xf32, #tpu.memory_space<vmem>>, vector<2x1x128xf32>,
    %c0_21 = arith.constant 0 : index
    %c15 = arith.constant 15 : index
    %c0_22 = arith.constant 0 : index
    %43 = vector.load %arg2[%c0_21, %c15, %c0_22] : memref<2x16x384xf32, #tpu.memory_space<vmem>>, vector<2x1x384xf32>
    %44 = vector.shape_cast %43 : vector<2x1x384xf32> to vector<2x384xf32>
    %cst_23 = arith.constant dense<0.000000e+00> : vector<2x384xf32>
    %45 = tpu.matmul %8, %5, %cst_23 {dimension_numbers = #tpu.dot_dimension_numbers<[1], [0], [0], [1], [0, 0, 1, 1], [], []>} : vector<2x128xf32>, vector<128x384xf32>, vector<2x384xf32> -> vector<2x384xf32>
    %46 = vector.broadcast %6 : vector<1x384xf32> to vector<2x384xf32>
    %47 = arith.addf %45, %46 : vector<2x384xf32>
    %48 = vector.extract_strided_slice %44 {offsets = [0, 0], sizes = [2, 128], strides = [1, 1]} : vector<2x384xf32> to vector<2x128xf32>
    %49 = vector.extract_strided_slice %47 {offsets = [0, 0], sizes = [2, 128], strides = [1, 1]} : vector<2x384xf32> to vector<2x128xf32>
    %50 = arith.addf %48, %49 : vector<2x128xf32>
    %51 = arith.negf %50 : vector<2x128xf32>
    %52 = math.exp %51 : vector<2x128xf32>
    %cst_24 = arith.constant 1.000000e+00 : f32
    %53 = vector.broadcast %cst_24 : f32 to vector<2x128xf32>
    %54 = arith.addf %53, %52 : vector<2x128xf32>
    %55 = arith.divf %53, %54 : vector<2x128xf32>
    %56 = vector.extract_strided_slice %44 {offsets = [0, 128], sizes = [2, 128], strides = [1, 1]} : vector<2x384xf32> to vector<2x128xf32>
    %57 = vector.extract_strided_slice %47 {offsets = [0, 128], sizes = [2, 128], strides = [1, 1]} : vector<2x384xf32> to vector<2x128xf32>
    %58 = arith.addf %56, %57 : vector<2x128xf32>
    %59 = arith.negf %58 : vector<2x128xf32>
    %60 = math.exp %59 : vector<2x128xf32>
    %cst_25 = arith.constant 1.000000e+00 : f32
    %61 = vector.broadcast %cst_25 : f32 to vector<2x128xf32>
    %62 = arith.addf %61, %60 : vector<2x128xf32>
    %63 = arith.divf %61, %62 : vector<2x128xf32>
    %64 = vector.extract_strided_slice %44 {offsets = [0, 256], sizes = [2, 128], strides = [1, 1]} : vector<2x384xf32> to vector<2x128xf32>
    %65 = vector.extract_strided_slice %47 {offsets = [0, 256], sizes = [2, 128], strides = [1, 1]} : vector<2x384xf32> to vector<2x128xf32>
    %66 = arith.mulf %55, %65 : vector<2x128xf32>
    %67 = arith.addf %64, %66 : vector<2x128xf32>
    %68 = math.tanh %67 : vector<2x128xf32>
    %cst_26 = arith.constant 1.000000e+00 : f32
    %69 = vector.broadcast %cst_26 : f32 to vector<2x128xf32>
    %70 = arith.subf %69, %63 : vector<2x128xf32>
    %71 = arith.mulf %70, %68 : vector<2x128xf32>
    %72 = arith.mulf %63, %8 : vector<2x128xf32>
    %73 = arith.addf %71, %72 : vector<2x128xf32>
    %c0_27 = arith.constant 0 : index
    %c15_28 = arith.constant 15 : index
    %c0_29 = arith.constant 0 : index
    %74 = vector.load %arg8[%c0_27, %c15_28, %c0_29] : memref<2x16x128xf32, #tpu.memory_space<vmem>>, vector<2x1x128xf32>
    %75 = vector.shape_cast %74 : vector<2x1x128xf32> to vector<2x128xf32>
    %76 = vector.shape_cast %73 : vector<2x128xf32> to vector<2x1x128xf32>
    tpu.vector_store %arg8[%c0_27, %c15_28, %c0_29], %76 {strides = array<i32>} : memref<2x16x128xf32, #tpu.memory_space<vmem>>, vector<2x1x128xf32>,
    %c0_30 = arith.constant 0 : index
    %c1 = arith.constant 1 : index
    %c0_31 = arith.constant 0 : index
    %77 = vector.load %arg1[%c0_30, %c1, %c0_31] : memref<2x16x384xf32, #tpu.memory_space<vmem>>, vector<2x1x384xf32>
    %78 = vector.shape_cast %77 : vector<2x1x384xf32> to vector<2x384xf32>
    %cst_32 = arith.constant dense<0.000000e+00> : vector<2x384xf32>
    %79 = tpu.matmul %39, %3, %cst_32 {dimension_numbers = #tpu.dot_dimension_numbers<[1], [0], [0], [1], [0, 0, 1, 1], [], []>} : vector<2x128xf32>, vector<128x384xf32>, vector<2x384xf32> -> vector<2x384xf32>
    %80 = vector.broadcast %4 : vector<1x384xf32> to vector<2x384xf32>
    %81 = arith.addf %79, %80 : vector<2x384xf32>
    %82 = vector.extract_strided_slice %78 {offsets = [0, 0], sizes = [2, 128], strides = [1, 1]} : vector<2x384xf32> to vector<2x128xf32>
    %83 = vector.extract_strided_slice %81 {offsets = [0, 0], sizes = [2, 128], strides = [1, 1]} : vector<2x384xf32> to vector<2x128xf32>
    %84 = arith.addf %82, %83 : vector<2x128xf32>
    %85 = arith.negf %84 : vector<2x128xf32>
    %86 = math.exp %85 : vector<2x128xf32>
    %cst_33 = arith.constant 1.000000e+00 : f32
    %87 = vector.broadcast %cst_33 : f32 to vector<2x128xf32>
    %88 = arith.addf %87, %86 : vector<2x128xf32>
    %89 = arith.divf %87, %88 : vector<2x128xf32>
    %90 = vector.extract_strided_slice %78 {offsets = [0, 128], sizes = [2, 128], strides = [1, 1]} : vector<2x384xf32> to vector<2x128xf32>
    %91 = vector.extract_strided_slice %81 {offsets = [0, 128], sizes = [2, 128], strides = [1, 1]} : vector<2x384xf32> to vector<2x128xf32>
    %92 = arith.addf %90, %91 : vector<2x128xf32>
    %93 = arith.negf %92 : vector<2x128xf32>
    %94 = math.exp %93 : vector<2x128xf32>
    %cst_34 = arith.constant 1.000000e+00 : f32
    %95 = vector.broadcast %cst_34 : f32 to vector<2x128xf32>
    %96 = arith.addf %95, %94 : vector<2x128xf32>
    %97 = arith.divf %95, %96 : vector<2x128xf32>
    %98 = vector.extract_strided_slice %78 {offsets = [0, 256], sizes = [2, 128], strides = [1, 1]} : vector<2x384xf32> to vector<2x128xf32>
    %99 = vector.extract_strided_slice %81 {offsets = [0, 256], sizes = [2, 128], strides = [1, 1]} : vector<2x384xf32> to vector<2x128xf32>
    %100 = arith.mulf %89, %99 : vector<2x128xf32>
    %101 = arith.addf %98, %100 : vector<2x128xf32>
    %102 = math.tanh %101 : vector<2x128xf32>
    %cst_35 = arith.constant 1.000000e+00 : f32
    %103 = vector.broadcast %cst_35 : f32 to vector<2x128xf32>
    %104 = arith.subf %103, %97 : vector<2x128xf32>
    %105 = arith.mulf %104, %102 : vector<2x128xf32>
    %106 = arith.mulf %97, %39 : vector<2x128xf32>
    %107 = arith.addf %105, %106 : vector<2x128xf32>
    %c0_36 = arith.constant 0 : index
    %c1_37 = arith.constant 1 : index
    %c0_38 = arith.constant 0 : index
    %108 = vector.load %arg7[%c0_36, %c1_37, %c0_38] : memref<2x16x128xf32, #tpu.memory_space<vmem>>, vector<2x1x128xf32>
    %109 = vector.shape_cast %108 : vector<2x1x128xf32> to vector<2x128xf32>
    %110 = vector.shape_cast %107 : vector<2x128xf32> to vector<2x1x128xf32>
    tpu.vector_store %arg7[%c0_36, %c1_37, %c0_38], %110 {strides = array<i32>} : memref<2x16x128xf32, #tpu.memory_space<vmem>>, vector<2x1x128xf32>,
    %c0_39 = arith.constant 0 : index
    %c14 = arith.constant 14 : index
    %c0_40 = arith.constant 0 : index
    %111 = vector.load %arg2[%c0_39, %c14, %c0_40] : memref<2x16x384xf32, #tpu.memory_space<vmem>>, vector<2x1x384xf32>
    %112 = vector.shape_cast %111 : vector<2x1x384xf32> to vector<2x384xf32>
    %cst_41 = arith.constant dense<0.000000e+00> : vector<2x384xf32>
    %113 = tpu.matmul %73, %5, %cst_41 {dimension_numbers = #tpu.dot_dimension_numbers<[1], [0], [0], [1], [0, 0, 1, 1], [], []>} : vector<2x128xf32>, vector<128x384xf32>, vector<2x384xf32> -> vector<2x384xf32>
    %114 = vector.broadcast %6 : vector<1x384xf32> to vector<2x384xf32>
    %115 = arith.addf %113, %114 : vector<2x384xf32>
    %116 = vector.extract_strided_slice %112 {offsets = [0, 0], sizes = [2, 128], strides = [1, 1]} : vector<2x384xf32> to vector<2x128xf32>
    %117 = vector.extract_strided_slice %115 {offsets = [0, 0], sizes = [2, 128], strides = [1, 1]} : vector<2x384xf32> to vector<2x128xf32>
    %118 = arith.addf %116, %117 : vector<2x128xf32>
    %119 = arith.negf %118 : vector<2x128xf32>
    %120 = math.exp %119 : vector<2x128xf32>
    %cst_42 = arith.constant 1.000000e+00 : f32
    %121 = vector.broadcast %cst_42 : f32 to vector<2x128xf32>
    %122 = arith.addf %121, %120 : vector<2x128xf32>
    %123 = arith.divf %121, %122 : vector<2x128xf32>
    %124 = vector.extract_strided_slice %112 {offsets = [0, 128], sizes = [2, 128], strides = [1, 1]} : vector<2x384xf32> to vector<2x128xf32>
    %125 = vector.extract_strided_slice %115 {offsets = [0, 128], sizes = [2, 128], strides = [1, 1]} : vector<2x384xf32> to vector<2x128xf32>
    %126 = arith.addf %124, %125 : vector<2x128xf32>
    %127 = arith.negf %126 : vector<2x128xf32>
    %128 = math.exp %127 : vector<2x128xf32>
    %cst_43 = arith.constant 1.000000e+00 : f32
    %129 = vector.broadcast %cst_43 : f32 to vector<2x128xf32>
    %130 = arith.addf %129, %128 : vector<2x128xf32>
    %131 = arith.divf %129, %130 : vector<2x128xf32>
    %132 = vector.extract_strided_slice %112 {offsets = [0, 256], sizes = [2, 128], strides = [1, 1]} : vector<2x384xf32> to vector<2x128xf32>
    %133 = vector.extract_strided_slice %115 {offsets = [0, 256], sizes = [2, 128], strides = [1, 1]} : vector<2x384xf32> to vector<2x128xf32>
    %134 = arith.mulf %123, %133 : vector<2x128xf32>
    %135 = arith.addf %132, %134 : vector<2x128xf32>
    %136 = math.tanh %135 : vector<2x128xf32>
    %cst_44 = arith.constant 1.000000e+00 : f32
    %137 = vector.broadcast %cst_44 : f32 to vector<2x128xf32>
    %138 = arith.subf %137, %131 : vector<2x128xf32>
    %139 = arith.mulf %138, %136 : vector<2x128xf32>
    %140 = arith.mulf %131, %73 : vector<2x128xf32>
    %141 = arith.addf %139, %140 : vector<2x128xf32>
    %c0_45 = arith.constant 0 : index
    %c14_46 = arith.constant 14 : index
    %c0_47 = arith.constant 0 : index
    %142 = vector.load %arg8[%c0_45, %c14_46, %c0_47] : memref<2x16x128xf32, #tpu.memory_space<vmem>>, vector<2x1x128xf32>
    %143 = vector.shape_cast %142 : vector<2x1x128xf32> to vector<2x128xf32>
    %144 = vector.shape_cast %141 : vector<2x128xf32> to vector<2x1x128xf32>
    tpu.vector_store %arg8[%c0_45, %c14_46, %c0_47], %144 {strides = array<i32>} : memref<2x16x128xf32, #tpu.memory_space<vmem>>, vector<2x1x128xf32>,
    %c0_48 = arith.constant 0 : index
    %c2 = arith.constant 2 : index
    %c0_49 = arith.constant 0 : index
    %145 = vector.load %arg1[%c0_48, %c2, %c0_49] : memref<2x16x384xf32, #tpu.memory_space<vmem>>, vector<2x1x384xf32>
    %146 = vector.shape_cast %145 : vector<2x1x384xf32> to vector<2x384xf32>
    %cst_50 = arith.constant dense<0.000000e+00> : vector<2x384xf32>
    %147 = tpu.matmul %107, %3, %cst_50 {dimension_numbers = #tpu.dot_dimension_numbers<[1], [0], [0], [1], [0, 0, 1, 1], [], []>} : vector<2x128xf32>, vector<128x384xf32>, vector<2x384xf32> -> vector<2x384xf32>
    %148 = vector.broadcast %4 : vector<1x384xf32> to vector<2x384xf32>
    %149 = arith.addf %147, %148 : vector<2x384xf32>
    %150 = vector.extract_strided_slice %146 {offsets = [0, 0], sizes = [2, 128], strides = [1, 1]} : vector<2x384xf32> to vector<2x128xf32>
    %151 = vector.extract_strided_slice %149 {offsets = [0, 0], sizes = [2, 128], strides = [1, 1]} : vector<2x384xf32> to vector<2x128xf32>
    %152 = arith.addf %150, %151 : vector<2x128xf32>
    %153 = arith.negf %152 : vector<2x128xf32>
    %154 = math.exp %153 : vector<2x128xf32>
    %cst_51 = arith.constant 1.000000e+00 : f32
    %155 = vector.broadcast %cst_51 : f32 to vector<2x128xf32>
    %156 = arith.addf %155, %154 : vector<2x128xf32>
    %157 = arith.divf %155, %156 : vector<2x128xf32>
    %158 = vector.extract_strided_slice %146 {offsets = [0, 128], sizes = [2, 128], strides = [1, 1]} : vector<2x384xf32> to vector<2x128xf32>
    %159 = vector.extract_strided_slice %149 {offsets = [0, 128], sizes = [2, 128], strides = [1, 1]} : vector<2x384xf32> to vector<2x128xf32>
    %160 = arith.addf %158, %159 : vector<2x128xf32>
    %161 = arith.negf %160 : vector<2x128xf32>
    %162 = math.exp %161 : vector<2x128xf32>
    %cst_52 = arith.constant 1.000000e+00 : f32
    %163 = vector.broadcast %cst_52 : f32 to vector<2x128xf32>
    %164 = arith.addf %163, %162 : vector<2x128xf32>
    %165 = arith.divf %163, %164 : vector<2x128xf32>
    %166 = vector.extract_strided_slice %146 {offsets = [0, 256], sizes = [2, 128], strides = [1, 1]} : vector<2x384xf32> to vector<2x128xf32>
    %167 = vector.extract_strided_slice %149 {offsets = [0, 256], sizes = [2, 128], strides = [1, 1]} : vector<2x384xf32> to vector<2x128xf32>
    %168 = arith.mulf %157, %167 : vector<2x128xf32>
    %169 = arith.addf %166, %168 : vector<2x128xf32>
    %170 = math.tanh %169 : vector<2x128xf32>
    %cst_53 = arith.constant 1.000000e+00 : f32
    %171 = vector.broadcast %cst_53 : f32 to vector<2x128xf32>
    %172 = arith.subf %171, %165 : vector<2x128xf32>
    %173 = arith.mulf %172, %170 : vector<2x128xf32>
    %174 = arith.mulf %165, %107 : vector<2x128xf32>
    %175 = arith.addf %173, %174 : vector<2x128xf32>
    %c0_54 = arith.constant 0 : index
    %c2_55 = arith.constant 2 : index
    %c0_56 = arith.constant 0 : index
    %176 = vector.load %arg7[%c0_54, %c2_55, %c0_56] : memref<2x16x128xf32, #tpu.memory_space<vmem>>, vector<2x1x128xf32>
    %177 = vector.shape_cast %176 : vector<2x1x128xf32> to vector<2x128xf32>
    %178 = vector.shape_cast %175 : vector<2x128xf32> to vector<2x1x128xf32>
    tpu.vector_store %arg7[%c0_54, %c2_55, %c0_56], %178 {strides = array<i32>} : memref<2x16x128xf32, #tpu.memory_space<vmem>>, vector<2x1x128xf32>,
    %c0_57 = arith.constant 0 : index
    %c13 = arith.constant 13 : index
    %c0_58 = arith.constant 0 : index
    %179 = vector.load %arg2[%c0_57, %c13, %c0_58] : memref<2x16x384xf32, #tpu.memory_space<vmem>>, vector<2x1x384xf32>
    %180 = vector.shape_cast %179 : vector<2x1x384xf32> to vector<2x384xf32>
    %cst_59 = arith.constant dense<0.000000e+00> : vector<2x384xf32>
    %181 = tpu.matmul %141, %5, %cst_59 {dimension_numbers = #tpu.dot_dimension_numbers<[1], [0], [0], [1], [0, 0, 1, 1], [], []>} : vector<2x128xf32>, vector<128x384xf32>, vector<2x384xf32> -> vector<2x384xf32>
    %182 = vector.broadcast %6 : vector<1x384xf32> to vector<2x384xf32>
    %183 = arith.addf %181, %182 : vector<2x384xf32>
    %184 = vector.extract_strided_slice %180 {offsets = [0, 0], sizes = [2, 128], strides = [1, 1]} : vector<2x384xf32> to vector<2x128xf32>
    %185 = vector.extract_strided_slice %183 {offsets = [0, 0], sizes = [2, 128], strides = [1, 1]} : vector<2x384xf32> to vector<2x128xf32>
    %186 = arith.addf %184, %185 : vector<2x128xf32>
    %187 = arith.negf %186 : vector<2x128xf32>
    %188 = math.exp %187 : vector<2x128xf32>
    %cst_60 = arith.constant 1.000000e+00 : f32
    %189 = vector.broadcast %cst_60 : f32 to vector<2x128xf32>
    %190 = arith.addf %189, %188 : vector<2x128xf32>
    %191 = arith.divf %189, %190 : vector<2x128xf32>
    %192 = vector.extract_strided_slice %180 {offsets = [0, 128], sizes = [2, 128], strides = [1, 1]} : vector<2x384xf32> to vector<2x128xf32>
    %193 = vector.extract_strided_slice %183 {offsets = [0, 128], sizes = [2, 128], strides = [1, 1]} : vector<2x384xf32> to vector<2x128xf32>
    %194 = arith.addf %192, %193 : vector<2x128xf32>
    %195 = arith.negf %194 : vector<2x128xf32>
    %196 = math.exp %195 : vector<2x128xf32>
    %cst_61 = arith.constant 1.000000e+00 : f32
    %197 = vector.broadcast %cst_61 : f32 to vector<2x128xf32>
    %198 = arith.addf %197, %196 : vector<2x128xf32>
    %199 = arith.divf %197, %198 : vector<2x128xf32>
    %200 = vector.extract_strided_slice %180 {offsets = [0, 256], sizes = [2, 128], strides = [1, 1]} : vector<2x384xf32> to vector<2x128xf32>
    %201 = vector.extract_strided_slice %183 {offsets = [0, 256], sizes = [2, 128], strides = [1, 1]} : vector<2x384xf32> to vector<2x128xf32>
    %202 = arith.mulf %191, %201 : vector<2x128xf32>
    %203 = arith.addf %200, %202 : vector<2x128xf32>
    %204 = math.tanh %203 : vector<2x128xf32>
    %cst_62 = arith.constant 1.000000e+00 : f32
    %205 = vector.broadcast %cst_62 : f32 to vector<2x128xf32>
    %206 = arith.subf %205, %199 : vector<2x128xf32>
    %207 = arith.mulf %206, %204 : vector<2x128xf32>
    %208 = arith.mulf %199, %141 : vector<2x128xf32>
    %209 = arith.addf %207, %208 : vector<2x128xf32>
    %c0_63 = arith.constant 0 : index
    %c13_64 = arith.constant 13 : index
    %c0_65 = arith.constant 0 : index
    %210 = vector.load %arg8[%c0_63, %c13_64, %c0_65] : memref<2x16x128xf32, #tpu.memory_space<vmem>>, vector<2x1x128xf32>
    %211 = vector.shape_cast %210 : vector<2x1x128xf32> to vector<2x128xf32>
    %212 = vector.shape_cast %209 : vector<2x128xf32> to vector<2x1x128xf32>
    tpu.vector_store %arg8[%c0_63, %c13_64, %c0_65], %212 {strides = array<i32>} : memref<2x16x128xf32, #tpu.memory_space<vmem>>, vector<2x1x128xf32>,
    %c0_66 = arith.constant 0 : index
    %c3 = arith.constant 3 : index
    %c0_67 = arith.constant 0 : index
    %213 = vector.load %arg1[%c0_66, %c3, %c0_67] : memref<2x16x384xf32, #tpu.memory_space<vmem>>, vector<2x1x384xf32>
    %214 = vector.shape_cast %213 : vector<2x1x384xf32> to vector<2x384xf32>
    %cst_68 = arith.constant dense<0.000000e+00> : vector<2x384xf32>
    %215 = tpu.matmul %175, %3, %cst_68 {dimension_numbers = #tpu.dot_dimension_numbers<[1], [0], [0], [1], [0, 0, 1, 1], [], []>} : vector<2x128xf32>, vector<128x384xf32>, vector<2x384xf32> -> vector<2x384xf32>
    %216 = vector.broadcast %4 : vector<1x384xf32> to vector<2x384xf32>
    %217 = arith.addf %215, %216 : vector<2x384xf32>
    %218 = vector.extract_strided_slice %214 {offsets = [0, 0], sizes = [2, 128], strides = [1, 1]} : vector<2x384xf32> to vector<2x128xf32>
    %219 = vector.extract_strided_slice %217 {offsets = [0, 0], sizes = [2, 128], strides = [1, 1]} : vector<2x384xf32> to vector<2x128xf32>
    %220 = arith.addf %218, %219 : vector<2x128xf32>
    %221 = arith.negf %220 : vector<2x128xf32>
    %222 = math.exp %221 : vector<2x128xf32>
    %cst_69 = arith.constant 1.000000e+00 : f32
    %223 = vector.broadcast %cst_69 : f32 to vector<2x128xf32>
    %224 = arith.addf %223, %222 : vector<2x128xf32>
    %225 = arith.divf %223, %224 : vector<2x128xf32>
    %226 = vector.extract_strided_slice %214 {offsets = [0, 128], sizes = [2, 128], strides = [1, 1]} : vector<2x384xf32> to vector<2x128xf32>
    %227 = vector.extract_strided_slice %217 {offsets = [0, 128], sizes = [2, 128], strides = [1, 1]} : vector<2x384xf32> to vector<2x128xf32>
    %228 = arith.addf %226, %227 : vector<2x128xf32>
    %229 = arith.negf %228 : vector<2x128xf32>
    %230 = math.exp %229 : vector<2x128xf32>
    %cst_70 = arith.constant 1.000000e+00 : f32
    %231 = vector.broadcast %cst_70 : f32 to vector<2x128xf32>
    %232 = arith.addf %231, %230 : vector<2x128xf32>
    %233 = arith.divf %231, %232 : vector<2x128xf32>
    %234 = vector.extract_strided_slice %214 {offsets = [0, 256], sizes = [2, 128], strides = [1, 1]} : vector<2x384xf32> to vector<2x128xf32>
    %235 = vector.extract_strided_slice %217 {offsets = [0, 256], sizes = [2, 128], strides = [1, 1]} : vector<2x384xf32> to vector<2x128xf32>
    %236 = arith.mulf %225, %235 : vector<2x128xf32>
    %237 = arith.addf %234, %236 : vector<2x128xf32>
    %238 = math.tanh %237 : vector<2x128xf32>
    %cst_71 = arith.constant 1.000000e+00 : f32
    %239 = vector.broadcast %cst_71 : f32 to vector<2x128xf32>
    %240 = arith.subf %239, %233 : vector<2x128xf32>
    %241 = arith.mulf %240, %238 : vector<2x128xf32>
    %242 = arith.mulf %233, %175 : vector<2x128xf32>
    %243 = arith.addf %241, %242 : vector<2x128xf32>
    %c0_72 = arith.constant 0 : index
    %c3_73 = arith.constant 3 : index
    %c0_74 = arith.constant 0 : index
    %244 = vector.load %arg7[%c0_72, %c3_73, %c0_74] : memref<2x16x128xf32, #tpu.memory_space<vmem>>, vector<2x1x128xf32>
    %245 = vector.shape_cast %244 : vector<2x1x128xf32> to vector<2x128xf32>
    %246 = vector.shape_cast %243 : vector<2x128xf32> to vector<2x1x128xf32>
    tpu.vector_store %arg7[%c0_72, %c3_73, %c0_74], %246 {strides = array<i32>} : memref<2x16x128xf32, #tpu.memory_space<vmem>>, vector<2x1x128xf32>,
    %c0_75 = arith.constant 0 : index
    %c12 = arith.constant 12 : index
    %c0_76 = arith.constant 0 : index
    %247 = vector.load %arg2[%c0_75, %c12, %c0_76] : memref<2x16x384xf32, #tpu.memory_space<vmem>>, vector<2x1x384xf32>
    %248 = vector.shape_cast %247 : vector<2x1x384xf32> to vector<2x384xf32>
    %cst_77 = arith.constant dense<0.000000e+00> : vector<2x384xf32>
    %249 = tpu.matmul %209, %5, %cst_77 {dimension_numbers = #tpu.dot_dimension_numbers<[1], [0], [0], [1], [0, 0, 1, 1], [], []>} : vector<2x128xf32>, vector<128x384xf32>, vector<2x384xf32> -> vector<2x384xf32>
    %250 = vector.broadcast %6 : vector<1x384xf32> to vector<2x384xf32>
    %251 = arith.addf %249, %250 : vector<2x384xf32>
    %252 = vector.extract_strided_slice %248 {offsets = [0, 0], sizes = [2, 128], strides = [1, 1]} : vector<2x384xf32> to vector<2x128xf32>
    %253 = vector.extract_strided_slice %251 {offsets = [0, 0], sizes = [2, 128], strides = [1, 1]} : vector<2x384xf32> to vector<2x128xf32>
    %254 = arith.addf %252, %253 : vector<2x128xf32>
    %255 = arith.negf %254 : vector<2x128xf32>
    %256 = math.exp %255 : vector<2x128xf32>
    %cst_78 = arith.constant 1.000000e+00 : f32
    %257 = vector.broadcast %cst_78 : f32 to vector<2x128xf32>
    %258 = arith.addf %257, %256 : vector<2x128xf32>
    %259 = arith.divf %257, %258 : vector<2x128xf32>
    %260 = vector.extract_strided_slice %248 {offsets = [0, 128], sizes = [2, 128], strides = [1, 1]} : vector<2x384xf32> to vector<2x128xf32>
    %261 = vector.extract_strided_slice %251 {offsets = [0, 128], sizes = [2, 128], strides = [1, 1]} : vector<2x384xf32> to vector<2x128xf32>
    %262 = arith.addf %260, %261 : vector<2x128xf32>
    %263 = arith.negf %262 : vector<2x128xf32>
    %264 = math.exp %263 : vector<2x128xf32>
    %cst_79 = arith.constant 1.000000e+00 : f32
    %265 = vector.broadcast %cst_79 : f32 to vector<2x128xf32>
    %266 = arith.addf %265, %264 : vector<2x128xf32>
    %267 = arith.divf %265, %266 : vector<2x128xf32>
    %268 = vector.extract_strided_slice %248 {offsets = [0, 256], sizes = [2, 128], strides = [1, 1]} : vector<2x384xf32> to vector<2x128xf32>
    %269 = vector.extract_strided_slice %251 {offsets = [0, 256], sizes = [2, 128], strides = [1, 1]} : vector<2x384xf32> to vector<2x128xf32>
    %270 = arith.mulf %259, %269 : vector<2x128xf32>
    %271 = arith.addf %268, %270 : vector<2x128xf32>
    %272 = math.tanh %271 : vector<2x128xf32>
    %cst_80 = arith.constant 1.000000e+00 : f32
    %273 = vector.broadcast %cst_80 : f32 to vector<2x128xf32>
    %274 = arith.subf %273, %267 : vector<2x128xf32>
    %275 = arith.mulf %274, %272 : vector<2x128xf32>
    %276 = arith.mulf %267, %209 : vector<2x128xf32>
    %277 = arith.addf %275, %276 : vector<2x128xf32>
    %c0_81 = arith.constant 0 : index
    %c12_82 = arith.constant 12 : index
    %c0_83 = arith.constant 0 : index
    %278 = vector.load %arg8[%c0_81, %c12_82, %c0_83] : memref<2x16x128xf32, #tpu.memory_space<vmem>>, vector<2x1x128xf32>
    %279 = vector.shape_cast %278 : vector<2x1x128xf32> to vector<2x128xf32>
    %280 = vector.shape_cast %277 : vector<2x128xf32> to vector<2x1x128xf32>
    tpu.vector_store %arg8[%c0_81, %c12_82, %c0_83], %280 {strides = array<i32>} : memref<2x16x128xf32, #tpu.memory_space<vmem>>, vector<2x1x128xf32>,
    %c0_84 = arith.constant 0 : index
    %c4 = arith.constant 4 : index
    %c0_85 = arith.constant 0 : index
    %281 = vector.load %arg1[%c0_84, %c4, %c0_85] : memref<2x16x384xf32, #tpu.memory_space<vmem>>, vector<2x1x384xf32>
    %282 = vector.shape_cast %281 : vector<2x1x384xf32> to vector<2x384xf32>
    %cst_86 = arith.constant dense<0.000000e+00> : vector<2x384xf32>
    %283 = tpu.matmul %243, %3, %cst_86 {dimension_numbers = #tpu.dot_dimension_numbers<[1], [0], [0], [1], [0, 0, 1, 1], [], []>} : vector<2x128xf32>, vector<128x384xf32>, vector<2x384xf32> -> vector<2x384xf32>
    %284 = vector.broadcast %4 : vector<1x384xf32> to vector<2x384xf32>
    %285 = arith.addf %283, %284 : vector<2x384xf32>
    %286 = vector.extract_strided_slice %282 {offsets = [0, 0], sizes = [2, 128], strides = [1, 1]} : vector<2x384xf32> to vector<2x128xf32>
    %287 = vector.extract_strided_slice %285 {offsets = [0, 0], sizes = [2, 128], strides = [1, 1]} : vector<2x384xf32> to vector<2x128xf32>
    %288 = arith.addf %286, %287 : vector<2x128xf32>
    %289 = arith.negf %288 : vector<2x128xf32>
    %290 = math.exp %289 : vector<2x128xf32>
    %cst_87 = arith.constant 1.000000e+00 : f32
    %291 = vector.broadcast %cst_87 : f32 to vector<2x128xf32>
    %292 = arith.addf %291, %290 : vector<2x128xf32>
    %293 = arith.divf %291, %292 : vector<2x128xf32>
    %294 = vector.extract_strided_slice %282 {offsets = [0, 128], sizes = [2, 128], strides = [1, 1]} : vector<2x384xf32> to vector<2x128xf32>
    %295 = vector.extract_strided_slice %285 {offsets = [0, 128], sizes = [2, 128], strides = [1, 1]} : vector<2x384xf32> to vector<2x128xf32>
    %296 = arith.addf %294, %295 : vector<2x128xf32>
    %297 = arith.negf %296 : vector<2x128xf32>
    %298 = math.exp %297 : vector<2x128xf32>
    %cst_88 = arith.constant 1.000000e+00 : f32
    %299 = vector.broadcast %cst_88 : f32 to vector<2x128xf32>
    %300 = arith.addf %299, %298 : vector<2x128xf32>
    %301 = arith.divf %299, %300 : vector<2x128xf32>
    %302 = vector.extract_strided_slice %282 {offsets = [0, 256], sizes = [2, 128], strides = [1, 1]} : vector<2x384xf32> to vector<2x128xf32>
    %303 = vector.extract_strided_slice %285 {offsets = [0, 256], sizes = [2, 128], strides = [1, 1]} : vector<2x384xf32> to vector<2x128xf32>
    %304 = arith.mulf %293, %303 : vector<2x128xf32>
    %305 = arith.addf %302, %304 : vector<2x128xf32>
    %306 = math.tanh %305 : vector<2x128xf32>
    %cst_89 = arith.constant 1.000000e+00 : f32
    %307 = vector.broadcast %cst_89 : f32 to vector<2x128xf32>
    %308 = arith.subf %307, %301 : vector<2x128xf32>
    %309 = arith.mulf %308, %306 : vector<2x128xf32>
    %310 = arith.mulf %301, %243 : vector<2x128xf32>
    %311 = arith.addf %309, %310 : vector<2x128xf32>
    %c0_90 = arith.constant 0 : index
    %c4_91 = arith.constant 4 : index
    %c0_92 = arith.constant 0 : index
    %312 = vector.load %arg7[%c0_90, %c4_91, %c0_92] : memref<2x16x128xf32, #tpu.memory_space<vmem>>, vector<2x1x128xf32>
    %313 = vector.shape_cast %312 : vector<2x1x128xf32> to vector<2x128xf32>
    %314 = vector.shape_cast %311 : vector<2x128xf32> to vector<2x1x128xf32>
    tpu.vector_store %arg7[%c0_90, %c4_91, %c0_92], %314 {strides = array<i32>} : memref<2x16x128xf32, #tpu.memory_space<vmem>>, vector<2x1x128xf32>,
    %c0_93 = arith.constant 0 : index
    %c11 = arith.constant 11 : index
    %c0_94 = arith.constant 0 : index
    %315 = vector.load %arg2[%c0_93, %c11, %c0_94] : memref<2x16x384xf32, #tpu.memory_space<vmem>>, vector<2x1x384xf32>
    %316 = vector.shape_cast %315 : vector<2x1x384xf32> to vector<2x384xf32>
    %cst_95 = arith.constant dense<0.000000e+00> : vector<2x384xf32>
    %317 = tpu.matmul %277, %5, %cst_95 {dimension_numbers = #tpu.dot_dimension_numbers<[1], [0], [0], [1], [0, 0, 1, 1], [], []>} : vector<2x128xf32>, vector<128x384xf32>, vector<2x384xf32> -> vector<2x384xf32>
    %318 = vector.broadcast %6 : vector<1x384xf32> to vector<2x384xf32>
    %319 = arith.addf %317, %318 : vector<2x384xf32>
    %320 = vector.extract_strided_slice %316 {offsets = [0, 0], sizes = [2, 128], strides = [1, 1]} : vector<2x384xf32> to vector<2x128xf32>
    %321 = vector.extract_strided_slice %319 {offsets = [0, 0], sizes = [2, 128], strides = [1, 1]} : vector<2x384xf32> to vector<2x128xf32>
    %322 = arith.addf %320, %321 : vector<2x128xf32>
    %323 = arith.negf %322 : vector<2x128xf32>
    %324 = math.exp %323 : vector<2x128xf32>
    %cst_96 = arith.constant 1.000000e+00 : f32
    %325 = vector.broadcast %cst_96 : f32 to vector<2x128xf32>
    %326 = arith.addf %325, %324 : vector<2x128xf32>
    %327 = arith.divf %325, %326 : vector<2x128xf32>
    %328 = vector.extract_strided_slice %316 {offsets = [0, 128], sizes = [2, 128], strides = [1, 1]} : vector<2x384xf32> to vector<2x128xf32>
    %329 = vector.extract_strided_slice %319 {offsets = [0, 128], sizes = [2, 128], strides = [1, 1]} : vector<2x384xf32> to vector<2x128xf32>
    %330 = arith.addf %328, %329 : vector<2x128xf32>
    %331 = arith.negf %330 : vector<2x128xf32>
    %332 = math.exp %331 : vector<2x128xf32>
    %cst_97 = arith.constant 1.000000e+00 : f32
    %333 = vector.broadcast %cst_97 : f32 to vector<2x128xf32>
    %334 = arith.addf %333, %332 : vector<2x128xf32>
    %335 = arith.divf %333, %334 : vector<2x128xf32>
    %336 = vector.extract_strided_slice %316 {offsets = [0, 256], sizes = [2, 128], strides = [1, 1]} : vector<2x384xf32> to vector<2x128xf32>
    %337 = vector.extract_strided_slice %319 {offsets = [0, 256], sizes = [2, 128], strides = [1, 1]} : vector<2x384xf32> to vector<2x128xf32>
    %338 = arith.mulf %327, %337 : vector<2x128xf32>
    %339 = arith.addf %336, %338 : vector<2x128xf32>
    %340 = math.tanh %339 : vector<2x128xf32>
    %cst_98 = arith.constant 1.000000e+00 : f32
    %341 = vector.broadcast %cst_98 : f32 to vector<2x128xf32>
    %342 = arith.subf %341, %335 : vector<2x128xf32>
    %343 = arith.mulf %342, %340 : vector<2x128xf32>
    %344 = arith.mulf %335, %277 : vector<2x128xf32>
    %345 = arith.addf %343, %344 : vector<2x128xf32>
    %c0_99 = arith.constant 0 : index
    %c11_100 = arith.constant 11 : index
    %c0_101 = arith.constant 0 : index
    %346 = vector.load %arg8[%c0_99, %c11_100, %c0_101] : memref<2x16x128xf32, #tpu.memory_space<vmem>>, vector<2x1x128xf32>
    %347 = vector.shape_cast %346 : vector<2x1x128xf32> to vector<2x128xf32>
    %348 = vector.shape_cast %345 : vector<2x128xf32> to vector<2x1x128xf32>
    tpu.vector_store %arg8[%c0_99, %c11_100, %c0_101], %348 {strides = array<i32>} : memref<2x16x128xf32, #tpu.memory_space<vmem>>, vector<2x1x128xf32>,
    %c0_102 = arith.constant 0 : index
    %c5 = arith.constant 5 : index
    %c0_103 = arith.constant 0 : index
    %349 = vector.load %arg1[%c0_102, %c5, %c0_103] : memref<2x16x384xf32, #tpu.memory_space<vmem>>, vector<2x1x384xf32>
    %350 = vector.shape_cast %349 : vector<2x1x384xf32> to vector<2x384xf32>
    %cst_104 = arith.constant dense<0.000000e+00> : vector<2x384xf32>
    %351 = tpu.matmul %311, %3, %cst_104 {dimension_numbers = #tpu.dot_dimension_numbers<[1], [0], [0], [1], [0, 0, 1, 1], [], []>} : vector<2x128xf32>, vector<128x384xf32>, vector<2x384xf32> -> vector<2x384xf32>
    %352 = vector.broadcast %4 : vector<1x384xf32> to vector<2x384xf32>
    %353 = arith.addf %351, %352 : vector<2x384xf32>
    %354 = vector.extract_strided_slice %350 {offsets = [0, 0], sizes = [2, 128], strides = [1, 1]} : vector<2x384xf32> to vector<2x128xf32>
    %355 = vector.extract_strided_slice %353 {offsets = [0, 0], sizes = [2, 128], strides = [1, 1]} : vector<2x384xf32> to vector<2x128xf32>
    %356 = arith.addf %354, %355 : vector<2x128xf32>
    %357 = arith.negf %356 : vector<2x128xf32>
    %358 = math.exp %357 : vector<2x128xf32>
    %cst_105 = arith.constant 1.000000e+00 : f32
    %359 = vector.broadcast %cst_105 : f32 to vector<2x128xf32>
    %360 = arith.addf %359, %358 : vector<2x128xf32>
    %361 = arith.divf %359, %360 : vector<2x128xf32>
    %362 = vector.extract_strided_slice %350 {offsets = [0, 128], sizes = [2, 128], strides = [1, 1]} : vector<2x384xf32> to vector<2x128xf32>
    %363 = vector.extract_strided_slice %353 {offsets = [0, 128], sizes = [2, 128], strides = [1, 1]} : vector<2x384xf32> to vector<2x128xf32>
    %364 = arith.addf %362, %363 : vector<2x128xf32>
    %365 = arith.negf %364 : vector<2x128xf32>
    %366 = math.exp %365 : vector<2x128xf32>
    %cst_106 = arith.constant 1.000000e+00 : f32
    %367 = vector.broadcast %cst_106 : f32 to vector<2x128xf32>
    %368 = arith.addf %367, %366 : vector<2x128xf32>
    %369 = arith.divf %367, %368 : vector<2x128xf32>
    %370 = vector.extract_strided_slice %350 {offsets = [0, 256], sizes = [2, 128], strides = [1, 1]} : vector<2x384xf32> to vector<2x128xf32>
    %371 = vector.extract_strided_slice %353 {offsets = [0, 256], sizes = [2, 128], strides = [1, 1]} : vector<2x384xf32> to vector<2x128xf32>
    %372 = arith.mulf %361, %371 : vector<2x128xf32>
    %373 = arith.addf %370, %372 : vector<2x128xf32>
    %374 = math.tanh %373 : vector<2x128xf32>
    %cst_107 = arith.constant 1.000000e+00 : f32
    %375 = vector.broadcast %cst_107 : f32 to vector<2x128xf32>
    %376 = arith.subf %375, %369 : vector<2x128xf32>
    %377 = arith.mulf %376, %374 : vector<2x128xf32>
    %378 = arith.mulf %369, %311 : vector<2x128xf32>
    %379 = arith.addf %377, %378 : vector<2x128xf32>
    %c0_108 = arith.constant 0 : index
    %c5_109 = arith.constant 5 : index
    %c0_110 = arith.constant 0 : index
    %380 = vector.load %arg7[%c0_108, %c5_109, %c0_110] : memref<2x16x128xf32, #tpu.memory_space<vmem>>, vector<2x1x128xf32>
    %381 = vector.shape_cast %380 : vector<2x1x128xf32> to vector<2x128xf32>
    %382 = vector.shape_cast %379 : vector<2x128xf32> to vector<2x1x128xf32>
    tpu.vector_store %arg7[%c0_108, %c5_109, %c0_110], %382 {strides = array<i32>} : memref<2x16x128xf32, #tpu.memory_space<vmem>>, vector<2x1x128xf32>,
    %c0_111 = arith.constant 0 : index
    %c10 = arith.constant 10 : index
    %c0_112 = arith.constant 0 : index
    %383 = vector.load %arg2[%c0_111, %c10, %c0_112] : memref<2x16x384xf32, #tpu.memory_space<vmem>>, vector<2x1x384xf32>
    %384 = vector.shape_cast %383 : vector<2x1x384xf32> to vector<2x384xf32>
    %cst_113 = arith.constant dense<0.000000e+00> : vector<2x384xf32>
    %385 = tpu.matmul %345, %5, %cst_113 {dimension_numbers = #tpu.dot_dimension_numbers<[1], [0], [0], [1], [0, 0, 1, 1], [], []>} : vector<2x128xf32>, vector<128x384xf32>, vector<2x384xf32> -> vector<2x384xf32>
    %386 = vector.broadcast %6 : vector<1x384xf32> to vector<2x384xf32>
    %387 = arith.addf %385, %386 : vector<2x384xf32>
    %388 = vector.extract_strided_slice %384 {offsets = [0, 0], sizes = [2, 128], strides = [1, 1]} : vector<2x384xf32> to vector<2x128xf32>
    %389 = vector.extract_strided_slice %387 {offsets = [0, 0], sizes = [2, 128], strides = [1, 1]} : vector<2x384xf32> to vector<2x128xf32>
    %390 = arith.addf %388, %389 : vector<2x128xf32>
    %391 = arith.negf %390 : vector<2x128xf32>
    %392 = math.exp %391 : vector<2x128xf32>
    %cst_114 = arith.constant 1.000000e+00 : f32
    %393 = vector.broadcast %cst_114 : f32 to vector<2x128xf32>
    %394 = arith.addf %393, %392 : vector<2x128xf32>
    %395 = arith.divf %393, %394 : vector<2x128xf32>
    %396 = vector.extract_strided_slice %384 {offsets = [0, 128], sizes = [2, 128], strides = [1, 1]} : vector<2x384xf32> to vector<2x128xf32>
    %397 = vector.extract_strided_slice %387 {offsets = [0, 128], sizes = [2, 128], strides = [1, 1]} : vector<2x384xf32> to vector<2x128xf32>
    %398 = arith.addf %396, %397 : vector<2x128xf32>
    %399 = arith.negf %398 : vector<2x128xf32>
    %400 = math.exp %399 : vector<2x128xf32>
    %cst_115 = arith.constant 1.000000e+00 : f32
    %401 = vector.broadcast %cst_115 : f32 to vector<2x128xf32>
    %402 = arith.addf %401, %400 : vector<2x128xf32>
    %403 = arith.divf %401, %402 : vector<2x128xf32>
    %404 = vector.extract_strided_slice %384 {offsets = [0, 256], sizes = [2, 128], strides = [1, 1]} : vector<2x384xf32> to vector<2x128xf32>
    %405 = vector.extract_strided_slice %387 {offsets = [0, 256], sizes = [2, 128], strides = [1, 1]} : vector<2x384xf32> to vector<2x128xf32>
    %406 = arith.mulf %395, %405 : vector<2x128xf32>
    %407 = arith.addf %404, %406 : vector<2x128xf32>
    %408 = math.tanh %407 : vector<2x128xf32>
    %cst_116 = arith.constant 1.000000e+00 : f32
    %409 = vector.broadcast %cst_116 : f32 to vector<2x128xf32>
    %410 = arith.subf %409, %403 : vector<2x128xf32>
    %411 = arith.mulf %410, %408 : vector<2x128xf32>
    %412 = arith.mulf %403, %345 : vector<2x128xf32>
    %413 = arith.addf %411, %412 : vector<2x128xf32>
    %c0_117 = arith.constant 0 : index
    %c10_118 = arith.constant 10 : index
    %c0_119 = arith.constant 0 : index
    %414 = vector.load %arg8[%c0_117, %c10_118, %c0_119] : memref<2x16x128xf32, #tpu.memory_space<vmem>>, vector<2x1x128xf32>
    %415 = vector.shape_cast %414 : vector<2x1x128xf32> to vector<2x128xf32>
    %416 = vector.shape_cast %413 : vector<2x128xf32> to vector<2x1x128xf32>
    tpu.vector_store %arg8[%c0_117, %c10_118, %c0_119], %416 {strides = array<i32>} : memref<2x16x128xf32, #tpu.memory_space<vmem>>, vector<2x1x128xf32>,
    %c0_120 = arith.constant 0 : index
    %c6 = arith.constant 6 : index
    %c0_121 = arith.constant 0 : index
    %417 = vector.load %arg1[%c0_120, %c6, %c0_121] : memref<2x16x384xf32, #tpu.memory_space<vmem>>, vector<2x1x384xf32>
    %418 = vector.shape_cast %417 : vector<2x1x384xf32> to vector<2x384xf32>
    %cst_122 = arith.constant dense<0.000000e+00> : vector<2x384xf32>
    %419 = tpu.matmul %379, %3, %cst_122 {dimension_numbers = #tpu.dot_dimension_numbers<[1], [0], [0], [1], [0, 0, 1, 1], [], []>} : vector<2x128xf32>, vector<128x384xf32>, vector<2x384xf32> -> vector<2x384xf32>
    %420 = vector.broadcast %4 : vector<1x384xf32> to vector<2x384xf32>
    %421 = arith.addf %419, %420 : vector<2x384xf32>
    %422 = vector.extract_strided_slice %418 {offsets = [0, 0], sizes = [2, 128], strides = [1, 1]} : vector<2x384xf32> to vector<2x128xf32>
    %423 = vector.extract_strided_slice %421 {offsets = [0, 0], sizes = [2, 128], strides = [1, 1]} : vector<2x384xf32> to vector<2x128xf32>
    %424 = arith.addf %422, %423 : vector<2x128xf32>
    %425 = arith.negf %424 : vector<2x128xf32>
    %426 = math.exp %425 : vector<2x128xf32>
    %cst_123 = arith.constant 1.000000e+00 : f32
    %427 = vector.broadcast %cst_123 : f32 to vector<2x128xf32>
    %428 = arith.addf %427, %426 : vector<2x128xf32>
    %429 = arith.divf %427, %428 : vector<2x128xf32>
    %430 = vector.extract_strided_slice %418 {offsets = [0, 128], sizes = [2, 128], strides = [1, 1]} : vector<2x384xf32> to vector<2x128xf32>
    %431 = vector.extract_strided_slice %421 {offsets = [0, 128], sizes = [2, 128], strides = [1, 1]} : vector<2x384xf32> to vector<2x128xf32>
    %432 = arith.addf %430, %431 : vector<2x128xf32>
    %433 = arith.negf %432 : vector<2x128xf32>
    %434 = math.exp %433 : vector<2x128xf32>
    %cst_124 = arith.constant 1.000000e+00 : f32
    %435 = vector.broadcast %cst_124 : f32 to vector<2x128xf32>
    %436 = arith.addf %435, %434 : vector<2x128xf32>
    %437 = arith.divf %435, %436 : vector<2x128xf32>
    %438 = vector.extract_strided_slice %418 {offsets = [0, 256], sizes = [2, 128], strides = [1, 1]} : vector<2x384xf32> to vector<2x128xf32>
    %439 = vector.extract_strided_slice %421 {offsets = [0, 256], sizes = [2, 128], strides = [1, 1]} : vector<2x384xf32> to vector<2x128xf32>
    %440 = arith.mulf %429, %439 : vector<2x128xf32>
    %441 = arith.addf %438, %440 : vector<2x128xf32>
    %442 = math.tanh %441 : vector<2x128xf32>
    %cst_125 = arith.constant 1.000000e+00 : f32
    %443 = vector.broadcast %cst_125 : f32 to vector<2x128xf32>
    %444 = arith.subf %443, %437 : vector<2x128xf32>
    %445 = arith.mulf %444, %442 : vector<2x128xf32>
    %446 = arith.mulf %437, %379 : vector<2x128xf32>
    %447 = arith.addf %445, %446 : vector<2x128xf32>
    %c0_126 = arith.constant 0 : index
    %c6_127 = arith.constant 6 : index
    %c0_128 = arith.constant 0 : index
    %448 = vector.load %arg7[%c0_126, %c6_127, %c0_128] : memref<2x16x128xf32, #tpu.memory_space<vmem>>, vector<2x1x128xf32>
    %449 = vector.shape_cast %448 : vector<2x1x128xf32> to vector<2x128xf32>
    %450 = vector.shape_cast %447 : vector<2x128xf32> to vector<2x1x128xf32>
    tpu.vector_store %arg7[%c0_126, %c6_127, %c0_128], %450 {strides = array<i32>} : memref<2x16x128xf32, #tpu.memory_space<vmem>>, vector<2x1x128xf32>,
    %c0_129 = arith.constant 0 : index
    %c9 = arith.constant 9 : index
    %c0_130 = arith.constant 0 : index
    %451 = vector.load %arg2[%c0_129, %c9, %c0_130] : memref<2x16x384xf32, #tpu.memory_space<vmem>>, vector<2x1x384xf32>
    %452 = vector.shape_cast %451 : vector<2x1x384xf32> to vector<2x384xf32>
    %cst_131 = arith.constant dense<0.000000e+00> : vector<2x384xf32>
    %453 = tpu.matmul %413, %5, %cst_131 {dimension_numbers = #tpu.dot_dimension_numbers<[1], [0], [0], [1], [0, 0, 1, 1], [], []>} : vector<2x128xf32>, vector<128x384xf32>, vector<2x384xf32> -> vector<2x384xf32>
    %454 = vector.broadcast %6 : vector<1x384xf32> to vector<2x384xf32>
    %455 = arith.addf %453, %454 : vector<2x384xf32>
    %456 = vector.extract_strided_slice %452 {offsets = [0, 0], sizes = [2, 128], strides = [1, 1]} : vector<2x384xf32> to vector<2x128xf32>
    %457 = vector.extract_strided_slice %455 {offsets = [0, 0], sizes = [2, 128], strides = [1, 1]} : vector<2x384xf32> to vector<2x128xf32>
    %458 = arith.addf %456, %457 : vector<2x128xf32>
    %459 = arith.negf %458 : vector<2x128xf32>
    %460 = math.exp %459 : vector<2x128xf32>
    %cst_132 = arith.constant 1.000000e+00 : f32
    %461 = vector.broadcast %cst_132 : f32 to vector<2x128xf32>
    %462 = arith.addf %461, %460 : vector<2x128xf32>
    %463 = arith.divf %461, %462 : vector<2x128xf32>
    %464 = vector.extract_strided_slice %452 {offsets = [0, 128], sizes = [2, 128], strides = [1, 1]} : vector<2x384xf32> to vector<2x128xf32>
    %465 = vector.extract_strided_slice %455 {offsets = [0, 128], sizes = [2, 128], strides = [1, 1]} : vector<2x384xf32> to vector<2x128xf32>
    %466 = arith.addf %464, %465 : vector<2x128xf32>
    %467 = arith.negf %466 : vector<2x128xf32>
    %468 = math.exp %467 : vector<2x128xf32>
    %cst_133 = arith.constant 1.000000e+00 : f32
    %469 = vector.broadcast %cst_133 : f32 to vector<2x128xf32>
    %470 = arith.addf %469, %468 : vector<2x128xf32>
    %471 = arith.divf %469, %470 : vector<2x128xf32>
    %472 = vector.extract_strided_slice %452 {offsets = [0, 256], sizes = [2, 128], strides = [1, 1]} : vector<2x384xf32> to vector<2x128xf32>
    %473 = vector.extract_strided_slice %455 {offsets = [0, 256], sizes = [2, 128], strides = [1, 1]} : vector<2x384xf32> to vector<2x128xf32>
    %474 = arith.mulf %463, %473 : vector<2x128xf32>
    %475 = arith.addf %472, %474 : vector<2x128xf32>
    %476 = math.tanh %475 : vector<2x128xf32>
    %cst_134 = arith.constant 1.000000e+00 : f32
    %477 = vector.broadcast %cst_134 : f32 to vector<2x128xf32>
    %478 = arith.subf %477, %471 : vector<2x128xf32>
    %479 = arith.mulf %478, %476 : vector<2x128xf32>
    %480 = arith.mulf %471, %413 : vector<2x128xf32>
    %481 = arith.addf %479, %480 : vector<2x128xf32>
    %c0_135 = arith.constant 0 : index
    %c9_136 = arith.constant 9 : index
    %c0_137 = arith.constant 0 : index
    %482 = vector.load %arg8[%c0_135, %c9_136, %c0_137] : memref<2x16x128xf32, #tpu.memory_space<vmem>>, vector<2x1x128xf32>
    %483 = vector.shape_cast %482 : vector<2x1x128xf32> to vector<2x128xf32>
    %484 = vector.shape_cast %481 : vector<2x128xf32> to vector<2x1x128xf32>
    tpu.vector_store %arg8[%c0_135, %c9_136, %c0_137], %484 {strides = array<i32>} : memref<2x16x128xf32, #tpu.memory_space<vmem>>, vector<2x1x128xf32>,
    %c0_138 = arith.constant 0 : index
    %c7 = arith.constant 7 : index
    %c0_139 = arith.constant 0 : index
    %485 = vector.load %arg1[%c0_138, %c7, %c0_139] : memref<2x16x384xf32, #tpu.memory_space<vmem>>, vector<2x1x384xf32>
    %486 = vector.shape_cast %485 : vector<2x1x384xf32> to vector<2x384xf32>
    %cst_140 = arith.constant dense<0.000000e+00> : vector<2x384xf32>
    %487 = tpu.matmul %447, %3, %cst_140 {dimension_numbers = #tpu.dot_dimension_numbers<[1], [0], [0], [1], [0, 0, 1, 1], [], []>} : vector<2x128xf32>, vector<128x384xf32>, vector<2x384xf32> -> vector<2x384xf32>
    %488 = vector.broadcast %4 : vector<1x384xf32> to vector<2x384xf32>
    %489 = arith.addf %487, %488 : vector<2x384xf32>
    %490 = vector.extract_strided_slice %486 {offsets = [0, 0], sizes = [2, 128], strides = [1, 1]} : vector<2x384xf32> to vector<2x128xf32>
    %491 = vector.extract_strided_slice %489 {offsets = [0, 0], sizes = [2, 128], strides = [1, 1]} : vector<2x384xf32> to vector<2x128xf32>
    %492 = arith.addf %490, %491 : vector<2x128xf32>
    %493 = arith.negf %492 : vector<2x128xf32>
    %494 = math.exp %493 : vector<2x128xf32>
    %cst_141 = arith.constant 1.000000e+00 : f32
    %495 = vector.broadcast %cst_141 : f32 to vector<2x128xf32>
    %496 = arith.addf %495, %494 : vector<2x128xf32>
    %497 = arith.divf %495, %496 : vector<2x128xf32>
    %498 = vector.extract_strided_slice %486 {offsets = [0, 128], sizes = [2, 128], strides = [1, 1]} : vector<2x384xf32> to vector<2x128xf32>
    %499 = vector.extract_strided_slice %489 {offsets = [0, 128], sizes = [2, 128], strides = [1, 1]} : vector<2x384xf32> to vector<2x128xf32>
    %500 = arith.addf %498, %499 : vector<2x128xf32>
    %501 = arith.negf %500 : vector<2x128xf32>
    %502 = math.exp %501 : vector<2x128xf32>
    %cst_142 = arith.constant 1.000000e+00 : f32
    %503 = vector.broadcast %cst_142 : f32 to vector<2x128xf32>
    %504 = arith.addf %503, %502 : vector<2x128xf32>
    %505 = arith.divf %503, %504 : vector<2x128xf32>
    %506 = vector.extract_strided_slice %486 {offsets = [0, 256], sizes = [2, 128], strides = [1, 1]} : vector<2x384xf32> to vector<2x128xf32>
    %507 = vector.extract_strided_slice %489 {offsets = [0, 256], sizes = [2, 128], strides = [1, 1]} : vector<2x384xf32> to vector<2x128xf32>
    %508 = arith.mulf %497, %507 : vector<2x128xf32>
    %509 = arith.addf %506, %508 : vector<2x128xf32>
    %510 = math.tanh %509 : vector<2x128xf32>
    %cst_143 = arith.constant 1.000000e+00 : f32
    %511 = vector.broadcast %cst_143 : f32 to vector<2x128xf32>
    %512 = arith.subf %511, %505 : vector<2x128xf32>
    %513 = arith.mulf %512, %510 : vector<2x128xf32>
    %514 = arith.mulf %505, %447 : vector<2x128xf32>
    %515 = arith.addf %513, %514 : vector<2x128xf32>
    %c0_144 = arith.constant 0 : index
    %c7_145 = arith.constant 7 : index
    %c0_146 = arith.constant 0 : index
    %516 = vector.load %arg7[%c0_144, %c7_145, %c0_146] : memref<2x16x128xf32, #tpu.memory_space<vmem>>, vector<2x1x128xf32>
    %517 = vector.shape_cast %516 : vector<2x1x128xf32> to vector<2x128xf32>
    %518 = vector.shape_cast %515 : vector<2x128xf32> to vector<2x1x128xf32>
    tpu.vector_store %arg7[%c0_144, %c7_145, %c0_146], %518 {strides = array<i32>} : memref<2x16x128xf32, #tpu.memory_space<vmem>>, vector<2x1x128xf32>,
    %c0_147 = arith.constant 0 : index
    %c8 = arith.constant 8 : index
    %c0_148 = arith.constant 0 : index
    %519 = vector.load %arg2[%c0_147, %c8, %c0_148] : memref<2x16x384xf32, #tpu.memory_space<vmem>>, vector<2x1x384xf32>
    %520 = vector.shape_cast %519 : vector<2x1x384xf32> to vector<2x384xf32>
    %cst_149 = arith.constant dense<0.000000e+00> : vector<2x384xf32>
    %521 = tpu.matmul %481, %5, %cst_149 {dimension_numbers = #tpu.dot_dimension_numbers<[1], [0], [0], [1], [0, 0, 1, 1], [], []>} : vector<2x128xf32>, vector<128x384xf32>, vector<2x384xf32> -> vector<2x384xf32>
    %522 = vector.broadcast %6 : vector<1x384xf32> to vector<2x384xf32>
    %523 = arith.addf %521, %522 : vector<2x384xf32>
    %524 = vector.extract_strided_slice %520 {offsets = [0, 0], sizes = [2, 128], strides = [1, 1]} : vector<2x384xf32> to vector<2x128xf32>
    %525 = vector.extract_strided_slice %523 {offsets = [0, 0], sizes = [2, 128], strides = [1, 1]} : vector<2x384xf32> to vector<2x128xf32>
    %526 = arith.addf %524, %525 : vector<2x128xf32>
    %527 = arith.negf %526 : vector<2x128xf32>
    %528 = math.exp %527 : vector<2x128xf32>
    %cst_150 = arith.constant 1.000000e+00 : f32
    %529 = vector.broadcast %cst_150 : f32 to vector<2x128xf32>
    %530 = arith.addf %529, %528 : vector<2x128xf32>
    %531 = arith.divf %529, %530 : vector<2x128xf32>
    %532 = vector.extract_strided_slice %520 {offsets = [0, 128], sizes = [2, 128], strides = [1, 1]} : vector<2x384xf32> to vector<2x128xf32>
    %533 = vector.extract_strided_slice %523 {offsets = [0, 128], sizes = [2, 128], strides = [1, 1]} : vector<2x384xf32> to vector<2x128xf32>
    %534 = arith.addf %532, %533 : vector<2x128xf32>
    %535 = arith.negf %534 : vector<2x128xf32>
    %536 = math.exp %535 : vector<2x128xf32>
    %cst_151 = arith.constant 1.000000e+00 : f32
    %537 = vector.broadcast %cst_151 : f32 to vector<2x128xf32>
    %538 = arith.addf %537, %536 : vector<2x128xf32>
    %539 = arith.divf %537, %538 : vector<2x128xf32>
    %540 = vector.extract_strided_slice %520 {offsets = [0, 256], sizes = [2, 128], strides = [1, 1]} : vector<2x384xf32> to vector<2x128xf32>
    %541 = vector.extract_strided_slice %523 {offsets = [0, 256], sizes = [2, 128], strides = [1, 1]} : vector<2x384xf32> to vector<2x128xf32>
    %542 = arith.mulf %531, %541 : vector<2x128xf32>
    %543 = arith.addf %540, %542 : vector<2x128xf32>
    %544 = math.tanh %543 : vector<2x128xf32>
    %cst_152 = arith.constant 1.000000e+00 : f32
    %545 = vector.broadcast %cst_152 : f32 to vector<2x128xf32>
    %546 = arith.subf %545, %539 : vector<2x128xf32>
    %547 = arith.mulf %546, %544 : vector<2x128xf32>
    %548 = arith.mulf %539, %481 : vector<2x128xf32>
    %549 = arith.addf %547, %548 : vector<2x128xf32>
    %c0_153 = arith.constant 0 : index
    %c8_154 = arith.constant 8 : index
    %c0_155 = arith.constant 0 : index
    %550 = vector.load %arg8[%c0_153, %c8_154, %c0_155] : memref<2x16x128xf32, #tpu.memory_space<vmem>>, vector<2x1x128xf32>
    %551 = vector.shape_cast %550 : vector<2x1x128xf32> to vector<2x128xf32>
    %552 = vector.shape_cast %549 : vector<2x128xf32> to vector<2x1x128xf32>
    tpu.vector_store %arg8[%c0_153, %c8_154, %c0_155], %552 {strides = array<i32>} : memref<2x16x128xf32, #tpu.memory_space<vmem>>, vector<2x1x128xf32>,
    %c0_156 = arith.constant 0 : index
    %c8_157 = arith.constant 8 : index
    %c0_158 = arith.constant 0 : index
    %553 = vector.load %arg1[%c0_156, %c8_157, %c0_158] : memref<2x16x384xf32, #tpu.memory_space<vmem>>, vector<2x1x384xf32>
    %554 = vector.shape_cast %553 : vector<2x1x384xf32> to vector<2x384xf32>
    %cst_159 = arith.constant dense<0.000000e+00> : vector<2x384xf32>
    %555 = tpu.matmul %515, %3, %cst_159 {dimension_numbers = #tpu.dot_dimension_numbers<[1], [0], [0], [1], [0, 0, 1, 1], [], []>} : vector<2x128xf32>, vector<128x384xf32>, vector<2x384xf32> -> vector<2x384xf32>
    %556 = vector.broadcast %4 : vector<1x384xf32> to vector<2x384xf32>
    %557 = arith.addf %555, %556 : vector<2x384xf32>
    %558 = vector.extract_strided_slice %554 {offsets = [0, 0], sizes = [2, 128], strides = [1, 1]} : vector<2x384xf32> to vector<2x128xf32>
    %559 = vector.extract_strided_slice %557 {offsets = [0, 0], sizes = [2, 128], strides = [1, 1]} : vector<2x384xf32> to vector<2x128xf32>
    %560 = arith.addf %558, %559 : vector<2x128xf32>
    %561 = arith.negf %560 : vector<2x128xf32>
    %562 = math.exp %561 : vector<2x128xf32>
    %cst_160 = arith.constant 1.000000e+00 : f32
    %563 = vector.broadcast %cst_160 : f32 to vector<2x128xf32>
    %564 = arith.addf %563, %562 : vector<2x128xf32>
    %565 = arith.divf %563, %564 : vector<2x128xf32>
    %566 = vector.extract_strided_slice %554 {offsets = [0, 128], sizes = [2, 128], strides = [1, 1]} : vector<2x384xf32> to vector<2x128xf32>
    %567 = vector.extract_strided_slice %557 {offsets = [0, 128], sizes = [2, 128], strides = [1, 1]} : vector<2x384xf32> to vector<2x128xf32>
    %568 = arith.addf %566, %567 : vector<2x128xf32>
    %569 = arith.negf %568 : vector<2x128xf32>
    %570 = math.exp %569 : vector<2x128xf32>
    %cst_161 = arith.constant 1.000000e+00 : f32
    %571 = vector.broadcast %cst_161 : f32 to vector<2x128xf32>
    %572 = arith.addf %571, %570 : vector<2x128xf32>
    %573 = arith.divf %571, %572 : vector<2x128xf32>
    %574 = vector.extract_strided_slice %554 {offsets = [0, 256], sizes = [2, 128], strides = [1, 1]} : vector<2x384xf32> to vector<2x128xf32>
    %575 = vector.extract_strided_slice %557 {offsets = [0, 256], sizes = [2, 128], strides = [1, 1]} : vector<2x384xf32> to vector<2x128xf32>
    %576 = arith.mulf %565, %575 : vector<2x128xf32>
    %577 = arith.addf %574, %576 : vector<2x128xf32>
    %578 = math.tanh %577 : vector<2x128xf32>
    %cst_162 = arith.constant 1.000000e+00 : f32
    %579 = vector.broadcast %cst_162 : f32 to vector<2x128xf32>
    %580 = arith.subf %579, %573 : vector<2x128xf32>
    %581 = arith.mulf %580, %578 : vector<2x128xf32>
    %582 = arith.mulf %573, %515 : vector<2x128xf32>
    %583 = arith.addf %581, %582 : vector<2x128xf32>
    %c0_163 = arith.constant 0 : index
    %c8_164 = arith.constant 8 : index
    %c0_165 = arith.constant 0 : index
    %584 = vector.load %arg7[%c0_163, %c8_164, %c0_165] : memref<2x16x128xf32, #tpu.memory_space<vmem>>, vector<2x1x128xf32>
    %585 = vector.shape_cast %584 : vector<2x1x128xf32> to vector<2x128xf32>
    %586 = vector.shape_cast %583 : vector<2x128xf32> to vector<2x1x128xf32>
    tpu.vector_store %arg7[%c0_163, %c8_164, %c0_165], %586 {strides = array<i32>} : memref<2x16x128xf32, #tpu.memory_space<vmem>>, vector<2x1x128xf32>,
    %c0_166 = arith.constant 0 : index
    %c7_167 = arith.constant 7 : index
    %c0_168 = arith.constant 0 : index
    %587 = vector.load %arg2[%c0_166, %c7_167, %c0_168] : memref<2x16x384xf32, #tpu.memory_space<vmem>>, vector<2x1x384xf32>
    %588 = vector.shape_cast %587 : vector<2x1x384xf32> to vector<2x384xf32>
    %cst_169 = arith.constant dense<0.000000e+00> : vector<2x384xf32>
    %589 = tpu.matmul %549, %5, %cst_169 {dimension_numbers = #tpu.dot_dimension_numbers<[1], [0], [0], [1], [0, 0, 1, 1], [], []>} : vector<2x128xf32>, vector<128x384xf32>, vector<2x384xf32> -> vector<2x384xf32>
    %590 = vector.broadcast %6 : vector<1x384xf32> to vector<2x384xf32>
    %591 = arith.addf %589, %590 : vector<2x384xf32>
    %592 = vector.extract_strided_slice %588 {offsets = [0, 0], sizes = [2, 128], strides = [1, 1]} : vector<2x384xf32> to vector<2x128xf32>
    %593 = vector.extract_strided_slice %591 {offsets = [0, 0], sizes = [2, 128], strides = [1, 1]} : vector<2x384xf32> to vector<2x128xf32>
    %594 = arith.addf %592, %593 : vector<2x128xf32>
    %595 = arith.negf %594 : vector<2x128xf32>
    %596 = math.exp %595 : vector<2x128xf32>
    %cst_170 = arith.constant 1.000000e+00 : f32
    %597 = vector.broadcast %cst_170 : f32 to vector<2x128xf32>
    %598 = arith.addf %597, %596 : vector<2x128xf32>
    %599 = arith.divf %597, %598 : vector<2x128xf32>
    %600 = vector.extract_strided_slice %588 {offsets = [0, 128], sizes = [2, 128], strides = [1, 1]} : vector<2x384xf32> to vector<2x128xf32>
    %601 = vector.extract_strided_slice %591 {offsets = [0, 128], sizes = [2, 128], strides = [1, 1]} : vector<2x384xf32> to vector<2x128xf32>
    %602 = arith.addf %600, %601 : vector<2x128xf32>
    %603 = arith.negf %602 : vector<2x128xf32>
    %604 = math.exp %603 : vector<2x128xf32>
    %cst_171 = arith.constant 1.000000e+00 : f32
    %605 = vector.broadcast %cst_171 : f32 to vector<2x128xf32>
    %606 = arith.addf %605, %604 : vector<2x128xf32>
    %607 = arith.divf %605, %606 : vector<2x128xf32>
    %608 = vector.extract_strided_slice %588 {offsets = [0, 256], sizes = [2, 128], strides = [1, 1]} : vector<2x384xf32> to vector<2x128xf32>
    %609 = vector.extract_strided_slice %591 {offsets = [0, 256], sizes = [2, 128], strides = [1, 1]} : vector<2x384xf32> to vector<2x128xf32>
    %610 = arith.mulf %599, %609 : vector<2x128xf32>
    %611 = arith.addf %608, %610 : vector<2x128xf32>
    %612 = math.tanh %611 : vector<2x128xf32>
    %cst_172 = arith.constant 1.000000e+00 : f32
    %613 = vector.broadcast %cst_172 : f32 to vector<2x128xf32>
    %614 = arith.subf %613, %607 : vector<2x128xf32>
    %615 = arith.mulf %614, %612 : vector<2x128xf32>
    %616 = arith.mulf %607, %549 : vector<2x128xf32>
    %617 = arith.addf %615, %616 : vector<2x128xf32>
    %c0_173 = arith.constant 0 : index
    %c7_174 = arith.constant 7 : index
    %c0_175 = arith.constant 0 : index
    %618 = vector.load %arg8[%c0_173, %c7_174, %c0_175] : memref<2x16x128xf32, #tpu.memory_space<vmem>>, vector<2x1x128xf32>
    %619 = vector.shape_cast %618 : vector<2x1x128xf32> to vector<2x128xf32>
    %620 = vector.shape_cast %617 : vector<2x128xf32> to vector<2x1x128xf32>
    tpu.vector_store %arg8[%c0_173, %c7_174, %c0_175], %620 {strides = array<i32>} : memref<2x16x128xf32, #tpu.memory_space<vmem>>, vector<2x1x128xf32>,
    %c0_176 = arith.constant 0 : index
    %c9_177 = arith.constant 9 : index
    %c0_178 = arith.constant 0 : index
    %621 = vector.load %arg1[%c0_176, %c9_177, %c0_178] : memref<2x16x384xf32, #tpu.memory_space<vmem>>, vector<2x1x384xf32>
    %622 = vector.shape_cast %621 : vector<2x1x384xf32> to vector<2x384xf32>
    %cst_179 = arith.constant dense<0.000000e+00> : vector<2x384xf32>
    %623 = tpu.matmul %583, %3, %cst_179 {dimension_numbers = #tpu.dot_dimension_numbers<[1], [0], [0], [1], [0, 0, 1, 1], [], []>} : vector<2x128xf32>, vector<128x384xf32>, vector<2x384xf32> -> vector<2x384xf32>
    %624 = vector.broadcast %4 : vector<1x384xf32> to vector<2x384xf32>
    %625 = arith.addf %623, %624 : vector<2x384xf32>
    %626 = vector.extract_strided_slice %622 {offsets = [0, 0], sizes = [2, 128], strides = [1, 1]} : vector<2x384xf32> to vector<2x128xf32>
    %627 = vector.extract_strided_slice %625 {offsets = [0, 0], sizes = [2, 128], strides = [1, 1]} : vector<2x384xf32> to vector<2x128xf32>
    %628 = arith.addf %626, %627 : vector<2x128xf32>
    %629 = arith.negf %628 : vector<2x128xf32>
    %630 = math.exp %629 : vector<2x128xf32>
    %cst_180 = arith.constant 1.000000e+00 : f32
    %631 = vector.broadcast %cst_180 : f32 to vector<2x128xf32>
    %632 = arith.addf %631, %630 : vector<2x128xf32>
    %633 = arith.divf %631, %632 : vector<2x128xf32>
    %634 = vector.extract_strided_slice %622 {offsets = [0, 128], sizes = [2, 128], strides = [1, 1]} : vector<2x384xf32> to vector<2x128xf32>
    %635 = vector.extract_strided_slice %625 {offsets = [0, 128], sizes = [2, 128], strides = [1, 1]} : vector<2x384xf32> to vector<2x128xf32>
    %636 = arith.addf %634, %635 : vector<2x128xf32>
    %637 = arith.negf %636 : vector<2x128xf32>
    %638 = math.exp %637 : vector<2x128xf32>
    %cst_181 = arith.constant 1.000000e+00 : f32
    %639 = vector.broadcast %cst_181 : f32 to vector<2x128xf32>
    %640 = arith.addf %639, %638 : vector<2x128xf32>
    %641 = arith.divf %639, %640 : vector<2x128xf32>
    %642 = vector.extract_strided_slice %622 {offsets = [0, 256], sizes = [2, 128], strides = [1, 1]} : vector<2x384xf32> to vector<2x128xf32>
    %643 = vector.extract_strided_slice %625 {offsets = [0, 256], sizes = [2, 128], strides = [1, 1]} : vector<2x384xf32> to vector<2x128xf32>
    %644 = arith.mulf %633, %643 : vector<2x128xf32>
    %645 = arith.addf %642, %644 : vector<2x128xf32>
    %646 = math.tanh %645 : vector<2x128xf32>
    %cst_182 = arith.constant 1.000000e+00 : f32
    %647 = vector.broadcast %cst_182 : f32 to vector<2x128xf32>
    %648 = arith.subf %647, %641 : vector<2x128xf32>
    %649 = arith.mulf %648, %646 : vector<2x128xf32>
    %650 = arith.mulf %641, %583 : vector<2x128xf32>
    %651 = arith.addf %649, %650 : vector<2x128xf32>
    %c0_183 = arith.constant 0 : index
    %c9_184 = arith.constant 9 : index
    %c0_185 = arith.constant 0 : index
    %652 = vector.load %arg7[%c0_183, %c9_184, %c0_185] : memref<2x16x128xf32, #tpu.memory_space<vmem>>, vector<2x1x128xf32>
    %653 = vector.shape_cast %652 : vector<2x1x128xf32> to vector<2x128xf32>
    %654 = vector.shape_cast %651 : vector<2x128xf32> to vector<2x1x128xf32>
    tpu.vector_store %arg7[%c0_183, %c9_184, %c0_185], %654 {strides = array<i32>} : memref<2x16x128xf32, #tpu.memory_space<vmem>>, vector<2x1x128xf32>,
    %c0_186 = arith.constant 0 : index
    %c6_187 = arith.constant 6 : index
    %c0_188 = arith.constant 0 : index
    %655 = vector.load %arg2[%c0_186, %c6_187, %c0_188] : memref<2x16x384xf32, #tpu.memory_space<vmem>>, vector<2x1x384xf32>
    %656 = vector.shape_cast %655 : vector<2x1x384xf32> to vector<2x384xf32>
    %cst_189 = arith.constant dense<0.000000e+00> : vector<2x384xf32>
    %657 = tpu.matmul %617, %5, %cst_189 {dimension_numbers = #tpu.dot_dimension_numbers<[1], [0], [0], [1], [0, 0, 1, 1], [], []>} : vector<2x128xf32>, vector<128x384xf32>, vector<2x384xf32> -> vector<2x384xf32>
    %658 = vector.broadcast %6 : vector<1x384xf32> to vector<2x384xf32>
    %659 = arith.addf %657, %658 : vector<2x384xf32>
    %660 = vector.extract_strided_slice %656 {offsets = [0, 0], sizes = [2, 128], strides = [1, 1]} : vector<2x384xf32> to vector<2x128xf32>
    %661 = vector.extract_strided_slice %659 {offsets = [0, 0], sizes = [2, 128], strides = [1, 1]} : vector<2x384xf32> to vector<2x128xf32>
    %662 = arith.addf %660, %661 : vector<2x128xf32>
    %663 = arith.negf %662 : vector<2x128xf32>
    %664 = math.exp %663 : vector<2x128xf32>
    %cst_190 = arith.constant 1.000000e+00 : f32
    %665 = vector.broadcast %cst_190 : f32 to vector<2x128xf32>
    %666 = arith.addf %665, %664 : vector<2x128xf32>
    %667 = arith.divf %665, %666 : vector<2x128xf32>
    %668 = vector.extract_strided_slice %656 {offsets = [0, 128], sizes = [2, 128], strides = [1, 1]} : vector<2x384xf32> to vector<2x128xf32>
    %669 = vector.extract_strided_slice %659 {offsets = [0, 128], sizes = [2, 128], strides = [1, 1]} : vector<2x384xf32> to vector<2x128xf32>
    %670 = arith.addf %668, %669 : vector<2x128xf32>
    %671 = arith.negf %670 : vector<2x128xf32>
    %672 = math.exp %671 : vector<2x128xf32>
    %cst_191 = arith.constant 1.000000e+00 : f32
    %673 = vector.broadcast %cst_191 : f32 to vector<2x128xf32>
    %674 = arith.addf %673, %672 : vector<2x128xf32>
    %675 = arith.divf %673, %674 : vector<2x128xf32>
    %676 = vector.extract_strided_slice %656 {offsets = [0, 256], sizes = [2, 128], strides = [1, 1]} : vector<2x384xf32> to vector<2x128xf32>
    %677 = vector.extract_strided_slice %659 {offsets = [0, 256], sizes = [2, 128], strides = [1, 1]} : vector<2x384xf32> to vector<2x128xf32>
    %678 = arith.mulf %667, %677 : vector<2x128xf32>
    %679 = arith.addf %676, %678 : vector<2x128xf32>
    %680 = math.tanh %679 : vector<2x128xf32>
    %cst_192 = arith.constant 1.000000e+00 : f32
    %681 = vector.broadcast %cst_192 : f32 to vector<2x128xf32>
    %682 = arith.subf %681, %675 : vector<2x128xf32>
    %683 = arith.mulf %682, %680 : vector<2x128xf32>
    %684 = arith.mulf %675, %617 : vector<2x128xf32>
    %685 = arith.addf %683, %684 : vector<2x128xf32>
    %c0_193 = arith.constant 0 : index
    %c6_194 = arith.constant 6 : index
    %c0_195 = arith.constant 0 : index
    %686 = vector.load %arg8[%c0_193, %c6_194, %c0_195] : memref<2x16x128xf32, #tpu.memory_space<vmem>>, vector<2x1x128xf32>
    %687 = vector.shape_cast %686 : vector<2x1x128xf32> to vector<2x128xf32>
    %688 = vector.shape_cast %685 : vector<2x128xf32> to vector<2x1x128xf32>
    tpu.vector_store %arg8[%c0_193, %c6_194, %c0_195], %688 {strides = array<i32>} : memref<2x16x128xf32, #tpu.memory_space<vmem>>, vector<2x1x128xf32>,
    %c0_196 = arith.constant 0 : index
    %c10_197 = arith.constant 10 : index
    %c0_198 = arith.constant 0 : index
    %689 = vector.load %arg1[%c0_196, %c10_197, %c0_198] : memref<2x16x384xf32, #tpu.memory_space<vmem>>, vector<2x1x384xf32>
    %690 = vector.shape_cast %689 : vector<2x1x384xf32> to vector<2x384xf32>
    %cst_199 = arith.constant dense<0.000000e+00> : vector<2x384xf32>
    %691 = tpu.matmul %651, %3, %cst_199 {dimension_numbers = #tpu.dot_dimension_numbers<[1], [0], [0], [1], [0, 0, 1, 1], [], []>} : vector<2x128xf32>, vector<128x384xf32>, vector<2x384xf32> -> vector<2x384xf32>
    %692 = vector.broadcast %4 : vector<1x384xf32> to vector<2x384xf32>
    %693 = arith.addf %691, %692 : vector<2x384xf32>
    %694 = vector.extract_strided_slice %690 {offsets = [0, 0], sizes = [2, 128], strides = [1, 1]} : vector<2x384xf32> to vector<2x128xf32>
    %695 = vector.extract_strided_slice %693 {offsets = [0, 0], sizes = [2, 128], strides = [1, 1]} : vector<2x384xf32> to vector<2x128xf32>
    %696 = arith.addf %694, %695 : vector<2x128xf32>
    %697 = arith.negf %696 : vector<2x128xf32>
    %698 = math.exp %697 : vector<2x128xf32>
    %cst_200 = arith.constant 1.000000e+00 : f32
    %699 = vector.broadcast %cst_200 : f32 to vector<2x128xf32>
    %700 = arith.addf %699, %698 : vector<2x128xf32>
    %701 = arith.divf %699, %700 : vector<2x128xf32>
    %702 = vector.extract_strided_slice %690 {offsets = [0, 128], sizes = [2, 128], strides = [1, 1]} : vector<2x384xf32> to vector<2x128xf32>
    %703 = vector.extract_strided_slice %693 {offsets = [0, 128], sizes = [2, 128], strides = [1, 1]} : vector<2x384xf32> to vector<2x128xf32>
    %704 = arith.addf %702, %703 : vector<2x128xf32>
    %705 = arith.negf %704 : vector<2x128xf32>
    %706 = math.exp %705 : vector<2x128xf32>
    %cst_201 = arith.constant 1.000000e+00 : f32
    %707 = vector.broadcast %cst_201 : f32 to vector<2x128xf32>
    %708 = arith.addf %707, %706 : vector<2x128xf32>
    %709 = arith.divf %707, %708 : vector<2x128xf32>
    %710 = vector.extract_strided_slice %690 {offsets = [0, 256], sizes = [2, 128], strides = [1, 1]} : vector<2x384xf32> to vector<2x128xf32>
    %711 = vector.extract_strided_slice %693 {offsets = [0, 256], sizes = [2, 128], strides = [1, 1]} : vector<2x384xf32> to vector<2x128xf32>
    %712 = arith.mulf %701, %711 : vector<2x128xf32>
    %713 = arith.addf %710, %712 : vector<2x128xf32>
    %714 = math.tanh %713 : vector<2x128xf32>
    %cst_202 = arith.constant 1.000000e+00 : f32
    %715 = vector.broadcast %cst_202 : f32 to vector<2x128xf32>
    %716 = arith.subf %715, %709 : vector<2x128xf32>
    %717 = arith.mulf %716, %714 : vector<2x128xf32>
    %718 = arith.mulf %709, %651 : vector<2x128xf32>
    %719 = arith.addf %717, %718 : vector<2x128xf32>
    %c0_203 = arith.constant 0 : index
    %c10_204 = arith.constant 10 : index
    %c0_205 = arith.constant 0 : index
    %720 = vector.load %arg7[%c0_203, %c10_204, %c0_205] : memref<2x16x128xf32, #tpu.memory_space<vmem>>, vector<2x1x128xf32>
    %721 = vector.shape_cast %720 : vector<2x1x128xf32> to vector<2x128xf32>
    %722 = vector.shape_cast %719 : vector<2x128xf32> to vector<2x1x128xf32>
    tpu.vector_store %arg7[%c0_203, %c10_204, %c0_205], %722 {strides = array<i32>} : memref<2x16x128xf32, #tpu.memory_space<vmem>>, vector<2x1x128xf32>,
    %c0_206 = arith.constant 0 : index
    %c5_207 = arith.constant 5 : index
    %c0_208 = arith.constant 0 : index
    %723 = vector.load %arg2[%c0_206, %c5_207, %c0_208] : memref<2x16x384xf32, #tpu.memory_space<vmem>>, vector<2x1x384xf32>
    %724 = vector.shape_cast %723 : vector<2x1x384xf32> to vector<2x384xf32>
    %cst_209 = arith.constant dense<0.000000e+00> : vector<2x384xf32>
    %725 = tpu.matmul %685, %5, %cst_209 {dimension_numbers = #tpu.dot_dimension_numbers<[1], [0], [0], [1], [0, 0, 1, 1], [], []>} : vector<2x128xf32>, vector<128x384xf32>, vector<2x384xf32> -> vector<2x384xf32>
    %726 = vector.broadcast %6 : vector<1x384xf32> to vector<2x384xf32>
    %727 = arith.addf %725, %726 : vector<2x384xf32>
    %728 = vector.extract_strided_slice %724 {offsets = [0, 0], sizes = [2, 128], strides = [1, 1]} : vector<2x384xf32> to vector<2x128xf32>
    %729 = vector.extract_strided_slice %727 {offsets = [0, 0], sizes = [2, 128], strides = [1, 1]} : vector<2x384xf32> to vector<2x128xf32>
    %730 = arith.addf %728, %729 : vector<2x128xf32>
    %731 = arith.negf %730 : vector<2x128xf32>
    %732 = math.exp %731 : vector<2x128xf32>
    %cst_210 = arith.constant 1.000000e+00 : f32
    %733 = vector.broadcast %cst_210 : f32 to vector<2x128xf32>
    %734 = arith.addf %733, %732 : vector<2x128xf32>
    %735 = arith.divf %733, %734 : vector<2x128xf32>
    %736 = vector.extract_strided_slice %724 {offsets = [0, 128], sizes = [2, 128], strides = [1, 1]} : vector<2x384xf32> to vector<2x128xf32>
    %737 = vector.extract_strided_slice %727 {offsets = [0, 128], sizes = [2, 128], strides = [1, 1]} : vector<2x384xf32> to vector<2x128xf32>
    %738 = arith.addf %736, %737 : vector<2x128xf32>
    %739 = arith.negf %738 : vector<2x128xf32>
    %740 = math.exp %739 : vector<2x128xf32>
    %cst_211 = arith.constant 1.000000e+00 : f32
    %741 = vector.broadcast %cst_211 : f32 to vector<2x128xf32>
    %742 = arith.addf %741, %740 : vector<2x128xf32>
    %743 = arith.divf %741, %742 : vector<2x128xf32>
    %744 = vector.extract_strided_slice %724 {offsets = [0, 256], sizes = [2, 128], strides = [1, 1]} : vector<2x384xf32> to vector<2x128xf32>
    %745 = vector.extract_strided_slice %727 {offsets = [0, 256], sizes = [2, 128], strides = [1, 1]} : vector<2x384xf32> to vector<2x128xf32>
    %746 = arith.mulf %735, %745 : vector<2x128xf32>
    %747 = arith.addf %744, %746 : vector<2x128xf32>
    %748 = math.tanh %747 : vector<2x128xf32>
    %cst_212 = arith.constant 1.000000e+00 : f32
    %749 = vector.broadcast %cst_212 : f32 to vector<2x128xf32>
    %750 = arith.subf %749, %743 : vector<2x128xf32>
    %751 = arith.mulf %750, %748 : vector<2x128xf32>
    %752 = arith.mulf %743, %685 : vector<2x128xf32>
    %753 = arith.addf %751, %752 : vector<2x128xf32>
    %c0_213 = arith.constant 0 : index
    %c5_214 = arith.constant 5 : index
    %c0_215 = arith.constant 0 : index
    %754 = vector.load %arg8[%c0_213, %c5_214, %c0_215] : memref<2x16x128xf32, #tpu.memory_space<vmem>>, vector<2x1x128xf32>
    %755 = vector.shape_cast %754 : vector<2x1x128xf32> to vector<2x128xf32>
    %756 = vector.shape_cast %753 : vector<2x128xf32> to vector<2x1x128xf32>
    tpu.vector_store %arg8[%c0_213, %c5_214, %c0_215], %756 {strides = array<i32>} : memref<2x16x128xf32, #tpu.memory_space<vmem>>, vector<2x1x128xf32>,
    %c0_216 = arith.constant 0 : index
    %c11_217 = arith.constant 11 : index
    %c0_218 = arith.constant 0 : index
    %757 = vector.load %arg1[%c0_216, %c11_217, %c0_218] : memref<2x16x384xf32, #tpu.memory_space<vmem>>, vector<2x1x384xf32>
    %758 = vector.shape_cast %757 : vector<2x1x384xf32> to vector<2x384xf32>
    %cst_219 = arith.constant dense<0.000000e+00> : vector<2x384xf32>
    %759 = tpu.matmul %719, %3, %cst_219 {dimension_numbers = #tpu.dot_dimension_numbers<[1], [0], [0], [1], [0, 0, 1, 1], [], []>} : vector<2x128xf32>, vector<128x384xf32>, vector<2x384xf32> -> vector<2x384xf32>
    %760 = vector.broadcast %4 : vector<1x384xf32> to vector<2x384xf32>
    %761 = arith.addf %759, %760 : vector<2x384xf32>
    %762 = vector.extract_strided_slice %758 {offsets = [0, 0], sizes = [2, 128], strides = [1, 1]} : vector<2x384xf32> to vector<2x128xf32>
    %763 = vector.extract_strided_slice %761 {offsets = [0, 0], sizes = [2, 128], strides = [1, 1]} : vector<2x384xf32> to vector<2x128xf32>
    %764 = arith.addf %762, %763 : vector<2x128xf32>
    %765 = arith.negf %764 : vector<2x128xf32>
    %766 = math.exp %765 : vector<2x128xf32>
    %cst_220 = arith.constant 1.000000e+00 : f32
    %767 = vector.broadcast %cst_220 : f32 to vector<2x128xf32>
    %768 = arith.addf %767, %766 : vector<2x128xf32>
    %769 = arith.divf %767, %768 : vector<2x128xf32>
    %770 = vector.extract_strided_slice %758 {offsets = [0, 128], sizes = [2, 128], strides = [1, 1]} : vector<2x384xf32> to vector<2x128xf32>
    %771 = vector.extract_strided_slice %761 {offsets = [0, 128], sizes = [2, 128], strides = [1, 1]} : vector<2x384xf32> to vector<2x128xf32>
    %772 = arith.addf %770, %771 : vector<2x128xf32>
    %773 = arith.negf %772 : vector<2x128xf32>
    %774 = math.exp %773 : vector<2x128xf32>
    %cst_221 = arith.constant 1.000000e+00 : f32
    %775 = vector.broadcast %cst_221 : f32 to vector<2x128xf32>
    %776 = arith.addf %775, %774 : vector<2x128xf32>
    %777 = arith.divf %775, %776 : vector<2x128xf32>
    %778 = vector.extract_strided_slice %758 {offsets = [0, 256], sizes = [2, 128], strides = [1, 1]} : vector<2x384xf32> to vector<2x128xf32>
    %779 = vector.extract_strided_slice %761 {offsets = [0, 256], sizes = [2, 128], strides = [1, 1]} : vector<2x384xf32> to vector<2x128xf32>
    %780 = arith.mulf %769, %779 : vector<2x128xf32>
    %781 = arith.addf %778, %780 : vector<2x128xf32>
    %782 = math.tanh %781 : vector<2x128xf32>
    %cst_222 = arith.constant 1.000000e+00 : f32
    %783 = vector.broadcast %cst_222 : f32 to vector<2x128xf32>
    %784 = arith.subf %783, %777 : vector<2x128xf32>
    %785 = arith.mulf %784, %782 : vector<2x128xf32>
    %786 = arith.mulf %777, %719 : vector<2x128xf32>
    %787 = arith.addf %785, %786 : vector<2x128xf32>
    %c0_223 = arith.constant 0 : index
    %c11_224 = arith.constant 11 : index
    %c0_225 = arith.constant 0 : index
    %788 = vector.load %arg7[%c0_223, %c11_224, %c0_225] : memref<2x16x128xf32, #tpu.memory_space<vmem>>, vector<2x1x128xf32>
    %789 = vector.shape_cast %788 : vector<2x1x128xf32> to vector<2x128xf32>
    %790 = vector.shape_cast %787 : vector<2x128xf32> to vector<2x1x128xf32>
    tpu.vector_store %arg7[%c0_223, %c11_224, %c0_225], %790 {strides = array<i32>} : memref<2x16x128xf32, #tpu.memory_space<vmem>>, vector<2x1x128xf32>,
    %c0_226 = arith.constant 0 : index
    %c4_227 = arith.constant 4 : index
    %c0_228 = arith.constant 0 : index
    %791 = vector.load %arg2[%c0_226, %c4_227, %c0_228] : memref<2x16x384xf32, #tpu.memory_space<vmem>>, vector<2x1x384xf32>
    %792 = vector.shape_cast %791 : vector<2x1x384xf32> to vector<2x384xf32>
    %cst_229 = arith.constant dense<0.000000e+00> : vector<2x384xf32>
    %793 = tpu.matmul %753, %5, %cst_229 {dimension_numbers = #tpu.dot_dimension_numbers<[1], [0], [0], [1], [0, 0, 1, 1], [], []>} : vector<2x128xf32>, vector<128x384xf32>, vector<2x384xf32> -> vector<2x384xf32>
    %794 = vector.broadcast %6 : vector<1x384xf32> to vector<2x384xf32>
    %795 = arith.addf %793, %794 : vector<2x384xf32>
    %796 = vector.extract_strided_slice %792 {offsets = [0, 0], sizes = [2, 128], strides = [1, 1]} : vector<2x384xf32> to vector<2x128xf32>
    %797 = vector.extract_strided_slice %795 {offsets = [0, 0], sizes = [2, 128], strides = [1, 1]} : vector<2x384xf32> to vector<2x128xf32>
    %798 = arith.addf %796, %797 : vector<2x128xf32>
    %799 = arith.negf %798 : vector<2x128xf32>
    %800 = math.exp %799 : vector<2x128xf32>
    %cst_230 = arith.constant 1.000000e+00 : f32
    %801 = vector.broadcast %cst_230 : f32 to vector<2x128xf32>
    %802 = arith.addf %801, %800 : vector<2x128xf32>
    %803 = arith.divf %801, %802 : vector<2x128xf32>
    %804 = vector.extract_strided_slice %792 {offsets = [0, 128], sizes = [2, 128], strides = [1, 1]} : vector<2x384xf32> to vector<2x128xf32>
    %805 = vector.extract_strided_slice %795 {offsets = [0, 128], sizes = [2, 128], strides = [1, 1]} : vector<2x384xf32> to vector<2x128xf32>
    %806 = arith.addf %804, %805 : vector<2x128xf32>
    %807 = arith.negf %806 : vector<2x128xf32>
    %808 = math.exp %807 : vector<2x128xf32>
    %cst_231 = arith.constant 1.000000e+00 : f32
    %809 = vector.broadcast %cst_231 : f32 to vector<2x128xf32>
    %810 = arith.addf %809, %808 : vector<2x128xf32>
    %811 = arith.divf %809, %810 : vector<2x128xf32>
    %812 = vector.extract_strided_slice %792 {offsets = [0, 256], sizes = [2, 128], strides = [1, 1]} : vector<2x384xf32> to vector<2x128xf32>
    %813 = vector.extract_strided_slice %795 {offsets = [0, 256], sizes = [2, 128], strides = [1, 1]} : vector<2x384xf32> to vector<2x128xf32>
    %814 = arith.mulf %803, %813 : vector<2x128xf32>
    %815 = arith.addf %812, %814 : vector<2x128xf32>
    %816 = math.tanh %815 : vector<2x128xf32>
    %cst_232 = arith.constant 1.000000e+00 : f32
    %817 = vector.broadcast %cst_232 : f32 to vector<2x128xf32>
    %818 = arith.subf %817, %811 : vector<2x128xf32>
    %819 = arith.mulf %818, %816 : vector<2x128xf32>
    %820 = arith.mulf %811, %753 : vector<2x128xf32>
    %821 = arith.addf %819, %820 : vector<2x128xf32>
    %c0_233 = arith.constant 0 : index
    %c4_234 = arith.constant 4 : index
    %c0_235 = arith.constant 0 : index
    %822 = vector.load %arg8[%c0_233, %c4_234, %c0_235] : memref<2x16x128xf32, #tpu.memory_space<vmem>>, vector<2x1x128xf32>
    %823 = vector.shape_cast %822 : vector<2x1x128xf32> to vector<2x128xf32>
    %824 = vector.shape_cast %821 : vector<2x128xf32> to vector<2x1x128xf32>
    tpu.vector_store %arg8[%c0_233, %c4_234, %c0_235], %824 {strides = array<i32>} : memref<2x16x128xf32, #tpu.memory_space<vmem>>, vector<2x1x128xf32>,
    %c0_236 = arith.constant 0 : index
    %c12_237 = arith.constant 12 : index
    %c0_238 = arith.constant 0 : index
    %825 = vector.load %arg1[%c0_236, %c12_237, %c0_238] : memref<2x16x384xf32, #tpu.memory_space<vmem>>, vector<2x1x384xf32>
    %826 = vector.shape_cast %825 : vector<2x1x384xf32> to vector<2x384xf32>
    %cst_239 = arith.constant dense<0.000000e+00> : vector<2x384xf32>
    %827 = tpu.matmul %787, %3, %cst_239 {dimension_numbers = #tpu.dot_dimension_numbers<[1], [0], [0], [1], [0, 0, 1, 1], [], []>} : vector<2x128xf32>, vector<128x384xf32>, vector<2x384xf32> -> vector<2x384xf32>
    %828 = vector.broadcast %4 : vector<1x384xf32> to vector<2x384xf32>
    %829 = arith.addf %827, %828 : vector<2x384xf32>
    %830 = vector.extract_strided_slice %826 {offsets = [0, 0], sizes = [2, 128], strides = [1, 1]} : vector<2x384xf32> to vector<2x128xf32>
    %831 = vector.extract_strided_slice %829 {offsets = [0, 0], sizes = [2, 128], strides = [1, 1]} : vector<2x384xf32> to vector<2x128xf32>
    %832 = arith.addf %830, %831 : vector<2x128xf32>
    %833 = arith.negf %832 : vector<2x128xf32>
    %834 = math.exp %833 : vector<2x128xf32>
    %cst_240 = arith.constant 1.000000e+00 : f32
    %835 = vector.broadcast %cst_240 : f32 to vector<2x128xf32>
    %836 = arith.addf %835, %834 : vector<2x128xf32>
    %837 = arith.divf %835, %836 : vector<2x128xf32>
    %838 = vector.extract_strided_slice %826 {offsets = [0, 128], sizes = [2, 128], strides = [1, 1]} : vector<2x384xf32> to vector<2x128xf32>
    %839 = vector.extract_strided_slice %829 {offsets = [0, 128], sizes = [2, 128], strides = [1, 1]} : vector<2x384xf32> to vector<2x128xf32>
    %840 = arith.addf %838, %839 : vector<2x128xf32>
    %841 = arith.negf %840 : vector<2x128xf32>
    %842 = math.exp %841 : vector<2x128xf32>
    %cst_241 = arith.constant 1.000000e+00 : f32
    %843 = vector.broadcast %cst_241 : f32 to vector<2x128xf32>
    %844 = arith.addf %843, %842 : vector<2x128xf32>
    %845 = arith.divf %843, %844 : vector<2x128xf32>
    %846 = vector.extract_strided_slice %826 {offsets = [0, 256], sizes = [2, 128], strides = [1, 1]} : vector<2x384xf32> to vector<2x128xf32>
    %847 = vector.extract_strided_slice %829 {offsets = [0, 256], sizes = [2, 128], strides = [1, 1]} : vector<2x384xf32> to vector<2x128xf32>
    %848 = arith.mulf %837, %847 : vector<2x128xf32>
    %849 = arith.addf %846, %848 : vector<2x128xf32>
    %850 = math.tanh %849 : vector<2x128xf32>
    %cst_242 = arith.constant 1.000000e+00 : f32
    %851 = vector.broadcast %cst_242 : f32 to vector<2x128xf32>
    %852 = arith.subf %851, %845 : vector<2x128xf32>
    %853 = arith.mulf %852, %850 : vector<2x128xf32>
    %854 = arith.mulf %845, %787 : vector<2x128xf32>
    %855 = arith.addf %853, %854 : vector<2x128xf32>
    %c0_243 = arith.constant 0 : index
    %c12_244 = arith.constant 12 : index
    %c0_245 = arith.constant 0 : index
    %856 = vector.load %arg7[%c0_243, %c12_244, %c0_245] : memref<2x16x128xf32, #tpu.memory_space<vmem>>, vector<2x1x128xf32>
    %857 = vector.shape_cast %856 : vector<2x1x128xf32> to vector<2x128xf32>
    %858 = vector.shape_cast %855 : vector<2x128xf32> to vector<2x1x128xf32>
    tpu.vector_store %arg7[%c0_243, %c12_244, %c0_245], %858 {strides = array<i32>} : memref<2x16x128xf32, #tpu.memory_space<vmem>>, vector<2x1x128xf32>,
    %c0_246 = arith.constant 0 : index
    %c3_247 = arith.constant 3 : index
    %c0_248 = arith.constant 0 : index
    %859 = vector.load %arg2[%c0_246, %c3_247, %c0_248] : memref<2x16x384xf32, #tpu.memory_space<vmem>>, vector<2x1x384xf32>
    %860 = vector.shape_cast %859 : vector<2x1x384xf32> to vector<2x384xf32>
    %cst_249 = arith.constant dense<0.000000e+00> : vector<2x384xf32>
    %861 = tpu.matmul %821, %5, %cst_249 {dimension_numbers = #tpu.dot_dimension_numbers<[1], [0], [0], [1], [0, 0, 1, 1], [], []>} : vector<2x128xf32>, vector<128x384xf32>, vector<2x384xf32> -> vector<2x384xf32>
    %862 = vector.broadcast %6 : vector<1x384xf32> to vector<2x384xf32>
    %863 = arith.addf %861, %862 : vector<2x384xf32>
    %864 = vector.extract_strided_slice %860 {offsets = [0, 0], sizes = [2, 128], strides = [1, 1]} : vector<2x384xf32> to vector<2x128xf32>
    %865 = vector.extract_strided_slice %863 {offsets = [0, 0], sizes = [2, 128], strides = [1, 1]} : vector<2x384xf32> to vector<2x128xf32>
    %866 = arith.addf %864, %865 : vector<2x128xf32>
    %867 = arith.negf %866 : vector<2x128xf32>
    %868 = math.exp %867 : vector<2x128xf32>
    %cst_250 = arith.constant 1.000000e+00 : f32
    %869 = vector.broadcast %cst_250 : f32 to vector<2x128xf32>
    %870 = arith.addf %869, %868 : vector<2x128xf32>
    %871 = arith.divf %869, %870 : vector<2x128xf32>
    %872 = vector.extract_strided_slice %860 {offsets = [0, 128], sizes = [2, 128], strides = [1, 1]} : vector<2x384xf32> to vector<2x128xf32>
    %873 = vector.extract_strided_slice %863 {offsets = [0, 128], sizes = [2, 128], strides = [1, 1]} : vector<2x384xf32> to vector<2x128xf32>
    %874 = arith.addf %872, %873 : vector<2x128xf32>
    %875 = arith.negf %874 : vector<2x128xf32>
    %876 = math.exp %875 : vector<2x128xf32>
    %cst_251 = arith.constant 1.000000e+00 : f32
    %877 = vector.broadcast %cst_251 : f32 to vector<2x128xf32>
    %878 = arith.addf %877, %876 : vector<2x128xf32>
    %879 = arith.divf %877, %878 : vector<2x128xf32>
    %880 = vector.extract_strided_slice %860 {offsets = [0, 256], sizes = [2, 128], strides = [1, 1]} : vector<2x384xf32> to vector<2x128xf32>
    %881 = vector.extract_strided_slice %863 {offsets = [0, 256], sizes = [2, 128], strides = [1, 1]} : vector<2x384xf32> to vector<2x128xf32>
    %882 = arith.mulf %871, %881 : vector<2x128xf32>
    %883 = arith.addf %880, %882 : vector<2x128xf32>
    %884 = math.tanh %883 : vector<2x128xf32>
    %cst_252 = arith.constant 1.000000e+00 : f32
    %885 = vector.broadcast %cst_252 : f32 to vector<2x128xf32>
    %886 = arith.subf %885, %879 : vector<2x128xf32>
    %887 = arith.mulf %886, %884 : vector<2x128xf32>
    %888 = arith.mulf %879, %821 : vector<2x128xf32>
    %889 = arith.addf %887, %888 : vector<2x128xf32>
    %c0_253 = arith.constant 0 : index
    %c3_254 = arith.constant 3 : index
    %c0_255 = arith.constant 0 : index
    %890 = vector.load %arg8[%c0_253, %c3_254, %c0_255] : memref<2x16x128xf32, #tpu.memory_space<vmem>>, vector<2x1x128xf32>
    %891 = vector.shape_cast %890 : vector<2x1x128xf32> to vector<2x128xf32>
    %892 = vector.shape_cast %889 : vector<2x128xf32> to vector<2x1x128xf32>
    tpu.vector_store %arg8[%c0_253, %c3_254, %c0_255], %892 {strides = array<i32>} : memref<2x16x128xf32, #tpu.memory_space<vmem>>, vector<2x1x128xf32>,
    %c0_256 = arith.constant 0 : index
    %c13_257 = arith.constant 13 : index
    %c0_258 = arith.constant 0 : index
    %893 = vector.load %arg1[%c0_256, %c13_257, %c0_258] : memref<2x16x384xf32, #tpu.memory_space<vmem>>, vector<2x1x384xf32>
    %894 = vector.shape_cast %893 : vector<2x1x384xf32> to vector<2x384xf32>
    %cst_259 = arith.constant dense<0.000000e+00> : vector<2x384xf32>
    %895 = tpu.matmul %855, %3, %cst_259 {dimension_numbers = #tpu.dot_dimension_numbers<[1], [0], [0], [1], [0, 0, 1, 1], [], []>} : vector<2x128xf32>, vector<128x384xf32>, vector<2x384xf32> -> vector<2x384xf32>
    %896 = vector.broadcast %4 : vector<1x384xf32> to vector<2x384xf32>
    %897 = arith.addf %895, %896 : vector<2x384xf32>
    %898 = vector.extract_strided_slice %894 {offsets = [0, 0], sizes = [2, 128], strides = [1, 1]} : vector<2x384xf32> to vector<2x128xf32>
    %899 = vector.extract_strided_slice %897 {offsets = [0, 0], sizes = [2, 128], strides = [1, 1]} : vector<2x384xf32> to vector<2x128xf32>
    %900 = arith.addf %898, %899 : vector<2x128xf32>
    %901 = arith.negf %900 : vector<2x128xf32>
    %902 = math.exp %901 : vector<2x128xf32>
    %cst_260 = arith.constant 1.000000e+00 : f32
    %903 = vector.broadcast %cst_260 : f32 to vector<2x128xf32>
    %904 = arith.addf %903, %902 : vector<2x128xf32>
    %905 = arith.divf %903, %904 : vector<2x128xf32>
    %906 = vector.extract_strided_slice %894 {offsets = [0, 128], sizes = [2, 128], strides = [1, 1]} : vector<2x384xf32> to vector<2x128xf32>
    %907 = vector.extract_strided_slice %897 {offsets = [0, 128], sizes = [2, 128], strides = [1, 1]} : vector<2x384xf32> to vector<2x128xf32>
    %908 = arith.addf %906, %907 : vector<2x128xf32>
    %909 = arith.negf %908 : vector<2x128xf32>
    %910 = math.exp %909 : vector<2x128xf32>
    %cst_261 = arith.constant 1.000000e+00 : f32
    %911 = vector.broadcast %cst_261 : f32 to vector<2x128xf32>
    %912 = arith.addf %911, %910 : vector<2x128xf32>
    %913 = arith.divf %911, %912 : vector<2x128xf32>
    %914 = vector.extract_strided_slice %894 {offsets = [0, 256], sizes = [2, 128], strides = [1, 1]} : vector<2x384xf32> to vector<2x128xf32>
    %915 = vector.extract_strided_slice %897 {offsets = [0, 256], sizes = [2, 128], strides = [1, 1]} : vector<2x384xf32> to vector<2x128xf32>
    %916 = arith.mulf %905, %915 : vector<2x128xf32>
    %917 = arith.addf %914, %916 : vector<2x128xf32>
    %918 = math.tanh %917 : vector<2x128xf32>
    %cst_262 = arith.constant 1.000000e+00 : f32
    %919 = vector.broadcast %cst_262 : f32 to vector<2x128xf32>
    %920 = arith.subf %919, %913 : vector<2x128xf32>
    %921 = arith.mulf %920, %918 : vector<2x128xf32>
    %922 = arith.mulf %913, %855 : vector<2x128xf32>
    %923 = arith.addf %921, %922 : vector<2x128xf32>
    %c0_263 = arith.constant 0 : index
    %c13_264 = arith.constant 13 : index
    %c0_265 = arith.constant 0 : index
    %924 = vector.load %arg7[%c0_263, %c13_264, %c0_265] : memref<2x16x128xf32, #tpu.memory_space<vmem>>, vector<2x1x128xf32>
    %925 = vector.shape_cast %924 : vector<2x1x128xf32> to vector<2x128xf32>
    %926 = vector.shape_cast %923 : vector<2x128xf32> to vector<2x1x128xf32>
    tpu.vector_store %arg7[%c0_263, %c13_264, %c0_265], %926 {strides = array<i32>} : memref<2x16x128xf32, #tpu.memory_space<vmem>>, vector<2x1x128xf32>,
    %c0_266 = arith.constant 0 : index
    %c2_267 = arith.constant 2 : index
    %c0_268 = arith.constant 0 : index
    %927 = vector.load %arg2[%c0_266, %c2_267, %c0_268] : memref<2x16x384xf32, #tpu.memory_space<vmem>>, vector<2x1x384xf32>
    %928 = vector.shape_cast %927 : vector<2x1x384xf32> to vector<2x384xf32>
    %cst_269 = arith.constant dense<0.000000e+00> : vector<2x384xf32>
    %929 = tpu.matmul %889, %5, %cst_269 {dimension_numbers = #tpu.dot_dimension_numbers<[1], [0], [0], [1], [0, 0, 1, 1], [], []>} : vector<2x128xf32>, vector<128x384xf32>, vector<2x384xf32> -> vector<2x384xf32>
    %930 = vector.broadcast %6 : vector<1x384xf32> to vector<2x384xf32>
    %931 = arith.addf %929, %930 : vector<2x384xf32>
    %932 = vector.extract_strided_slice %928 {offsets = [0, 0], sizes = [2, 128], strides = [1, 1]} : vector<2x384xf32> to vector<2x128xf32>
    %933 = vector.extract_strided_slice %931 {offsets = [0, 0], sizes = [2, 128], strides = [1, 1]} : vector<2x384xf32> to vector<2x128xf32>
    %934 = arith.addf %932, %933 : vector<2x128xf32>
    %935 = arith.negf %934 : vector<2x128xf32>
    %936 = math.exp %935 : vector<2x128xf32>
    %cst_270 = arith.constant 1.000000e+00 : f32
    %937 = vector.broadcast %cst_270 : f32 to vector<2x128xf32>
    %938 = arith.addf %937, %936 : vector<2x128xf32>
    %939 = arith.divf %937, %938 : vector<2x128xf32>
    %940 = vector.extract_strided_slice %928 {offsets = [0, 128], sizes = [2, 128], strides = [1, 1]} : vector<2x384xf32> to vector<2x128xf32>
    %941 = vector.extract_strided_slice %931 {offsets = [0, 128], sizes = [2, 128], strides = [1, 1]} : vector<2x384xf32> to vector<2x128xf32>
    %942 = arith.addf %940, %941 : vector<2x128xf32>
    %943 = arith.negf %942 : vector<2x128xf32>
    %944 = math.exp %943 : vector<2x128xf32>
    %cst_271 = arith.constant 1.000000e+00 : f32
    %945 = vector.broadcast %cst_271 : f32 to vector<2x128xf32>
    %946 = arith.addf %945, %944 : vector<2x128xf32>
    %947 = arith.divf %945, %946 : vector<2x128xf32>
    %948 = vector.extract_strided_slice %928 {offsets = [0, 256], sizes = [2, 128], strides = [1, 1]} : vector<2x384xf32> to vector<2x128xf32>
    %949 = vector.extract_strided_slice %931 {offsets = [0, 256], sizes = [2, 128], strides = [1, 1]} : vector<2x384xf32> to vector<2x128xf32>
    %950 = arith.mulf %939, %949 : vector<2x128xf32>
    %951 = arith.addf %948, %950 : vector<2x128xf32>
    %952 = math.tanh %951 : vector<2x128xf32>
    %cst_272 = arith.constant 1.000000e+00 : f32
    %953 = vector.broadcast %cst_272 : f32 to vector<2x128xf32>
    %954 = arith.subf %953, %947 : vector<2x128xf32>
    %955 = arith.mulf %954, %952 : vector<2x128xf32>
    %956 = arith.mulf %947, %889 : vector<2x128xf32>
    %957 = arith.addf %955, %956 : vector<2x128xf32>
    %c0_273 = arith.constant 0 : index
    %c2_274 = arith.constant 2 : index
    %c0_275 = arith.constant 0 : index
    %958 = vector.load %arg8[%c0_273, %c2_274, %c0_275] : memref<2x16x128xf32, #tpu.memory_space<vmem>>, vector<2x1x128xf32>
    %959 = vector.shape_cast %958 : vector<2x1x128xf32> to vector<2x128xf32>
    %960 = vector.shape_cast %957 : vector<2x128xf32> to vector<2x1x128xf32>
    tpu.vector_store %arg8[%c0_273, %c2_274, %c0_275], %960 {strides = array<i32>} : memref<2x16x128xf32, #tpu.memory_space<vmem>>, vector<2x1x128xf32>,
    %c0_276 = arith.constant 0 : index
    %c14_277 = arith.constant 14 : index
    %c0_278 = arith.constant 0 : index
    %961 = vector.load %arg1[%c0_276, %c14_277, %c0_278] : memref<2x16x384xf32, #tpu.memory_space<vmem>>, vector<2x1x384xf32>
    %962 = vector.shape_cast %961 : vector<2x1x384xf32> to vector<2x384xf32>
    %cst_279 = arith.constant dense<0.000000e+00> : vector<2x384xf32>
    %963 = tpu.matmul %923, %3, %cst_279 {dimension_numbers = #tpu.dot_dimension_numbers<[1], [0], [0], [1], [0, 0, 1, 1], [], []>} : vector<2x128xf32>, vector<128x384xf32>, vector<2x384xf32> -> vector<2x384xf32>
    %964 = vector.broadcast %4 : vector<1x384xf32> to vector<2x384xf32>
    %965 = arith.addf %963, %964 : vector<2x384xf32>
    %966 = vector.extract_strided_slice %962 {offsets = [0, 0], sizes = [2, 128], strides = [1, 1]} : vector<2x384xf32> to vector<2x128xf32>
    %967 = vector.extract_strided_slice %965 {offsets = [0, 0], sizes = [2, 128], strides = [1, 1]} : vector<2x384xf32> to vector<2x128xf32>
    %968 = arith.addf %966, %967 : vector<2x128xf32>
    %969 = arith.negf %968 : vector<2x128xf32>
    %970 = math.exp %969 : vector<2x128xf32>
    %cst_280 = arith.constant 1.000000e+00 : f32
    %971 = vector.broadcast %cst_280 : f32 to vector<2x128xf32>
    %972 = arith.addf %971, %970 : vector<2x128xf32>
    %973 = arith.divf %971, %972 : vector<2x128xf32>
    %974 = vector.extract_strided_slice %962 {offsets = [0, 128], sizes = [2, 128], strides = [1, 1]} : vector<2x384xf32> to vector<2x128xf32>
    %975 = vector.extract_strided_slice %965 {offsets = [0, 128], sizes = [2, 128], strides = [1, 1]} : vector<2x384xf32> to vector<2x128xf32>
    %976 = arith.addf %974, %975 : vector<2x128xf32>
    %977 = arith.negf %976 : vector<2x128xf32>
    %978 = math.exp %977 : vector<2x128xf32>
    %cst_281 = arith.constant 1.000000e+00 : f32
    %979 = vector.broadcast %cst_281 : f32 to vector<2x128xf32>
    %980 = arith.addf %979, %978 : vector<2x128xf32>
    %981 = arith.divf %979, %980 : vector<2x128xf32>
    %982 = vector.extract_strided_slice %962 {offsets = [0, 256], sizes = [2, 128], strides = [1, 1]} : vector<2x384xf32> to vector<2x128xf32>
    %983 = vector.extract_strided_slice %965 {offsets = [0, 256], sizes = [2, 128], strides = [1, 1]} : vector<2x384xf32> to vector<2x128xf32>
    %984 = arith.mulf %973, %983 : vector<2x128xf32>
    %985 = arith.addf %982, %984 : vector<2x128xf32>
    %986 = math.tanh %985 : vector<2x128xf32>
    %cst_282 = arith.constant 1.000000e+00 : f32
    %987 = vector.broadcast %cst_282 : f32 to vector<2x128xf32>
    %988 = arith.subf %987, %981 : vector<2x128xf32>
    %989 = arith.mulf %988, %986 : vector<2x128xf32>
    %990 = arith.mulf %981, %923 : vector<2x128xf32>
    %991 = arith.addf %989, %990 : vector<2x128xf32>
    %c0_283 = arith.constant 0 : index
    %c14_284 = arith.constant 14 : index
    %c0_285 = arith.constant 0 : index
    %992 = vector.load %arg7[%c0_283, %c14_284, %c0_285] : memref<2x16x128xf32, #tpu.memory_space<vmem>>, vector<2x1x128xf32>
    %993 = vector.shape_cast %992 : vector<2x1x128xf32> to vector<2x128xf32>
    %994 = vector.shape_cast %991 : vector<2x128xf32> to vector<2x1x128xf32>
    tpu.vector_store %arg7[%c0_283, %c14_284, %c0_285], %994 {strides = array<i32>} : memref<2x16x128xf32, #tpu.memory_space<vmem>>, vector<2x1x128xf32>,
    %c0_286 = arith.constant 0 : index
    %c1_287 = arith.constant 1 : index
    %c0_288 = arith.constant 0 : index
    %995 = vector.load %arg2[%c0_286, %c1_287, %c0_288] : memref<2x16x384xf32, #tpu.memory_space<vmem>>, vector<2x1x384xf32>
    %996 = vector.shape_cast %995 : vector<2x1x384xf32> to vector<2x384xf32>
    %cst_289 = arith.constant dense<0.000000e+00> : vector<2x384xf32>
    %997 = tpu.matmul %957, %5, %cst_289 {dimension_numbers = #tpu.dot_dimension_numbers<[1], [0], [0], [1], [0, 0, 1, 1], [], []>} : vector<2x128xf32>, vector<128x384xf32>, vector<2x384xf32> -> vector<2x384xf32>
    %998 = vector.broadcast %6 : vector<1x384xf32> to vector<2x384xf32>
    %999 = arith.addf %997, %998 : vector<2x384xf32>
    %1000 = vector.extract_strided_slice %996 {offsets = [0, 0], sizes = [2, 128], strides = [1, 1]} : vector<2x384xf32> to vector<2x128xf32>
    %1001 = vector.extract_strided_slice %999 {offsets = [0, 0], sizes = [2, 128], strides = [1, 1]} : vector<2x384xf32> to vector<2x128xf32>
    %1002 = arith.addf %1000, %1001 : vector<2x128xf32>
    %1003 = arith.negf %1002 : vector<2x128xf32>
    %1004 = math.exp %1003 : vector<2x128xf32>
    %cst_290 = arith.constant 1.000000e+00 : f32
    %1005 = vector.broadcast %cst_290 : f32 to vector<2x128xf32>
    %1006 = arith.addf %1005, %1004 : vector<2x128xf32>
    %1007 = arith.divf %1005, %1006 : vector<2x128xf32>
    %1008 = vector.extract_strided_slice %996 {offsets = [0, 128], sizes = [2, 128], strides = [1, 1]} : vector<2x384xf32> to vector<2x128xf32>
    %1009 = vector.extract_strided_slice %999 {offsets = [0, 128], sizes = [2, 128], strides = [1, 1]} : vector<2x384xf32> to vector<2x128xf32>
    %1010 = arith.addf %1008, %1009 : vector<2x128xf32>
    %1011 = arith.negf %1010 : vector<2x128xf32>
    %1012 = math.exp %1011 : vector<2x128xf32>
    %cst_291 = arith.constant 1.000000e+00 : f32
    %1013 = vector.broadcast %cst_291 : f32 to vector<2x128xf32>
    %1014 = arith.addf %1013, %1012 : vector<2x128xf32>
    %1015 = arith.divf %1013, %1014 : vector<2x128xf32>
    %1016 = vector.extract_strided_slice %996 {offsets = [0, 256], sizes = [2, 128], strides = [1, 1]} : vector<2x384xf32> to vector<2x128xf32>
    %1017 = vector.extract_strided_slice %999 {offsets = [0, 256], sizes = [2, 128], strides = [1, 1]} : vector<2x384xf32> to vector<2x128xf32>
    %1018 = arith.mulf %1007, %1017 : vector<2x128xf32>
    %1019 = arith.addf %1016, %1018 : vector<2x128xf32>
    %1020 = math.tanh %1019 : vector<2x128xf32>
    %cst_292 = arith.constant 1.000000e+00 : f32
    %1021 = vector.broadcast %cst_292 : f32 to vector<2x128xf32>
    %1022 = arith.subf %1021, %1015 : vector<2x128xf32>
    %1023 = arith.mulf %1022, %1020 : vector<2x128xf32>
    %1024 = arith.mulf %1015, %957 : vector<2x128xf32>
    %1025 = arith.addf %1023, %1024 : vector<2x128xf32>
    %c0_293 = arith.constant 0 : index
    %c1_294 = arith.constant 1 : index
    %c0_295 = arith.constant 0 : index
    %1026 = vector.load %arg8[%c0_293, %c1_294, %c0_295] : memref<2x16x128xf32, #tpu.memory_space<vmem>>, vector<2x1x128xf32>
    %1027 = vector.shape_cast %1026 : vector<2x1x128xf32> to vector<2x128xf32>
    %1028 = vector.shape_cast %1025 : vector<2x128xf32> to vector<2x1x128xf32>
    tpu.vector_store %arg8[%c0_293, %c1_294, %c0_295], %1028 {strides = array<i32>} : memref<2x16x128xf32, #tpu.memory_space<vmem>>, vector<2x1x128xf32>,
    %c0_296 = arith.constant 0 : index
    %c15_297 = arith.constant 15 : index
    %c0_298 = arith.constant 0 : index
    %1029 = vector.load %arg1[%c0_296, %c15_297, %c0_298] : memref<2x16x384xf32, #tpu.memory_space<vmem>>, vector<2x1x384xf32>
    %1030 = vector.shape_cast %1029 : vector<2x1x384xf32> to vector<2x384xf32>
    %cst_299 = arith.constant dense<0.000000e+00> : vector<2x384xf32>
    %1031 = tpu.matmul %991, %3, %cst_299 {dimension_numbers = #tpu.dot_dimension_numbers<[1], [0], [0], [1], [0, 0, 1, 1], [], []>} : vector<2x128xf32>, vector<128x384xf32>, vector<2x384xf32> -> vector<2x384xf32>
    %1032 = vector.broadcast %4 : vector<1x384xf32> to vector<2x384xf32>
    %1033 = arith.addf %1031, %1032 : vector<2x384xf32>
    %1034 = vector.extract_strided_slice %1030 {offsets = [0, 0], sizes = [2, 128], strides = [1, 1]} : vector<2x384xf32> to vector<2x128xf32>
    %1035 = vector.extract_strided_slice %1033 {offsets = [0, 0], sizes = [2, 128], strides = [1, 1]} : vector<2x384xf32> to vector<2x128xf32>
    %1036 = arith.addf %1034, %1035 : vector<2x128xf32>
    %1037 = arith.negf %1036 : vector<2x128xf32>
    %1038 = math.exp %1037 : vector<2x128xf32>
    %cst_300 = arith.constant 1.000000e+00 : f32
    %1039 = vector.broadcast %cst_300 : f32 to vector<2x128xf32>
    %1040 = arith.addf %1039, %1038 : vector<2x128xf32>
    %1041 = arith.divf %1039, %1040 : vector<2x128xf32>
    %1042 = vector.extract_strided_slice %1030 {offsets = [0, 128], sizes = [2, 128], strides = [1, 1]} : vector<2x384xf32> to vector<2x128xf32>
    %1043 = vector.extract_strided_slice %1033 {offsets = [0, 128], sizes = [2, 128], strides = [1, 1]} : vector<2x384xf32> to vector<2x128xf32>
    %1044 = arith.addf %1042, %1043 : vector<2x128xf32>
    %1045 = arith.negf %1044 : vector<2x128xf32>
    %1046 = math.exp %1045 : vector<2x128xf32>
    %cst_301 = arith.constant 1.000000e+00 : f32
    %1047 = vector.broadcast %cst_301 : f32 to vector<2x128xf32>
    %1048 = arith.addf %1047, %1046 : vector<2x128xf32>
    %1049 = arith.divf %1047, %1048 : vector<2x128xf32>
    %1050 = vector.extract_strided_slice %1030 {offsets = [0, 256], sizes = [2, 128], strides = [1, 1]} : vector<2x384xf32> to vector<2x128xf32>
    %1051 = vector.extract_strided_slice %1033 {offsets = [0, 256], sizes = [2, 128], strides = [1, 1]} : vector<2x384xf32> to vector<2x128xf32>
    %1052 = arith.mulf %1041, %1051 : vector<2x128xf32>
    %1053 = arith.addf %1050, %1052 : vector<2x128xf32>
    %1054 = math.tanh %1053 : vector<2x128xf32>
    %cst_302 = arith.constant 1.000000e+00 : f32
    %1055 = vector.broadcast %cst_302 : f32 to vector<2x128xf32>
    %1056 = arith.subf %1055, %1049 : vector<2x128xf32>
    %1057 = arith.mulf %1056, %1054 : vector<2x128xf32>
    %1058 = arith.mulf %1049, %991 : vector<2x128xf32>
    %1059 = arith.addf %1057, %1058 : vector<2x128xf32>
    %c0_303 = arith.constant 0 : index
    %c15_304 = arith.constant 15 : index
    %c0_305 = arith.constant 0 : index
    %1060 = vector.load %arg7[%c0_303, %c15_304, %c0_305] : memref<2x16x128xf32, #tpu.memory_space<vmem>>, vector<2x1x128xf32>
    %1061 = vector.shape_cast %1060 : vector<2x1x128xf32> to vector<2x128xf32>
    %1062 = vector.shape_cast %1059 : vector<2x128xf32> to vector<2x1x128xf32>
    tpu.vector_store %arg7[%c0_303, %c15_304, %c0_305], %1062 {strides = array<i32>} : memref<2x16x128xf32, #tpu.memory_space<vmem>>, vector<2x1x128xf32>,
    %c0_306 = arith.constant 0 : index
    %c0_307 = arith.constant 0 : index
    %c0_308 = arith.constant 0 : index
    %1063 = vector.load %arg2[%c0_306, %c0_307, %c0_308] : memref<2x16x384xf32, #tpu.memory_space<vmem>>, vector<2x1x384xf32>
    %1064 = vector.shape_cast %1063 : vector<2x1x384xf32> to vector<2x384xf32>
    %cst_309 = arith.constant dense<0.000000e+00> : vector<2x384xf32>
    %1065 = tpu.matmul %1025, %5, %cst_309 {dimension_numbers = #tpu.dot_dimension_numbers<[1], [0], [0], [1], [0, 0, 1, 1], [], []>} : vector<2x128xf32>, vector<128x384xf32>, vector<2x384xf32> -> vector<2x384xf32>
    %1066 = vector.broadcast %6 : vector<1x384xf32> to vector<2x384xf32>
    %1067 = arith.addf %1065, %1066 : vector<2x384xf32>
    %1068 = vector.extract_strided_slice %1064 {offsets = [0, 0], sizes = [2, 128], strides = [1, 1]} : vector<2x384xf32> to vector<2x128xf32>
    %1069 = vector.extract_strided_slice %1067 {offsets = [0, 0], sizes = [2, 128], strides = [1, 1]} : vector<2x384xf32> to vector<2x128xf32>
    %1070 = arith.addf %1068, %1069 : vector<2x128xf32>
    %1071 = arith.negf %1070 : vector<2x128xf32>
    %1072 = math.exp %1071 : vector<2x128xf32>
    %cst_310 = arith.constant 1.000000e+00 : f32
    %1073 = vector.broadcast %cst_310 : f32 to vector<2x128xf32>
    %1074 = arith.addf %1073, %1072 : vector<2x128xf32>
    %1075 = arith.divf %1073, %1074 : vector<2x128xf32>
    %1076 = vector.extract_strided_slice %1064 {offsets = [0, 128], sizes = [2, 128], strides = [1, 1]} : vector<2x384xf32> to vector<2x128xf32>
    %1077 = vector.extract_strided_slice %1067 {offsets = [0, 128], sizes = [2, 128], strides = [1, 1]} : vector<2x384xf32> to vector<2x128xf32>
    %1078 = arith.addf %1076, %1077 : vector<2x128xf32>
    %1079 = arith.negf %1078 : vector<2x128xf32>
    %1080 = math.exp %1079 : vector<2x128xf32>
    %cst_311 = arith.constant 1.000000e+00 : f32
    %1081 = vector.broadcast %cst_311 : f32 to vector<2x128xf32>
    %1082 = arith.addf %1081, %1080 : vector<2x128xf32>
    %1083 = arith.divf %1081, %1082 : vector<2x128xf32>
    %1084 = vector.extract_strided_slice %1064 {offsets = [0, 256], sizes = [2, 128], strides = [1, 1]} : vector<2x384xf32> to vector<2x128xf32>
    %1085 = vector.extract_strided_slice %1067 {offsets = [0, 256], sizes = [2, 128], strides = [1, 1]} : vector<2x384xf32> to vector<2x128xf32>
    %1086 = arith.mulf %1075, %1085 : vector<2x128xf32>
    %1087 = arith.addf %1084, %1086 : vector<2x128xf32>
    %1088 = math.tanh %1087 : vector<2x128xf32>
    %cst_312 = arith.constant 1.000000e+00 : f32
    %1089 = vector.broadcast %cst_312 : f32 to vector<2x128xf32>
    %1090 = arith.subf %1089, %1083 : vector<2x128xf32>
    %1091 = arith.mulf %1090, %1088 : vector<2x128xf32>
    %1092 = arith.mulf %1083, %1025 : vector<2x128xf32>
    %1093 = arith.addf %1091, %1092 : vector<2x128xf32>
    %c0_313 = arith.constant 0 : index
    %c0_314 = arith.constant 0 : index
    %c0_315 = arith.constant 0 : index
    %1094 = vector.load %arg8[%c0_313, %c0_314, %c0_315] : memref<2x16x128xf32, #tpu.memory_space<vmem>>, vector<2x1x128xf32>
    %1095 = vector.shape_cast %1094 : vector<2x1x128xf32> to vector<2x128xf32>
    %1096 = vector.shape_cast %1093 : vector<2x128xf32> to vector<2x1x128xf32>
    tpu.vector_store %arg8[%c0_313, %c0_314, %c0_315], %1096 {strides = array<i32>} : memref<2x16x128xf32, #tpu.memory_space<vmem>>, vector<2x1x128xf32>,
    %c0_316 = arith.constant 0 : index
    %c0_317 = arith.constant 0 : index
    %1097 = vector.load %arg9[%c0_316, %c0_317] : memref<2x128xf32, #tpu.memory_space<vmem>>, vector<2x128xf32>
    tpu.vector_store %arg9[%c0_316, %c0_317], %1059 {strides = array<i32>} : memref<2x128xf32, #tpu.memory_space<vmem>>, vector<2x128xf32>,
    %c0_318 = arith.constant 0 : index
    %c0_319 = arith.constant 0 : index
    %1098 = vector.load %arg10[%c0_318, %c0_319] : memref<2x128xf32, #tpu.memory_space<vmem>>, vector<2x128xf32>
    tpu.vector_store %arg10[%c0_318, %c0_319], %1093 {strides = array<i32>} : memref<2x128xf32, #tpu.memory_space<vmem>>, vector<2x128xf32>,
    return
  }
  func.func @transform_0(%arg0: i32) -> (i32, i32, i32) {
    %c0_i32 = arith.constant 0 : i32
    %c0_i32_0 = arith.constant 0 : i32
    %c0_i32_1 = arith.constant 0 : i32
    return %c0_i32, %arg0, %c0_i32_0 : i32, i32, i32
  }
  func.func @transform_1(%arg0: i32) -> (i32, i32, i32) {
    %c0_i32 = arith.constant 0 : i32
    %0 = arith.subi %c0_i32, %arg0 : i32
    %c0_i32_0 = arith.constant 0 : i32
    %c0_i32_1 = arith.constant 0 : i32
    %c0_i32_2 = arith.constant 0 : i32
    return %c0_i32_0, %0, %c0_i32_1 : i32, i32, i32
  }
  func.func @transform_2(%arg0: i32) -> (i32, i32) {
    %c0_i32 = arith.constant 0 : i32
    %c0_i32_0 = arith.constant 0 : i32
    %c0_i32_1 = arith.constant 0 : i32
    return %c0_i32, %c0_i32_0 : i32, i32
  }
  func.func @transform_3(%arg0: i32) -> (i32, i32) {
    %c0_i32 = arith.constant 0 : i32
    %c0_i32_0 = arith.constant 0 : i32
    %c0_i32_1 = arith.constant 0 : i32
    return %c0_i32, %c0_i32_0 : i32, i32
  }
  func.func @transform_4(%arg0: i32) -> (i32, i32) {
    %c0_i32 = arith.constant 0 : i32
    %c0_i32_0 = arith.constant 0 : i32
    %c0_i32_1 = arith.constant 0 : i32
    return %c0_i32, %c0_i32_0 : i32, i32
  }
  func.func @transform_5(%arg0: i32) -> (i32, i32) {
    %c0_i32 = arith.constant 0 : i32
    %c0_i32_0 = arith.constant 0 : i32
    %c0_i32_1 = arith.constant 0 : i32
    return %c0_i32, %c0_i32_0 : i32, i32
  }
  func.func @transform_6(%arg0: i32) -> (i32, i32, i32) {
    %c0_i32 = arith.constant 0 : i32
    %c0_i32_0 = arith.constant 0 : i32
    %c0_i32_1 = arith.constant 0 : i32
    return %c0_i32, %arg0, %c0_i32_0 : i32, i32, i32
  }
  func.func @transform_7(%arg0: i32) -> (i32, i32, i32) {
    %c0_i32 = arith.constant 0 : i32
    %0 = arith.subi %c0_i32, %arg0 : i32
    %c0_i32_0 = arith.constant 0 : i32
    %c0_i32_1 = arith.constant 0 : i32
    %c0_i32_2 = arith.constant 0 : i32
    return %c0_i32_0, %0, %c0_i32_1 : i32, i32, i32
  }
}

module attributes {stable_mosaic.version = 11 : i64} {
  func.func @_linear_kernel(%arg0: i32, %arg1: memref<32x256xf32, #tpu.memory_space<vmem>>, %arg2: memref<256x768xf32, #tpu.memory_space<vmem>>, %arg3: memref<1x768xf32, #tpu.memory_space<vmem>>, %arg4: memref<32x768xf32, #tpu.memory_space<vmem>>) attributes {dimension_semantics = [#tpu.dimension_semantics<parallel>], iteration_bounds = array<i64: 1>, scalar_prefetch = 0 : i64, scratch_operands = 0 : i64, tpu.core_type = #tpu.core_type<tc>, window_params = [{transform_indices = @transform_0, window_bounds = array<i64: 32, 256>}, {pipeline_mode = #tpu.pipeline_mode<synchronous>, transform_indices = @transform_1, window_bounds = array<i64: 256, 768>}, {pipeline_mode = #tpu.pipeline_mode<synchronous>, transform_indices = @transform_2, window_bounds = array<i64: 1, 768>}, {transform_indices = @transform_3, window_bounds = array<i64: 32, 768>}]} {
    %c0 = arith.constant 0 : index
    %c0_0 = arith.constant 0 : index
    %0 = vector.load %arg1[%c0, %c0_0] : memref<32x256xf32, #tpu.memory_space<vmem>>, vector<32x256xf32>
    %c0_1 = arith.constant 0 : index
    %c0_2 = arith.constant 0 : index
    %1 = vector.load %arg2[%c0_1, %c0_2] : memref<256x768xf32, #tpu.memory_space<vmem>>, vector<256x768xf32>
    %cst = arith.constant dense<0.000000e+00> : vector<32x768xf32>
    %2 = tpu.matmul %0, %1, %cst {dimension_numbers = #tpu.dot_dimension_numbers<[1], [0], [0], [1], [0, 0, 1, 1], [], []>} : vector<32x256xf32>, vector<256x768xf32>, vector<32x768xf32> -> vector<32x768xf32>
    %c0_3 = arith.constant 0 : index
    %c0_4 = arith.constant 0 : index
    %3 = vector.load %arg3[%c0_3, %c0_4] : memref<1x768xf32, #tpu.memory_space<vmem>>, vector<1x768xf32>
    %4 = vector.broadcast %3 : vector<1x768xf32> to vector<32x768xf32>
    %5 = arith.addf %2, %4 : vector<32x768xf32>
    %c0_5 = arith.constant 0 : index
    %c0_6 = arith.constant 0 : index
    %6 = vector.load %arg4[%c0_5, %c0_6] : memref<32x768xf32, #tpu.memory_space<vmem>>, vector<32x768xf32>
    tpu.vector_store %arg4[%c0_5, %c0_6], %5 {strides = array<i32>} : memref<32x768xf32, #tpu.memory_space<vmem>>, vector<32x768xf32>,
    return
  }
  func.func @transform_0(%arg0: i32) -> (i32, i32) {
    %c0_i32 = arith.constant 0 : i32
    %c0_i32_0 = arith.constant 0 : i32
    return %arg0, %c0_i32 : i32, i32
  }
  func.func @transform_1(%arg0: i32) -> (i32, i32) {
    %c0_i32 = arith.constant 0 : i32
    %c0_i32_0 = arith.constant 0 : i32
    %c0_i32_1 = arith.constant 0 : i32
    return %c0_i32, %c0_i32_0 : i32, i32
  }
  func.func @transform_2(%arg0: i32) -> (i32, i32) {
    %c0_i32 = arith.constant 0 : i32
    %c0_i32_0 = arith.constant 0 : i32
    %c0_i32_1 = arith.constant 0 : i32
    return %c0_i32, %c0_i32_0 : i32, i32
  }
  func.func @transform_3(%arg0: i32) -> (i32, i32) {
    %c0_i32 = arith.constant 0 : i32
    %c0_i32_0 = arith.constant 0 : i32
    return %arg0, %c0_i32 : i32, i32
  }
}

module attributes {stable_mosaic.version = 11 : i64} {
  func.func @_linear_kernel(%arg0: i32, %arg1: memref<32x256xf32, #tpu.memory_space<vmem>>, %arg2: memref<256x128xf32, #tpu.memory_space<vmem>>, %arg3: memref<1x128xf32, #tpu.memory_space<vmem>>, %arg4: memref<32x128xf32, #tpu.memory_space<vmem>>) attributes {dimension_semantics = [#tpu.dimension_semantics<parallel>], iteration_bounds = array<i64: 1>, scalar_prefetch = 0 : i64, scratch_operands = 0 : i64, tpu.core_type = #tpu.core_type<tc>, window_params = [{transform_indices = @transform_0, window_bounds = array<i64: 32, 256>}, {pipeline_mode = #tpu.pipeline_mode<synchronous>, transform_indices = @transform_1, window_bounds = array<i64: 256, 128>}, {pipeline_mode = #tpu.pipeline_mode<synchronous>, transform_indices = @transform_2, window_bounds = array<i64: 1, 128>}, {transform_indices = @transform_3, window_bounds = array<i64: 32, 128>}]} {
    %c0 = arith.constant 0 : index
    %c0_0 = arith.constant 0 : index
    %0 = vector.load %arg1[%c0, %c0_0] : memref<32x256xf32, #tpu.memory_space<vmem>>, vector<32x256xf32>
    %c0_1 = arith.constant 0 : index
    %c0_2 = arith.constant 0 : index
    %1 = vector.load %arg2[%c0_1, %c0_2] : memref<256x128xf32, #tpu.memory_space<vmem>>, vector<256x128xf32>
    %cst = arith.constant dense<0.000000e+00> : vector<32x128xf32>
    %2 = tpu.matmul %0, %1, %cst {dimension_numbers = #tpu.dot_dimension_numbers<[1], [0], [0], [1], [0, 0, 1, 1], [], []>} : vector<32x256xf32>, vector<256x128xf32>, vector<32x128xf32> -> vector<32x128xf32>
    %c0_3 = arith.constant 0 : index
    %c0_4 = arith.constant 0 : index
    %3 = vector.load %arg3[%c0_3, %c0_4] : memref<1x128xf32, #tpu.memory_space<vmem>>, vector<1x128xf32>
    %4 = vector.broadcast %3 : vector<1x128xf32> to vector<32x128xf32>
    %5 = arith.addf %2, %4 : vector<32x128xf32>
    %c0_5 = arith.constant 0 : index
    %c0_6 = arith.constant 0 : index
    %6 = vector.load %arg4[%c0_5, %c0_6] : memref<32x128xf32, #tpu.memory_space<vmem>>, vector<32x128xf32>
    tpu.vector_store %arg4[%c0_5, %c0_6], %5 {strides = array<i32>} : memref<32x128xf32, #tpu.memory_space<vmem>>, vector<32x128xf32>,
    return
  }
  func.func @transform_0(%arg0: i32) -> (i32, i32) {
    %c0_i32 = arith.constant 0 : i32
    %c0_i32_0 = arith.constant 0 : i32
    return %arg0, %c0_i32 : i32, i32
  }
  func.func @transform_1(%arg0: i32) -> (i32, i32) {
    %c0_i32 = arith.constant 0 : i32
    %c0_i32_0 = arith.constant 0 : i32
    %c0_i32_1 = arith.constant 0 : i32
    return %c0_i32, %c0_i32_0 : i32, i32
  }
  func.func @transform_2(%arg0: i32) -> (i32, i32) {
    %c0_i32 = arith.constant 0 : i32
    %c0_i32_0 = arith.constant 0 : i32
    %c0_i32_1 = arith.constant 0 : i32
    return %c0_i32, %c0_i32_0 : i32, i32
  }
  func.func @transform_3(%arg0: i32) -> (i32, i32) {
    %c0_i32 = arith.constant 0 : i32
    %c0_i32_0 = arith.constant 0 : i32
    return %arg0, %c0_i32 : i32, i32
  }
}

</mosaic_0001>

<bundles_post_ra>
// kernel: naive_caller_forward.12
= control target key start
LH: loop header
LB: loop body
LE: loop exit
PB: predicated region body
PF: predicated region fallthrough
CT: control target
= control target key end

     0   :  { %s42_s10 = smov 96   ;;  %vm32_vm0 = vcmask 261120   ;;  %s77_s0 = inlined_call_operand.vmem [shape: f32[32,64], index: 0, kind: input, shape index: {}]   ;;  %s78_s1 = inlined_call_operand.vmem [shape: f32[32,32], index: 1, kind: output, shape index: {}]  }
   0x1   :  { %v10_v0 = vld [vmem:[%s77_s0 + $0x10] sm:$0xff]  ;;  %v8_v1 = vld [vmem:[%s77_s0] sm:$0xff]  ;;  %v11_v2 = vld [vmem:[%s77_s0 + $0x18] sm:$0xff] }
   0x2   :  { %20 = vrot.lane.b32.xlu1 %v10_v0, %s42_s10  ;;  %16 = vrot.lane.b32.xlu0 %v8_v1, %s42_s10  ;;  %v9_v3 = vld [vmem:[%s77_s0 + $0x8] sm:$0xff] }
   0x6   :  { %22 = vrot.lane.b32.xlu1 %v11_v2, %s42_s10  ;;  %18 = vrot.lane.b32.xlu0 %v9_v3, %s42_s10 }
  0x74   :  { %v21_v4 = vpop.permute.xlu1 %20  ;;  %v17_v5 = vpop.permute.xlu0 %16 }
  0x75   :  { %v30_v6 = vmax.f32 %v10_v0, %v21_v4  ;;  %v28_v7 = vmax.f32 %v8_v1, %v17_v5 }
  0x77   :  { %35 = vst.msk [vmem:[%s78_s1 + $0x10] sm:$0xff] %vm32_vm0, %v30_v6  ;;  %33 = vst.msk [vmem:[%s78_s1] sm:$0xff] %vm32_vm0, %v28_v7 }
  0x78   :  { %v23_v8 = vpop.permute.xlu1 %22  ;;  %v19_v9 = vpop.permute.xlu0 %18 }
  0x79   :  { %v31_v10 = vmax.f32 %v11_v2, %v23_v8  ;;  %v29_v11 = vmax.f32 %v9_v3, %v19_v9 }
  0x7b   :  { %36 = vst.msk [vmem:[%s78_s1 + $0x18] sm:$0xff] %vm32_vm0, %v31_v10  ;;  %34 = vst.msk [vmem:[%s78_s1 + $0x8] sm:$0xff] %vm32_vm0, %v29_v11 }

// kernel: naive_caller_forward.11
= control target key start
LH: loop header
LB: loop body
LE: loop exit
PB: predicated region body
PF: predicated region fallthrough
CT: control target
= control target key end

     0   :  { %v225_v0 = vmov 0   ;;  %v226_v9 = vmov 1   ;;  %v227_v10 = vmov 2   ;;  %v63_v19 = vlaneseq  ;;  %s326_s0 = inlined_call_operand.vmem [shape: f32[64,3], index: 0, kind: input, shape index: {}]   ;;  %s327_s1 = inlined_call_operand.vmem [shape: f32[3,32], index: 1, kind: input, shape index: {}]   ;;  %s328_s2 = inlined_call_operand.vmem [shape: f32[1,32], index: 2, kind: input, shape index: {}]   ;;  %s329_s3 = inlined_call_operand.vmem [shape: f32[64,32], index: 3, kind: output, shape index: {}]  }
   0x1   :  { %220 = vset.pattern.permute.xlu1 %v225_v0  ;;  %219 = vset.pattern.permute.xlu0 %v225_v0  ;;  %v16_v1 = vld [vmem:[%s326_s0 + $0x10] sm:$0xff]  ;;  %v14_v2 = vld [vmem:[%s326_s0] sm:$0xff]  ;;  %v17_v3 = vld [vmem:[%s326_s0 + $0x18] sm:$0xff]  ;;  %vm202_vm0 = vcmask 261120  }
   0x2   :  { %35 = vperm.xlu1 %220, %v16_v1   ;;  %25 = vperm.xlu0 %219, %v14_v2   ;;  %v15_v4 = vld [vmem:[%s326_s0 + $0x8] sm:$0xff]  ;;  %v18_v6 = vld [vmem:[%s326_s0 + $0x20] sm:$0xff]  ;;  %v21_v7 = vld [vmem:[%s326_s0 + $0x38] sm:$0xff]  ;;  %v64_v22 = vshrl.u32 %v63_v19, 7 }
   0x3   :  { %v19_v5 = vld [vmem:[%s326_s0 + $0x28] sm:$0xff]  ;;  %v20_v8 = vld [vmem:[%s326_s0 + $0x30] sm:$0xff]  ;;  %v22_v28 = vld [vmem:[%s327_s1] sm:$0x7] }
   0x4   :  { %v109_v25 = vsub.s32 1, %v64_v22  ;;  %v65_v29 = vsub.s32 0, %v64_v22  ;;  %v161_v31 = vsub.s32 2, %v64_v22  ;;  %v215_v50 = vld [vmem:[%s328_s2] ss:$0 sm:$0xff] }
   0x6   :  { %40 = vperm.xlu1 %220, %v17_v3   ;;  %30 = vperm.xlu0 %219, %v15_v4   ;;  %v110_v30 = vrot.slane %v22_v28, %v109_v25  ;;  %v66_v34 = vrot.slane %v22_v28, %v65_v29  ;;  %v279_v37 = vrot.slane %v22_v28, %v161_v31 }
   0xa   :  { %50 = vperm.xlu1 %220, %v19_v5   ;;  %45 = vperm.xlu0 %219, %v18_v6  }
   0xe   :  { %60 = vperm.xlu1 %220, %v21_v7   ;;  %55 = vperm.xlu0 %219, %v20_v8  }
  0x12   :  { %222 = vset.pattern.permute.xlu1 %v226_v9  ;;  %221 = vset.pattern.permute.xlu0 %v226_v9 }
  0x13   :  { %80 = vperm.xlu1 %222, %v15_v4   ;;  %76 = vperm.xlu0 %221, %v14_v2  }
  0x17   :  { %84 = vperm.xlu1 %222, %v16_v1   ;;  %88 = vperm.xlu0 %221, %v17_v3  }
  0x1b   :  { %92 = vperm.xlu1 %222, %v18_v6   ;;  %96 = vperm.xlu0 %221, %v19_v5  }
  0x1f   :  { %100 = vperm.xlu1 %222, %v20_v8   ;;  %104 = vperm.xlu0 %221, %v21_v7  }
  0x23   :  { %223 = vset.pattern.permute.xlu1 %v227_v10  ;;  %224 = vset.pattern.permute.xlu0 %v227_v10 }
  0x24   :  { %128 = vperm.xlu1 %223, %v14_v2   ;;  %132 = vperm.xlu0 %224, %v15_v4  }
  0x28   :  { %136 = vperm.xlu1 %223, %v16_v1   ;;  %144 = vperm.xlu0 %224, %v18_v6  }
  0x2c   :  { %140 = vperm.xlu1 %223, %v17_v3   ;;  %152 = vperm.xlu0 %224, %v20_v8  }
  0x30   :  { %148 = vperm.xlu1 %223, %v19_v5  }
  0x34   :  { %156 = vperm.xlu1 %223, %v21_v7  }
  0x81   :  { %v36_v11 = vpop.permute.xlu1 %35  ;;  %v26_v12 = vpop.permute.xlu0 %25 }
  0x82   :  { %v67_v38 = vmul.f32 %v66_v34, %v26_v12  ;;  %v69_v48 = vmul.f32 %v66_v34, %v36_v11 }
  0x85   :  { %v41_v13 = vpop.permute.xlu1 %40  ;;  %v31_v14 = vpop.permute.xlu0 %30 }
  0x86   :  { %v68_v39 = vmul.f32 %v66_v34, %v31_v14  ;;  %v70_v63 = vmul.f32 %v66_v34, %v41_v13 }
  0x89   :  { %v272_v15 = vpop.permute.xlu1 %50  ;;  %v46_v16 = vpop.permute.xlu0 %45 }
  0x8a   :  { %v71_v49 = vmul.f32 %v66_v34, %v46_v16  ;;  %v72_v14 = vmul.f32 %v66_v34, %v272_v15 }
  0x8d   :  { %v274_v17 = vpop.permute.xlu1 %60  ;;  %v56_v18 = vpop.permute.xlu0 %55 }
  0x8e   :  { %v73_v0 = vmul.f32 %v66_v34, %v56_v18 }
  0x92   :  { %v81_v20 = vpop.permute.xlu1 %80  ;;  %v77_v21 = vpop.permute.xlu0 %76 }
  0x93   :  { %v112_v35 = vmul.f32 %v110_v30, %v81_v20  ;;  %v111_v36 = vmul.f32 %v110_v30, %v77_v21 }
  0x95   :  { %v120_v44 = vadd.f32 %v112_v35, %v68_v39  ;;  %v119_v45 = vadd.f32 %v111_v36, %v67_v38 }
  0x96   :  { %v85_v23 = vpop.permute.xlu1 %84  ;;  %v89_v24 = vpop.permute.xlu0 %88 }
  0x97   :  { %v113_v40 = vmul.f32 %v110_v30, %v85_v23  ;;  %v114_v54 = vmul.f32 %v110_v30, %v89_v24 }
  0x99   :  { %v121_v53 = vadd.f32 %v113_v40, %v69_v48  ;;  %v122_v5 = vadd.f32 %v114_v54, %v70_v63 }
  0x9a   :  { %v93_v26 = vpop.permute.xlu1 %92  ;;  %v97_v27 = vpop.permute.xlu0 %96 }
  0x9b   :  { %v115_v41 = vmul.f32 %v110_v30, %v93_v26  ;;  %v116_v6 = vmul.f32 %v110_v30, %v97_v27  ;;  %v74_v26 = vmul.f32 %v66_v34, %v274_v17 }
  0x9d   :  { %v123_v55 = vadd.f32 %v115_v41, %v71_v49  ;;  %v124_v21 = vadd.f32 %v116_v6, %v72_v14 }
  0x9e   :  { %v101_v32 = vpop.permute.xlu1 %100  ;;  %v105_v33 = vpop.permute.xlu0 %104 }
  0x9f   :  { %v117_v56 = vmul.f32 %v110_v30, %v101_v32  ;;  %v118_v23 = vmul.f32 %v110_v30, %v105_v33 }
  0xa1   :  { %v125_v7 = vadd.f32 %v117_v56, %v73_v0  ;;  %v126_v31 = vadd.f32 %v118_v23, %v74_v26 }
  0xa3   :  { %v129_v42 = vpop.permute.xlu1 %128  ;;  %v133_v43 = vpop.permute.xlu0 %132 }
  0xa4   :  { %v163_v46 = vmul.f32 %v279_v37, %v129_v42  ;;  %v164_v47 = vmul.f32 %v279_v37, %v133_v43 }
  0xa6   :  { %v171_v51 = vadd.f32 %v163_v46, %v119_v45  ;;  %v172_v52 = vadd.f32 %v164_v47, %v120_v44 }
  0xa7   :  { %v137_v57 = vpop.permute.xlu1 %136  ;;  %v145_v58 = vpop.permute.xlu0 %144 }
  0xa8   :  { %v186_v59 = vadd.f32 %v215_v50, %v171_v51  ;;  %v187_v60 = vadd.f32 %v215_v50, %v172_v52  ;;  %v165_v61 = vmul.f32 %v279_v37, %v137_v57  ;;  %v167_v62 = vmul.f32 %v279_v37, %v145_v58 }
  0xaa   :  { %v194_v1 = vmax.f32 %v186_v59, 0.0  ;;  %v195_v2 = vmax.f32 %v187_v60, 0.0  ;;  %v173_v3 = vadd.f32 %v165_v61, %v121_v53  ;;  %v175_v4 = vadd.f32 %v167_v62, %v123_v55 }
  0xab   :  { %v141_v8 = vpop.permute.xlu1 %140  ;;  %v153_v9 = vpop.permute.xlu0 %152 }
  0xac   :  { %203 = vst.msk [vmem:[%s329_s3] sm:$0xff] %vm202_vm0, %v194_v1  ;;  %204 = vst.msk [vmem:[%s329_s3 + $0x8] sm:$0xff] %vm202_vm0, %v195_v2  ;;  %v188_v10 = vadd.f32 %v215_v50, %v173_v3  ;;  %v190_v11 = vadd.f32 %v215_v50, %v175_v4  ;;  %v166_v12 = vmul.f32 %v279_v37, %v141_v8 }
  0xad   :  { %v169_v13 = vmul.f32 %v279_v37, %v153_v9 }
  0xae   :  { %v196_v16 = vmax.f32 %v188_v10, 0.0  ;;  %v198_v18 = vmax.f32 %v190_v11, 0.0  ;;  %v174_v19 = vadd.f32 %v166_v12, %v122_v5 }
  0xaf   :  { %v177_v20 = vadd.f32 %v169_v13, %v125_v7  ;;  %v149_v22 = vpop.permute.xlu1 %148 }
  0xb0   :  { %205 = vst.msk [vmem:[%s329_s3 + $0x10] sm:$0xff] %vm202_vm0, %v196_v16  ;;  %207 = vst.msk [vmem:[%s329_s3 + $0x20] sm:$0xff] %vm202_vm0, %v198_v18  ;;  %v189_v24 = vadd.f32 %v215_v50, %v174_v19  ;;  %v168_v15 = vmul.f32 %v279_v37, %v149_v22 }
  0xb1   :  { %v192_v25 = vadd.f32 %v215_v50, %v177_v20 }
  0xb2   :  { %v197_v27 = vmax.f32 %v189_v24, 0.0  ;;  %v176_v29 = vadd.f32 %v168_v15, %v124_v21 }
  0xb3   :  { %v200_v28 = vmax.f32 %v192_v25, 0.0  ;;  %v157_v30 = vpop.permute.xlu1 %156 }
  0xb4   :  { %206 = vst.msk [vmem:[%s329_s3 + $0x18] sm:$0xff] %vm202_vm0, %v197_v27  ;;  %v191_v32 = vadd.f32 %v215_v50, %v176_v29  ;;  %v170_v33 = vmul.f32 %v279_v37, %v157_v30 }
  0xb5   :  { %209 = vst.msk [vmem:[%s329_s3 + $0x30] sm:$0xff] %vm202_vm0, %v200_v28 }
  0xb6   :  { %v199_v35 = vmax.f32 %v191_v32, 0.0  ;;  %v178_v17 = vadd.f32 %v170_v33, %v126_v31 }
  0xb8   :  { %208 = vst.msk [vmem:[%s329_s3 + $0x28] sm:$0xff] %vm202_vm0, %v199_v35  ;;  %v193_v34 = vadd.f32 %v215_v50, %v178_v17 }
  0xba   :  { %v201_v36 = vmax.f32 %v193_v34, 0.0 }
  0xbc   :  { %210 = vst.msk [vmem:[%s329_s3 + $0x38] sm:$0xff] %vm202_vm0, %v201_v36 }

// kernel: naive_caller_forward.13
= control target key start
LH: loop header
LB: loop body
LE: loop exit
PB: predicated region body
PF: predicated region fallthrough
CT: control target
= control target key end

     0   :  { %vm37_vm0 = vcmask 785408   ;;  %vm139_vm1 = vcmask 523264   ;;  %s322_s1 = inlined_call_operand.vmem [shape: f32[96,64], index: 1, kind: input, shape index: {}]   ;;  %s323_s0 = inlined_call_operand.vmem [shape: f32[32,96], index: 0, kind: input, shape index: {}]   ;;  %s324_s2 = inlined_call_operand.vmem [shape: f32[1,64], index: 2, kind: input, shape index: {}]   ;;  %s325_s3 = inlined_call_operand.vmem [shape: f32[32,64], index: 3, kind: output, shape index: {}]  }
   0x1   :  { %v18_v0 = vld [vmem:[%s322_s1] sm:$0xff]  ;;  %v19_v1 = vld [vmem:[%s322_s1 + $0x8] sm:$0xff]  ;;  %v20_v2 = vld [vmem:[%s322_s1 + $0x10] sm:$0xff] }
   0x2   :  { %v199_v3 = vpack.c.bf16 %v19_v1, %v18_v0  ;;  %v21_v4 = vld [vmem:[%s322_s1 + $0x18] sm:$0xff]  ;;  %v22_v6 = vld [vmem:[%s322_s1 + $0x20] sm:$0xff]  ;;  %v23_v7 = vld [vmem:[%s322_s1 + $0x28] sm:$0xff] }
   0x3   :  { %v203_v5 = vpack.c.bf16 %v21_v4, %v20_v2  ;;  %v14_v8 = vld [vmem:[%s323_s0] sm:$0xff]  ;;  %v16_v9 = vld [vmem:[%s323_s0 + $0x10] sm:$0xff]  ;;  %v207_v10 = vpack.c.bf16 %v23_v7, %v22_v6  ;;  %v25_v12 = vld [vmem:[%s322_s1 + $0x38] sm:$0xff] }
   0x4   :  { %200 = vmatprep.subr.bf16.mxu0 %v199_v3  ;;  %223 = vmatprep.subr.bf16.mxu1 %v199_v3  ;;  %v24_v11 = vld [vmem:[%s322_s1 + $0x30] sm:$0xff]  ;;  %v26_v14 = vld [vmem:[%s322_s1 + $0x40] sm:$0xff]  ;;  %v27_v15 = vld [vmem:[%s322_s1 + $0x48] sm:$0xff] }
   0x5   :  { %202 = vmatpush3.bf16.msra.mxu0 %v199_v3  ;;  %229 = vmatpush3.bf16.msra.mxu1 %v199_v3  ;;  %v211_v13 = vpack.c.bf16 %v25_v12, %v24_v11  ;;  %v215_v16 = vpack.c.bf16 %v27_v15, %v26_v14  ;;  %v28_v17 = vld [vmem:[%s322_s1 + $0x50] sm:$0xff]  ;;  %v29_v18 = vld [vmem:[%s322_s1 + $0x58] sm:$0xff]  ;;  %v15_v20 = vld [vmem:[%s323_s0 + $0x8] sm:$0xff] }
   0x6   :  { %204 = vmatprep.subr.bf16.mxu0 %v203_v5  ;;  %224 = vmatprep.subr.bf16.mxu1 %v203_v5  ;;  %v219_v19 = vpack.c.bf16 %v29_v18, %v28_v17  ;;  %v17_v21 = vld [vmem:[%s323_s0 + $0x18] sm:$0xff]  ;;  %v148_v22 = vld [vmem:[%s324_s2] ss:$0 sm:$0xff] }
   0x7   :  { %193 = vmatprep.mubr.msk.f32.mxu0 %vm37_vm0, %v14_v8  ;;  %196 = vmatprep.mubr.msk.f32.mxu1 %vm37_vm0, %v16_v9 }
   0x9   :  { %206 = vmatpush3.bf16.msra.mxu0 %v203_v5  ;;  %230 = vmatpush3.bf16.msra.mxu1 %v203_v5 }
   0xa   :  { %208 = vmatprep.subr.bf16.mxu0 %v207_v10  ;;  %225 = vmatprep.subr.bf16.mxu1 %v207_v10 }
   0xd   :  { %210 = vmatpush3.bf16.msra.mxu0 %v207_v10  ;;  %231 = vmatpush3.bf16.msra.mxu1 %v207_v10 }
   0xe   :  { %212 = vmatprep.subr.bf16.mxu0 %v211_v13  ;;  %226 = vmatprep.subr.bf16.mxu1 %v211_v13 }
  0x11   :  { %214 = vmatpush3.bf16.msra.mxu0 %v211_v13  ;;  %232 = vmatpush3.bf16.msra.mxu1 %v211_v13 }
  0x12   :  { %216 = vmatprep.subr.bf16.mxu0 %v215_v16  ;;  %227 = vmatprep.subr.bf16.mxu1 %v215_v16 }
  0x15   :  { %218 = vmatpush3.bf16.msra.mxu0 %v215_v16  ;;  %233 = vmatpush3.bf16.msra.mxu1 %v215_v16 }
  0x16   :  { %220 = vmatprep.subr.bf16.mxu0 %v219_v19  ;;  %228 = vmatprep.subr.bf16.mxu1 %v219_v19 }
  0x19   :  { %222 = vmatpush3.bf16.msra.mxu0 %v219_v19  ;;  %234 = vmatpush3.bf16.msra.mxu1 %v219_v19 }
  0x1c   :  { %194 = vmatmul.mubr.msk.f32.vlgmr.msra.gmra.mrb[0].mxu0 %vm37_vm0, %v15_v20  ;;  %197 = vmatmul.mubr.msk.f32.vlgmr.msra.gmra.mrb[0].mxu1 %vm37_vm0, %v17_v21 }
  0xef   :  { %v195_v23 = vpop.f32.mrb[0].mxu0  ;;  %v198_v24 = vpop.f32.mrb[0].mxu1 }
  0xf0   :  { %v122_v25 = vadd.f32 %v195_v23, %v148_v22  ;;  %v132_v26 = vadd.f32 %v198_v24, %v148_v22  ;;  %v116_v27 = vpop.f32.mrb[1].mxu0  ;;  %v126_v28 = vpop.f32.mrb[1].mxu1 }
  0xf1   :  { %v117_v29 = vadd.f32 %v148_v22, %v116_v27  ;;  %v127_v30 = vadd.f32 %v148_v22, %v126_v28 }
  0xf2   :  { %v136_v31 = vmax.f32 %v122_v25, 0.0  ;;  %v138_v32 = vmax.f32 %v132_v26, 0.0 }
  0xf3   :  { %v135_v33 = vmax.f32 %v117_v29, 0.0  ;;  %v137_v34 = vmax.f32 %v127_v30, 0.0 }
  0xf4   :  { %141 = vst.msk [vmem:[%s325_s3 + $0x8] sm:$0xff] %vm139_vm1, %v136_v31  ;;  %143 = vst.msk [vmem:[%s325_s3 + $0x18] sm:$0xff] %vm139_vm1, %v138_v32 }
  0xf5   :  { %140 = vst.msk [vmem:[%s325_s3] sm:$0xff] %vm139_vm1, %v135_v33  ;;  %142 = vst.msk [vmem:[%s325_s3 + $0x10] sm:$0xff] %vm139_vm1, %v137_v34 }

// kernel: naive_caller_forward.14
= control target key start
LH: loop header
LB: loop body
LE: loop exit
PB: predicated region body
PF: predicated region fallthrough
CT: control target
= control target key end

     0   :  { %vm33_vm0 = vcmask 523264   ;;  %s281_s1 = inlined_call_operand.vmem [shape: f32[64,128], index: 1, kind: input, shape index: {}]   ;;  %s282_s0 = inlined_call_operand.vmem [shape: f32[32,64], index: 0, kind: input, shape index: {}]   ;;  %s283_s2 = inlined_call_operand.vmem [shape: f32[1,128], index: 2, kind: input, shape index: {}]   ;;  %s284_s3 = inlined_call_operand.vmem [shape: f32[32,128], index: 3, kind: output, shape index: {}]  }
   0x1   :  { %v18_v0 = vld [vmem:[%s281_s1] sm:$0xff]  ;;  %v19_v1 = vld [vmem:[%s281_s1 + $0x8] sm:$0xff]  ;;  %v20_v2 = vld [vmem:[%s281_s1 + $0x10] sm:$0xff] }
   0x2   :  { %v182_v3 = vpack.c.bf16 %v19_v1, %v18_v0  ;;  %v21_v4 = vld [vmem:[%s281_s1 + $0x18] sm:$0xff]  ;;  %v22_v6 = vld [vmem:[%s281_s1 + $0x20] sm:$0xff]  ;;  %v23_v7 = vld [vmem:[%s281_s1 + $0x28] sm:$0xff] }
   0x3   :  { %v186_v5 = vpack.c.bf16 %v21_v4, %v20_v2  ;;  %v14_v8 = vld [vmem:[%s282_s0] sm:$0xff]  ;;  %v16_v9 = vld [vmem:[%s282_s0 + $0x10] sm:$0xff]  ;;  %v190_v10 = vpack.c.bf16 %v23_v7, %v22_v6  ;;  %v25_v12 = vld [vmem:[%s281_s1 + $0x38] sm:$0xff] }
   0x4   :  { %183 = vmatprep.subr.bf16.mxu0 %v182_v3  ;;  %198 = vmatprep.subr.bf16.mxu1 %v182_v3  ;;  %v24_v11 = vld [vmem:[%s281_s1 + $0x30] sm:$0xff]  ;;  %v15_v14 = vld [vmem:[%s282_s0 + $0x8] sm:$0xff]  ;;  %v17_v15 = vld [vmem:[%s282_s0 + $0x18] sm:$0xff] }
   0x5   :  { %185 = vmatpush3.bf16.msra.mxu0 %v182_v3  ;;  %202 = vmatpush3.bf16.msra.mxu1 %v182_v3  ;;  %v194_v13 = vpack.c.bf16 %v25_v12, %v24_v11  ;;  %v143_v16 = vld [vmem:[%s283_s2] ss:$0 sm:$0xff] }
   0x6   :  { %187 = vmatprep.subr.bf16.mxu0 %v186_v5  ;;  %199 = vmatprep.subr.bf16.mxu1 %v186_v5 }
   0x7   :  { %176 = vmatprep.mubr.msk.f32.mxu0 %vm33_vm0, %v14_v8  ;;  %179 = vmatprep.mubr.msk.f32.mxu1 %vm33_vm0, %v16_v9 }
   0x9   :  { %189 = vmatpush3.bf16.msra.mxu0 %v186_v5  ;;  %203 = vmatpush3.bf16.msra.mxu1 %v186_v5 }
   0xa   :  { %191 = vmatprep.subr.bf16.mxu0 %v190_v10  ;;  %200 = vmatprep.subr.bf16.mxu1 %v190_v10 }
   0xd   :  { %193 = vmatpush3.bf16.msra.mxu0 %v190_v10  ;;  %204 = vmatpush3.bf16.msra.mxu1 %v190_v10 }
   0xe   :  { %195 = vmatprep.subr.bf16.mxu0 %v194_v13  ;;  %201 = vmatprep.subr.bf16.mxu1 %v194_v13 }
  0x11   :  { %197 = vmatpush3.bf16.msra.mxu0 %v194_v13  ;;  %205 = vmatpush3.bf16.msra.mxu1 %v194_v13 }
  0x14   :  { %177 = vmatmul.mubr.msk.f32.vlgmr.msra.gmra.mrb[0].mxu0 %vm33_vm0, %v15_v14  ;;  %180 = vmatmul.mubr.msk.f32.vlgmr.msra.gmra.mrb[0].mxu1 %vm33_vm0, %v17_v15 }
  0xe7   :  { %v178_v17 = vpop.f32.mrb[0].mxu0  ;;  %v181_v18 = vpop.f32.mrb[0].mxu1 }
  0xe8   :  { %v118_v19 = vadd.f32 %v178_v17, %v143_v16  ;;  %v128_v20 = vadd.f32 %v181_v18, %v143_v16  ;;  %v112_v21 = vpop.f32.mrb[1].mxu0  ;;  %v122_v22 = vpop.f32.mrb[1].mxu1 }
  0xe9   :  { %v113_v23 = vadd.f32 %v143_v16, %v112_v21  ;;  %v123_v24 = vadd.f32 %v143_v16, %v122_v22 }
  0xea   :  { %v132_v25 = vmax.f32 %v118_v19, 0.0  ;;  %v134_v26 = vmax.f32 %v128_v20, 0.0 }
  0xeb   :  { %v131_v27 = vmax.f32 %v113_v23, 0.0  ;;  %v133_v28 = vmax.f32 %v123_v24, 0.0 }
  0xec   :  { %136 = vst [vmem:[%s284_s3 + $0x8] sm:$0xff] %v132_v25  ;;  %138 = vst [vmem:[%s284_s3 + $0x18] sm:$0xff] %v134_v26 }
  0xed   :  { %135 = vst [vmem:[%s284_s3] sm:$0xff] %v131_v27  ;;  %137 = vst [vmem:[%s284_s3 + $0x10] sm:$0xff] %v133_v28 }

// kernel: naive_caller_forward.15
= control target key start
LH: loop header
LB: loop body
LE: loop exit
PB: predicated region body
PF: predicated region fallthrough
CT: control target
= control target key end

     0   :  { %v554_v3 = vmov 0.0   ;;  %s985_s1 = inlined_call_operand.vmem [shape: f32[128,768], index: 1, kind: input, shape index: {}]   ;;  %s986_s0 = inlined_call_operand.vmem [shape: f32[32,128], index: 0, kind: input, shape index: {}]   ;;  %s987_s2 = inlined_call_operand.vmem [shape: f32[1,768], index: 2, kind: input, shape index: {}]   ;;  %s988_s3 = inlined_call_operand.vmem [shape: f32[32,768], index: 3, kind: output, shape index: {}]  }
   0x1   :  { %v19_v0 = vld [vmem:[%s985_s1 + $0x8] sm:$0xff]  ;;  %v25_v1 = vld [vmem:[%s985_s1 + $0x38] sm:$0xff]  ;;  %210 = vmatprep.mubr.f32.mxu0 %v554_v3  ;;  %299 = vmatprep.mubr.f32.mxu1 %v554_v3  ;;  %v18_v6 = vld [vmem:[%s985_s1] sm:$0xff] }
   0x2   :  { %v21_v2 = vld [vmem:[%s985_s1 + $0x18] sm:$0xff]  ;;  %v441_v4 = vpack.c.bf16 %v25_v1, %v19_v0  ;;  %v27_v5 = vld [vmem:[%s985_s1 + $0x48] sm:$0xff]  ;;  %v24_v7 = vld [vmem:[%s985_s1 + $0x30] sm:$0xff] }
   0x3   :  { %v473_v8 = vpack.c.bf16 %v27_v5, %v21_v2  ;;  %v443_v9 = vpack.c.bf16 %v24_v7, %v18_v6  ;;  %v20_v10 = vld [vmem:[%s985_s1 + $0x10] sm:$0xff]  ;;  %v26_v11 = vld [vmem:[%s985_s1 + $0x40] sm:$0xff]  ;;  %v31_v12 = vld [vmem:[%s985_s1 + $0x68] sm:$0xff] }
   0x4   :  { %442 = vmatprep.subr.bf16.mxu0 %v441_v4  ;;  %v475_v13 = vpack.c.bf16 %v26_v11, %v20_v10  ;;  %v37_v14 = vld [vmem:[%s985_s1 + $0x98] sm:$0xff]  ;;  %v39_v16 = vld [vmem:[%s985_s1 + $0xa8] sm:$0xff]  ;;  %v30_v19 = vld [vmem:[%s985_s1 + $0x60] sm:$0xff] }
   0x5   :  { %v33_v15 = vld [vmem:[%s985_s1 + $0x78] sm:$0xff]  ;;  %474 = vmatprep.subr.bf16.mxu1 %v473_v8  ;;  %444 = vmatpush1.bf16.msra.mxu0 %v443_v9  ;;  %v445_v17 = vpack.c.bf16 %v37_v14, %v31_v12  ;;  %v36_v20 = vld [vmem:[%s985_s1 + $0x90] sm:$0xff]  ;;  %v38_v23 = vld [vmem:[%s985_s1 + $0xa0] sm:$0xff] }
   0x6   :  { %v477_v18 = vpack.c.bf16 %v39_v16, %v33_v15  ;;  %v32_v21 = vld [vmem:[%s985_s1 + $0x70] sm:$0xff]  ;;  %476 = vmatpush1.bf16.msra.mxu1 %v475_v13  ;;  %v447_v22 = vpack.c.bf16 %v36_v20, %v30_v19  ;;  %v43_v24 = vld [vmem:[%s985_s1 + $0xc8] sm:$0xff]  ;;  %v49_v25 = vld [vmem:[%s985_s1 + $0xf8] sm:$0xff] }
   0x7   :  { %446 = vmatprep.subr.bf16.mxu0 %v445_v17  ;;  %v479_v26 = vpack.c.bf16 %v38_v23, %v32_v21  ;;  %v449_v27 = vpack.c.bf16 %v49_v25, %v43_v24  ;;  %v45_v28 = vld [vmem:[%s985_s1 + $0xd8] sm:$0xff]  ;;  %v51_v29 = vld [vmem:[%s985_s1 + $0x108] sm:$0xff]  ;;  %v42_v30 = vld [vmem:[%s985_s1 + $0xc0] sm:$0xff] }
   0x8   :  { %478 = vmatprep.subr.bf16.mxu1 %v477_v18  ;;  %v481_v31 = vpack.c.bf16 %v51_v29, %v45_v28  ;;  %v48_v32 = vld [vmem:[%s985_s1 + $0xf0] sm:$0xff]  ;;  %v50_v34 = vld [vmem:[%s985_s1 + $0x100] sm:$0xff]  ;;  %v55_v36 = vld [vmem:[%s985_s1 + $0x128] sm:$0xff] }
   0x9   :  { %v44_v33 = vld [vmem:[%s985_s1 + $0xd0] sm:$0xff]  ;;  %448 = vmatpush1.bf16.msra.mxu0 %v447_v22  ;;  %v451_v35 = vpack.c.bf16 %v48_v32, %v42_v30  ;;  %v61_v37 = vld [vmem:[%s985_s1 + $0x158] sm:$0xff]  ;;  %v63_v41 = vld [vmem:[%s985_s1 + $0x168] sm:$0xff] }
   0xa   :  { %v57_v38 = vld [vmem:[%s985_s1 + $0x138] sm:$0xff]  ;;  %480 = vmatpush1.bf16.msra.mxu1 %v479_v26  ;;  %450 = vmatprep.subr.bf16.mxu0 %v449_v27  ;;  %v483_v39 = vpack.c.bf16 %v50_v34, %v44_v33  ;;  %v453_v40 = vpack.c.bf16 %v61_v37, %v55_v36  ;;  %v54_v42 = vld [vmem:[%s985_s1 + $0x120] sm:$0xff]  ;;  %v60_v43 = vld [vmem:[%s985_s1 + $0x150] sm:$0xff] }
   0xb   :  { %482 = vmatprep.subr.bf16.mxu1 %v481_v31  ;;  %v485_v44 = vpack.c.bf16 %v63_v41, %v57_v38  ;;  %v56_v45 = vld [vmem:[%s985_s1 + $0x130] sm:$0xff]  ;;  %v62_v46 = vld [vmem:[%s985_s1 + $0x160] sm:$0xff]  ;;  %v67_v47 = vld [vmem:[%s985_s1 + $0x188] sm:$0xff]  ;;  %v455_v51 = vpack.c.bf16 %v60_v43, %v54_v42 }
   0xc   :  { %v73_v48 = vld [vmem:[%s985_s1 + $0x1b8] sm:$0xff]  ;;  %v75_v50 = vld [vmem:[%s985_s1 + $0x1c8] sm:$0xff]  ;;  %v487_v52 = vpack.c.bf16 %v62_v46, %v56_v45  ;;  %v66_v54 = vld [vmem:[%s985_s1 + $0x180] sm:$0xff] }
   0xd   :  { %v69_v49 = vld [vmem:[%s985_s1 + $0x198] sm:$0xff]  ;;  %452 = vmatpush1.bf16.msra.mxu0 %v451_v35  ;;  %v457_v53 = vpack.c.bf16 %v73_v48, %v67_v47  ;;  %v72_v55 = vld [vmem:[%s985_s1 + $0x1b0] sm:$0xff]  ;;  %v74_v58 = vld [vmem:[%s985_s1 + $0x1c0] sm:$0xff] }
   0xe   :  { %484 = vmatpush1.bf16.msra.mxu1 %v483_v39  ;;  %454 = vmatprep.subr.bf16.mxu0 %v453_v40  ;;  %v68_v56 = vld [vmem:[%s985_s1 + $0x190] sm:$0xff]  ;;  %v489_v57 = vpack.c.bf16 %v75_v50, %v69_v49  ;;  %v79_v59 = vld [vmem:[%s985_s1 + $0x1e8] sm:$0xff]  ;;  %v85_v60 = vld [vmem:[%s985_s1 + $0x218] sm:$0xff]  ;;  %v459_v63 = vpack.c.bf16 %v72_v55, %v66_v54 }
   0xf   :  { %486 = vmatprep.subr.bf16.mxu1 %v485_v44  ;;  %v81_v61 = vld [vmem:[%s985_s1 + $0x1f8] sm:$0xff]  ;;  %v87_v62 = vld [vmem:[%s985_s1 + $0x228] sm:$0xff]  ;;  %v491_v0 = vpack.c.bf16 %v74_v58, %v68_v56  ;;  %v461_v1 = vpack.c.bf16 %v85_v60, %v79_v59  ;;  %v78_v2 = vld [vmem:[%s985_s1 + $0x1e0] sm:$0xff] }
  0x10   :  { %v84_v4 = vld [vmem:[%s985_s1 + $0x210] sm:$0xff]  ;;  %v493_v6 = vpack.c.bf16 %v87_v62, %v81_v61  ;;  %v86_v7 = vld [vmem:[%s985_s1 + $0x220] sm:$0xff]  ;;  %v91_v8 = vld [vmem:[%s985_s1 + $0x248] sm:$0xff] }
  0x11   :  { %456 = vmatpush1.bf16.msra.mxu0 %v455_v51  ;;  %v80_v5 = vld [vmem:[%s985_s1 + $0x1f0] sm:$0xff]  ;;  %v97_v9 = vld [vmem:[%s985_s1 + $0x278] sm:$0xff]  ;;  %v99_v11 = vld [vmem:[%s985_s1 + $0x288] sm:$0xff]  ;;  %v463_v12 = vpack.c.bf16 %v84_v4, %v78_v2 }
  0x12   :  { %488 = vmatpush1.bf16.msra.mxu1 %v487_v52  ;;  %458 = vmatprep.subr.bf16.mxu0 %v457_v53  ;;  %v93_v10 = vld [vmem:[%s985_s1 + $0x258] sm:$0xff]  ;;  %v495_v13 = vpack.c.bf16 %v86_v7, %v80_v5  ;;  %v465_v14 = vpack.c.bf16 %v97_v9, %v91_v8  ;;  %v90_v15 = vld [vmem:[%s985_s1 + $0x240] sm:$0xff]  ;;  %v96_v16 = vld [vmem:[%s985_s1 + $0x270] sm:$0xff] }
  0x13   :  { %490 = vmatprep.subr.bf16.mxu1 %v489_v57  ;;  %v92_v17 = vld [vmem:[%s985_s1 + $0x250] sm:$0xff]  ;;  %v497_v18 = vpack.c.bf16 %v99_v11, %v93_v10  ;;  %v98_v19 = vld [vmem:[%s985_s1 + $0x280] sm:$0xff]  ;;  %v103_v20 = vld [vmem:[%s985_s1 + $0x2a8] sm:$0xff]  ;;  %v467_v24 = vpack.c.bf16 %v96_v16, %v90_v15 }
  0x14   :  { %v109_v21 = vld [vmem:[%s985_s1 + $0x2d8] sm:$0xff]  ;;  %v111_v23 = vld [vmem:[%s985_s1 + $0x2e8] sm:$0xff]  ;;  %v499_v25 = vpack.c.bf16 %v98_v19, %v92_v17  ;;  %v102_v27 = vld [vmem:[%s985_s1 + $0x2a0] sm:$0xff] }
  0x15   :  { %460 = vmatpush1.bf16.msra.mxu0 %v459_v63  ;;  %v105_v22 = vld [vmem:[%s985_s1 + $0x2b8] sm:$0xff]  ;;  %v469_v26 = vpack.c.bf16 %v109_v21, %v103_v20  ;;  %v108_v28 = vld [vmem:[%s985_s1 + $0x2d0] sm:$0xff]  ;;  %v110_v31 = vld [vmem:[%s985_s1 + $0x2e0] sm:$0xff] }
  0x16   :  { %492 = vmatpush1.bf16.msra.mxu1 %v491_v0  ;;  %462 = vmatprep.subr.bf16.mxu0 %v461_v1  ;;  %v104_v29 = vld [vmem:[%s985_s1 + $0x2b0] sm:$0xff]  ;;  %v501_v30 = vpack.c.bf16 %v111_v23, %v105_v22  ;;  %v23_v32 = vld [vmem:[%s985_s1 + $0x28] sm:$0xff]  ;;  %v29_v33 = vld [vmem:[%s985_s1 + $0x58] sm:$0xff]  ;;  %v471_v34 = vpack.c.bf16 %v108_v28, %v102_v27  ;;  %v116_v23 = vlaneseq }
  0x17   :  { %494 = vmatprep.subr.bf16.mxu1 %v493_v6  ;;  %v503_v35 = vpack.c.bf16 %v110_v31, %v104_v29  ;;  %v505_v36 = vpack.c.bf16 %v29_v33, %v23_v32  ;;  %v22_v37 = vld [vmem:[%s985_s1 + $0x20] sm:$0xff]  ;;  %v28_v38 = vld [vmem:[%s985_s1 + $0x50] sm:$0xff]  ;;  %v35_v39 = vld [vmem:[%s985_s1 + $0x88] sm:$0xff] }
  0x18   :  { %v41_v40 = vld [vmem:[%s985_s1 + $0xb8] sm:$0xff]  ;;  %v790_v41 = vld [vmem:[%s986_s0] sm:$0xff]  ;;  %v507_v42 = vpack.c.bf16 %v28_v38, %v22_v37  ;;  %v40_v45 = vld [vmem:[%s985_s1 + $0xb0] sm:$0xff] }
  0x19   :  { %464 = vmatpush1.bf16.msra.mxu0 %v463_v12  ;;  %v509_v43 = vpack.c.bf16 %v41_v40, %v35_v39  ;;  %v34_v44 = vld [vmem:[%s985_s1 + $0x80] sm:$0xff]  ;;  %v47_v46 = vld [vmem:[%s985_s1 + $0xe8] sm:$0xff]  ;;  %v53_v47 = vld [vmem:[%s985_s1 + $0x118] sm:$0xff] }
  0x1a   :  { %496 = vmatpush1.bf16.msra.mxu1 %v495_v13  ;;  %466 = vmatprep.subr.bf16.mxu0 %v465_v14  ;;  %v511_v48 = vpack.c.bf16 %v40_v45, %v34_v44  ;;  %v809_v49 = vld [vmem:[%s986_s0 + $0x8] sm:$0xff]  ;;  %v513_v50 = vpack.c.bf16 %v53_v47, %v47_v46  ;;  %v46_v51 = vld [vmem:[%s985_s1 + $0xe0] sm:$0xff]  ;;  %v52_v52 = vld [vmem:[%s985_s1 + $0x110] sm:$0xff] }
  0x1b   :  { %498 = vmatprep.subr.bf16.mxu1 %v497_v18  ;;  %v59_v53 = vld [vmem:[%s985_s1 + $0x148] sm:$0xff]  ;;  %v65_v54 = vld [vmem:[%s985_s1 + $0x178] sm:$0xff]  ;;  %v515_v55 = vpack.c.bf16 %v52_v52, %v46_v51  ;;  %v830_v56 = vld [vmem:[%s986_s0 + $0x10] sm:$0xff] }
  0x1c   :  { %v517_v57 = vpack.c.bf16 %v65_v54, %v59_v53  ;;  %v58_v58 = vld [vmem:[%s985_s1 + $0x140] sm:$0xff]  ;;  %v64_v59 = vld [vmem:[%s985_s1 + $0x170] sm:$0xff]  ;;  %v71_v60 = vld [vmem:[%s985_s1 + $0x1a8] sm:$0xff] }
  0x1d   :  { %468 = vmatpush1.bf16.msra.mxu0 %v467_v24  ;;  %v77_v61 = vld [vmem:[%s985_s1 + $0x1d8] sm:$0xff]  ;;  %v519_v62 = vpack.c.bf16 %v64_v59, %v58_v58  ;;  %v70_v1 = vld [vmem:[%s985_s1 + $0x1a0] sm:$0xff]  ;;  %v76_v2 = vld [vmem:[%s985_s1 + $0x1d0] sm:$0xff]  ;;  %v902_v24 = vshrl.u32 %v116_v23, 7 }
  0x1e   :  { %500 = vmatpush1.bf16.msra.mxu1 %v499_v25  ;;  %470 = vmatprep.subr.bf16.mxu0 %v469_v26  ;;  %v17_v63 = vld [vmem:[%s986_s0 + $0x18] sm:$0xff]  ;;  %v521_v0 = vpack.c.bf16 %v77_v61, %v71_v60  ;;  %v83_v4 = vld [vmem:[%s985_s1 + $0x208] sm:$0xff]  ;;  %v523_v6 = vpack.c.bf16 %v76_v2, %v70_v1  ;;  %v82_v8 = vld [vmem:[%s985_s1 + $0x200] sm:$0xff] }
  0x1f   :  { %502 = vmatprep.subr.bf16.mxu1 %v501_v30  ;;  %v89_v5 = vld [vmem:[%s985_s1 + $0x238] sm:$0xff]  ;;  %v88_v9 = vld [vmem:[%s985_s1 + $0x230] sm:$0xff]  ;;  %v95_v10 = vld [vmem:[%s985_s1 + $0x268] sm:$0xff]  ;;  %v118_v25 = vsub.s32 0, %v902_v24  ;;  %v126_v27 = vsub.s32 2, %v902_v24  ;;  %v122_v28 = vsub.s32 1, %v902_v24 }
  0x20   :  { %v525_v7 = vpack.c.bf16 %v89_v5, %v83_v4  ;;  %v101_v11 = vld [vmem:[%s985_s1 + $0x298] sm:$0xff]  ;;  %v527_v12 = vpack.c.bf16 %v88_v9, %v82_v8  ;;  %v94_v14 = vld [vmem:[%s985_s1 + $0x260] sm:$0xff]  ;;  %v100_v15 = vld [vmem:[%s985_s1 + $0x290] sm:$0xff]  ;;  %v130_v29 = vsub.s32 3, %v902_v24  ;;  %v134_v1 = vsub.s32 4, %v902_v24 }
  0x21   :  { %472 = vmatpush1.bf16.msra.mxu0 %v471_v34  ;;  %v529_v13 = vpack.c.bf16 %v101_v11, %v95_v10  ;;  %v107_v16 = vld [vmem:[%s985_s1 + $0x2c8] sm:$0xff]  ;;  %v113_v17 = vld [vmem:[%s985_s1 + $0x2f8] sm:$0xff]  ;;  %v531_v18 = vpack.c.bf16 %v100_v15, %v94_v14  ;;  %v106_v20 = vld [vmem:[%s985_s1 + $0x2c0] sm:$0xff]  ;;  %v138_v2 = vsub.s32 5, %v902_v24 }
  0x22   :  { %504 = vmatpush1.bf16.msra.mxu1 %v503_v35  ;;  %506 = vmatprep.subr.bf16.mxu0 %v505_v36  ;;  %v533_v19 = vpack.c.bf16 %v113_v17, %v107_v16  ;;  %v112_v21 = vld [vmem:[%s985_s1 + $0x2f0] sm:$0xff]  ;;  %v114_v26 = vld [vmem:[%s987_s2] sm:$0x3f] }
  0x23   :  { %537 = vmatprep.subr.bf16.mxu1 %v505_v36  ;;  %v535_v22 = vpack.c.bf16 %v112_v21, %v106_v20  ;;  %v119_v30 = vrot.slane %v114_v26, %v118_v25  ;;  %v123_v31 = vrot.slane %v114_v26, %v122_v28  ;;  %v131_v32 = vrot.slane %v114_v26, %v130_v29 }
  0x24   :  { %211 = vmatmul.mubr.f32.vlgmr.msra.gmra.mrb[0].mxu0 %v790_v41  ;;  %v135_v4 = vrot.slane %v114_v26, %v134_v1  ;;  %v139_v5 = vrot.slane %v114_v26, %v138_v2 }
  0x25   :  { %300 = vmatmul.mubr.f32.vlgmr.msra.gmra.mrb[0].mxu1 %v790_v41  ;;  %508 = vmatpush1.bf16.msra.mxu0 %v507_v42 }
  0x26   :  { %545 = vmatpush1.bf16.msra.mxu1 %v507_v42  ;;  %510 = vmatprep.subr.bf16.mxu0 %v509_v43 }
  0x27   :  { %538 = vmatprep.subr.bf16.mxu1 %v509_v43  ;;  %216 = vmatprep.mubr.f32.mxu0 %v554_v3 }
  0x28   :  { %305 = vmatprep.mubr.f32.mxu1 %v554_v3  ;;  %217 = vmatmul.mubr.f32.gmra.mrb[2].mxu0 %v809_v49 }
  0x29   :  { %512 = vmatpush1.bf16.msra.mxu0 %v511_v48  ;;  %306 = vmatmul.mubr.f32.gmra.mrb[2].mxu1 %v809_v49 }
  0x2a   :  { %546 = vmatpush1.bf16.msra.mxu1 %v511_v48  ;;  %514 = vmatprep.subr.bf16.mxu0 %v513_v50 }
  0x2b   :  { %539 = vmatprep.subr.bf16.mxu1 %v513_v50  ;;  %222 = vmatprep.mubr.f32.mxu0 %v554_v3 }
  0x2c   :  { %311 = vmatprep.mubr.f32.mxu1 %v554_v3  ;;  %223 = vmatmul.mubr.f32.gmra.mrb[4].mxu0 %v830_v56 }
  0x2d   :  { %516 = vmatpush1.bf16.msra.mxu0 %v515_v55  ;;  %312 = vmatmul.mubr.f32.gmra.mrb[4].mxu1 %v830_v56 }
  0x2e   :  { %547 = vmatpush1.bf16.msra.mxu1 %v515_v55  ;;  %518 = vmatprep.subr.bf16.mxu0 %v517_v57 }
  0x2f   :  { %540 = vmatprep.subr.bf16.mxu1 %v517_v57  ;;  %228 = vmatprep.mubr.f32.mxu0 %v554_v3 }
  0x30   :  { %317 = vmatprep.mubr.f32.mxu1 %v554_v3  ;;  %229 = vmatmul.mubr.f32.gmra.mrb[6].mxu0 %v17_v63 }
  0x31   :  { %520 = vmatpush1.bf16.msra.mxu0 %v519_v62  ;;  %318 = vmatmul.mubr.f32.gmra.mrb[6].mxu1 %v17_v63 }
  0x32   :  { %548 = vmatpush1.bf16.msra.mxu1 %v519_v62  ;;  %522 = vmatprep.subr.bf16.mxu0 %v521_v0 }
  0x33   :  { %541 = vmatprep.subr.bf16.mxu1 %v521_v0  ;;  %388 = vmatprep.mubr.f32.mxu0 %v554_v3 }
  0x34   :  { %400 = vmatprep.mubr.f32.mxu1 %v554_v3 }
  0x35   :  { %524 = vmatpush1.bf16.msra.mxu0 %v523_v6 }
  0x36   :  { %549 = vmatpush1.bf16.msra.mxu1 %v523_v6  ;;  %526 = vmatprep.subr.bf16.mxu0 %v525_v7 }
  0x37   :  { %542 = vmatprep.subr.bf16.mxu1 %v525_v7 }
  0x39   :  { %528 = vmatpush1.bf16.msra.mxu0 %v527_v12 }
  0x3a   :  { %550 = vmatpush1.bf16.msra.mxu1 %v527_v12  ;;  %530 = vmatprep.subr.bf16.mxu0 %v529_v13 }
  0x3b   :  { %543 = vmatprep.subr.bf16.mxu1 %v529_v13 }
  0x3d   :  { %532 = vmatpush1.bf16.msra.mxu0 %v531_v18 }
  0x3e   :  { %551 = vmatpush1.bf16.msra.mxu1 %v531_v18  ;;  %534 = vmatprep.subr.bf16.mxu0 %v533_v19 }
  0x3f   :  { %544 = vmatprep.subr.bf16.mxu1 %v533_v19 }
  0x41   :  { %536 = vmatpush1.bf16.msra.mxu0 %v535_v22 }
  0x42   :  { %552 = vmatpush1.bf16.msra.mxu1 %v535_v22 }
  0x44   :  { %389 = vmatmul.mubr.f32.vlgmr.msra.gmra.mrb[8].mxu0 %v790_v41 }
  0x45   :  { %401 = vmatmul.mubr.f32.vlgmr.msra.gmra.mrb[8].mxu1 %v830_v56  ;;  %394 = vmatprep.mubr.f32.mxu0 %v554_v3 }
  0x46   :  { %406 = vmatprep.mubr.f32.mxu1 %v554_v3  ;;  %v127_v3 = vrot.slane %v114_v26, %v126_v27 }
  0x48   :  { %395 = vmatmul.mubr.f32.gmra.mrb[10].mxu0 %v809_v49 }
  0x49   :  { %407 = vmatmul.mubr.f32.gmra.mrb[10].mxu1 %v17_v63 }
  0xf7   :  { %v212_v33 = vpop.f32.mrb[0].mxu0 }
  0xf8   :  { %v213_v34 = vadd.f32 %v212_v33, %v119_v30  ;;  %v301_v35 = vpop.f32.mrb[0].mxu1  ;;  %v214_v36 = vpop.f32.mrb[1].mxu0 }
  0xf9   :  { %v302_v37 = vadd.f32 %v301_v35, %v127_v3  ;;  %v215_v38 = vadd.f32 %v214_v36, %v123_v31  ;;  %v303_v39 = vpop.f32.mrb[1].mxu1 }
  0xfa   :  { %413 = vst [vmem:[%s988_s3] sm:$0xff] %v213_v34  ;;  %v304_v40 = vadd.f32 %v303_v39, %v131_v32 }
  0xfb   :  { %415 = vst [vmem:[%s988_s3 + $0x10] sm:$0xff] %v302_v37  ;;  %414 = vst [vmem:[%s988_s3 + $0x8] sm:$0xff] %v215_v38  ;;  %v218_v41 = vpop.f32.mrb[2].mxu0 }
  0xfc   :  { %416 = vst [vmem:[%s988_s3 + $0x18] sm:$0xff] %v304_v40  ;;  %v219_v42 = vadd.f32 %v218_v41, %v119_v30  ;;  %v307_v43 = vpop.f32.mrb[2].mxu1  ;;  %v220_v44 = vpop.f32.mrb[3].mxu0 }
  0xfd   :  { %v308_v45 = vadd.f32 %v307_v43, %v127_v3  ;;  %v221_v46 = vadd.f32 %v220_v44, %v123_v31  ;;  %v309_v47 = vpop.f32.mrb[3].mxu1 }
  0xfe   :  { %419 = vst [vmem:[%s988_s3 + $0x30] sm:$0xff] %v219_v42  ;;  %v310_v48 = vadd.f32 %v309_v47, %v131_v32 }
  0xff   :  { %421 = vst [vmem:[%s988_s3 + $0x40] sm:$0xff] %v308_v45  ;;  %420 = vst [vmem:[%s988_s3 + $0x38] sm:$0xff] %v221_v46  ;;  %v224_v49 = vpop.f32.mrb[4].mxu0 }
 0x100   :  { %422 = vst [vmem:[%s988_s3 + $0x48] sm:$0xff] %v310_v48  ;;  %v225_v50 = vadd.f32 %v224_v49, %v119_v30  ;;  %v313_v51 = vpop.f32.mrb[4].mxu1  ;;  %v226_v52 = vpop.f32.mrb[5].mxu0 }
 0x101   :  { %v314_v53 = vadd.f32 %v313_v51, %v127_v3  ;;  %v227_v54 = vadd.f32 %v226_v52, %v123_v31  ;;  %v315_v55 = vpop.f32.mrb[5].mxu1 }
 0x102   :  { %425 = vst [vmem:[%s988_s3 + $0x60] sm:$0xff] %v225_v50  ;;  %v316_v56 = vadd.f32 %v315_v55, %v131_v32 }
 0x103   :  { %427 = vst [vmem:[%s988_s3 + $0x70] sm:$0xff] %v314_v53  ;;  %426 = vst [vmem:[%s988_s3 + $0x68] sm:$0xff] %v227_v54  ;;  %v230_v57 = vpop.f32.mrb[6].mxu0 }
 0x104   :  { %428 = vst [vmem:[%s988_s3 + $0x78] sm:$0xff] %v316_v56  ;;  %v231_v58 = vadd.f32 %v230_v57, %v119_v30  ;;  %v319_v59 = vpop.f32.mrb[6].mxu1  ;;  %v232_v60 = vpop.f32.mrb[7].mxu0 }
 0x105   :  { %v320_v61 = vadd.f32 %v319_v59, %v127_v3  ;;  %v233_v62 = vadd.f32 %v232_v60, %v123_v31  ;;  %v321_v63 = vpop.f32.mrb[7].mxu1 }
 0x106   :  { %431 = vst [vmem:[%s988_s3 + $0x90] sm:$0xff] %v231_v58  ;;  %v322_v0 = vadd.f32 %v321_v63, %v131_v32 }
 0x107   :  { %433 = vst [vmem:[%s988_s3 + $0xa0] sm:$0xff] %v320_v61  ;;  %432 = vst [vmem:[%s988_s3 + $0x98] sm:$0xff] %v233_v62 }
 0x108   :  { %434 = vst [vmem:[%s988_s3 + $0xa8] sm:$0xff] %v322_v0 }
 0x117   :  { %v390_v6 = vpop.f32.mrb[8].mxu0 }
 0x118   :  { %v391_v7 = vadd.f32 %v390_v6, %v135_v4  ;;  %v402_v8 = vpop.f32.mrb[8].mxu1  ;;  %v392_v9 = vpop.f32.mrb[9].mxu0 }
 0x119   :  { %v403_v10 = vadd.f32 %v402_v8, %v135_v4  ;;  %v393_v11 = vadd.f32 %v392_v9, %v139_v5  ;;  %v404_v12 = vpop.f32.mrb[9].mxu1 }
 0x11a   :  { %417 = vst [vmem:[%s988_s3 + $0x20] sm:$0xff] %v391_v7  ;;  %v405_v13 = vadd.f32 %v404_v12, %v139_v5 }
 0x11b   :  { %429 = vst [vmem:[%s988_s3 + $0x80] sm:$0xff] %v403_v10  ;;  %418 = vst [vmem:[%s988_s3 + $0x28] sm:$0xff] %v393_v11  ;;  %v396_v14 = vpop.f32.mrb[10].mxu0 }
 0x11c   :  { %430 = vst [vmem:[%s988_s3 + $0x88] sm:$0xff] %v405_v13  ;;  %v397_v15 = vadd.f32 %v396_v14, %v135_v4  ;;  %v408_v16 = vpop.f32.mrb[10].mxu1  ;;  %v398_v17 = vpop.f32.mrb[11].mxu0 }
 0x11d   :  { %v409_v18 = vadd.f32 %v408_v16, %v135_v4  ;;  %v399_v19 = vadd.f32 %v398_v17, %v139_v5  ;;  %v410_v20 = vpop.f32.mrb[11].mxu1 }
 0x11e   :  { %423 = vst [vmem:[%s988_s3 + $0x50] sm:$0xff] %v397_v15  ;;  %v411_v21 = vadd.f32 %v410_v20, %v139_v5 }
 0x11f   :  { %435 = vst [vmem:[%s988_s3 + $0xb0] sm:$0xff] %v409_v18  ;;  %424 = vst [vmem:[%s988_s3 + $0x58] sm:$0xff] %v399_v19 }
 0x120   :  { %436 = vst [vmem:[%s988_s3 + $0xb8] sm:$0xff] %v411_v21 }

// kernel: naive_caller_forward.21
= control target key start
LH: loop header
LB: loop body
LE: loop exit
PB: predicated region body
PF: predicated region fallthrough
CT: control target
= control target key end

     0   :  { %s402_s1 = inlined_call_operand.vmem [shape: f32[256,128], index: 1, kind: input, shape index: {}]   ;;  %s403_s0 = inlined_call_operand.vmem [shape: f32[32,256], index: 0, kind: input, shape index: {}]   ;;  %s404_s2 = inlined_call_operand.vmem [shape: f32[1,128], index: 2, kind: input, shape index: {}]   ;;  %s405_s3 = inlined_call_operand.vmem [shape: f32[32,128], index: 3, kind: output, shape index: {}]  }
   0x1   :  { %v38_v0 = vld [vmem:[%s402_s1 + $0x80] sm:$0xff]  ;;  %v39_v1 = vld [vmem:[%s402_s1 + $0x88] sm:$0xff]  ;;  %v40_v5 = vld [vmem:[%s402_s1 + $0x90] sm:$0xff] }
   0x2   :  { %v22_v2 = vld [vmem:[%s402_s1] sm:$0xff]  ;;  %v199_v3 = vpack.c.bf16 %v39_v1, %v38_v0  ;;  %v23_v4 = vld [vmem:[%s402_s1 + $0x8] sm:$0xff]  ;;  %v41_v6 = vld [vmem:[%s402_s1 + $0x98] sm:$0xff] }
   0x3   :  { %v201_v7 = vpack.c.bf16 %v23_v4, %v22_v2  ;;  %v203_v8 = vpack.c.bf16 %v41_v6, %v40_v5  ;;  %v24_v9 = vld [vmem:[%s402_s1 + $0x10] sm:$0xff]  ;;  %v25_v10 = vld [vmem:[%s402_s1 + $0x18] sm:$0xff]  ;;  %v42_v11 = vld [vmem:[%s402_s1 + $0xa0] sm:$0xff] }
   0x4   :  { %200 = vmatprep.subr.bf16.mxu0 %v199_v3  ;;  %231 = vmatprep.subr.bf16.mxu1 %v199_v3  ;;  %v43_v12 = vld [vmem:[%s402_s1 + $0xa8] sm:$0xff]  ;;  %v205_v13 = vpack.c.bf16 %v25_v10, %v24_v9  ;;  %v26_v15 = vld [vmem:[%s402_s1 + $0x20] sm:$0xff]  ;;  %v44_v17 = vld [vmem:[%s402_s1 + $0xb0] sm:$0xff] }
   0x5   :  { %202 = vmatpush3.bf16.msra.mxu0 %v201_v7  ;;  %239 = vmatpush3.bf16.msra.mxu1 %v201_v7  ;;  %v207_v14 = vpack.c.bf16 %v43_v12, %v42_v11  ;;  %v27_v16 = vld [vmem:[%s402_s1 + $0x28] sm:$0xff]  ;;  %v45_v18 = vld [vmem:[%s402_s1 + $0xb8] sm:$0xff]  ;;  %v28_v21 = vld [vmem:[%s402_s1 + $0x30] sm:$0xff] }
   0x6   :  { %204 = vmatprep.subr.bf16.mxu0 %v203_v8  ;;  %232 = vmatprep.subr.bf16.mxu1 %v203_v8  ;;  %v209_v19 = vpack.c.bf16 %v27_v16, %v26_v15  ;;  %v211_v20 = vpack.c.bf16 %v45_v18, %v44_v17  ;;  %v29_v22 = vld [vmem:[%s402_s1 + $0x38] sm:$0xff]  ;;  %v46_v23 = vld [vmem:[%s402_s1 + $0xc0] sm:$0xff]  ;;  %v47_v24 = vld [vmem:[%s402_s1 + $0xc8] sm:$0xff] }
   0x7   :  { %v15_v25 = vld [vmem:[%s403_s0 + $0x8] sm:$0xff]  ;;  %v213_v27 = vpack.c.bf16 %v29_v22, %v28_v21  ;;  %v215_v28 = vpack.c.bf16 %v47_v24, %v46_v23  ;;  %v30_v29 = vld [vmem:[%s402_s1 + $0x40] sm:$0xff]  ;;  %v48_v31 = vld [vmem:[%s402_s1 + $0xd0] sm:$0xff] }
   0x8   :  { %125 = vmatprep.mubr.f32.mxu0 %v15_v25  ;;  %v19_v26 = vld [vmem:[%s403_s0 + $0x28] sm:$0xff]  ;;  %v49_v32 = vld [vmem:[%s402_s1 + $0xd8] sm:$0xff]  ;;  %v32_v35 = vld [vmem:[%s402_s1 + $0x50] sm:$0xff] }
   0x9   :  { %206 = vmatpush3.bf16.msra.mxu0 %v205_v13  ;;  %240 = vmatpush3.bf16.msra.mxu1 %v205_v13  ;;  %v31_v30 = vld [vmem:[%s402_s1 + $0x48] sm:$0xff]  ;;  %v219_v34 = vpack.c.bf16 %v49_v32, %v48_v31  ;;  %v33_v36 = vld [vmem:[%s402_s1 + $0x58] sm:$0xff]  ;;  %v50_v37 = vld [vmem:[%s402_s1 + $0xe0] sm:$0xff] }
   0xa   :  { %208 = vmatprep.subr.bf16.mxu0 %v207_v14  ;;  %233 = vmatprep.subr.bf16.mxu1 %v207_v14  ;;  %v217_v33 = vpack.c.bf16 %v31_v30, %v30_v29  ;;  %v51_v38 = vld [vmem:[%s402_s1 + $0xe8] sm:$0xff]  ;;  %v221_v39 = vpack.c.bf16 %v33_v36, %v32_v35  ;;  %v34_v41 = vld [vmem:[%s402_s1 + $0x60] sm:$0xff]  ;;  %v52_v43 = vld [vmem:[%s402_s1 + $0xf0] sm:$0xff] }
   0xb   :  { %135 = vmatprep.mubr.f32.mxu1 %v19_v26  ;;  %v223_v40 = vpack.c.bf16 %v51_v38, %v50_v37  ;;  %v35_v42 = vld [vmem:[%s402_s1 + $0x68] sm:$0xff]  ;;  %v53_v44 = vld [vmem:[%s402_s1 + $0xf8] sm:$0xff]  ;;  %v36_v47 = vld [vmem:[%s402_s1 + $0x70] sm:$0xff] }
   0xc   :  { %v225_v45 = vpack.c.bf16 %v35_v42, %v34_v41  ;;  %v227_v46 = vpack.c.bf16 %v53_v44, %v52_v43  ;;  %v37_v48 = vld [vmem:[%s402_s1 + $0x78] sm:$0xff]  ;;  %v14_v50 = vld [vmem:[%s403_s0] sm:$0xff]  ;;  %v16_v54 = vld [vmem:[%s403_s0 + $0x10] sm:$0xff] }
   0xd   :  { %210 = vmatpush3.bf16.msra.mxu0 %v209_v19  ;;  %241 = vmatpush3.bf16.msra.mxu1 %v209_v19  ;;  %v229_v49 = vpack.c.bf16 %v37_v48, %v36_v47  ;;  %v18_v51 = vld [vmem:[%s403_s0 + $0x20] sm:$0xff]  ;;  %v17_v52 = vld [vmem:[%s403_s0 + $0x18] sm:$0xff]  ;;  %v20_v55 = vld [vmem:[%s403_s0 + $0x30] sm:$0xff] }
   0xe   :  { %212 = vmatprep.subr.bf16.mxu0 %v211_v20  ;;  %234 = vmatprep.subr.bf16.mxu1 %v211_v20  ;;  %v21_v53 = vld [vmem:[%s403_s0 + $0x38] sm:$0xff]  ;;  %v154_v58 = vld [vmem:[%s404_s2] ss:$0 sm:$0xff] }
  0x11   :  { %214 = vmatpush3.bf16.msra.mxu0 %v213_v27  ;;  %242 = vmatpush3.bf16.msra.mxu1 %v213_v27 }
  0x12   :  { %216 = vmatprep.subr.bf16.mxu0 %v215_v28  ;;  %235 = vmatprep.subr.bf16.mxu1 %v215_v28 }
  0x15   :  { %218 = vmatpush3.bf16.msra.mxu0 %v217_v33  ;;  %243 = vmatpush3.bf16.msra.mxu1 %v217_v33 }
  0x16   :  { %220 = vmatprep.subr.bf16.mxu0 %v219_v34  ;;  %236 = vmatprep.subr.bf16.mxu1 %v219_v34 }
  0x19   :  { %222 = vmatpush3.bf16.msra.mxu0 %v221_v39  ;;  %244 = vmatpush3.bf16.msra.mxu1 %v221_v39 }
  0x1a   :  { %224 = vmatprep.subr.bf16.mxu0 %v223_v40  ;;  %237 = vmatprep.subr.bf16.mxu1 %v223_v40 }
  0x1d   :  { %226 = vmatpush3.bf16.msra.mxu0 %v225_v45  ;;  %245 = vmatpush3.bf16.msra.mxu1 %v225_v45 }
  0x1e   :  { %228 = vmatprep.subr.bf16.mxu0 %v227_v46  ;;  %238 = vmatprep.subr.bf16.mxu1 %v227_v46 }
  0x21   :  { %230 = vmatpush3.bf16.msra.mxu0 %v229_v49  ;;  %246 = vmatpush3.bf16.msra.mxu1 %v229_v49 }
  0x24   :  { %126 = vmatmul.mubr.f32.vlgmr.msra.gmra.mrb[0].mxu0 %v14_v50  ;;  %136 = vmatmul.mubr.f32.vlgmr.msra.gmra.mrb[0].mxu1 %v18_v51 }
  0x25   :  { %130 = vmatprep.mubr.f32.mxu0 %v17_v52  ;;  %140 = vmatprep.mubr.f32.mxu1 %v21_v53 }
  0x28   :  { %131 = vmatmul.mubr.f32.gmra.mrb[2].mxu0 %v16_v54  ;;  %141 = vmatmul.mubr.f32.gmra.mrb[2].mxu1 %v20_v55 }
  0xf7   :  { %v187_v56 = vpop.f32.mrb[0].mxu0  ;;  %v193_v57 = vpop.f32.mrb[0].mxu1 }
  0xf8   :  { %v188_v59 = vpop.f32.mrb[1].mxu0  ;;  %v194_v60 = vpop.f32.mrb[1].mxu1 }
  0xf9   :  { %v189_v61 = vadd.f32 %v188_v59, %v187_v56  ;;  %v195_v62 = vadd.f32 %v194_v60, %v193_v57 }
  0xfb   :  { %v128_v63 = vadd.f32 %v189_v61, %v154_v58  ;;  %v138_v0 = vadd.f32 %v195_v62, %v154_v58  ;;  %v190_v1 = vpop.f32.mrb[2].mxu0  ;;  %v196_v2 = vpop.f32.mrb[2].mxu1 }
  0xfc   :  { %v191_v3 = vpop.f32.mrb[3].mxu0  ;;  %v197_v4 = vpop.f32.mrb[3].mxu1 }
  0xfd   :  { %146 = vst [vmem:[%s405_s3] sm:$0xff] %v128_v63  ;;  %148 = vst [vmem:[%s405_s3 + $0x10] sm:$0xff] %v138_v0  ;;  %v192_v5 = vadd.f32 %v191_v3, %v190_v1  ;;  %v198_v6 = vadd.f32 %v197_v4, %v196_v2 }
  0xff   :  { %v133_v7 = vadd.f32 %v192_v5, %v154_v58  ;;  %v143_v8 = vadd.f32 %v198_v6, %v154_v58 }
 0x101   :  { %147 = vst [vmem:[%s405_s3 + $0x8] sm:$0xff] %v133_v7  ;;  %149 = vst [vmem:[%s405_s3 + $0x18] sm:$0xff] %v143_v8 }

// kernel: naive_caller_forward.17
= control target key start
LH: loop header
LB: loop body
LE: loop exit
PB: predicated region body
PF: predicated region fallthrough
CT: control target
= control target key end

     0   :  { %s1503_s1 = inlined_call_operand.vmem [shape: f32[256,768], index: 1, kind: input, shape index: {}]   ;;  %s1504_s0 = inlined_call_operand.vmem [shape: f32[32,256], index: 0, kind: input, shape index: {}]   ;;  %s1505_s2 = inlined_call_operand.vmem [shape: f32[1,768], index: 2, kind: input, shape index: {}]   ;;  %s1506_s3 = inlined_call_operand.vmem [shape: f32[32,768], index: 3, kind: output, shape index: {}]  }
   0x1   :  { %v23_v0 = vld [vmem:[%s1503_s1 + $0x8] sm:$0xff]  ;;  %v29_v1 = vld [vmem:[%s1503_s1 + $0x38] sm:$0xff]  ;;  %v22_v5 = vld [vmem:[%s1503_s1] sm:$0xff] }
   0x2   :  { %v25_v2 = vld [vmem:[%s1503_s1 + $0x18] sm:$0xff]  ;;  %v541_v3 = vpack.c.bf16 %v29_v1, %v23_v0  ;;  %v31_v4 = vld [vmem:[%s1503_s1 + $0x48] sm:$0xff]  ;;  %v28_v6 = vld [vmem:[%s1503_s1 + $0x30] sm:$0xff] }
   0x3   :  { %v605_v7 = vpack.c.bf16 %v31_v4, %v25_v2  ;;  %v543_v8 = vpack.c.bf16 %v28_v6, %v22_v5  ;;  %v24_v9 = vld [vmem:[%s1503_s1 + $0x10] sm:$0xff]  ;;  %v30_v10 = vld [vmem:[%s1503_s1 + $0x40] sm:$0xff]  ;;  %v35_v11 = vld [vmem:[%s1503_s1 + $0x68] sm:$0xff] }
   0x4   :  { %542 = vmatprep.subr.bf16.mxu0 %v541_v3  ;;  %v607_v12 = vpack.c.bf16 %v30_v10, %v24_v9  ;;  %v41_v13 = vld [vmem:[%s1503_s1 + $0x98] sm:$0xff]  ;;  %v43_v15 = vld [vmem:[%s1503_s1 + $0xa8] sm:$0xff]  ;;  %v34_v18 = vld [vmem:[%s1503_s1 + $0x60] sm:$0xff] }
   0x5   :  { %v37_v14 = vld [vmem:[%s1503_s1 + $0x78] sm:$0xff]  ;;  %606 = vmatprep.subr.bf16.mxu1 %v605_v7  ;;  %544 = vmatpush1.bf16.msra.mxu0 %v543_v8  ;;  %v545_v16 = vpack.c.bf16 %v41_v13, %v35_v11  ;;  %v40_v19 = vld [vmem:[%s1503_s1 + $0x90] sm:$0xff]  ;;  %v42_v22 = vld [vmem:[%s1503_s1 + $0xa0] sm:$0xff] }
   0x6   :  { %v609_v17 = vpack.c.bf16 %v43_v15, %v37_v14  ;;  %v36_v20 = vld [vmem:[%s1503_s1 + $0x70] sm:$0xff]  ;;  %608 = vmatpush1.bf16.msra.mxu1 %v607_v12  ;;  %v547_v21 = vpack.c.bf16 %v40_v19, %v34_v18  ;;  %v47_v23 = vld [vmem:[%s1503_s1 + $0xc8] sm:$0xff]  ;;  %v53_v24 = vld [vmem:[%s1503_s1 + $0xf8] sm:$0xff] }
   0x7   :  { %546 = vmatprep.subr.bf16.mxu0 %v545_v16  ;;  %v611_v25 = vpack.c.bf16 %v42_v22, %v36_v20  ;;  %v549_v26 = vpack.c.bf16 %v53_v24, %v47_v23  ;;  %v49_v27 = vld [vmem:[%s1503_s1 + $0xd8] sm:$0xff]  ;;  %v55_v28 = vld [vmem:[%s1503_s1 + $0x108] sm:$0xff]  ;;  %v46_v29 = vld [vmem:[%s1503_s1 + $0xc0] sm:$0xff] }
   0x8   :  { %610 = vmatprep.subr.bf16.mxu1 %v609_v17  ;;  %v613_v30 = vpack.c.bf16 %v55_v28, %v49_v27  ;;  %v52_v31 = vld [vmem:[%s1503_s1 + $0xf0] sm:$0xff]  ;;  %v54_v33 = vld [vmem:[%s1503_s1 + $0x100] sm:$0xff]  ;;  %v59_v35 = vld [vmem:[%s1503_s1 + $0x128] sm:$0xff] }
   0x9   :  { %v48_v32 = vld [vmem:[%s1503_s1 + $0xd0] sm:$0xff]  ;;  %548 = vmatpush1.bf16.msra.mxu0 %v547_v21  ;;  %v551_v34 = vpack.c.bf16 %v52_v31, %v46_v29  ;;  %v65_v36 = vld [vmem:[%s1503_s1 + $0x158] sm:$0xff]  ;;  %v67_v40 = vld [vmem:[%s1503_s1 + $0x168] sm:$0xff] }
   0xa   :  { %v61_v37 = vld [vmem:[%s1503_s1 + $0x138] sm:$0xff]  ;;  %612 = vmatpush1.bf16.msra.mxu1 %v611_v25  ;;  %550 = vmatprep.subr.bf16.mxu0 %v549_v26  ;;  %v615_v38 = vpack.c.bf16 %v54_v33, %v48_v32  ;;  %v553_v39 = vpack.c.bf16 %v65_v36, %v59_v35  ;;  %v58_v41 = vld [vmem:[%s1503_s1 + $0x120] sm:$0xff]  ;;  %v64_v42 = vld [vmem:[%s1503_s1 + $0x150] sm:$0xff] }
   0xb   :  { %614 = vmatprep.subr.bf16.mxu1 %v613_v30  ;;  %v617_v43 = vpack.c.bf16 %v67_v40, %v61_v37  ;;  %v60_v44 = vld [vmem:[%s1503_s1 + $0x130] sm:$0xff]  ;;  %v66_v45 = vld [vmem:[%s1503_s1 + $0x160] sm:$0xff]  ;;  %v71_v46 = vld [vmem:[%s1503_s1 + $0x188] sm:$0xff]  ;;  %v555_v50 = vpack.c.bf16 %v64_v42, %v58_v41 }
   0xc   :  { %v77_v47 = vld [vmem:[%s1503_s1 + $0x1b8] sm:$0xff]  ;;  %v79_v49 = vld [vmem:[%s1503_s1 + $0x1c8] sm:$0xff]  ;;  %v619_v51 = vpack.c.bf16 %v66_v45, %v60_v44  ;;  %v70_v53 = vld [vmem:[%s1503_s1 + $0x180] sm:$0xff] }
   0xd   :  { %v73_v48 = vld [vmem:[%s1503_s1 + $0x198] sm:$0xff]  ;;  %552 = vmatpush1.bf16.msra.mxu0 %v551_v34  ;;  %v557_v52 = vpack.c.bf16 %v77_v47, %v71_v46  ;;  %v76_v54 = vld [vmem:[%s1503_s1 + $0x1b0] sm:$0xff]  ;;  %v78_v57 = vld [vmem:[%s1503_s1 + $0x1c0] sm:$0xff] }
   0xe   :  { %616 = vmatpush1.bf16.msra.mxu1 %v615_v38  ;;  %554 = vmatprep.subr.bf16.mxu0 %v553_v39  ;;  %v72_v55 = vld [vmem:[%s1503_s1 + $0x190] sm:$0xff]  ;;  %v621_v56 = vpack.c.bf16 %v79_v49, %v73_v48  ;;  %v83_v58 = vld [vmem:[%s1503_s1 + $0x1e8] sm:$0xff]  ;;  %v89_v59 = vld [vmem:[%s1503_s1 + $0x218] sm:$0xff]  ;;  %v559_v62 = vpack.c.bf16 %v76_v54, %v70_v53 }
   0xf   :  { %618 = vmatprep.subr.bf16.mxu1 %v617_v43  ;;  %v85_v60 = vld [vmem:[%s1503_s1 + $0x1f8] sm:$0xff]  ;;  %v91_v61 = vld [vmem:[%s1503_s1 + $0x228] sm:$0xff]  ;;  %v623_v63 = vpack.c.bf16 %v78_v57, %v72_v55  ;;  %v561_v0 = vpack.c.bf16 %v89_v59, %v83_v58  ;;  %v82_v1 = vld [vmem:[%s1503_s1 + $0x1e0] sm:$0xff] }
  0x10   :  { %v88_v2 = vld [vmem:[%s1503_s1 + $0x210] sm:$0xff]  ;;  %v625_v4 = vpack.c.bf16 %v91_v61, %v85_v60  ;;  %v90_v5 = vld [vmem:[%s1503_s1 + $0x220] sm:$0xff]  ;;  %v95_v6 = vld [vmem:[%s1503_s1 + $0x248] sm:$0xff] }
  0x11   :  { %556 = vmatpush1.bf16.msra.mxu0 %v555_v50  ;;  %v84_v3 = vld [vmem:[%s1503_s1 + $0x1f0] sm:$0xff]  ;;  %v101_v7 = vld [vmem:[%s1503_s1 + $0x278] sm:$0xff]  ;;  %v103_v9 = vld [vmem:[%s1503_s1 + $0x288] sm:$0xff]  ;;  %v563_v10 = vpack.c.bf16 %v88_v2, %v82_v1 }
  0x12   :  { %620 = vmatpush1.bf16.msra.mxu1 %v619_v51  ;;  %558 = vmatprep.subr.bf16.mxu0 %v557_v52  ;;  %v97_v8 = vld [vmem:[%s1503_s1 + $0x258] sm:$0xff]  ;;  %v627_v11 = vpack.c.bf16 %v90_v5, %v84_v3  ;;  %v565_v12 = vpack.c.bf16 %v101_v7, %v95_v6  ;;  %v94_v13 = vld [vmem:[%s1503_s1 + $0x240] sm:$0xff]  ;;  %v100_v14 = vld [vmem:[%s1503_s1 + $0x270] sm:$0xff] }
  0x13   :  { %622 = vmatprep.subr.bf16.mxu1 %v621_v56  ;;  %v96_v15 = vld [vmem:[%s1503_s1 + $0x250] sm:$0xff]  ;;  %v629_v16 = vpack.c.bf16 %v103_v9, %v97_v8  ;;  %v102_v17 = vld [vmem:[%s1503_s1 + $0x280] sm:$0xff]  ;;  %v107_v18 = vld [vmem:[%s1503_s1 + $0x2a8] sm:$0xff]  ;;  %v567_v22 = vpack.c.bf16 %v100_v14, %v94_v13 }
  0x14   :  { %v113_v19 = vld [vmem:[%s1503_s1 + $0x2d8] sm:$0xff]  ;;  %v115_v21 = vld [vmem:[%s1503_s1 + $0x2e8] sm:$0xff]  ;;  %v631_v23 = vpack.c.bf16 %v102_v17, %v96_v15  ;;  %v106_v25 = vld [vmem:[%s1503_s1 + $0x2a0] sm:$0xff] }
  0x15   :  { %560 = vmatpush1.bf16.msra.mxu0 %v559_v62  ;;  %v109_v20 = vld [vmem:[%s1503_s1 + $0x2b8] sm:$0xff]  ;;  %v569_v24 = vpack.c.bf16 %v113_v19, %v107_v18  ;;  %v112_v26 = vld [vmem:[%s1503_s1 + $0x2d0] sm:$0xff]  ;;  %v114_v29 = vld [vmem:[%s1503_s1 + $0x2e0] sm:$0xff] }
  0x16   :  { %624 = vmatpush1.bf16.msra.mxu1 %v623_v63  ;;  %562 = vmatprep.subr.bf16.mxu0 %v561_v0  ;;  %v108_v27 = vld [vmem:[%s1503_s1 + $0x2b0] sm:$0xff]  ;;  %v633_v28 = vpack.c.bf16 %v115_v21, %v109_v20  ;;  %v119_v30 = vld [vmem:[%s1503_s1 + $0x308] sm:$0xff]  ;;  %v125_v31 = vld [vmem:[%s1503_s1 + $0x338] sm:$0xff]  ;;  %v571_v34 = vpack.c.bf16 %v112_v26, %v106_v25 }
  0x17   :  { %626 = vmatprep.subr.bf16.mxu1 %v625_v4  ;;  %v121_v32 = vld [vmem:[%s1503_s1 + $0x318] sm:$0xff]  ;;  %v127_v33 = vld [vmem:[%s1503_s1 + $0x348] sm:$0xff]  ;;  %v635_v35 = vpack.c.bf16 %v114_v29, %v108_v27  ;;  %v573_v36 = vpack.c.bf16 %v125_v31, %v119_v30  ;;  %v118_v37 = vld [vmem:[%s1503_s1 + $0x300] sm:$0xff] }
  0x18   :  { %v124_v38 = vld [vmem:[%s1503_s1 + $0x330] sm:$0xff]  ;;  %v637_v40 = vpack.c.bf16 %v127_v33, %v121_v32  ;;  %v126_v41 = vld [vmem:[%s1503_s1 + $0x340] sm:$0xff]  ;;  %v131_v42 = vld [vmem:[%s1503_s1 + $0x368] sm:$0xff] }
  0x19   :  { %564 = vmatpush1.bf16.msra.mxu0 %v563_v10  ;;  %v120_v39 = vld [vmem:[%s1503_s1 + $0x310] sm:$0xff]  ;;  %v137_v43 = vld [vmem:[%s1503_s1 + $0x398] sm:$0xff]  ;;  %v139_v45 = vld [vmem:[%s1503_s1 + $0x3a8] sm:$0xff]  ;;  %v575_v46 = vpack.c.bf16 %v124_v38, %v118_v37 }
  0x1a   :  { %628 = vmatpush1.bf16.msra.mxu1 %v627_v11  ;;  %566 = vmatprep.subr.bf16.mxu0 %v565_v12  ;;  %v133_v44 = vld [vmem:[%s1503_s1 + $0x378] sm:$0xff]  ;;  %v639_v47 = vpack.c.bf16 %v126_v41, %v120_v39  ;;  %v577_v48 = vpack.c.bf16 %v137_v43, %v131_v42  ;;  %v130_v49 = vld [vmem:[%s1503_s1 + $0x360] sm:$0xff]  ;;  %v136_v50 = vld [vmem:[%s1503_s1 + $0x390] sm:$0xff] }
  0x1b   :  { %630 = vmatprep.subr.bf16.mxu1 %v629_v16  ;;  %v132_v51 = vld [vmem:[%s1503_s1 + $0x370] sm:$0xff]  ;;  %v641_v52 = vpack.c.bf16 %v139_v45, %v133_v44  ;;  %v138_v53 = vld [vmem:[%s1503_s1 + $0x3a0] sm:$0xff]  ;;  %v143_v54 = vld [vmem:[%s1503_s1 + $0x3c8] sm:$0xff]  ;;  %v579_v58 = vpack.c.bf16 %v136_v50, %v130_v49 }
  0x1c   :  { %v149_v55 = vld [vmem:[%s1503_s1 + $0x3f8] sm:$0xff]  ;;  %v151_v57 = vld [vmem:[%s1503_s1 + $0x408] sm:$0xff]  ;;  %v643_v59 = vpack.c.bf16 %v138_v53, %v132_v51  ;;  %v142_v61 = vld [vmem:[%s1503_s1 + $0x3c0] sm:$0xff] }
  0x1d   :  { %568 = vmatpush1.bf16.msra.mxu0 %v567_v22  ;;  %v145_v56 = vld [vmem:[%s1503_s1 + $0x3d8] sm:$0xff]  ;;  %v581_v60 = vpack.c.bf16 %v149_v55, %v143_v54  ;;  %v148_v62 = vld [vmem:[%s1503_s1 + $0x3f0] sm:$0xff]  ;;  %v150_v1 = vld [vmem:[%s1503_s1 + $0x400] sm:$0xff] }
  0x1e   :  { %632 = vmatpush1.bf16.msra.mxu1 %v631_v23  ;;  %570 = vmatprep.subr.bf16.mxu0 %v569_v24  ;;  %v144_v63 = vld [vmem:[%s1503_s1 + $0x3d0] sm:$0xff]  ;;  %v645_v0 = vpack.c.bf16 %v151_v57, %v145_v56  ;;  %v155_v2 = vld [vmem:[%s1503_s1 + $0x428] sm:$0xff]  ;;  %v161_v3 = vld [vmem:[%s1503_s1 + $0x458] sm:$0xff]  ;;  %v583_v6 = vpack.c.bf16 %v148_v62, %v142_v61 }
  0x1f   :  { %634 = vmatprep.subr.bf16.mxu1 %v633_v28  ;;  %v157_v4 = vld [vmem:[%s1503_s1 + $0x438] sm:$0xff]  ;;  %v163_v5 = vld [vmem:[%s1503_s1 + $0x468] sm:$0xff]  ;;  %v154_v7 = vld [vmem:[%s1503_s1 + $0x420] sm:$0xff]  ;;  %v647_v8 = vpack.c.bf16 %v150_v1, %v144_v63  ;;  %v585_v9 = vpack.c.bf16 %v161_v3, %v155_v2 }
  0x20   :  { %v160_v10 = vld [vmem:[%s1503_s1 + $0x450] sm:$0xff]  ;;  %v162_v12 = vld [vmem:[%s1503_s1 + $0x460] sm:$0xff]  ;;  %v649_v13 = vpack.c.bf16 %v163_v5, %v157_v4  ;;  %v167_v14 = vld [vmem:[%s1503_s1 + $0x488] sm:$0xff] }
  0x21   :  { %572 = vmatpush1.bf16.msra.mxu0 %v571_v34  ;;  %v156_v11 = vld [vmem:[%s1503_s1 + $0x430] sm:$0xff]  ;;  %v173_v15 = vld [vmem:[%s1503_s1 + $0x4b8] sm:$0xff]  ;;  %v1082_v16 = vld [vmem:[%s1504_s0 + $0x8] sm:$0xff]  ;;  %v587_v19 = vpack.c.bf16 %v160_v10, %v154_v7 }
  0x22   :  { %636 = vmatpush1.bf16.msra.mxu1 %v635_v35  ;;  %574 = vmatprep.subr.bf16.mxu0 %v573_v36  ;;  %v169_v17 = vld [vmem:[%s1503_s1 + $0x498] sm:$0xff]  ;;  %v175_v18 = vld [vmem:[%s1503_s1 + $0x4c8] sm:$0xff]  ;;  %v651_v20 = vpack.c.bf16 %v162_v12, %v156_v11  ;;  %v589_v21 = vpack.c.bf16 %v173_v15, %v167_v14  ;;  %v166_v22 = vld [vmem:[%s1503_s1 + $0x480] sm:$0xff] }
  0x23   :  { %638 = vmatprep.subr.bf16.mxu1 %v637_v40  ;;  %310 = vmatprep.mubr.f32.mxu0 %v1082_v16  ;;  %v172_v23 = vld [vmem:[%s1503_s1 + $0x4b0] sm:$0xff]  ;;  %v653_v25 = vpack.c.bf16 %v175_v18, %v169_v17  ;;  %v174_v26 = vld [vmem:[%s1503_s1 + $0x4c0] sm:$0xff]  ;;  %v179_v27 = vld [vmem:[%s1503_s1 + $0x4e8] sm:$0xff] }
  0x24   :  { %399 = vmatprep.mubr.f32.mxu1 %v1082_v16  ;;  %v168_v24 = vld [vmem:[%s1503_s1 + $0x490] sm:$0xff]  ;;  %v185_v28 = vld [vmem:[%s1503_s1 + $0x518] sm:$0xff]  ;;  %v187_v30 = vld [vmem:[%s1503_s1 + $0x528] sm:$0xff]  ;;  %v591_v31 = vpack.c.bf16 %v172_v23, %v166_v22 }
  0x25   :  { %576 = vmatpush1.bf16.msra.mxu0 %v575_v46  ;;  %v181_v29 = vld [vmem:[%s1503_s1 + $0x4f8] sm:$0xff]  ;;  %v655_v32 = vpack.c.bf16 %v174_v26, %v168_v24  ;;  %v593_v33 = vpack.c.bf16 %v185_v28, %v179_v27  ;;  %v178_v34 = vld [vmem:[%s1503_s1 + $0x4e0] sm:$0xff]  ;;  %v184_v35 = vld [vmem:[%s1503_s1 + $0x510] sm:$0xff] }
  0x26   :  { %640 = vmatpush1.bf16.msra.mxu1 %v639_v47  ;;  %578 = vmatprep.subr.bf16.mxu0 %v577_v48  ;;  %v180_v36 = vld [vmem:[%s1503_s1 + $0x4f0] sm:$0xff]  ;;  %v657_v37 = vpack.c.bf16 %v187_v30, %v181_v29  ;;  %v186_v38 = vld [vmem:[%s1503_s1 + $0x520] sm:$0xff]  ;;  %v191_v39 = vld [vmem:[%s1503_s1 + $0x548] sm:$0xff]  ;;  %v595_v43 = vpack.c.bf16 %v184_v35, %v178_v34 }
  0x27   :  { %642 = vmatprep.subr.bf16.mxu1 %v641_v52  ;;  %v197_v40 = vld [vmem:[%s1503_s1 + $0x578] sm:$0xff]  ;;  %v199_v42 = vld [vmem:[%s1503_s1 + $0x588] sm:$0xff]  ;;  %v659_v44 = vpack.c.bf16 %v186_v38, %v180_v36  ;;  %v190_v46 = vld [vmem:[%s1503_s1 + $0x540] sm:$0xff] }
  0x28   :  { %v193_v41 = vld [vmem:[%s1503_s1 + $0x558] sm:$0xff]  ;;  %v597_v45 = vpack.c.bf16 %v197_v40, %v191_v39  ;;  %v196_v47 = vld [vmem:[%s1503_s1 + $0x570] sm:$0xff]  ;;  %v198_v50 = vld [vmem:[%s1503_s1 + $0x580] sm:$0xff] }
  0x29   :  { %580 = vmatpush1.bf16.msra.mxu0 %v579_v58  ;;  %v192_v48 = vld [vmem:[%s1503_s1 + $0x550] sm:$0xff]  ;;  %v661_v49 = vpack.c.bf16 %v199_v42, %v193_v41  ;;  %v203_v51 = vld [vmem:[%s1503_s1 + $0x5a8] sm:$0xff]  ;;  %v209_v52 = vld [vmem:[%s1503_s1 + $0x5d8] sm:$0xff]  ;;  %v599_v55 = vpack.c.bf16 %v196_v47, %v190_v46 }
  0x2a   :  { %644 = vmatpush1.bf16.msra.mxu1 %v643_v59  ;;  %582 = vmatprep.subr.bf16.mxu0 %v581_v60  ;;  %v205_v53 = vld [vmem:[%s1503_s1 + $0x5b8] sm:$0xff]  ;;  %v211_v54 = vld [vmem:[%s1503_s1 + $0x5e8] sm:$0xff]  ;;  %v663_v56 = vpack.c.bf16 %v198_v50, %v192_v48  ;;  %v601_v57 = vpack.c.bf16 %v209_v52, %v203_v51  ;;  %v202_v58 = vld [vmem:[%s1503_s1 + $0x5a0] sm:$0xff] }
  0x2b   :  { %646 = vmatprep.subr.bf16.mxu1 %v645_v0  ;;  %v208_v59 = vld [vmem:[%s1503_s1 + $0x5d0] sm:$0xff]  ;;  %v665_v61 = vpack.c.bf16 %v211_v54, %v205_v53  ;;  %v210_v62 = vld [vmem:[%s1503_s1 + $0x5e0] sm:$0xff]  ;;  %v27_v63 = vld [vmem:[%s1503_s1 + $0x28] sm:$0xff] }
  0x2c   :  { %v204_v60 = vld [vmem:[%s1503_s1 + $0x5b0] sm:$0xff]  ;;  %v33_v0 = vld [vmem:[%s1503_s1 + $0x58] sm:$0xff]  ;;  %v603_v1 = vpack.c.bf16 %v208_v59, %v202_v58  ;;  %v26_v4 = vld [vmem:[%s1503_s1 + $0x20] sm:$0xff] }
  0x2d   :  { %584 = vmatpush1.bf16.msra.mxu0 %v583_v6  ;;  %v667_v2 = vpack.c.bf16 %v210_v62, %v204_v60  ;;  %v669_v3 = vpack.c.bf16 %v33_v0, %v27_v63  ;;  %v32_v5 = vld [vmem:[%s1503_s1 + $0x50] sm:$0xff]  ;;  %v39_v6 = vld [vmem:[%s1503_s1 + $0x88] sm:$0xff]  ;;  %v45_v7 = vld [vmem:[%s1503_s1 + $0xb8] sm:$0xff] }
  0x2e   :  { %648 = vmatpush1.bf16.msra.mxu1 %v647_v8  ;;  %586 = vmatprep.subr.bf16.mxu0 %v585_v9  ;;  %v1197_v8 = vld [vmem:[%s1504_s0] sm:$0xff]  ;;  %v671_v9 = vpack.c.bf16 %v32_v5, %v26_v4  ;;  %v673_v10 = vpack.c.bf16 %v45_v7, %v39_v6  ;;  %v44_v12 = vld [vmem:[%s1503_s1 + $0xb0] sm:$0xff]  ;;  %v57_v14 = vld [vmem:[%s1503_s1 + $0x118] sm:$0xff] }
  0x2f   :  { %650 = vmatprep.subr.bf16.mxu1 %v649_v13  ;;  %v38_v11 = vld [vmem:[%s1503_s1 + $0x80] sm:$0xff]  ;;  %v51_v13 = vld [vmem:[%s1503_s1 + $0xe8] sm:$0xff]  ;;  %v1215_v15 = vld [vmem:[%s1504_s0 + $0x18] sm:$0xff] }
  0x30   :  { %v675_v17 = vpack.c.bf16 %v44_v12, %v38_v11  ;;  %v1221_v18 = vld [vmem:[%s1504_s0 + $0x10] sm:$0xff]  ;;  %v63_v22 = vld [vmem:[%s1503_s1 + $0x148] sm:$0xff]  ;;  %v69_v23 = vld [vmem:[%s1503_s1 + $0x178] sm:$0xff] }
  0x31   :  { %588 = vmatpush1.bf16.msra.mxu0 %v587_v19  ;;  %v677_v19 = vpack.c.bf16 %v57_v14, %v51_v13  ;;  %v19_v24 = vld [vmem:[%s1504_s0 + $0x28] sm:$0xff]  ;;  %v1245_v26 = vld [vmem:[%s1504_s0 + $0x20] sm:$0xff]  ;;  %v681_v27 = vpack.c.bf16 %v69_v23, %v63_v22  ;;  %v68_v29 = vld [vmem:[%s1503_s1 + $0x170] sm:$0xff] }
  0x32   :  { %652 = vmatpush1.bf16.msra.mxu1 %v651_v20  ;;  %590 = vmatprep.subr.bf16.mxu0 %v589_v21  ;;  %v50_v20 = vld [vmem:[%s1503_s1 + $0xe0] sm:$0xff]  ;;  %v56_v21 = vld [vmem:[%s1503_s1 + $0x110] sm:$0xff]  ;;  %v75_v30 = vld [vmem:[%s1503_s1 + $0x1a8] sm:$0xff] }
  0x33   :  { %654 = vmatprep.subr.bf16.mxu1 %v653_v25  ;;  %v679_v25 = vpack.c.bf16 %v56_v21, %v50_v20  ;;  %v62_v28 = vld [vmem:[%s1503_s1 + $0x140] sm:$0xff]  ;;  %v1269_v34 = vld [vmem:[%s1504_s0 + $0x30] sm:$0xff]  ;;  %v87_v38 = vld [vmem:[%s1503_s1 + $0x208] sm:$0xff] }
  0x34   :  { %v74_v36 = vld [vmem:[%s1503_s1 + $0x1a0] sm:$0xff]  ;;  %v93_v39 = vld [vmem:[%s1503_s1 + $0x238] sm:$0xff]  ;;  %v111_v50 = vld [vmem:[%s1503_s1 + $0x2c8] sm:$0xff] }
  0x35   :  { %592 = vmatpush1.bf16.msra.mxu0 %v591_v31  ;;  %v81_v31 = vld [vmem:[%s1503_s1 + $0x1d8] sm:$0xff]  ;;  %v689_v41 = vpack.c.bf16 %v93_v39, %v87_v38  ;;  %v86_v42 = vld [vmem:[%s1503_s1 + $0x200] sm:$0xff]  ;;  %v116_v54 = vld [vmem:[%s1503_s1 + $0x2f0] sm:$0xff] }
  0x36   :  { %656 = vmatpush1.bf16.msra.mxu1 %v655_v32  ;;  %594 = vmatprep.subr.bf16.mxu0 %v593_v33  ;;  %v1263_v32 = vld [vmem:[%s1504_s0 + $0x38] sm:$0xff]  ;;  %v683_v33 = vpack.c.bf16 %v68_v29, %v62_v28  ;;  %v685_v35 = vpack.c.bf16 %v81_v31, %v75_v30  ;;  %v98_v48 = vld [vmem:[%s1503_s1 + $0x260] sm:$0xff]  ;;  %v128_v60 = vld [vmem:[%s1503_s1 + $0x350] sm:$0xff] }
  0x37   :  { %658 = vmatprep.subr.bf16.mxu1 %v657_v37  ;;  %v80_v37 = vld [vmem:[%s1503_s1 + $0x1d0] sm:$0xff]  ;;  %v110_v53 = vld [vmem:[%s1503_s1 + $0x2c0] sm:$0xff]  ;;  %v141_v62 = vld [vmem:[%s1503_s1 + $0x3b8] sm:$0xff] }
  0x38   :  { %v687_v40 = vpack.c.bf16 %v80_v37, %v74_v36  ;;  %v122_v59 = vld [vmem:[%s1503_s1 + $0x320] sm:$0xff]  ;;  %v153_v4 = vld [vmem:[%s1503_s1 + $0x418] sm:$0xff]  ;;  %v188_v31 = vld [vmem:[%s1503_s1 + $0x530] sm:$0xff] }
  0x39   :  { %596 = vmatpush1.bf16.msra.mxu0 %v595_v43  ;;  %v92_v43 = vld [vmem:[%s1503_s1 + $0x230] sm:$0xff]  ;;  %v703_v63 = vpack.c.bf16 %v128_v60, %v122_v59  ;;  %v146_v7 = vld [vmem:[%s1503_s1 + $0x3e0] sm:$0xff]  ;;  %v165_v11 = vld [vmem:[%s1503_s1 + $0x478] sm:$0xff] }
  0x3a   :  { %660 = vmatpush1.bf16.msra.mxu1 %v659_v44  ;;  %598 = vmatprep.subr.bf16.mxu0 %v597_v45  ;;  %v99_v44 = vld [vmem:[%s1503_s1 + $0x268] sm:$0xff]  ;;  %v105_v45 = vld [vmem:[%s1503_s1 + $0x298] sm:$0xff]  ;;  %v691_v46 = vpack.c.bf16 %v92_v43, %v86_v42  ;;  %v158_v14 = vld [vmem:[%s1503_s1 + $0x440] sm:$0xff] }
  0x3b   :  { %662 = vmatprep.subr.bf16.mxu1 %v661_v49  ;;  %v693_v47 = vpack.c.bf16 %v105_v45, %v99_v44  ;;  %v104_v49 = vld [vmem:[%s1503_s1 + $0x290] sm:$0xff]  ;;  %v177_v20 = vld [vmem:[%s1503_s1 + $0x4d8] sm:$0xff]  ;;  %v170_v23 = vld [vmem:[%s1503_s1 + $0x4a0] sm:$0xff] }
  0x3c   :  { %v695_v51 = vpack.c.bf16 %v104_v49, %v98_v48  ;;  %v182_v30 = vld [vmem:[%s1503_s1 + $0x500] sm:$0xff]  ;;  %v200_v39 = vld [vmem:[%s1503_s1 + $0x590] sm:$0xff] }
  0x3d   :  { %600 = vmatpush1.bf16.msra.mxu0 %v599_v55  ;;  %v123_v55 = vld [vmem:[%s1503_s1 + $0x328] sm:$0xff]  ;;  %v723_v36 = vpack.c.bf16 %v188_v31, %v182_v30  ;;  %v194_v38 = vld [vmem:[%s1503_s1 + $0x560] sm:$0xff]  ;;  %v212_v45 = vld [vmem:[%s1503_s1 + $0x5f0] sm:$0xff] }
  0x3e   :  { %664 = vmatpush1.bf16.msra.mxu1 %v663_v56  ;;  %602 = vmatprep.subr.bf16.mxu0 %v601_v57  ;;  %v129_v56 = vld [vmem:[%s1503_s1 + $0x358] sm:$0xff]  ;;  %v699_v57 = vpack.c.bf16 %v116_v54, %v110_v53  ;;  %v727_v42 = vpack.c.bf16 %v200_v39, %v194_v38  ;;  %v206_v44 = vld [vmem:[%s1503_s1 + $0x5c0] sm:$0xff] }
  0x3f   :  { %666 = vmatprep.subr.bf16.mxu1 %v665_v61  ;;  %v701_v58 = vpack.c.bf16 %v129_v56, %v123_v55  ;;  %v135_v61 = vld [vmem:[%s1503_s1 + $0x388] sm:$0xff] }
  0x40   :  { %v705_v0 = vpack.c.bf16 %v141_v62, %v135_v61 }
  0x41   :  { %604 = vmatpush1.bf16.msra.mxu0 %v603_v1  ;;  %v134_v1 = vld [vmem:[%s1503_s1 + $0x380] sm:$0xff] }
  0x42   :  { %668 = vmatpush1.bf16.msra.mxu1 %v667_v2  ;;  %670 = vmatprep.subr.bf16.mxu0 %v669_v3  ;;  %v140_v2 = vld [vmem:[%s1503_s1 + $0x3b0] sm:$0xff] }
  0x43   :  { %733 = vmatprep.subr.bf16.mxu1 %v669_v3  ;;  %v147_v3 = vld [vmem:[%s1503_s1 + $0x3e8] sm:$0xff]  ;;  %v707_v5 = vpack.c.bf16 %v140_v2, %v134_v1 }
  0x44   :  { %311 = vmatmul.mubr.f32.vlgmr.msra.gmra.mrb[0].mxu0 %v1197_v8  ;;  %v709_v6 = vpack.c.bf16 %v153_v4, %v147_v3 }
  0x45   :  { %400 = vmatmul.mubr.f32.vlgmr.msra.gmra.mrb[0].mxu1 %v1197_v8  ;;  %672 = vmatpush1.bf16.msra.mxu0 %v671_v9 }
  0x46   :  { %749 = vmatpush1.bf16.msra.mxu1 %v671_v9  ;;  %674 = vmatprep.subr.bf16.mxu0 %v673_v10  ;;  %v152_v9 = vld [vmem:[%s1503_s1 + $0x410] sm:$0xff] }
  0x47   :  { %734 = vmatprep.subr.bf16.mxu1 %v673_v10  ;;  %316 = vmatprep.mubr.f32.mxu0 %v1215_v15  ;;  %v159_v10 = vld [vmem:[%s1503_s1 + $0x448] sm:$0xff]  ;;  %v711_v12 = vpack.c.bf16 %v152_v9, %v146_v7 }
  0x48   :  { %405 = vmatprep.mubr.f32.mxu1 %v1215_v15  ;;  %317 = vmatmul.mubr.f32.gmra.mrb[2].mxu0 %v1221_v18  ;;  %v713_v13 = vpack.c.bf16 %v165_v11, %v159_v10 }
  0x49   :  { %676 = vmatpush1.bf16.msra.mxu0 %v675_v17  ;;  %406 = vmatmul.mubr.f32.gmra.mrb[2].mxu1 %v1221_v18 }
  0x4a   :  { %750 = vmatpush1.bf16.msra.mxu1 %v675_v17  ;;  %678 = vmatprep.subr.bf16.mxu0 %v677_v19  ;;  %v164_v17 = vld [vmem:[%s1503_s1 + $0x470] sm:$0xff] }
  0x4b   :  { %735 = vmatprep.subr.bf16.mxu1 %v677_v19  ;;  %322 = vmatprep.mubr.f32.mxu0 %v19_v24  ;;  %v171_v19 = vld [vmem:[%s1503_s1 + $0x4a8] sm:$0xff]  ;;  %v715_v21 = vpack.c.bf16 %v164_v17, %v158_v14 }
  0x4c   :  { %411 = vmatprep.mubr.f32.mxu1 %v19_v24  ;;  %323 = vmatmul.mubr.f32.gmra.mrb[4].mxu0 %v1245_v26  ;;  %v717_v22 = vpack.c.bf16 %v177_v20, %v171_v19 }
  0x4d   :  { %680 = vmatpush1.bf16.msra.mxu0 %v679_v25  ;;  %412 = vmatmul.mubr.f32.gmra.mrb[4].mxu1 %v1245_v26 }
  0x4e   :  { %751 = vmatpush1.bf16.msra.mxu1 %v679_v25  ;;  %682 = vmatprep.subr.bf16.mxu0 %v681_v27  ;;  %v183_v25 = vld [vmem:[%s1503_s1 + $0x508] sm:$0xff] }
  0x4f   :  { %736 = vmatprep.subr.bf16.mxu1 %v681_v27  ;;  %328 = vmatprep.mubr.f32.mxu0 %v1263_v32  ;;  %v189_v27 = vld [vmem:[%s1503_s1 + $0x538] sm:$0xff] }
  0x50   :  { %417 = vmatprep.mubr.f32.mxu1 %v1263_v32  ;;  %329 = vmatmul.mubr.f32.gmra.mrb[6].mxu0 %v1269_v34  ;;  %v721_v29 = vpack.c.bf16 %v189_v27, %v183_v25 }
  0x51   :  { %684 = vmatpush1.bf16.msra.mxu0 %v683_v33  ;;  %418 = vmatmul.mubr.f32.gmra.mrb[6].mxu1 %v1269_v34 }
  0x52   :  { %752 = vmatpush1.bf16.msra.mxu1 %v683_v33  ;;  %686 = vmatprep.subr.bf16.mxu0 %v685_v35  ;;  %v195_v33 = vld [vmem:[%s1503_s1 + $0x568] sm:$0xff] }
  0x53   :  { %737 = vmatprep.subr.bf16.mxu1 %v685_v35  ;;  %488 = vmatprep.mubr.f32.mxu0 %v1082_v16  ;;  %v117_v16 = vld [vmem:[%s1503_s1 + $0x2f8] sm:$0xff] }
  0x54   :  { %500 = vmatprep.mubr.f32.mxu1 %v19_v24  ;;  %v697_v52 = vpack.c.bf16 %v117_v16, %v111_v50  ;;  %v176_v24 = vld [vmem:[%s1503_s1 + $0x4d0] sm:$0xff]  ;;  %v201_v35 = vld [vmem:[%s1503_s1 + $0x598] sm:$0xff]  ;;  %v214_v50 = vld [vmem:[%s1505_s2] sm:$0x3f] }
  0x55   :  { %688 = vmatpush1.bf16.msra.mxu0 %v687_v40  ;;  %v719_v28 = vpack.c.bf16 %v176_v24, %v170_v23  ;;  %v725_v37 = vpack.c.bf16 %v201_v35, %v195_v33 }
  0x56   :  { %753 = vmatpush1.bf16.msra.mxu1 %v687_v40  ;;  %690 = vmatprep.subr.bf16.mxu0 %v689_v41  ;;  %v207_v40 = vld [vmem:[%s1503_s1 + $0x5c8] sm:$0xff] }
  0x57   :  { %738 = vmatprep.subr.bf16.mxu1 %v689_v41  ;;  %v213_v41 = vld [vmem:[%s1503_s1 + $0x5f8] sm:$0xff] }
  0x58   :  { %v729_v43 = vpack.c.bf16 %v213_v41, %v207_v40 }
  0x59   :  { %692 = vmatpush1.bf16.msra.mxu0 %v691_v46 }
  0x5a   :  { %754 = vmatpush1.bf16.msra.mxu1 %v691_v46  ;;  %694 = vmatprep.subr.bf16.mxu0 %v693_v47  ;;  %v731_v46 = vpack.c.bf16 %v212_v45, %v206_v44 }
  0x5b   :  { %739 = vmatprep.subr.bf16.mxu1 %v693_v47  ;;  %v216_v47 = vlaneseq }
  0x5d   :  { %696 = vmatpush1.bf16.msra.mxu0 %v695_v51  ;;  %v1420_v48 = vshrl.u32 %v216_v47, 7 }
  0x5e   :  { %755 = vmatpush1.bf16.msra.mxu1 %v695_v51  ;;  %698 = vmatprep.subr.bf16.mxu0 %v697_v52 }
  0x5f   :  { %740 = vmatprep.subr.bf16.mxu1 %v697_v52  ;;  %v218_v49 = vsub.s32 0, %v1420_v48  ;;  %v234_v23 = vsub.s32 4, %v1420_v48  ;;  %v238_v24 = vsub.s32 5, %v1420_v48 }
  0x61   :  { %700 = vmatpush1.bf16.msra.mxu0 %v699_v57  ;;  %v235_v25 = vrot.slane %v214_v50, %v234_v23  ;;  %v239_v27 = vrot.slane %v214_v50, %v238_v24 }
  0x62   :  { %756 = vmatpush1.bf16.msra.mxu1 %v699_v57  ;;  %702 = vmatprep.subr.bf16.mxu0 %v701_v58 }
  0x63   :  { %741 = vmatprep.subr.bf16.mxu1 %v701_v58 }
  0x65   :  { %704 = vmatpush1.bf16.msra.mxu0 %v703_v63 }
  0x66   :  { %757 = vmatpush1.bf16.msra.mxu1 %v703_v63  ;;  %706 = vmatprep.subr.bf16.mxu0 %v705_v0 }
  0x67   :  { %742 = vmatprep.subr.bf16.mxu1 %v705_v0 }
  0x69   :  { %708 = vmatpush1.bf16.msra.mxu0 %v707_v5 }
  0x6a   :  { %758 = vmatpush1.bf16.msra.mxu1 %v707_v5  ;;  %710 = vmatprep.subr.bf16.mxu0 %v709_v6 }
  0x6b   :  { %743 = vmatprep.subr.bf16.mxu1 %v709_v6 }
  0x6d   :  { %712 = vmatpush1.bf16.msra.mxu0 %v711_v12 }
  0x6e   :  { %759 = vmatpush1.bf16.msra.mxu1 %v711_v12  ;;  %714 = vmatprep.subr.bf16.mxu0 %v713_v13 }
  0x6f   :  { %744 = vmatprep.subr.bf16.mxu1 %v713_v13 }
  0x71   :  { %716 = vmatpush1.bf16.msra.mxu0 %v715_v21 }
  0x72   :  { %760 = vmatpush1.bf16.msra.mxu1 %v715_v21  ;;  %718 = vmatprep.subr.bf16.mxu0 %v717_v22 }
  0x73   :  { %745 = vmatprep.subr.bf16.mxu1 %v717_v22 }
  0x75   :  { %720 = vmatpush1.bf16.msra.mxu0 %v719_v28 }
  0x76   :  { %761 = vmatpush1.bf16.msra.mxu1 %v719_v28  ;;  %722 = vmatprep.subr.bf16.mxu0 %v721_v29 }
  0x77   :  { %746 = vmatprep.subr.bf16.mxu1 %v721_v29 }
  0x79   :  { %724 = vmatpush1.bf16.msra.mxu0 %v723_v36 }
  0x7a   :  { %762 = vmatpush1.bf16.msra.mxu1 %v723_v36  ;;  %726 = vmatprep.subr.bf16.mxu0 %v725_v37 }
  0x7b   :  { %747 = vmatprep.subr.bf16.mxu1 %v725_v37 }
  0x7d   :  { %728 = vmatpush1.bf16.msra.mxu0 %v727_v42 }
  0x7e   :  { %763 = vmatpush1.bf16.msra.mxu1 %v727_v42  ;;  %730 = vmatprep.subr.bf16.mxu0 %v729_v43 }
  0x7f   :  { %748 = vmatprep.subr.bf16.mxu1 %v729_v43 }
  0x81   :  { %732 = vmatpush1.bf16.msra.mxu0 %v731_v46 }
  0x82   :  { %764 = vmatpush1.bf16.msra.mxu1 %v731_v46 }
  0x84   :  { %489 = vmatmul.mubr.f32.vlgmr.msra.gmra.mrb[8].mxu0 %v1197_v8  ;;  %v226_v8 = vsub.s32 2, %v1420_v48 }
  0x85   :  { %501 = vmatmul.mubr.f32.vlgmr.msra.gmra.mrb[8].mxu1 %v1245_v26  ;;  %494 = vmatprep.mubr.f32.mxu0 %v1215_v15  ;;  %v222_v26 = vsub.s32 1, %v1420_v48  ;;  %v230_v15 = vsub.s32 3, %v1420_v48 }
  0x86   :  { %506 = vmatprep.mubr.f32.mxu1 %v1263_v32  ;;  %v219_v32 = vrot.slane %v214_v50, %v218_v49  ;;  %v227_v16 = vrot.slane %v214_v50, %v226_v8 }
  0x87   :  { %v231_v51 = vrot.slane %v214_v50, %v230_v15 }
  0x88   :  { %495 = vmatmul.mubr.f32.gmra.mrb[10].mxu0 %v1221_v18  ;;  %v223_v18 = vrot.slane %v214_v50, %v222_v26 }
  0x89   :  { %507 = vmatmul.mubr.f32.gmra.mrb[10].mxu1 %v1269_v34 }
 0x117   :  { %v312_v34 = vpop.f32.mrb[0].mxu0 }
 0x118   :  { %v313_v52 = vadd.f32 %v312_v34, %v219_v32  ;;  %v401_v53 = vpop.f32.mrb[0].mxu1  ;;  %v314_v54 = vpop.f32.mrb[1].mxu0 }
 0x119   :  { %v402_v55 = vadd.f32 %v401_v53, %v227_v16  ;;  %v315_v56 = vadd.f32 %v314_v54, %v223_v18  ;;  %v403_v57 = vpop.f32.mrb[1].mxu1 }
 0x11a   :  { %513 = vst [vmem:[%s1506_s3] sm:$0xff] %v313_v52  ;;  %v404_v58 = vadd.f32 %v403_v57, %v231_v51 }
 0x11b   :  { %515 = vst [vmem:[%s1506_s3 + $0x10] sm:$0xff] %v402_v55  ;;  %514 = vst [vmem:[%s1506_s3 + $0x8] sm:$0xff] %v315_v56  ;;  %v318_v59 = vpop.f32.mrb[2].mxu0 }
 0x11c   :  { %516 = vst [vmem:[%s1506_s3 + $0x18] sm:$0xff] %v404_v58  ;;  %v319_v60 = vadd.f32 %v318_v59, %v219_v32  ;;  %v407_v61 = vpop.f32.mrb[2].mxu1  ;;  %v320_v62 = vpop.f32.mrb[3].mxu0 }
 0x11d   :  { %v408_v63 = vadd.f32 %v407_v61, %v227_v16  ;;  %v321_v0 = vadd.f32 %v320_v62, %v223_v18  ;;  %v409_v1 = vpop.f32.mrb[3].mxu1 }
 0x11e   :  { %519 = vst [vmem:[%s1506_s3 + $0x30] sm:$0xff] %v319_v60  ;;  %v410_v2 = vadd.f32 %v409_v1, %v231_v51 }
 0x11f   :  { %521 = vst [vmem:[%s1506_s3 + $0x40] sm:$0xff] %v408_v63  ;;  %520 = vst [vmem:[%s1506_s3 + $0x38] sm:$0xff] %v321_v0  ;;  %v324_v3 = vpop.f32.mrb[4].mxu0 }
 0x120   :  { %522 = vst [vmem:[%s1506_s3 + $0x48] sm:$0xff] %v410_v2  ;;  %v325_v4 = vadd.f32 %v324_v3, %v219_v32  ;;  %v413_v5 = vpop.f32.mrb[4].mxu1  ;;  %v326_v6 = vpop.f32.mrb[5].mxu0 }
 0x121   :  { %v414_v7 = vadd.f32 %v413_v5, %v227_v16  ;;  %v327_v9 = vadd.f32 %v326_v6, %v223_v18  ;;  %v415_v10 = vpop.f32.mrb[5].mxu1 }
 0x122   :  { %525 = vst [vmem:[%s1506_s3 + $0x60] sm:$0xff] %v325_v4  ;;  %v416_v11 = vadd.f32 %v415_v10, %v231_v51 }
 0x123   :  { %527 = vst [vmem:[%s1506_s3 + $0x70] sm:$0xff] %v414_v7  ;;  %526 = vst [vmem:[%s1506_s3 + $0x68] sm:$0xff] %v327_v9  ;;  %v330_v12 = vpop.f32.mrb[6].mxu0 }
 0x124   :  { %528 = vst [vmem:[%s1506_s3 + $0x78] sm:$0xff] %v416_v11  ;;  %v331_v13 = vadd.f32 %v330_v12, %v219_v32  ;;  %v419_v14 = vpop.f32.mrb[6].mxu1  ;;  %v332_v17 = vpop.f32.mrb[7].mxu0 }
 0x125   :  { %v420_v19 = vadd.f32 %v419_v14, %v227_v16  ;;  %v333_v20 = vadd.f32 %v332_v17, %v223_v18  ;;  %v421_v21 = vpop.f32.mrb[7].mxu1 }
 0x126   :  { %531 = vst [vmem:[%s1506_s3 + $0x90] sm:$0xff] %v331_v13  ;;  %v422_v22 = vadd.f32 %v421_v21, %v231_v51 }
 0x127   :  { %533 = vst [vmem:[%s1506_s3 + $0xa0] sm:$0xff] %v420_v19  ;;  %532 = vst [vmem:[%s1506_s3 + $0x98] sm:$0xff] %v333_v20 }
 0x128   :  { %534 = vst [vmem:[%s1506_s3 + $0xa8] sm:$0xff] %v422_v22 }
 0x157   :  { %v490_v28 = vpop.f32.mrb[8].mxu0 }
 0x158   :  { %v491_v29 = vadd.f32 %v490_v28, %v235_v25  ;;  %v502_v30 = vpop.f32.mrb[8].mxu1  ;;  %v492_v31 = vpop.f32.mrb[9].mxu0 }
 0x159   :  { %v503_v33 = vadd.f32 %v502_v30, %v235_v25  ;;  %v493_v35 = vadd.f32 %v492_v31, %v239_v27  ;;  %v504_v36 = vpop.f32.mrb[9].mxu1 }
 0x15a   :  { %517 = vst [vmem:[%s1506_s3 + $0x20] sm:$0xff] %v491_v29  ;;  %v505_v37 = vadd.f32 %v504_v36, %v239_v27 }
 0x15b   :  { %529 = vst [vmem:[%s1506_s3 + $0x80] sm:$0xff] %v503_v33  ;;  %518 = vst [vmem:[%s1506_s3 + $0x28] sm:$0xff] %v493_v35  ;;  %v496_v38 = vpop.f32.mrb[10].mxu0 }
 0x15c   :  { %530 = vst [vmem:[%s1506_s3 + $0x88] sm:$0xff] %v505_v37  ;;  %v497_v39 = vadd.f32 %v496_v38, %v235_v25  ;;  %v508_v40 = vpop.f32.mrb[10].mxu1  ;;  %v498_v41 = vpop.f32.mrb[11].mxu0 }
 0x15d   :  { %v509_v42 = vadd.f32 %v508_v40, %v235_v25  ;;  %v499_v43 = vadd.f32 %v498_v41, %v239_v27  ;;  %v510_v44 = vpop.f32.mrb[11].mxu1 }
 0x15e   :  { %523 = vst [vmem:[%s1506_s3 + $0x50] sm:$0xff] %v497_v39  ;;  %v511_v45 = vadd.f32 %v510_v44, %v239_v27 }
 0x15f   :  { %535 = vst [vmem:[%s1506_s3 + $0xb0] sm:$0xff] %v509_v42  ;;  %524 = vst [vmem:[%s1506_s3 + $0x58] sm:$0xff] %v499_v43 }
 0x160   :  { %536 = vst [vmem:[%s1506_s3 + $0xb8] sm:$0xff] %v511_v45 }

// kernel: naive_caller_forward.16
= control target key start
LH: loop header
LB: loop body
LE: loop exit
PB: predicated region body
PF: predicated region fallthrough
CT: control target
= control target key end

     0   :  { %v16830_v3 = vmov 0.0|0.0   ;;  %v16828_v4 = vmov 0.0   ;;  %vm13926_vm0 = vmmov 0   ;;  %s16820_s2 = inlined_call_operand.vmem [shape: f32[128,384], index: 2, kind: input, shape index: {}]   ;;  %s16821_s4 = inlined_call_operand.vmem [shape: f32[128,384], index: 4, kind: input, shape index: {}]   ;;  %s16822_s3 = inlined_call_operand.vmem [shape: f32[1,384], index: 3, kind: input, shape index: {}]   ;;  %s16823_s0 = inlined_call_operand.vmem [shape: f32[2,16,384], index: 0, kind: input, shape index: {}]   ;;  %s16824_s5 = inlined_call_operand.vmem [shape: f32[1,384], index: 5, kind: input, shape index: {}]   ;;  %s16825_s1 = inlined_call_operand.vmem [shape: f32[2,16,384], index: 1, kind: input, shape index: {}]   ;;  %s16826_s6 = inlined_call_operand.vmem [shape: f32[2,16,128], index: 6, kind: output, shape index: {0}]   ;;  %s16827_s7 = inlined_call_operand.vmem [shape: f32[2,16,128], index: 7, kind: output, shape index: {1}]  }
   0x1   :  { %v71_v0 = vld [vmem:[%s16820_s2 + $0x8] sm:$0xff]  ;;  %v74_v1 = vld [vmem:[%s16820_s2 + $0x20] sm:$0xff]  ;;  %11520 = vmatprep.subr.bf16.mxu1 %v16830_v3  ;;  %253 = vmatprep.mubr.f32.mxu0 %v16828_v4  ;;  %68 = vst [vmem:[#allocation2] sm:$0x3] %v16828_v4  ;;  %69 = vst [vmem:[#allocation3] sm:$0x3] %v16828_v4 }
   0x2   :  { %v70_v2 = vld [vmem:[%s16820_s2] sm:$0xff]  ;;  %v13981_v5 = vpack.c.bf16 %v74_v1, %v71_v0  ;;  %v73_v6 = vld [vmem:[%s16820_s2 + $0x18] sm:$0xff]  ;;  %v80_v8 = vld [vmem:[%s16820_s2 + $0x50] sm:$0xff]  ;;  %10400 = vmatprep.mubr.msk.f32.mxu1 %vm13926_vm0, %v16828_v4 }
   0x3   :  { %v77_v7 = vld [vmem:[%s16820_s2 + $0x38] sm:$0xff]  ;;  %v13994_v9 = vpack.c.bf16 %v73_v6, %v70_v2  ;;  %v76_v11 = vld [vmem:[%s16820_s2 + $0x30] sm:$0xff]  ;;  %v79_v12 = vld [vmem:[%s16820_s2 + $0x48] sm:$0xff] }
   0x4   :  { %v13996_v10 = vpack.c.bf16 %v80_v8, %v77_v7  ;;  %v83_v13 = vld [vmem:[%s16820_s2 + $0x68] sm:$0xff]  ;;  %11489 = vmatprep.subr.bf16.mxu0 %v13981_v5  ;;  %v86_v14 = vld [vmem:[%s16820_s2 + $0x80] sm:$0xff]  ;;  %v14012_v15 = vpack.c.bf16 %v79_v12, %v76_v11  ;;  %v85_v18 = vld [vmem:[%s16820_s2 + $0x78] sm:$0xff] }
   0x5   :  { %11491 = vmatpush1.bf16.msra.mxu0 %v13994_v9  ;;  %v14015_v16 = vpack.c.bf16 %v86_v14, %v83_v13  ;;  %v82_v17 = vld [vmem:[%s16820_s2 + $0x60] sm:$0xff]  ;;  %v89_v19 = vld [vmem:[%s16820_s2 + $0x98] sm:$0xff]  ;;  %v92_v20 = vld [vmem:[%s16820_s2 + $0xb0] sm:$0xff] }
   0x6   :  { %11493 = vmatprep.subr.bf16.mxu0 %v13996_v10  ;;  %v14030_v21 = vpack.c.bf16 %v85_v18, %v82_v17  ;;  %v14033_v22 = vpack.c.bf16 %v92_v20, %v89_v19  ;;  %v88_v23 = vld [vmem:[%s16820_s2 + $0x90] sm:$0xff]  ;;  %v91_v24 = vld [vmem:[%s16820_s2 + $0xa8] sm:$0xff]  ;;  %v98_v26 = vld [vmem:[%s16820_s2 + $0xe0] sm:$0xff] }
   0x7   :  { %v95_v25 = vld [vmem:[%s16820_s2 + $0xc8] sm:$0xff]  ;;  %v72_v27 = vld [vmem:[%s16820_s2 + $0x10] sm:$0xff]  ;;  %v78_v30 = vld [vmem:[%s16820_s2 + $0x40] sm:$0xff]  ;;  %v14059_v31 = vpack.c.bf16 %v91_v24, %v88_v23 }
   0x8   :  { %16875 = vst [vmem:[#allocation4_spill] sm:$0xff] %v14033_v22  ;;  %v75_v28 = vld [vmem:[%s16820_s2 + $0x28] sm:$0xff]  ;;  %v81_v32 = vld [vmem:[%s16820_s2 + $0x58] sm:$0xff]  ;;  %v14065_v33 = vpack.c.bf16 %v98_v26, %v95_v25  ;;  %v94_v34 = vld [vmem:[%s16820_s2 + $0xc0] sm:$0xff] }
   0x9   :  { %11495 = vmatpush1.bf16.msra.mxu0 %v14012_v15  ;;  %v14053_v29 = vpack.c.bf16 %v75_v28, %v72_v27  ;;  %16876 = vst [vmem:[#allocation5_spill] sm:$0xff] %v14059_v31  ;;  %v97_v35 = vld [vmem:[%s16820_s2 + $0xd8] sm:$0xff]  ;;  %v14077_v37 = vpack.c.bf16 %v81_v32, %v78_v30  ;;  %v104_v38 = vld [vmem:[%s16820_s2 + $0x110] sm:$0xff]  ;;  %v87_v40 = vld [vmem:[%s16820_s2 + $0x88] sm:$0xff] }
   0xa   :  { %11497 = vmatprep.subr.bf16.mxu0 %v14015_v16  ;;  %16877 = vst [vmem:[#allocation6_spill] sm:$0xff] %v14065_v33  ;;  %v101_v36 = vld [vmem:[%s16820_s2 + $0xf8] sm:$0xff]  ;;  %v84_v39 = vld [vmem:[%s16820_s2 + $0x70] sm:$0xff]  ;;  %v14090_v41 = vpack.c.bf16 %v97_v35, %v94_v34  ;;  %v103_v44 = vld [vmem:[%s16820_s2 + $0x108] sm:$0xff] }
   0xb   :  { %11522 = vmatpush3.bf16.msra.mxu1 %v14053_v29  ;;  %v14093_v42 = vpack.c.bf16 %v104_v38, %v101_v36  ;;  %v100_v43 = vld [vmem:[%s16820_s2 + $0xf0] sm:$0xff]  ;;  %v107_v45 = vld [vmem:[%s16820_s2 + $0x128] sm:$0xff]  ;;  %v14105_v46 = vpack.c.bf16 %v87_v40, %v84_v39  ;;  %v110_v47 = vld [vmem:[%s16820_s2 + $0x140] sm:$0xff] }
   0xc   :  { %11523 = vmatprep.subr.bf16.mxu1 %v16830_v3  ;;  %16878 = vst [vmem:[#allocation7_spill] sm:$0xff] %v14090_v41  ;;  %v90_v48 = vld [vmem:[%s16820_s2 + $0xa0] sm:$0xff]  ;;  %v93_v49 = vld [vmem:[%s16820_s2 + $0xb8] sm:$0xff]  ;;  %v14118_v50 = vpack.c.bf16 %v103_v44, %v100_v43  ;;  %v14121_v51 = vpack.c.bf16 %v110_v47, %v107_v45  ;;  %v116_v56 = vld [vmem:[%s16820_s2 + $0x170] sm:$0xff] }
   0xd   :  { %11499 = vmatpush1.bf16.msra.mxu0 %v14030_v21  ;;  %16879 = vst [vmem:[#allocation8_spill] sm:$0xff] %v14093_v42  ;;  %v106_v52 = vld [vmem:[%s16820_s2 + $0x120] sm:$0xff]  ;;  %v109_v53 = vld [vmem:[%s16820_s2 + $0x138] sm:$0xff]  ;;  %v14133_v55 = vpack.c.bf16 %v93_v49, %v90_v48  ;;  %v96_v57 = vld [vmem:[%s16820_s2 + $0xd0] sm:$0xff] }
   0xe   :  { %11501 = vmatprep.subr.bf16.mxu0 %v14033_v22  ;;  %16880 = vst [vmem:[#allocation9_spill] sm:$0xff] %v14118_v50  ;;  %16881 = vst [vmem:[#allocation10_spill] sm:$0xff] %v14121_v51  ;;  %v113_v54 = vld [vmem:[%s16820_s2 + $0x158] sm:$0xff]  ;;  %v99_v58 = vld [vmem:[%s16820_s2 + $0xe8] sm:$0xff]  ;;  %v14146_v59 = vpack.c.bf16 %v109_v53, %v106_v52 }
   0xf   :  { %11525 = vmatpush3.bf16.msra.mxu1 %v14077_v37  ;;  %16882 = vst [vmem:[#allocation11_spill] sm:$0xff] %v14133_v55  ;;  %v14149_v60 = vpack.c.bf16 %v116_v56, %v113_v54  ;;  %v112_v61 = vld [vmem:[%s16820_s2 + $0x150] sm:$0xff]  ;;  %v115_v62 = vld [vmem:[%s16820_s2 + $0x168] sm:$0xff]  ;;  %v14161_v0 = vpack.c.bf16 %v99_v58, %v96_v57  ;;  %v123_v1 = vld [vmem:[%s16821_s4 + $0x20] sm:$0xff] }
  0x10   :  { %11526 = vmatprep.subr.bf16.mxu1 %v16830_v3  ;;  %16883 = vst [vmem:[#allocation12_spill] sm:$0xff] %v14146_v59  ;;  %v120_v63 = vld [vmem:[%s16821_s4 + $0x8] sm:$0xff]  ;;  %v102_v2 = vld [vmem:[%s16820_s2 + $0x100] sm:$0xff]  ;;  %v105_v6 = vld [vmem:[%s16820_s2 + $0x118] sm:$0xff]  ;;  %v14174_v7 = vpack.c.bf16 %v115_v62, %v112_v61 }
  0x11   :  { %11503 = vmatpush1.bf16.msra.mxu0 %v14059_v31  ;;  %16884 = vst [vmem:[#allocation13_spill] sm:$0xff] %v14149_v60  ;;  %16885 = vst [vmem:[#allocation14_spill] sm:$0xff] %v14161_v0  ;;  %v14177_v8 = vpack.c.bf16 %v123_v1, %v120_v63  ;;  %v119_v11 = vld [vmem:[%s16821_s4] sm:$0xff]  ;;  %v122_v12 = vld [vmem:[%s16821_s4 + $0x18] sm:$0xff]  ;;  %v14189_v14 = vpack.c.bf16 %v105_v6, %v102_v2 }
  0x12   :  { %11505 = vmatprep.subr.bf16.mxu0 %v14065_v33  ;;  %16886 = vst [vmem:[#allocation15_spill] sm:$0xff] %v14174_v7  ;;  %v126_v13 = vld [vmem:[%s16821_s4 + $0x38] sm:$0xff]  ;;  %v129_v17 = vld [vmem:[%s16821_s4 + $0x50] sm:$0xff]  ;;  %v111_v19 = vld [vmem:[%s16820_s2 + $0x148] sm:$0xff]  ;;  %v14204_v23 = vpack.c.bf16 %v122_v12, %v119_v11 }
  0x13   :  { %11528 = vmatpush3.bf16.msra.mxu1 %v14105_v46  ;;  %16887 = vst [vmem:[#allocation16_spill] sm:$0xff] %v14177_v8  ;;  %16888 = vst [vmem:[#allocation17_spill] sm:$0xff] %v14189_v14  ;;  %v108_v18 = vld [vmem:[%s16820_s2 + $0x130] sm:$0xff]  ;;  %v14202_v20 = vld [vmem:[#allocation2] sm:$0x3]  ;;  %v14207_v24 = vpack.c.bf16 %v129_v17, %v126_v13 }
  0x14   :  { %11529 = vmatprep.subr.bf16.mxu1 %v16830_v3  ;;  %v125_v25 = vld [vmem:[%s16821_s4 + $0x30] sm:$0xff]  ;;  %v128_v26 = vld [vmem:[%s16821_s4 + $0x48] sm:$0xff]  ;;  %v14219_v28 = vpack.c.bf16 %v111_v19, %v108_v18  ;;  %v135_v30 = vld [vmem:[%s16821_s4 + $0x80] sm:$0xff] }
  0x15   :  { %11507 = vmatpush1.bf16.msra.mxu0 %v14090_v41  ;;  %v132_v27 = vld [vmem:[%s16821_s4 + $0x68] sm:$0xff]  ;;  %v114_v32 = vld [vmem:[%s16820_s2 + $0x160] sm:$0xff]  ;;  %v117_v34 = vld [vmem:[%s16820_s2 + $0x178] sm:$0xff]  ;;  %v14233_v35 = vpack.c.bf16 %v128_v26, %v125_v25 }
  0x16   :  { %11509 = vmatprep.subr.bf16.mxu0 %v14093_v42  ;;  %16889 = vst [vmem:[#allocation18_spill] sm:$0xff] %v14219_v28  ;;  %v14237_v36 = vpack.c.bf16 %v135_v30, %v132_v27  ;;  %v131_v38 = vld [vmem:[%s16821_s4 + $0x60] sm:$0xff]  ;;  %v134_v39 = vld [vmem:[%s16821_s4 + $0x78] sm:$0xff]  ;;  %v14249_v43 = vpack.c.bf16 %v117_v34, %v114_v32  ;;  %v141_v44 = vld [vmem:[%s16821_s4 + $0xb0] sm:$0xff] }
  0x17   :  { %11531 = vmatpush3.bf16.msra.mxu1 %v14133_v55  ;;  %v138_v40 = vld [vmem:[%s16821_s4 + $0x98] sm:$0xff]  ;;  %v121_v45 = vld [vmem:[%s16821_s4 + $0x10] sm:$0xff]  ;;  %v124_v47 = vld [vmem:[%s16821_s4 + $0x28] sm:$0xff]  ;;  %v14262_v48 = vpack.c.bf16 %v134_v39, %v131_v38 }
  0x18   :  { %11532 = vmatprep.subr.bf16.mxu1 %v16830_v3  ;;  %16890 = vst [vmem:[#allocation19_spill] sm:$0xff] %v14249_v43  ;;  %v14265_v49 = vpack.c.bf16 %v141_v44, %v138_v40  ;;  %v137_v52 = vld [vmem:[%s16821_s4 + $0x90] sm:$0xff]  ;;  %v140_v53 = vld [vmem:[%s16821_s4 + $0xa8] sm:$0xff]  ;;  %v14277_v56 = vpack.c.bf16 %v124_v47, %v121_v45  ;;  %v147_v57 = vld [vmem:[%s16821_s4 + $0xe0] sm:$0xff] }
  0x19   :  { %11511 = vmatpush1.bf16.msra.mxu0 %v14118_v50  ;;  %v144_v54 = vld [vmem:[%s16821_s4 + $0xc8] sm:$0xff]  ;;  %v127_v58 = vld [vmem:[%s16821_s4 + $0x40] sm:$0xff]  ;;  %v130_v61 = vld [vmem:[%s16821_s4 + $0x58] sm:$0xff]  ;;  %v14290_v62 = vpack.c.bf16 %v140_v53, %v137_v52 }
  0x1a   :  { %11513 = vmatprep.subr.bf16.mxu0 %v14121_v51  ;;  %v14294_v63 = vpack.c.bf16 %v147_v57, %v144_v54  ;;  %v143_v1 = vld [vmem:[%s16821_s4 + $0xc0] sm:$0xff]  ;;  %v146_v2 = vld [vmem:[%s16821_s4 + $0xd8] sm:$0xff]  ;;  %v14306_v11 = vpack.c.bf16 %v130_v61, %v127_v58  ;;  %v153_v12 = vld [vmem:[%s16821_s4 + $0x110] sm:$0xff] }
  0x1b   :  { %11534 = vmatpush3.bf16.msra.mxu1 %v14161_v0  ;;  %v150_v6 = vld [vmem:[%s16821_s4 + $0xf8] sm:$0xff]  ;;  %v133_v13 = vld [vmem:[%s16821_s4 + $0x70] sm:$0xff]  ;;  %v136_v17 = vld [vmem:[%s16821_s4 + $0x88] sm:$0xff]  ;;  %v14321_v18 = vpack.c.bf16 %v146_v2, %v143_v1 }
  0x1c   :  { %11535 = vmatprep.subr.bf16.mxu1 %v16830_v3  ;;  %v14324_v19 = vpack.c.bf16 %v153_v12, %v150_v6  ;;  %v149_v25 = vld [vmem:[%s16821_s4 + $0xf0] sm:$0xff]  ;;  %v152_v26 = vld [vmem:[%s16821_s4 + $0x108] sm:$0xff]  ;;  %v14336_v30 = vpack.c.bf16 %v136_v17, %v133_v13  ;;  %v159_v32 = vld [vmem:[%s16821_s4 + $0x140] sm:$0xff] }
  0x1d   :  { %11515 = vmatpush1.bf16.msra.mxu0 %v14146_v59  ;;  %v156_v27 = vld [vmem:[%s16821_s4 + $0x128] sm:$0xff]  ;;  %v139_v34 = vld [vmem:[%s16821_s4 + $0xa0] sm:$0xff]  ;;  %v142_v38 = vld [vmem:[%s16821_s4 + $0xb8] sm:$0xff]  ;;  %v14349_v39 = vpack.c.bf16 %v152_v26, %v149_v25 }
  0x1e   :  { %11517 = vmatprep.subr.bf16.mxu0 %v14149_v60  ;;  %v14352_v40 = vpack.c.bf16 %v159_v32, %v156_v27  ;;  %v155_v44 = vld [vmem:[%s16821_s4 + $0x120] sm:$0xff]  ;;  %v158_v45 = vld [vmem:[%s16821_s4 + $0x138] sm:$0xff]  ;;  %v14364_v52 = vpack.c.bf16 %v142_v38, %v139_v34  ;;  %v165_v53 = vld [vmem:[%s16821_s4 + $0x170] sm:$0xff] }
  0x1f   :  { %11537 = vmatpush3.bf16.msra.mxu1 %v14189_v14  ;;  %v162_v47 = vld [vmem:[%s16821_s4 + $0x158] sm:$0xff]  ;;  %v145_v54 = vld [vmem:[%s16821_s4 + $0xd0] sm:$0xff]  ;;  %v148_v57 = vld [vmem:[%s16821_s4 + $0xe8] sm:$0xff]  ;;  %v14377_v58 = vpack.c.bf16 %v158_v45, %v155_v44 }
  0x20   :  { %11538 = vmatprep.subr.bf16.mxu1 %v16830_v3  ;;  %v14380_v61 = vpack.c.bf16 %v165_v53, %v162_v47  ;;  %v161_v1 = vld [vmem:[%s16821_s4 + $0x150] sm:$0xff]  ;;  %v164_v2 = vld [vmem:[%s16821_s4 + $0x168] sm:$0xff]  ;;  %v14389_v6 = vpack.c.bf16 %v148_v57, %v145_v54  ;;  %v151_v12 = vld [vmem:[%s16821_s4 + $0x100] sm:$0xff]  ;;  %v174_v47 = vlaneseq  ;;  %v13927_v54 = vmov 1966171168  }
  0x21   :  { %11519 = vmatpush1.bf16.msra.mxu0 %v14174_v7  ;;  %v154_v13 = vld [vmem:[%s16821_s4 + $0x118] sm:$0xff]  ;;  %v14399_v17 = vpack.c.bf16 %v164_v2, %v161_v1  ;;  %v157_v26 = vld [vmem:[%s16821_s4 + $0x130] sm:$0xff]  ;;  %v160_v27 = vld [vmem:[%s16821_s4 + $0x148] sm:$0xff]  ;;  %v332_v57 = vunpack.c.l.s4 %v13927_v54 }
  0x22   :  { %11545 = vmatprep.subr.bf16.mxu0 %v14177_v8  ;;  %v14403_v25 = vpack.c.bf16 %v154_v13, %v151_v12  ;;  %v14413_v32 = vld [vmem:[#allocation3] sm:$0x3]  ;;  %v14416_v34 = vpack.c.bf16 %v160_v27, %v157_v26  ;;  %v166_v44 = vld [vmem:[%s16821_s4 + $0x178] sm:$0xff]  ;;  %v14469_v53 = vshrl.u32 %v174_v47, 7 }
  0x23   :  { %11540 = vmatpush3.bf16.msra.mxu1 %v14219_v28  ;;  %v163_v38 = vld [vmem:[%s16821_s4 + $0x160] sm:$0xff]  ;;  %v333_v13 = vunpack.c.0.s8 %v332_v57 }
  0x24   :  { %254 = vmatmul.mubr.f32.vlgmr.msra.gmra.mrb[0].mxu0 %v14202_v20  ;;  %11541 = vmatprep.subr.bf16.mxu1 %v16830_v3  ;;  %v14430_v45 = vpack.c.bf16 %v166_v44, %v163_v38  ;;  %v176_v1 = vsub.s32 0, %v14469_v53  ;;  %v118_v2 = vld [vmem:[%s16822_s3] sm:$0x7]  ;;  %v180_v12 = vsub.s32 1, %v14469_v53 }
  0x25   :  { %11547 = vmatpush1.bf16.msra.mxu0 %v14204_v23  ;;  %568 = vmatprep.mubr.f32.mxu0 %v16828_v4  ;;  %v14481_v38 = vsub.s32 %v333_v13, %v14469_v53 }
  0x26   :  { %11549 = vmatprep.subr.bf16.mxu0 %v14207_v24  ;;  %v14476_v26 = vrot.slane %v118_v2, %v176_v1  ;;  %v14478_v27 = vrot.slane %v118_v2, %v180_v12 }
  0x27   :  { %11543 = vmatpush3.bf16.msra.mxu1 %v14249_v43 }
  0x28   :  { %11576 = vmatprep.subr.bf16.mxu1 %v16830_v3  ;;  %16891 = vst [vmem:[#allocation20_spill] sm:$0xff] %v14476_v26  ;;  %16892 = vst [vmem:[#allocation21_spill] sm:$0xff] %v14478_v27 }
  0x29   :  { %11551 = vmatpush1.bf16.msra.mxu0 %v14233_v35 }
  0x2a   :  { %11553 = vmatprep.subr.bf16.mxu0 %v14237_v36  ;;  %10401 = vmatmul.mubr.f32.vlgmr.msra.gmra.mrb[0].mxu1 %v14202_v20 }
  0x2b   :  { %11578 = vmatpush3.bf16.msra.mxu1 %v14277_v56  ;;  %10435 = vmatprep.mubr.msk.f32.mxu1 %vm13926_vm0, %v16828_v4 }
  0x2c   :  { %11579 = vmatprep.subr.bf16.mxu1 %v16830_v3 }
  0x2d   :  { %11555 = vmatpush1.bf16.msra.mxu0 %v14262_v48 }
  0x2e   :  { %11557 = vmatprep.subr.bf16.mxu0 %v14265_v49 }
  0x2f   :  { %11581 = vmatpush3.bf16.msra.mxu1 %v14306_v11 }
  0x30   :  { %11582 = vmatprep.subr.bf16.mxu1 %v16830_v3 }
  0x31   :  { %11559 = vmatpush1.bf16.msra.mxu0 %v14290_v62 }
  0x32   :  { %11561 = vmatprep.subr.bf16.mxu0 %v14294_v63 }
  0x33   :  { %11584 = vmatpush3.bf16.msra.mxu1 %v14336_v30 }
  0x34   :  { %11585 = vmatprep.subr.bf16.mxu1 %v16830_v3 }
  0x35   :  { %11563 = vmatpush1.bf16.msra.mxu0 %v14321_v18 }
  0x36   :  { %11565 = vmatprep.subr.bf16.mxu0 %v14324_v19 }
  0x37   :  { %11587 = vmatpush3.bf16.msra.mxu1 %v14364_v52 }
  0x38   :  { %11588 = vmatprep.subr.bf16.mxu1 %v16830_v3 }
  0x39   :  { %11567 = vmatpush1.bf16.msra.mxu0 %v14349_v39 }
  0x3a   :  { %11569 = vmatprep.subr.bf16.mxu0 %v14352_v40 }
  0x3b   :  { %11590 = vmatpush3.bf16.msra.mxu1 %v14389_v6 }
  0x3c   :  { %11591 = vmatprep.subr.bf16.mxu1 %v16830_v3 }
  0x3d   :  { %11571 = vmatpush1.bf16.msra.mxu0 %v14377_v58 }
  0x3e   :  { %11573 = vmatprep.subr.bf16.mxu0 %v14380_v61 }
  0x3f   :  { %11593 = vmatpush3.bf16.msra.mxu1 %v14403_v25 }
  0x40   :  { %11594 = vmatprep.subr.bf16.mxu1 %v16830_v3 }
  0x41   :  { %11575 = vmatpush1.bf16.msra.mxu0 %v14399_v17 }
  0x42   :  { %11601 = vmatprep.subr.bf16.mxu0 %v13981_v5 }
  0x43   :  { %11596 = vmatpush3.bf16.msra.mxu1 %v14416_v34 }
  0x44   :  { %569 = vmatmul.mubr.f32.vlgmr.msra.gmra.mrb[2].mxu0 %v14413_v32  ;;  %11597 = vmatprep.subr.bf16.mxu1 %v16830_v3 }
  0x45   :  { %11603 = vmatpush1.bf16.msra.mxu0 %v13994_v9  ;;  %885 = vmatprep.mubr.f32.mxu0 %v16828_v4 }
  0x46   :  { %11605 = vmatprep.subr.bf16.mxu0 %v13996_v10 }
  0x47   :  { %11599 = vmatpush3.bf16.msra.mxu1 %v14430_v45 }
  0x48   :  { %11632 = vmatprep.subr.bf16.mxu1 %v16830_v3 }
  0x49   :  { %11607 = vmatpush1.bf16.msra.mxu0 %v14012_v15 }
  0x4a   :  { %11609 = vmatprep.subr.bf16.mxu0 %v14015_v16  ;;  %10436 = vmatmul.mubr.f32.vlgmr.msra.gmra.mrb[2].mxu1 %v14413_v32 }
  0x4b   :  { %11634 = vmatpush3.bf16.msra.mxu1 %v14053_v29  ;;  %10470 = vmatprep.mubr.msk.f32.mxu1 %vm13926_vm0, %v16828_v4 }
  0x4c   :  { %11635 = vmatprep.subr.bf16.mxu1 %v16830_v3 }
  0x4d   :  { %11611 = vmatpush1.bf16.msra.mxu0 %v14030_v21 }
  0x4e   :  { %11613 = vmatprep.subr.bf16.mxu0 %v14033_v22 }
  0x4f   :  { %11637 = vmatpush3.bf16.msra.mxu1 %v14077_v37 }
  0x50   :  { %11638 = vmatprep.subr.bf16.mxu1 %v16830_v3 }
  0x51   :  { %11615 = vmatpush1.bf16.msra.mxu0 %v14059_v31 }
  0x52   :  { %11617 = vmatprep.subr.bf16.mxu0 %v14065_v33 }
  0x53   :  { %11640 = vmatpush3.bf16.msra.mxu1 %v14105_v46 }
  0x54   :  { %11641 = vmatprep.subr.bf16.mxu1 %v16830_v3 }
  0x55   :  { %11619 = vmatpush1.bf16.msra.mxu0 %v14090_v41 }
  0x56   :  { %11621 = vmatprep.subr.bf16.mxu0 %v14093_v42 }
  0x57   :  { %11643 = vmatpush3.bf16.msra.mxu1 %v14133_v55 }
  0x58   :  { %11644 = vmatprep.subr.bf16.mxu1 %v16830_v3 }
  0x59   :  { %11623 = vmatpush1.bf16.msra.mxu0 %v14118_v50 }
  0x5a   :  { %11625 = vmatprep.subr.bf16.mxu0 %v14121_v51 }
  0x5b   :  { %11646 = vmatpush3.bf16.msra.mxu1 %v14161_v0 }
  0x5c   :  { %11647 = vmatprep.subr.bf16.mxu1 %v16830_v3 }
  0x5d   :  { %11627 = vmatpush1.bf16.msra.mxu0 %v14146_v59 }
  0x5e   :  { %11629 = vmatprep.subr.bf16.mxu0 %v14149_v60 }
  0x5f   :  { %11649 = vmatpush3.bf16.msra.mxu1 %v14189_v14 }
  0x60   :  { %11650 = vmatprep.subr.bf16.mxu1 %v16830_v3 }
  0x61   :  { %11631 = vmatpush1.bf16.msra.mxu0 %v14174_v7 }
  0x62   :  { %11657 = vmatprep.subr.bf16.mxu0 %v14177_v8  ;;  %v14494_v8 = vld [vmem:[%s16823_s0 + $0x30] ss:$8 sm:$0x7] }
  0x63   :  { %11652 = vmatpush3.bf16.msra.mxu1 %v14219_v28 }
  0x64   :  { %11653 = vmatprep.subr.bf16.mxu1 %v16830_v3 }
  0x67   :  { %11655 = vmatpush3.bf16.msra.mxu1 %v14249_v43 }
  0x68   :  { %11688 = vmatprep.subr.bf16.mxu1 %v16830_v3  ;;  %v14488_v3 = vld [vmem:[%s16823_s0] ss:$8 sm:$0x7] }
  0xf7   :  { %v255_v44 = vpop.f32.mrb[0].mxu0 }
  0xf8   :  { %v256_v47 = vadd.f32 %v255_v44, %v14476_v26  ;;  %v257_v54 = vpop.f32.mrb[1].mxu0  ;;  %v371_v26 = vrot.slane %v14488_v3, 1 }
  0xf9   :  { %v258_v4 = vadd.f32 %v257_v54, %v14478_v27 }
  0xfa   :  { %v337_v57 = vrot.slane %v256_v47, %v14481_v38  ;;  %v372_v47 = vrot.slane %v14494_v8, 1 }
  0xfb   :  { %v382_v13 = vrot.slane %v258_v4, %v14481_v38 }
  0xfc   :  { %v338_v43 = vcombine.high %v337_v57, %v337_v57  ;;  %v345_v44 = vrot.slane %v337_v57, %v14481_v38 }
  0xfd   :  { %v383_v54 = vcombine.high %v382_v13, %v382_v13  ;;  %v390_v27 = vrot.slane %v382_v13, %v14481_v38  ;;  %v326_v4 = vpop.f32.mrb[0].mxu1  ;;  %v16858_v13 = vsub.s32 2, %v14469_v53 }
  0xfe   :  { %v352_v7 = vrot.slane %v338_v43, %v14481_v38  ;;  %v355_v60 = vadd.f32 %v345_v44, %v14488_v3  ;;  %v10402_v50 = vpop.f32.mrb[1].mxu1 }
  0xff   :  { %v397_v28 = vrot.slane %v383_v54, %v14481_v38  ;;  %v400_v14 = vadd.f32 %v390_v27, %v371_v26  ;;  %v14508_v44 = vrot.slane %v118_v2, %v16858_v13 }
 0x100   :  { %v356_v59 = vadd.f32 %v14494_v8, %v352_v7  ;;  %v9633_v51 = vmul.f32 -1.442695, %v355_v60 }
 0x101   :  { %v401_v42 = vadd.f32 %v397_v28, %v372_v47  ;;  %v9635_v0 = vmul.f32 -1.442695, %v400_v14  ;;  %16893 = vst [vmem:[#allocation22_spill] sm:$0xff] %v14508_v44  ;;  %v327_v60 = vadd.f32 %v326_v4, %v14508_v44 }
 0x102   :  { %13284 = vpow2.f32 %v9633_v51  ;;  %v9634_v57 = vmul.f32 -1.442695, %v356_v59 }
 0x103   :  { %v9636_v43 = vmul.f32 -1.442695, %v401_v42  ;;  %v421_v51 = vrot.slane %v327_v60, %v14481_v38  ;;  %v167_v42 = vld [vmem:[%s16824_s5] sm:$0x7] }
 0x104   :  { %13286 = vpow2.f32 %v9634_v57  ;;  %v14515_v2 = vrot.slane %v167_v42, %v176_v1 }
 0x105   :  { %13288 = vpow2.f32 %v9635_v0  ;;  %v422_v28 = vcombine.high %v421_v51, %v421_v51  ;;  %v14517_v0 = vrot.slane %v167_v42, %v180_v12  ;;  %v429_v47 = vrot.slane %v421_v51, %v14481_v38  ;;  %v14528_v51 = vld [vmem:[%s16825_s1 + $0x1f] ss:$8 sm:$0x7] }
 0x106   :  { %13290 = vpow2.f32 %v9636_v43  ;;  %16894 = vst [vmem:[#allocation23_spill] sm:$0xff] %v14515_v2  ;;  %v442_v12 = vrot.slane %v14494_v8, 2 }
 0x107   :  { %16895 = vst [vmem:[#allocation24_spill] sm:$0xff] %v14517_v0  ;;  %v436_v43 = vrot.slane %v422_v28, %v14481_v38 }
 0x10c   :  { %v13285_v54 = vpop.eup %13284 }
 0x10d   :  { %v363_v7 = vadd.f32 1.0, %v13285_v54  ;;  %v441_v54 = vrot.slane %v14488_v3, 2 }
 0x10e   :  { %v13287_v26 = vpop.eup %13286 }
 0x10f   :  { %v364_v50 = vadd.f32 1.0, %v13287_v26  ;;  %13292 = vrcp.f32 %v363_v7  ;;  %v13289_v59 = vpop.eup %13288 }
 0x110   :  { %v13291_v14 = vpop.eup %13290  ;;  %v408_v27 = vadd.f32 1.0, %v13289_v59 }
 0x111   :  { %13294 = vrcp.f32 %v364_v50  ;;  %v409_v4 = vadd.f32 1.0, %v13291_v14 }
 0x112   :  { %13296 = vrcp.f32 %v408_v27  ;;  %v14535_v27 = vld [vmem:[%s16825_s1 + $0x4f] ss:$8 sm:$0x7] }
 0x113   :  { %13298 = vrcp.f32 %v409_v4 }
 0x117   :  { %v570_v57 = vpop.f32.mrb[2].mxu0 }
 0x118   :  { %v571_v60 = vadd.f32 %v570_v57, %v14515_v2  ;;  %v572_v7 = vpop.f32.mrb[3].mxu0 }
 0x119   :  { %v13293_v26 = vpop.eup %13292  ;;  %v573_v50 = vadd.f32 %v572_v7, %v14517_v0  ;;  %v686_v7 = vrot.slane %v14528_v51, 1 }
 0x11a   :  { %v439_v1 = vmul.f32 %v13293_v26, %v429_v47  ;;  %v652_v59 = vrot.slane %v571_v60, %v14481_v38 }
 0x11b   :  { %v13295_v14 = vpop.eup %13294  ;;  %v697_v3 = vrot.slane %v573_v50, %v14481_v38  ;;  %v687_v50 = vrot.slane %v14535_v27, 1 }
 0x11c   :  { %v440_v28 = vmul.f32 %v13295_v14, %v436_v43  ;;  %v445_v57 = vadd.f32 %v441_v54, %v439_v1  ;;  %v653_v47 = vcombine.high %v652_v59, %v652_v59  ;;  %v660_v8 = vrot.slane %v652_v59, %v14481_v38 }
 0x11d   :  { %v698_v26 = vcombine.high %v697_v3, %v697_v3  ;;  %v705_v13 = vrot.slane %v697_v3, %v14481_v38  ;;  %v460_v54 = vrot.slane %v14202_v20, %v14481_v38  ;;  %v641_v0 = vpop.f32.mrb[2].mxu1 }
 0x11e   :  { %v446_v60 = vadd.f32 %v442_v12, %v440_v28  ;;  %13300 = vtanh.f32 %v445_v57  ;;  %v667_v4 = vrot.slane %v653_v47, %v14481_v38  ;;  %v670_v43 = vadd.f32 %v14528_v51, %v660_v8  ;;  %v10437_v3 = vpop.f32.mrb[3].mxu1  ;;  %v13297_v47 = vpop.eup %13296 }
 0x11f   :  { %v712_v1 = vrot.slane %v698_v26, %v14481_v38  ;;  %v715_v2 = vadd.f32 %v705_v13, %v686_v7  ;;  %v461_v28 = vcombine.high %v460_v54, %v460_v54  ;;  %v13299_v8 = vpop.eup %13298  ;;  %v468_v20 = vrot.slane %v460_v54, %v14481_v38 }
 0x120   :  { %13302 = vtanh.f32 %v446_v60  ;;  %v671_v59 = vadd.f32 %v14535_v27, %v667_v4  ;;  %v9639_v14 = vmul.f32 -1.442695, %v670_v43  ;;  %v449_v60 = vsub.f32 1.0, %v13297_v47 }
 0x121   :  { %v716_v57 = vadd.f32 %v712_v1, %v687_v50  ;;  %v9641_v44 = vmul.f32 -1.442695, %v715_v2  ;;  %v475_v41 = vrot.slane %v461_v28, %v14481_v38  ;;  %v16896_v4 = vsub.s32 2, %v14469_v53 }
 0x122   :  { %13304 = vpow2.f32 %v9639_v14  ;;  %v9640_v12 = vmul.f32 -1.442695, %v671_v59  ;;  %v450_v13 = vsub.f32 1.0, %v13299_v8  ;;  %v478_v59 = vmul.f32 %v13297_v47, %v468_v20 }
 0x123   :  { %v9642_v26 = vmul.f32 -1.442695, %v716_v57  ;;  %v14551_v43 = vrot.slane %v167_v42, %v16896_v4  ;;  %v479_v14 = vmul.f32 %v13299_v8, %v475_v41 }
 0x124   :  { %13306 = vpow2.f32 %v9640_v12 }
 0x125   :  { %13308 = vpow2.f32 %v9641_v44  ;;  %v642_v54 = vadd.f32 %v641_v0, %v14551_v43 }
 0x126   :  { %13310 = vpow2.f32 %v9642_v26 }
 0x127   :  { %v736_v44 = vrot.slane %v642_v54, %v14481_v38 }
 0x128   :  { %v13301_v33 = vpop.eup %13300 }
 0x129   :  { %v451_v7 = vmul.f32 %v13301_v33, %v449_v60  ;;  %v737_v47 = vcombine.high %v736_v44, %v736_v44  ;;  %v744_v26 = vrot.slane %v736_v44, %v14481_v38  ;;  %v16897_v60 = vmov 0.0|0.0  }
 0x12a   :  { %v13303_v50 = vpop.eup %13302 }
 0x12b   :  { %v452_v1 = vmul.f32 %v13303_v50, %v450_v13  ;;  %v14553_v3 = vadd.f32 %v478_v59, %v451_v7  ;;  %v751_v13 = vrot.slane %v737_v47, %v14481_v38  ;;  %v756_v7 = vrot.slane %v14528_v51, 2 }
 0x12c   :  { %v13305_v2 = vpop.eup %13304  ;;  %v16898_v59 = vmov 0.0  }
 0x12d   :  { %v678_v12 = vadd.f32 1.0, %v13305_v2  ;;  %v14556_v28 = vadd.f32 %v479_v14, %v452_v1  ;;  %482 = vst [vmem:[%s16826_s6] sm:$0x1] %v14553_v3  ;;  %v757_v14 = vrot.slane %v14535_v27, 2  ;;  %v775_v27 = vrot.slane %v14413_v32, %v14481_v38 }
 0x12e   :  { %v13307_v53 = vpop.eup %13306 }
 0x12f   :  { %v679_v33 = vadd.f32 1.0, %v13307_v53  ;;  %13312 = vrcp.f32 %v678_v12  ;;  %483 = vst [vmem:[%s16826_s6 + $0x10] sm:$0x1] %v14556_v28  ;;  %v805_v41 = vcombine.low %v14553_v3, %v14556_v28  ;;  %v13309_v0 = vpop.eup %13308  ;;  %v776_v53 = vcombine.high %v775_v27, %v775_v27 }
 0x130   :  { %v13311_v8 = vpop.eup %13310  ;;  %v723_v20 = vadd.f32 1.0, %v13309_v0 }
 0x131   :  { %13314 = vrcp.f32 %v679_v33  ;;  %v812_v42 = vrot.slane %v805_v41, %v14481_v38  ;;  %v724_v4 = vadd.f32 1.0, %v13311_v8  ;;  %v783_v41 = vrot.slane %v775_v27, %v14481_v38  ;;  %v16903_v27 = vld [vmem:[#allocation9_spill] sm:$0xff] }
 0x132   :  { %13316 = vrcp.f32 %v723_v20  ;;  %v790_v32 = vrot.slane %v776_v53, %v14481_v38  ;;  %v16904_v53 = vld [vmem:[#allocation17_spill] sm:$0xff] }
 0x133   :  { %v819_v57 = vrot.slane %v812_v42, %v14481_v38  ;;  %13318 = vrcp.f32 %v724_v4 }
 0x135   :  { %886 = vmatmul.mubr.f32.vlgmr.msra.gmra.mrb[4].mxu0 %v819_v57  ;;  %10471 = vmatmul.mubr.f32.vlgmr.msra.gmra.mrb[4].mxu1 %v819_v57 }
 0x136   :  { %11659 = vmatpush1.bf16.msra.mxu0 %v14204_v23  ;;  %11690 = vmatpush3.bf16.msra.mxu1 %v14277_v56 }
 0x137   :  { %11661 = vmatprep.subr.bf16.mxu0 %v14207_v24  ;;  %11691 = vmatprep.subr.bf16.mxu1 %v16897_v60 }
 0x138   :  { %1177 = vmatprep.mubr.f32.mxu0 %v16898_v59  ;;  %10505 = vmatprep.mubr.msk.f32.mxu1 %vm13926_vm0, %v16898_v59 }
 0x139   :  { %v13313_v50 = vpop.eup %13312 }
 0x13a   :  { %v754_v1 = vmul.f32 %v13313_v50, %v744_v26  ;;  %11663 = vmatpush1.bf16.msra.mxu0 %v14233_v35  ;;  %11693 = vmatpush3.bf16.msra.mxu1 %v14306_v11 }
 0x13b   :  { %v13315_v2 = vpop.eup %13314  ;;  %11665 = vmatprep.subr.bf16.mxu0 %v14237_v36  ;;  %11694 = vmatprep.subr.bf16.mxu1 %v16897_v60 }
 0x13c   :  { %v755_v51 = vmul.f32 %v13315_v2, %v751_v13  ;;  %v760_v54 = vadd.f32 %v756_v7, %v754_v1  ;;  %v13317_v33 = vpop.eup %13316  ;;  %v16899_v2 = vld [vmem:[#allocation6_spill] sm:$0xff] }
 0x13d   :  { %v13319_v44 = vpop.eup %13318  ;;  %v764_v42 = vsub.f32 1.0, %v13317_v33  ;;  %v793_v8 = vmul.f32 %v13317_v33, %v783_v41  ;;  %v16905_v33 = vld [vmem:[#allocation10_spill] sm:$0xff]  ;;  %v16906_v41 = vld [vmem:[#allocation12_spill] sm:$0xff] }
 0x13e   :  { %v761_v12 = vadd.f32 %v757_v14, %v755_v51  ;;  %13320 = vtanh.f32 %v760_v54  ;;  %11667 = vmatpush1.bf16.msra.mxu0 %v14262_v48  ;;  %11696 = vmatpush3.bf16.msra.mxu1 %v14336_v30  ;;  %v765_v57 = vsub.f32 1.0, %v13319_v44  ;;  %v794_v4 = vmul.f32 %v13319_v44, %v790_v32  ;;  %v16900_v51 = vld [vmem:[#allocation7_spill] sm:$0xff]  ;;  %v16901_v54 = vld [vmem:[#allocation14_spill] sm:$0xff]  ;;  %v16908_v32 = vld [vmem:[#allocation13_spill] sm:$0xff] }
 0x13f   :  { %11669 = vmatprep.subr.bf16.mxu0 %v14265_v49  ;;  %11697 = vmatprep.subr.bf16.mxu1 %v16897_v60  ;;  %v16907_v44 = vld [vmem:[#allocation18_spill] sm:$0xff] }
 0x140   :  { %13322 = vtanh.f32 %v761_v12  ;;  %v16902_v12 = vld [vmem:[#allocation8_spill] sm:$0xff] }
 0x142   :  { %11671 = vmatpush1.bf16.msra.mxu0 %v14290_v62  ;;  %11699 = vmatpush3.bf16.msra.mxu1 %v14364_v52 }
 0x143   :  { %11673 = vmatprep.subr.bf16.mxu0 %v14294_v63  ;;  %11700 = vmatprep.subr.bf16.mxu1 %v16897_v60 }
 0x146   :  { %11675 = vmatpush1.bf16.msra.mxu0 %v14321_v18  ;;  %11702 = vmatpush3.bf16.msra.mxu1 %v14389_v6 }
 0x147   :  { %11677 = vmatprep.subr.bf16.mxu0 %v14324_v19  ;;  %11703 = vmatprep.subr.bf16.mxu1 %v16897_v60 }
 0x148   :  { %v13321_v0 = vpop.eup %13320 }
 0x149   :  { %v766_v47 = vmul.f32 %v13321_v0, %v764_v42  ;;  %v16909_v42 = vld [vmem:[#allocation15_spill] sm:$0xff] }
 0x14a   :  { %v13323_v20 = vpop.eup %13322  ;;  %11679 = vmatpush1.bf16.msra.mxu0 %v14349_v39  ;;  %11705 = vmatpush3.bf16.msra.mxu1 %v14403_v25  ;;  %v16910_v0 = vld [vmem:[#allocation19_spill] sm:$0xff] }
 0x14b   :  { %11681 = vmatprep.subr.bf16.mxu0 %v14352_v40  ;;  %11706 = vmatprep.subr.bf16.mxu1 %v16897_v60  ;;  %v767_v26 = vmul.f32 %v13323_v20, %v765_v57  ;;  %v14606_v13 = vadd.f32 %v793_v8, %v766_v47  ;;  %v16911_v57 = vld [vmem:[#allocation16_spill] sm:$0xff] }
 0x14c   :  { %v16912_v20 = vld [vmem:[#allocation20_spill] sm:$0xff] }
 0x14d   :  { %v14608_v7 = vadd.f32 %v794_v4, %v767_v26  ;;  %797 = vst [vmem:[%s16827_s7 + $0xf] sm:$0x1] %v14606_v13 }
 0x14e   :  { %11683 = vmatpush1.bf16.msra.mxu0 %v14377_v58  ;;  %11708 = vmatpush3.bf16.msra.mxu1 %v14416_v34 }
 0x14f   :  { %11685 = vmatprep.subr.bf16.mxu0 %v14380_v61  ;;  %11709 = vmatprep.subr.bf16.mxu1 %v16897_v60  ;;  %798 = vst [vmem:[%s16827_s7 + $0x1f] sm:$0x1] %v14608_v7  ;;  %v1097_v50 = vcombine.low %v14606_v13, %v14608_v7 }
 0x151   :  { %v1104_v1 = vrot.slane %v1097_v50, %v14481_v38 }
 0x152   :  { %11687 = vmatpush1.bf16.msra.mxu0 %v14399_v17  ;;  %11711 = vmatpush3.bf16.msra.mxu1 %v14430_v45 }
 0x153   :  { %v1111_v14 = vrot.slane %v1104_v1, %v14481_v38  ;;  %11713 = vmatprep.subr.bf16.mxu0 %v13981_v5  ;;  %11744 = vmatprep.subr.bf16.mxu1 %v16897_v60  ;;  %v16913_v1 = vld [vmem:[#allocation21_spill] sm:$0xff] }
 0x155   :  { %1178 = vmatmul.mubr.f32.vlgmr.msra.gmra.mrb[6].mxu0 %v1111_v14  ;;  %10506 = vmatmul.mubr.f32.vlgmr.msra.gmra.mrb[6].mxu1 %v1111_v14 }
 0x156   :  { %11715 = vmatpush1.bf16.msra.mxu0 %v13994_v9  ;;  %11746 = vmatpush3.bf16.msra.mxu1 %v14053_v29 }
 0x157   :  { %11717 = vmatprep.subr.bf16.mxu0 %v13996_v10  ;;  %11747 = vmatprep.subr.bf16.mxu1 %v16897_v60 }
 0x158   :  { %1469 = vmatprep.mubr.f32.mxu0 %v16898_v59  ;;  %10540 = vmatprep.mubr.msk.f32.mxu1 %vm13926_vm0, %v16898_v59 }
 0x15a   :  { %11719 = vmatpush1.bf16.msra.mxu0 %v14012_v15  ;;  %11749 = vmatpush3.bf16.msra.mxu1 %v14077_v37 }
 0x15b   :  { %11721 = vmatprep.subr.bf16.mxu0 %v14015_v16  ;;  %11750 = vmatprep.subr.bf16.mxu1 %v16897_v60 }
 0x15e   :  { %11723 = vmatpush1.bf16.msra.mxu0 %v14030_v21  ;;  %11752 = vmatpush3.bf16.msra.mxu1 %v14105_v46 }
 0x15f   :  { %11725 = vmatprep.subr.bf16.mxu0 %v14033_v22  ;;  %11753 = vmatprep.subr.bf16.mxu1 %v16897_v60 }
 0x162   :  { %11727 = vmatpush1.bf16.msra.mxu0 %v14059_v31  ;;  %11755 = vmatpush3.bf16.msra.mxu1 %v14133_v55  ;;  %v16914_v31 = vld [vmem:[#allocation22_spill] sm:$0xff] }
 0x163   :  { %11729 = vmatprep.subr.bf16.mxu0 %v16899_v2  ;;  %11756 = vmatprep.subr.bf16.mxu1 %v16897_v60 }
 0x166   :  { %11731 = vmatpush1.bf16.msra.mxu0 %v16900_v51  ;;  %11758 = vmatpush3.bf16.msra.mxu1 %v16901_v54 }
 0x167   :  { %11733 = vmatprep.subr.bf16.mxu0 %v16902_v12  ;;  %11759 = vmatprep.subr.bf16.mxu1 %v16897_v60 }
 0x16a   :  { %11735 = vmatpush1.bf16.msra.mxu0 %v16903_v27  ;;  %11761 = vmatpush3.bf16.msra.mxu1 %v16904_v53 }
 0x16b   :  { %11737 = vmatprep.subr.bf16.mxu0 %v16905_v33  ;;  %11762 = vmatprep.subr.bf16.mxu1 %v16897_v60 }
 0x16e   :  { %11739 = vmatpush1.bf16.msra.mxu0 %v16906_v41  ;;  %11764 = vmatpush3.bf16.msra.mxu1 %v16907_v44 }
 0x16f   :  { %11741 = vmatprep.subr.bf16.mxu0 %v16908_v32  ;;  %11765 = vmatprep.subr.bf16.mxu1 %v16897_v60  ;;  %v9643_v32 = vld [vmem:[%s16823_s0 + $0x1] ss:$8 sm:$0x7] }
 0x172   :  { %11743 = vmatpush1.bf16.msra.mxu0 %v16909_v42  ;;  %11767 = vmatpush3.bf16.msra.mxu1 %v16910_v0 }
 0x173   :  { %11769 = vmatprep.subr.bf16.mxu0 %v16911_v57  ;;  %11800 = vmatprep.subr.bf16.mxu1 %v16897_v60  ;;  %v9644_v57 = vld [vmem:[%s16823_s0 + $0x31] ss:$8 sm:$0x7] }
 0x174   :  { %v1004_v33 = vrot.slane %v9644_v57, 1 }
 0x208   :  { %v887_v47 = vpop.f32.mrb[4].mxu0  ;;  %v958_v8 = vpop.f32.mrb[4].mxu1 }
 0x209   :  { %v888_v26 = vadd.f32 %v887_v47, %v16912_v20  ;;  %v889_v4 = vpop.f32.mrb[5].mxu0  ;;  %v10472_v50 = vpop.f32.mrb[5].mxu1  ;;  %v1003_v47 = vrot.slane %v9643_v32, 1 }
 0x20a   :  { %v890_v14 = vadd.f32 %v889_v4, %v16913_v1 }
 0x20b   :  { %v969_v42 = vrot.slane %v888_v26, %v14481_v38 }
 0x20c   :  { %v1014_v0 = vrot.slane %v890_v14, %v14481_v38 }
 0x20d   :  { %v970_v44 = vcombine.high %v969_v42, %v969_v42  ;;  %v977_v41 = vrot.slane %v969_v42, %v14481_v38 }
 0x20e   :  { %v1015_v20 = vcombine.high %v1014_v0, %v1014_v0  ;;  %v1022_v50 = vrot.slane %v1014_v0, %v14481_v38 }
 0x20f   :  { %v984_v4 = vrot.slane %v970_v44, %v14481_v38  ;;  %v987_v1 = vadd.f32 %v9643_v32, %v977_v41  ;;  %v959_v44 = vadd.f32 %v958_v8, %v16914_v31 }
 0x210   :  { %v1029_v53 = vrot.slane %v1015_v20, %v14481_v38  ;;  %v1032_v12 = vadd.f32 %v1022_v50, %v1003_v47 }
 0x211   :  { %v988_v26 = vadd.f32 %v9644_v57, %v984_v4  ;;  %v9645_v27 = vmul.f32 -1.442695, %v987_v1  ;;  %v1053_v20 = vrot.slane %v959_v44, %v14481_v38 }
 0x212   :  { %v1033_v51 = vadd.f32 %v1029_v53, %v1004_v33  ;;  %v9647_v14 = vmul.f32 -1.442695, %v1032_v12  ;;  %v16915_v33 = vld [vmem:[#allocation23_spill] sm:$0xff] }
 0x213   :  { %13324 = vpow2.f32 %v9645_v27  ;;  %v9646_v54 = vmul.f32 -1.442695, %v988_v26  ;;  %v1054_v27 = vcombine.high %v1053_v20, %v1053_v20 }
 0x214   :  { %v9648_v2 = vmul.f32 -1.442695, %v1033_v51  ;;  %v1061_v51 = vrot.slane %v1053_v20, %v14481_v38 }
 0x215   :  { %13326 = vpow2.f32 %v9646_v54  ;;  %v1068_v44 = vrot.slane %v1054_v27, %v14481_v38 }
 0x216   :  { %13328 = vpow2.f32 %v9647_v14 }
 0x217   :  { %13330 = vpow2.f32 %v9648_v2  ;;  %v1073_v2 = vrot.slane %v9643_v32, 2 }
 0x21d   :  { %v13325_v42 = vpop.eup %13324 }
 0x21e   :  { %v995_v55 = vadd.f32 1.0, %v13325_v42  ;;  %v1074_v42 = vrot.slane %v9644_v57, 2  ;;  %v14695_v57 = vld [vmem:[%s16825_s1 + $0x4e] ss:$8 sm:$0x7] }
 0x21f   :  { %v13327_v0 = vpop.eup %13326 }
 0x220   :  { %v996_v41 = vadd.f32 1.0, %v13327_v0  ;;  %13332 = vrcp.f32 %v995_v55  ;;  %v13329_v1 = vpop.eup %13328  ;;  %v16916_v55 = vld [vmem:[#allocation24_spill] sm:$0xff] }
 0x221   :  { %v13331_v47 = vpop.eup %13330  ;;  %v1040_v50 = vadd.f32 1.0, %v13329_v1  ;;  %v14688_v1 = vld [vmem:[%s16825_s1 + $0x1e] ss:$8 sm:$0x7] }
 0x222   :  { %13334 = vrcp.f32 %v996_v41  ;;  %v1041_v53 = vadd.f32 1.0, %v13331_v47 }
 0x223   :  { %13336 = vrcp.f32 %v1040_v50 }
 0x224   :  { %13338 = vrcp.f32 %v1041_v53 }
 0x228   :  { %v1179_v54 = vpop.f32.mrb[6].mxu0  ;;  %v1250_v12 = vpop.f32.mrb[6].mxu1 }
 0x229   :  { %v1180_v4 = vadd.f32 %v1179_v54, %v16915_v33  ;;  %v1181_v26 = vpop.f32.mrb[7].mxu0  ;;  %v10507_v14 = vpop.f32.mrb[7].mxu1 }
 0x22a   :  { %v13333_v8 = vpop.eup %13332  ;;  %v1182_v0 = vadd.f32 %v1181_v26, %v16916_v55 }
 0x22b   :  { %v1071_v41 = vmul.f32 %v13333_v8, %v1061_v51  ;;  %v1261_v20 = vrot.slane %v1180_v4, %v14481_v38  ;;  %v1295_v51 = vrot.slane %v14688_v1, 1 }
 0x22c   :  { %v13335_v32 = vpop.eup %13334  ;;  %v1306_v47 = vrot.slane %v1182_v0, %v14481_v38 }
 0x22d   :  { %v1072_v54 = vmul.f32 %v13335_v32, %v1068_v44  ;;  %v1077_v14 = vadd.f32 %v1073_v2, %v1071_v41  ;;  %v1262_v27 = vcombine.high %v1261_v20, %v1261_v20  ;;  %v1269_v50 = vrot.slane %v1261_v20, %v14481_v38  ;;  %v13337_v31 = vpop.eup %13336 }
 0x22e   :  { %v1307_v26 = vcombine.high %v1306_v47, %v1306_v47  ;;  %v1314_v8 = vrot.slane %v1306_v47, %v14481_v38  ;;  %v1296_v2 = vrot.slane %v14695_v57, 1 }
 0x22f   :  { %v1078_v4 = vadd.f32 %v1074_v42, %v1072_v54  ;;  %13340 = vtanh.f32 %v1077_v14  ;;  %v1276_v53 = vrot.slane %v1262_v27, %v14481_v38  ;;  %v1279_v0 = vadd.f32 %v14688_v1, %v1269_v50  ;;  %v13339_v42 = vpop.eup %13338 }
 0x230   :  { %v1321_v44 = vrot.slane %v1307_v26, %v14481_v38  ;;  %v1324_v20 = vadd.f32 %v1314_v8, %v1295_v51  ;;  %v1081_v14 = vsub.f32 1.0, %v13337_v31  ;;  %v1082_v50 = vsub.f32 1.0, %v13339_v42 }
 0x231   :  { %13342 = vtanh.f32 %v1078_v4  ;;  %v1280_v41 = vadd.f32 %v14695_v57, %v1276_v53  ;;  %v9651_v32 = vmul.f32 -1.442695, %v1279_v0  ;;  %v1085_v26 = vmul.f32 %v13337_v31, %v14553_v3 }
 0x232   :  { %v1325_v33 = vadd.f32 %v1321_v44, %v1296_v2  ;;  %v9653_v47 = vmul.f32 -1.442695, %v1324_v20  ;;  %v1086_v51 = vmul.f32 %v13339_v42, %v14556_v28  ;;  %v1251_v44 = vadd.f32 %v1250_v12, %v14551_v43 }
 0x233   :  { %13344 = vpow2.f32 %v9651_v32  ;;  %v9652_v55 = vmul.f32 -1.442695, %v1280_v41 }
 0x234   :  { %v9654_v54 = vmul.f32 -1.442695, %v1325_v33  ;;  %v1345_v28 = vrot.slane %v1251_v44, %v14481_v38 }
 0x235   :  { %13346 = vpow2.f32 %v9652_v55 }
 0x236   :  { %13348 = vpow2.f32 %v9653_v47  ;;  %v1346_v12 = vcombine.high %v1345_v28, %v1345_v28  ;;  %v1353_v47 = vrot.slane %v1345_v28, %v14481_v38 }
 0x237   :  { %13350 = vpow2.f32 %v9654_v54  ;;  %v1365_v54 = vrot.slane %v14688_v1, 2 }
 0x239   :  { %v13341_v27 = vpop.eup %13340 }
 0x23a   :  { %v1083_v22 = vmul.f32 %v13341_v27, %v1081_v14 }
 0x23b   :  { %v13343_v4 = vpop.eup %13342 }
 0x23c   :  { %v1084_v53 = vmul.f32 %v13343_v4, %v1082_v50  ;;  %v14707_v8 = vadd.f32 %v1085_v26, %v1083_v22  ;;  %v1360_v50 = vrot.slane %v1346_v12, %v14481_v38  ;;  %v1366_v4 = vrot.slane %v14695_v57, 2 }
 0x23d   :  { %v13345_v0 = vpop.eup %13344 }
 0x23e   :  { %v1287_v2 = vadd.f32 1.0, %v13345_v0  ;;  %v14709_v55 = vadd.f32 %v1086_v51, %v1084_v53  ;;  %1089 = vst [vmem:[%s16826_s6 + $0x1] sm:$0x1] %v14707_v8 }
 0x23f   :  { %v13347_v33 = vpop.eup %13346 }
 0x240   :  { %v1288_v31 = vadd.f32 1.0, %v13347_v33  ;;  %13352 = vrcp.f32 %v1287_v2  ;;  %1090 = vst [vmem:[%s16826_s6 + $0x11] sm:$0x1] %v14709_v55  ;;  %v1389_v22 = vcombine.low %v14707_v8, %v14709_v55  ;;  %v13349_v41 = vpop.eup %13348 }
 0x241   :  { %v13351_v20 = vpop.eup %13350  ;;  %v1332_v42 = vadd.f32 1.0, %v13349_v41 }
 0x242   :  { %13354 = vrcp.f32 %v1288_v31  ;;  %v1396_v3 = vrot.slane %v1389_v22, %v14481_v38  ;;  %v1333_v14 = vadd.f32 1.0, %v13351_v20 }
 0x243   :  { %13356 = vrcp.f32 %v1332_v42 }
 0x244   :  { %v1403_v32 = vrot.slane %v1396_v3, %v14481_v38  ;;  %13358 = vrcp.f32 %v1333_v14  ;;  %v16919_v14 = vld [vmem:[#allocation11_spill] sm:$0xff] }
 0x246   :  { %1470 = vmatmul.mubr.f32.vlgmr.msra.gmra.mrb[8].mxu0 %v1403_v32  ;;  %10541 = vmatmul.mubr.f32.vlgmr.msra.gmra.mrb[8].mxu1 %v1403_v32 }
 0x247   :  { %11771 = vmatpush1.bf16.msra.mxu0 %v14204_v23  ;;  %11802 = vmatpush3.bf16.msra.mxu1 %v14277_v56 }
 0x248   :  { %11773 = vmatprep.subr.bf16.mxu0 %v14207_v24  ;;  %11803 = vmatprep.subr.bf16.mxu1 %v16897_v60 }
 0x249   :  { %1761 = vmatprep.mubr.f32.mxu0 %v16898_v59  ;;  %10575 = vmatprep.mubr.msk.f32.mxu1 %vm13926_vm0, %v16898_v59 }
 0x24a   :  { %v13353_v27 = vpop.eup %13352 }
 0x24b   :  { %v1363_v26 = vmul.f32 %v13353_v27, %v1353_v47  ;;  %11775 = vmatpush1.bf16.msra.mxu0 %v14233_v35  ;;  %11805 = vmatpush3.bf16.msra.mxu1 %v14306_v11  ;;  %v16917_v47 = vld [vmem:[#allocation4_spill] sm:$0xff]  ;;  %v16920_v27 = vld [vmem:[#allocation6_spill] sm:$0xff] }
 0x24c   :  { %v13355_v53 = vpop.eup %13354  ;;  %11777 = vmatprep.subr.bf16.mxu0 %v14237_v36  ;;  %11806 = vmatprep.subr.bf16.mxu1 %v16897_v60 }
 0x24d   :  { %v1364_v1 = vmul.f32 %v13355_v53, %v1360_v50  ;;  %v1369_v51 = vadd.f32 %v1365_v54, %v1363_v26  ;;  %v13357_v57 = vpop.eup %13356  ;;  %v16918_v54 = vld [vmem:[#allocation5_spill] sm:$0xff]  ;;  %v16921_v50 = vld [vmem:[#allocation7_spill] sm:$0xff]  ;;  %v16922_v26 = vld [vmem:[#allocation14_spill] sm:$0xff] }
 0x24e   :  { %v13359_v2 = vpop.eup %13358  ;;  %v1373_v33 = vsub.f32 1.0, %v13357_v57  ;;  %v1377_v3 = vmul.f32 %v13357_v57, %v14606_v13  ;;  %v16924_v53 = vld [vmem:[#allocation9_spill] sm:$0xff]  ;;  %v16928_v57 = vld [vmem:[#allocation18_spill] sm:$0xff] }
 0x24f   :  { %v1370_v0 = vadd.f32 %v1366_v4, %v1364_v1  ;;  %13360 = vtanh.f32 %v1369_v51  ;;  %11779 = vmatpush1.bf16.msra.mxu0 %v14262_v48  ;;  %11808 = vmatpush3.bf16.msra.mxu1 %v14336_v30  ;;  %v1374_v31 = vsub.f32 1.0, %v13359_v2  ;;  %v1378_v32 = vmul.f32 %v13359_v2, %v14608_v7  ;;  %v16923_v4 = vld [vmem:[#allocation8_spill] sm:$0xff]  ;;  %v16925_v1 = vld [vmem:[#allocation17_spill] sm:$0xff]  ;;  %v16926_v51 = vld [vmem:[#allocation10_spill] sm:$0xff] }
 0x250   :  { %11781 = vmatprep.subr.bf16.mxu0 %v14265_v49  ;;  %11809 = vmatprep.subr.bf16.mxu1 %v16897_v60  ;;  %v16929_v2 = vld [vmem:[#allocation13_spill] sm:$0xff] }
 0x251   :  { %13362 = vtanh.f32 %v1370_v0  ;;  %v16927_v0 = vld [vmem:[#allocation12_spill] sm:$0xff] }
 0x253   :  { %11783 = vmatpush1.bf16.msra.mxu0 %v14290_v62  ;;  %11811 = vmatpush3.bf16.msra.mxu1 %v14364_v52 }
 0x254   :  { %11785 = vmatprep.subr.bf16.mxu0 %v14294_v63  ;;  %11812 = vmatprep.subr.bf16.mxu1 %v16897_v60 }
 0x257   :  { %11787 = vmatpush1.bf16.msra.mxu0 %v14321_v18  ;;  %11814 = vmatpush3.bf16.msra.mxu1 %v14389_v6 }
 0x258   :  { %11789 = vmatprep.subr.bf16.mxu0 %v14324_v19  ;;  %11815 = vmatprep.subr.bf16.mxu1 %v16897_v60 }
 0x259   :  { %v13361_v44 = vpop.eup %13360 }
 0x25a   :  { %v1375_v22 = vmul.f32 %v13361_v44, %v1373_v33  ;;  %v16930_v33 = vld [vmem:[#allocation15_spill] sm:$0xff] }
 0x25b   :  { %v13363_v28 = vpop.eup %13362  ;;  %11791 = vmatpush1.bf16.msra.mxu0 %v14349_v39  ;;  %11817 = vmatpush3.bf16.msra.mxu1 %v14403_v25  ;;  %v16931_v44 = vld [vmem:[#allocation19_spill] sm:$0xff] }
 0x25c   :  { %11793 = vmatprep.subr.bf16.mxu0 %v14352_v40  ;;  %11818 = vmatprep.subr.bf16.mxu1 %v16897_v60  ;;  %v1376_v41 = vmul.f32 %v13363_v28, %v1374_v31  ;;  %v14758_v20 = vadd.f32 %v1377_v3, %v1375_v22  ;;  %v16932_v31 = vld [vmem:[#allocation16_spill] sm:$0xff] }
 0x25d   :  { %v16933_v28 = vld [vmem:[#allocation20_spill] sm:$0xff] }
 0x25e   :  { %v14760_v12 = vadd.f32 %v1378_v32, %v1376_v41  ;;  %1381 = vst [vmem:[%s16827_s7 + $0xe] sm:$0x1] %v14758_v20 }
 0x25f   :  { %11795 = vmatpush1.bf16.msra.mxu0 %v14377_v58  ;;  %11820 = vmatpush3.bf16.msra.mxu1 %v14416_v34 }
 0x260   :  { %11797 = vmatprep.subr.bf16.mxu0 %v14380_v61  ;;  %11821 = vmatprep.subr.bf16.mxu1 %v16897_v60  ;;  %1382 = vst [vmem:[%s16827_s7 + $0x1e] sm:$0x1] %v14760_v12  ;;  %v1681_v13 = vcombine.low %v14758_v20, %v14760_v12 }
 0x262   :  { %v1688_v7 = vrot.slane %v1681_v13, %v14481_v38 }
 0x263   :  { %11799 = vmatpush1.bf16.msra.mxu0 %v14399_v17  ;;  %11823 = vmatpush3.bf16.msra.mxu1 %v14430_v45 }
 0x264   :  { %v1695_v42 = vrot.slane %v1688_v7, %v14481_v38  ;;  %11825 = vmatprep.subr.bf16.mxu0 %v13981_v5  ;;  %11856 = vmatprep.subr.bf16.mxu1 %v16897_v60  ;;  %v16934_v7 = vld [vmem:[#allocation21_spill] sm:$0xff] }
 0x266   :  { %1762 = vmatmul.mubr.f32.vlgmr.msra.gmra.mrb[10].mxu0 %v1695_v42  ;;  %10576 = vmatmul.mubr.f32.vlgmr.msra.gmra.mrb[10].mxu1 %v1695_v42 }
 0x267   :  { %11827 = vmatpush1.bf16.msra.mxu0 %v13994_v9  ;;  %11858 = vmatpush3.bf16.msra.mxu1 %v14053_v29 }
 0x268   :  { %11829 = vmatprep.subr.bf16.mxu0 %v13996_v10  ;;  %11859 = vmatprep.subr.bf16.mxu1 %v16897_v60 }
 0x269   :  { %2053 = vmatprep.mubr.f32.mxu0 %v16898_v59  ;;  %10610 = vmatprep.mubr.msk.f32.mxu1 %vm13926_vm0, %v16898_v59 }
 0x26b   :  { %11831 = vmatpush1.bf16.msra.mxu0 %v14012_v15  ;;  %11861 = vmatpush3.bf16.msra.mxu1 %v14077_v37 }
 0x26c   :  { %11833 = vmatprep.subr.bf16.mxu0 %v14015_v16  ;;  %11862 = vmatprep.subr.bf16.mxu1 %v16897_v60 }
 0x26f   :  { %11835 = vmatpush1.bf16.msra.mxu0 %v14030_v21  ;;  %11864 = vmatpush3.bf16.msra.mxu1 %v14105_v46 }
 0x270   :  { %11837 = vmatprep.subr.bf16.mxu0 %v16917_v47  ;;  %11865 = vmatprep.subr.bf16.mxu1 %v16897_v60 }
 0x273   :  { %11839 = vmatpush1.bf16.msra.mxu0 %v16918_v54  ;;  %11867 = vmatpush3.bf16.msra.mxu1 %v16919_v14  ;;  %v16935_v54 = vld [vmem:[#allocation22_spill] sm:$0xff] }
 0x274   :  { %11841 = vmatprep.subr.bf16.mxu0 %v16920_v27  ;;  %11868 = vmatprep.subr.bf16.mxu1 %v16897_v60 }
 0x277   :  { %11843 = vmatpush1.bf16.msra.mxu0 %v16921_v50  ;;  %11870 = vmatpush3.bf16.msra.mxu1 %v16922_v26 }
 0x278   :  { %11845 = vmatprep.subr.bf16.mxu0 %v16923_v4  ;;  %11871 = vmatprep.subr.bf16.mxu1 %v16897_v60 }
 0x27b   :  { %11847 = vmatpush1.bf16.msra.mxu0 %v16924_v53  ;;  %11873 = vmatpush3.bf16.msra.mxu1 %v16925_v1 }
 0x27c   :  { %11849 = vmatprep.subr.bf16.mxu0 %v16926_v51  ;;  %11874 = vmatprep.subr.bf16.mxu1 %v16897_v60 }
 0x27f   :  { %11851 = vmatpush1.bf16.msra.mxu0 %v16927_v0  ;;  %11876 = vmatpush3.bf16.msra.mxu1 %v16928_v57 }
 0x280   :  { %11853 = vmatprep.subr.bf16.mxu0 %v16929_v2  ;;  %11877 = vmatprep.subr.bf16.mxu1 %v16897_v60  ;;  %v9655_v2 = vld [vmem:[%s16823_s0 + $0x2] ss:$8 sm:$0x7] }
 0x283   :  { %11855 = vmatpush1.bf16.msra.mxu0 %v16930_v33  ;;  %11879 = vmatpush3.bf16.msra.mxu1 %v16931_v44 }
 0x284   :  { %11881 = vmatprep.subr.bf16.mxu0 %v16932_v31  ;;  %11912 = vmatprep.subr.bf16.mxu1 %v16897_v60  ;;  %v9656_v31 = vld [vmem:[%s16823_s0 + $0x32] ss:$8 sm:$0x7] }
 0x285   :  { %v1588_v51 = vrot.slane %v9656_v31, 1 }
 0x319   :  { %v1471_v22 = vpop.f32.mrb[8].mxu0  ;;  %v1542_v3 = vpop.f32.mrb[8].mxu1 }
 0x31a   :  { %v1472_v41 = vadd.f32 %v1471_v22, %v16933_v28  ;;  %v1473_v32 = vpop.f32.mrb[9].mxu0  ;;  %v10542_v13 = vpop.f32.mrb[9].mxu1  ;;  %v1587_v22 = vrot.slane %v9655_v2, 1 }
 0x31b   :  { %v1474_v42 = vadd.f32 %v1473_v32, %v16934_v7 }
 0x31c   :  { %v1553_v33 = vrot.slane %v1472_v41, %v14481_v38 }
 0x31d   :  { %v1598_v44 = vrot.slane %v1474_v42, %v14481_v38 }
 0x31e   :  { %v1554_v57 = vcombine.high %v1553_v33, %v1553_v33  ;;  %v1561_v0 = vrot.slane %v1553_v33, %v14481_v38 }
 0x31f   :  { %v1599_v28 = vcombine.high %v1598_v44, %v1598_v44  ;;  %v1606_v13 = vrot.slane %v1598_v44, %v14481_v38 }
 0x320   :  { %v1568_v32 = vrot.slane %v1554_v57, %v14481_v38  ;;  %v1571_v7 = vadd.f32 %v9655_v2, %v1561_v0  ;;  %v1543_v57 = vadd.f32 %v1542_v3, %v16935_v54 }
 0x321   :  { %v1613_v1 = vrot.slane %v1599_v28, %v14481_v38  ;;  %v1616_v4 = vadd.f32 %v1606_v13, %v1587_v22 }
 0x322   :  { %v1572_v41 = vadd.f32 %v9656_v31, %v1568_v32  ;;  %v9657_v53 = vmul.f32 -1.442695, %v1571_v7  ;;  %v1637_v28 = vrot.slane %v1543_v57, %v14481_v38 }
 0x323   :  { %v1617_v50 = vadd.f32 %v1613_v1, %v1588_v51  ;;  %v9659_v42 = vmul.f32 -1.442695, %v1616_v4  ;;  %v16936_v51 = vld [vmem:[#allocation23_spill] sm:$0xff] }
 0x324   :  { %13364 = vpow2.f32 %v9657_v53  ;;  %v9658_v26 = vmul.f32 -1.442695, %v1572_v41  ;;  %v1638_v53 = vcombine.high %v1637_v28, %v1637_v28 }
 0x325   :  { %v9660_v27 = vmul.f32 -1.442695, %v1617_v50  ;;  %v1645_v50 = vrot.slane %v1637_v28, %v14481_v38 }
 0x326   :  { %13366 = vpow2.f32 %v9658_v26  ;;  %v1652_v57 = vrot.slane %v1638_v53, %v14481_v38 }
 0x327   :  { %13368 = vpow2.f32 %v9659_v42 }
 0x328   :  { %13370 = vpow2.f32 %v9660_v27  ;;  %v1657_v27 = vrot.slane %v9655_v2, 2 }
 0x32e   :  { %v13365_v33 = vpop.eup %13364 }
 0x32f   :  { %v1579_v14 = vadd.f32 1.0, %v13365_v33  ;;  %v1658_v33 = vrot.slane %v9656_v31, 2  ;;  %v14847_v31 = vld [vmem:[%s16825_s1 + $0x4d] ss:$8 sm:$0x7] }
 0x330   :  { %v13367_v44 = vpop.eup %13366 }
 0x331   :  { %v1580_v0 = vadd.f32 1.0, %v13367_v44  ;;  %13372 = vrcp.f32 %v1579_v14  ;;  %v13369_v7 = vpop.eup %13368  ;;  %v16937_v14 = vld [vmem:[#allocation24_spill] sm:$0xff] }
 0x332   :  { %v13371_v22 = vpop.eup %13370  ;;  %v1624_v13 = vadd.f32 1.0, %v13369_v7  ;;  %v14840_v7 = vld [vmem:[%s16825_s1 + $0x1d] ss:$8 sm:$0x7] }
 0x333   :  { %13374 = vrcp.f32 %v1580_v0  ;;  %v1625_v1 = vadd.f32 1.0, %v13371_v22 }
 0x334   :  { %13376 = vrcp.f32 %v1624_v13 }
 0x335   :  { %13378 = vrcp.f32 %v1625_v1 }
 0x339   :  { %v1763_v26 = vpop.f32.mrb[10].mxu0  ;;  %v1834_v4 = vpop.f32.mrb[10].mxu1 }
 0x33a   :  { %v1764_v32 = vadd.f32 %v1763_v26, %v16936_v51  ;;  %v1765_v41 = vpop.f32.mrb[11].mxu0  ;;  %v10577_v42 = vpop.f32.mrb[11].mxu1 }
 0x33b   :  { %v13373_v3 = vpop.eup %13372  ;;  %v1766_v44 = vadd.f32 %v1765_v41, %v16937_v14 }
 0x33c   :  { %v1655_v0 = vmul.f32 %v13373_v3, %v1645_v50  ;;  %v1845_v28 = vrot.slane %v1764_v32, %v14481_v38  ;;  %v1879_v50 = vrot.slane %v14840_v7, 1 }
 0x33d   :  { %v13375_v2 = vpop.eup %13374  ;;  %v1890_v22 = vrot.slane %v1766_v44, %v14481_v38 }
 0x33e   :  { %v1656_v26 = vmul.f32 %v13375_v2, %v1652_v57  ;;  %v1661_v42 = vadd.f32 %v1657_v27, %v1655_v0  ;;  %v1846_v53 = vcombine.high %v1845_v28, %v1845_v28  ;;  %v1853_v13 = vrot.slane %v1845_v28, %v14481_v38  ;;  %v13377_v54 = vpop.eup %13376 }
 0x33f   :  { %v1891_v41 = vcombine.high %v1890_v22, %v1890_v22  ;;  %v1898_v3 = vrot.slane %v1890_v22, %v14481_v38  ;;  %v1880_v27 = vrot.slane %v14847_v31, 1 }
 0x340   :  { %v1662_v32 = vadd.f32 %v1658_v33, %v1656_v26  ;;  %13380 = vtanh.f32 %v1661_v42  ;;  %v1860_v1 = vrot.slane %v1846_v53, %v14481_v38  ;;  %v1863_v44 = vadd.f32 %v14840_v7, %v1853_v13  ;;  %v13379_v33 = vpop.eup %13378 }
 0x341   :  { %v1905_v57 = vrot.slane %v1891_v41, %v14481_v38  ;;  %v1908_v28 = vadd.f32 %v1898_v3, %v1879_v50  ;;  %v1665_v42 = vsub.f32 1.0, %v13377_v54  ;;  %v1666_v13 = vsub.f32 1.0, %v13379_v33 }
 0x342   :  { %13382 = vtanh.f32 %v1662_v32  ;;  %v1864_v0 = vadd.f32 %v14847_v31, %v1860_v1  ;;  %v9663_v2 = vmul.f32 -1.442695, %v1863_v44  ;;  %v1669_v41 = vmul.f32 %v13377_v54, %v14707_v8 }
 0x343   :  { %v1909_v51 = vadd.f32 %v1905_v57, %v1880_v27  ;;  %v9665_v22 = vmul.f32 -1.442695, %v1908_v28  ;;  %v1670_v50 = vmul.f32 %v13379_v33, %v14709_v55  ;;  %v1835_v57 = vadd.f32 %v1834_v4, %v14551_v43 }
 0x344   :  { %13384 = vpow2.f32 %v9663_v2  ;;  %v9664_v14 = vmul.f32 -1.442695, %v1864_v0 }
 0x345   :  { %v9666_v26 = vmul.f32 -1.442695, %v1909_v51  ;;  %v1929_v54 = vrot.slane %v1835_v57, %v14481_v38 }
 0x346   :  { %13386 = vpow2.f32 %v9664_v14 }
 0x347   :  { %13388 = vpow2.f32 %v9665_v22  ;;  %v1930_v4 = vcombine.high %v1929_v54, %v1929_v54  ;;  %v1937_v22 = vrot.slane %v1929_v54, %v14481_v38 }
 0x348   :  { %13390 = vpow2.f32 %v9666_v26  ;;  %v1949_v26 = vrot.slane %v14840_v7, 2 }
 0x34a   :  { %v13381_v53 = vpop.eup %13380 }
 0x34b   :  { %v1667_v47 = vmul.f32 %v13381_v53, %v1665_v42 }
 0x34c   :  { %v13383_v32 = vpop.eup %13382 }
 0x34d   :  { %v1668_v1 = vmul.f32 %v13383_v32, %v1666_v13  ;;  %v14859_v3 = vadd.f32 %v1669_v41, %v1667_v47  ;;  %v1944_v13 = vrot.slane %v1930_v4, %v14481_v38  ;;  %v1950_v32 = vrot.slane %v14847_v31, 2 }
 0x34e   :  { %v13385_v44 = vpop.eup %13384 }
 0x34f   :  { %v1871_v27 = vadd.f32 1.0, %v13385_v44  ;;  %v14861_v14 = vadd.f32 %v1670_v50, %v1668_v1  ;;  %1673 = vst [vmem:[%s16826_s6 + $0x2] sm:$0x1] %v14859_v3 }
 0x350   :  { %v13387_v51 = vpop.eup %13386 }
 0x351   :  { %v1872_v8 = vadd.f32 1.0, %v13387_v51  ;;  %13392 = vrcp.f32 %v1871_v27  ;;  %1674 = vst [vmem:[%s16826_s6 + $0x12] sm:$0x1] %v14861_v14  ;;  %v1973_v55 = vcombine.low %v14859_v3, %v14861_v14  ;;  %v13389_v0 = vpop.eup %13388 }
 0x352   :  { %v13391_v28 = vpop.eup %13390  ;;  %v1916_v33 = vadd.f32 1.0, %v13389_v0 }
 0x353   :  { %13394 = vrcp.f32 %v1872_v8  ;;  %v1980_v47 = vrot.slane %v1973_v55, %v14481_v38  ;;  %v1917_v42 = vadd.f32 1.0, %v13391_v28 }
 0x354   :  { %13396 = vrcp.f32 %v1916_v33 }
 0x355   :  { %v1987_v2 = vrot.slane %v1980_v47, %v14481_v38  ;;  %13398 = vrcp.f32 %v1917_v42  ;;  %v16940_v42 = vld [vmem:[#allocation11_spill] sm:$0xff] }
 0x357   :  { %2054 = vmatmul.mubr.f32.vlgmr.msra.gmra.mrb[12].mxu0 %v1987_v2  ;;  %10611 = vmatmul.mubr.f32.vlgmr.msra.gmra.mrb[12].mxu1 %v1987_v2 }
 0x358   :  { %11883 = vmatpush1.bf16.msra.mxu0 %v14204_v23  ;;  %11914 = vmatpush3.bf16.msra.mxu1 %v14277_v56 }
 0x359   :  { %11885 = vmatprep.subr.bf16.mxu0 %v14207_v24  ;;  %11915 = vmatprep.subr.bf16.mxu1 %v16897_v60 }
 0x35a   :  { %2345 = vmatprep.mubr.f32.mxu0 %v16898_v59  ;;  %10645 = vmatprep.mubr.msk.f32.mxu1 %vm13926_vm0, %v16898_v59 }
 0x35b   :  { %v13393_v53 = vpop.eup %13392 }
 0x35c   :  { %v1947_v41 = vmul.f32 %v13393_v53, %v1937_v22  ;;  %11887 = vmatpush1.bf16.msra.mxu0 %v14233_v35  ;;  %11917 = vmatpush3.bf16.msra.mxu1 %v14306_v11  ;;  %v16938_v22 = vld [vmem:[#allocation4_spill] sm:$0xff]  ;;  %v16941_v53 = vld [vmem:[#allocation6_spill] sm:$0xff] }
 0x35d   :  { %v13395_v1 = vpop.eup %13394  ;;  %11889 = vmatprep.subr.bf16.mxu0 %v14237_v36  ;;  %11918 = vmatprep.subr.bf16.mxu1 %v16897_v60 }
 0x35e   :  { %v1948_v7 = vmul.f32 %v13395_v1, %v1944_v13  ;;  %v1953_v50 = vadd.f32 %v1949_v26, %v1947_v41  ;;  %v13397_v31 = vpop.eup %13396  ;;  %v16939_v26 = vld [vmem:[#allocation5_spill] sm:$0xff]  ;;  %v16942_v13 = vld [vmem:[#allocation7_spill] sm:$0xff]  ;;  %v16943_v41 = vld [vmem:[#allocation14_spill] sm:$0xff] }
 0x35f   :  { %v13399_v27 = vpop.eup %13398  ;;  %v1957_v51 = vsub.f32 1.0, %v13397_v31  ;;  %v1961_v47 = vmul.f32 %v13397_v31, %v14758_v20  ;;  %v16945_v1 = vld [vmem:[#allocation9_spill] sm:$0xff]  ;;  %v16949_v31 = vld [vmem:[#allocation18_spill] sm:$0xff] }
 0x360   :  { %v1954_v44 = vadd.f32 %v1950_v32, %v1948_v7  ;;  %13400 = vtanh.f32 %v1953_v50  ;;  %11891 = vmatpush1.bf16.msra.mxu0 %v14262_v48  ;;  %11920 = vmatpush3.bf16.msra.mxu1 %v14336_v30  ;;  %v1958_v8 = vsub.f32 1.0, %v13399_v27  ;;  %v1962_v2 = vmul.f32 %v13399_v27, %v14760_v12  ;;  %v16944_v32 = vld [vmem:[#allocation8_spill] sm:$0xff]  ;;  %v16946_v7 = vld [vmem:[#allocation17_spill] sm:$0xff]  ;;  %v16947_v50 = vld [vmem:[#allocation10_spill] sm:$0xff] }
 0x361   :  { %11893 = vmatprep.subr.bf16.mxu0 %v14265_v49  ;;  %11921 = vmatprep.subr.bf16.mxu1 %v16897_v60  ;;  %v16950_v27 = vld [vmem:[#allocation13_spill] sm:$0xff] }
 0x362   :  { %13402 = vtanh.f32 %v1954_v44  ;;  %v16948_v44 = vld [vmem:[#allocation12_spill] sm:$0xff] }
 0x364   :  { %11895 = vmatpush1.bf16.msra.mxu0 %v14290_v62  ;;  %11923 = vmatpush3.bf16.msra.mxu1 %v14364_v52 }
 0x365   :  { %11897 = vmatprep.subr.bf16.mxu0 %v14294_v63  ;;  %11924 = vmatprep.subr.bf16.mxu1 %v16897_v60 }
 0x368   :  { %11899 = vmatpush1.bf16.msra.mxu0 %v14321_v18  ;;  %11926 = vmatpush3.bf16.msra.mxu1 %v14389_v6 }
 0x369   :  { %11901 = vmatprep.subr.bf16.mxu0 %v14324_v19  ;;  %11927 = vmatprep.subr.bf16.mxu1 %v16897_v60 }
 0x36a   :  { %v13401_v57 = vpop.eup %13400 }
 0x36b   :  { %v1959_v55 = vmul.f32 %v13401_v57, %v1957_v51  ;;  %v16951_v51 = vld [vmem:[#allocation15_spill] sm:$0xff] }
 0x36c   :  { %v13403_v54 = vpop.eup %13402  ;;  %11903 = vmatpush1.bf16.msra.mxu0 %v14349_v39  ;;  %11929 = vmatpush3.bf16.msra.mxu1 %v14403_v25  ;;  %v16952_v57 = vld [vmem:[#allocation19_spill] sm:$0xff] }
 0x36d   :  { %11905 = vmatprep.subr.bf16.mxu0 %v14352_v40  ;;  %11930 = vmatprep.subr.bf16.mxu1 %v16897_v60  ;;  %v1960_v0 = vmul.f32 %v13403_v54, %v1958_v8  ;;  %v14910_v28 = vadd.f32 %v1961_v47, %v1959_v55  ;;  %v16953_v8 = vld [vmem:[#allocation16_spill] sm:$0xff] }
 0x36e   :  { %v16954_v54 = vld [vmem:[#allocation20_spill] sm:$0xff] }
 0x36f   :  { %v14912_v4 = vadd.f32 %v1962_v2, %v1960_v0  ;;  %1965 = vst [vmem:[%s16827_s7 + $0xd] sm:$0x1] %v14910_v28 }
 0x370   :  { %11907 = vmatpush1.bf16.msra.mxu0 %v14377_v58  ;;  %11932 = vmatpush3.bf16.msra.mxu1 %v14416_v34 }
 0x371   :  { %11909 = vmatprep.subr.bf16.mxu0 %v14380_v61  ;;  %11933 = vmatprep.subr.bf16.mxu1 %v16897_v60  ;;  %1966 = vst [vmem:[%s16827_s7 + $0x1d] sm:$0x1] %v14912_v4  ;;  %v2265_v20 = vcombine.low %v14910_v28, %v14912_v4 }
 0x373   :  { %v2272_v12 = vrot.slane %v2265_v20, %v14481_v38 }
 0x374   :  { %11911 = vmatpush1.bf16.msra.mxu0 %v14399_v17  ;;  %11935 = vmatpush3.bf16.msra.mxu1 %v14430_v45 }
 0x375   :  { %v2279_v33 = vrot.slane %v2272_v12, %v14481_v38  ;;  %11937 = vmatprep.subr.bf16.mxu0 %v13981_v5  ;;  %11968 = vmatprep.subr.bf16.mxu1 %v16897_v60  ;;  %v16955_v12 = vld [vmem:[#allocation21_spill] sm:$0xff] }
 0x377   :  { %2346 = vmatmul.mubr.f32.vlgmr.msra.gmra.mrb[14].mxu0 %v2279_v33  ;;  %10646 = vmatmul.mubr.f32.vlgmr.msra.gmra.mrb[14].mxu1 %v2279_v33 }
 0x378   :  { %11939 = vmatpush1.bf16.msra.mxu0 %v13994_v9  ;;  %11970 = vmatpush3.bf16.msra.mxu1 %v14053_v29 }
 0x379   :  { %11941 = vmatprep.subr.bf16.mxu0 %v13996_v10  ;;  %11971 = vmatprep.subr.bf16.mxu1 %v16897_v60 }
 0x37a   :  { %2637 = vmatprep.mubr.f32.mxu0 %v16898_v59  ;;  %10680 = vmatprep.mubr.msk.f32.mxu1 %vm13926_vm0, %v16898_v59 }
 0x37c   :  { %11943 = vmatpush1.bf16.msra.mxu0 %v14012_v15  ;;  %11973 = vmatpush3.bf16.msra.mxu1 %v14077_v37 }
 0x37d   :  { %11945 = vmatprep.subr.bf16.mxu0 %v14015_v16  ;;  %11974 = vmatprep.subr.bf16.mxu1 %v16897_v60 }
 0x380   :  { %11947 = vmatpush1.bf16.msra.mxu0 %v14030_v21  ;;  %11976 = vmatpush3.bf16.msra.mxu1 %v14105_v46 }
 0x381   :  { %11949 = vmatprep.subr.bf16.mxu0 %v16938_v22  ;;  %11977 = vmatprep.subr.bf16.mxu1 %v16897_v60 }
 0x384   :  { %11951 = vmatpush1.bf16.msra.mxu0 %v16939_v26  ;;  %11979 = vmatpush3.bf16.msra.mxu1 %v16940_v42  ;;  %v16956_v26 = vld [vmem:[#allocation22_spill] sm:$0xff] }
 0x385   :  { %11953 = vmatprep.subr.bf16.mxu0 %v16941_v53  ;;  %11980 = vmatprep.subr.bf16.mxu1 %v16897_v60 }
 0x388   :  { %11955 = vmatpush1.bf16.msra.mxu0 %v16942_v13  ;;  %11982 = vmatpush3.bf16.msra.mxu1 %v16943_v41 }
 0x389   :  { %11957 = vmatprep.subr.bf16.mxu0 %v16944_v32  ;;  %11983 = vmatprep.subr.bf16.mxu1 %v16897_v60 }
 0x38c   :  { %11959 = vmatpush1.bf16.msra.mxu0 %v16945_v1  ;;  %11985 = vmatpush3.bf16.msra.mxu1 %v16946_v7 }
 0x38d   :  { %11961 = vmatprep.subr.bf16.mxu0 %v16947_v50  ;;  %11986 = vmatprep.subr.bf16.mxu1 %v16897_v60 }
 0x390   :  { %11963 = vmatpush1.bf16.msra.mxu0 %v16948_v44  ;;  %11988 = vmatpush3.bf16.msra.mxu1 %v16949_v31 }
 0x391   :  { %11965 = vmatprep.subr.bf16.mxu0 %v16950_v27  ;;  %11989 = vmatprep.subr.bf16.mxu1 %v16897_v60  ;;  %v9667_v27 = vld [vmem:[%s16823_s0 + $0x3] ss:$8 sm:$0x7] }
 0x394   :  { %11967 = vmatpush1.bf16.msra.mxu0 %v16951_v51  ;;  %11991 = vmatpush3.bf16.msra.mxu1 %v16952_v57 }
 0x395   :  { %11993 = vmatprep.subr.bf16.mxu0 %v16953_v8  ;;  %12024 = vmatprep.subr.bf16.mxu1 %v16897_v60  ;;  %v9668_v8 = vld [vmem:[%s16823_s0 + $0x33] ss:$8 sm:$0x7] }
 0x396   :  { %v2172_v50 = vrot.slane %v9668_v8, 1 }
 0x42a   :  { %v2055_v55 = vpop.f32.mrb[12].mxu0  ;;  %v2126_v47 = vpop.f32.mrb[12].mxu1 }
 0x42b   :  { %v2056_v0 = vadd.f32 %v2055_v55, %v16954_v54  ;;  %v2057_v2 = vpop.f32.mrb[13].mxu0  ;;  %v10612_v20 = vpop.f32.mrb[13].mxu1  ;;  %v2171_v55 = vrot.slane %v9667_v27, 1 }
 0x42c   :  { %v2058_v33 = vadd.f32 %v2057_v2, %v16955_v12 }
 0x42d   :  { %v2137_v51 = vrot.slane %v2056_v0, %v14481_v38 }
 0x42e   :  { %v2182_v57 = vrot.slane %v2058_v33, %v14481_v38 }
 0x42f   :  { %v2138_v31 = vcombine.high %v2137_v51, %v2137_v51  ;;  %v2145_v44 = vrot.slane %v2137_v51, %v14481_v38 }
 0x430   :  { %v2183_v54 = vcombine.high %v2182_v57, %v2182_v57  ;;  %v2190_v20 = vrot.slane %v2182_v57, %v14481_v38 }
 0x431   :  { %v2152_v2 = vrot.slane %v2138_v31, %v14481_v38  ;;  %v2155_v12 = vadd.f32 %v9667_v27, %v2145_v44  ;;  %v2127_v31 = vadd.f32 %v2126_v47, %v16956_v26 }
 0x432   :  { %v2197_v7 = vrot.slane %v2183_v54, %v14481_v38  ;;  %v2200_v32 = vadd.f32 %v2190_v20, %v2171_v55 }
 0x433   :  { %v2156_v0 = vadd.f32 %v9668_v8, %v2152_v2  ;;  %v9669_v1 = vmul.f32 -1.442695, %v2155_v12  ;;  %v2221_v54 = vrot.slane %v2127_v31, %v14481_v38 }
 0x434   :  { %v2201_v13 = vadd.f32 %v2197_v7, %v2172_v50  ;;  %v9671_v33 = vmul.f32 -1.442695, %v2200_v32  ;;  %v16957_v50 = vld [vmem:[#allocation23_spill] sm:$0xff] }
 0x435   :  { %13404 = vpow2.f32 %v9669_v1  ;;  %v9670_v41 = vmul.f32 -1.442695, %v2156_v0  ;;  %v2222_v1 = vcombine.high %v2221_v54, %v2221_v54 }
 0x436   :  { %v9672_v53 = vmul.f32 -1.442695, %v2201_v13  ;;  %v2229_v13 = vrot.slane %v2221_v54, %v14481_v38 }
 0x437   :  { %13406 = vpow2.f32 %v9670_v41  ;;  %v2236_v31 = vrot.slane %v2222_v1, %v14481_v38 }
 0x438   :  { %13408 = vpow2.f32 %v9671_v33 }
 0x439   :  { %13410 = vpow2.f32 %v9672_v53  ;;  %v2241_v53 = vrot.slane %v9667_v27, 2 }
 0x43f   :  { %v13405_v51 = vpop.eup %13404 }
 0x440   :  { %v2163_v42 = vadd.f32 1.0, %v13405_v51  ;;  %v2242_v51 = vrot.slane %v9668_v8, 2  ;;  %v14999_v8 = vld [vmem:[%s16825_s1 + $0x4c] ss:$8 sm:$0x7] }
 0x441   :  { %v13407_v57 = vpop.eup %13406 }
 0x442   :  { %v2164_v44 = vadd.f32 1.0, %v13407_v57  ;;  %13412 = vrcp.f32 %v2163_v42  ;;  %v13409_v12 = vpop.eup %13408  ;;  %v16958_v42 = vld [vmem:[#allocation24_spill] sm:$0xff] }
 0x443   :  { %v13411_v55 = vpop.eup %13410  ;;  %v2208_v20 = vadd.f32 1.0, %v13409_v12  ;;  %v14992_v12 = vld [vmem:[%s16825_s1 + $0x1c] ss:$8 sm:$0x7] }
 0x444   :  { %13414 = vrcp.f32 %v2164_v44  ;;  %v2209_v7 = vadd.f32 1.0, %v13411_v55 }
 0x445   :  { %13416 = vrcp.f32 %v2208_v20 }
 0x446   :  { %13418 = vrcp.f32 %v2209_v7 }
 0x44a   :  { %v2347_v41 = vpop.f32.mrb[14].mxu0  ;;  %v2418_v32 = vpop.f32.mrb[14].mxu1 }
 0x44b   :  { %v2348_v2 = vadd.f32 %v2347_v41, %v16957_v50  ;;  %v2349_v0 = vpop.f32.mrb[15].mxu0  ;;  %v10647_v33 = vpop.f32.mrb[15].mxu1 }
 0x44c   :  { %v13413_v47 = vpop.eup %13412  ;;  %v2350_v57 = vadd.f32 %v2349_v0, %v16958_v42 }
 0x44d   :  { %v2239_v44 = vmul.f32 %v13413_v47, %v2229_v13  ;;  %v2429_v54 = vrot.slane %v2348_v2, %v14481_v38  ;;  %v2463_v13 = vrot.slane %v14992_v12, 1 }
 0x44e   :  { %v13415_v27 = vpop.eup %13414  ;;  %v2474_v55 = vrot.slane %v2350_v57, %v14481_v38 }
 0x44f   :  { %v2240_v41 = vmul.f32 %v13415_v27, %v2236_v31  ;;  %v2245_v33 = vadd.f32 %v2241_v53, %v2239_v44  ;;  %v2430_v1 = vcombine.high %v2429_v54, %v2429_v54  ;;  %v2437_v20 = vrot.slane %v2429_v54, %v14481_v38  ;;  %v13417_v26 = vpop.eup %13416 }
 0x450   :  { %v2475_v0 = vcombine.high %v2474_v55, %v2474_v55  ;;  %v2482_v47 = vrot.slane %v2474_v55, %v14481_v38  ;;  %v2464_v53 = vrot.slane %v14999_v8, 1 }
 0x451   :  { %v2246_v2 = vadd.f32 %v2242_v51, %v2240_v41  ;;  %13420 = vtanh.f32 %v2245_v33  ;;  %v2444_v7 = vrot.slane %v2430_v1, %v14481_v38  ;;  %v2447_v57 = vadd.f32 %v14992_v12, %v2437_v20  ;;  %v13419_v51 = vpop.eup %13418 }
 0x452   :  { %v2489_v31 = vrot.slane %v2475_v0, %v14481_v38  ;;  %v2492_v54 = vadd.f32 %v2482_v47, %v2463_v13  ;;  %v2249_v33 = vsub.f32 1.0, %v13417_v26  ;;  %v2250_v20 = vsub.f32 1.0, %v13419_v51 }
 0x453   :  { %13422 = vtanh.f32 %v2246_v2  ;;  %v2448_v44 = vadd.f32 %v14999_v8, %v2444_v7  ;;  %v9675_v27 = vmul.f32 -1.442695, %v2447_v57  ;;  %v2253_v0 = vmul.f32 %v13417_v26, %v14859_v3 }
 0x454   :  { %v2493_v50 = vadd.f32 %v2489_v31, %v2464_v53  ;;  %v9677_v55 = vmul.f32 -1.442695, %v2492_v54  ;;  %v2254_v13 = vmul.f32 %v13419_v51, %v14861_v14  ;;  %v2419_v31 = vadd.f32 %v2418_v32, %v14551_v43 }
 0x455   :  { %13424 = vpow2.f32 %v9675_v27  ;;  %v9676_v42 = vmul.f32 -1.442695, %v2448_v44 }
 0x456   :  { %v9678_v41 = vmul.f32 -1.442695, %v2493_v50  ;;  %v2513_v26 = vrot.slane %v2419_v31, %v14481_v38 }
 0x457   :  { %13426 = vpow2.f32 %v9676_v42 }
 0x458   :  { %13428 = vpow2.f32 %v9677_v55  ;;  %v2514_v32 = vcombine.high %v2513_v26, %v2513_v26  ;;  %v2521_v55 = vrot.slane %v2513_v26, %v14481_v38 }
 0x459   :  { %13430 = vpow2.f32 %v9678_v41  ;;  %v2533_v41 = vrot.slane %v14992_v12, 2 }
 0x45b   :  { %v13421_v1 = vpop.eup %13420 }
 0x45c   :  { %v2251_v22 = vmul.f32 %v13421_v1, %v2249_v33 }
 0x45d   :  { %v13423_v2 = vpop.eup %13422 }
 0x45e   :  { %v2252_v7 = vmul.f32 %v13423_v2, %v2250_v20  ;;  %v15011_v47 = vadd.f32 %v2253_v0, %v2251_v22  ;;  %v2528_v20 = vrot.slane %v2514_v32, %v14481_v38  ;;  %v2534_v2 = vrot.slane %v14999_v8, 2 }
 0x45f   :  { %v13425_v57 = vpop.eup %13424 }
 0x460   :  { %v2455_v53 = vadd.f32 1.0, %v13425_v57  ;;  %v15013_v42 = vadd.f32 %v2254_v13, %v2252_v7  ;;  %2257 = vst [vmem:[%s16826_s6 + $0x3] sm:$0x1] %v15011_v47 }
 0x461   :  { %v13427_v50 = vpop.eup %13426 }
 0x462   :  { %v2456_v3 = vadd.f32 1.0, %v13427_v50  ;;  %13432 = vrcp.f32 %v2455_v53  ;;  %2258 = vst [vmem:[%s16826_s6 + $0x13] sm:$0x1] %v15013_v42  ;;  %v2557_v14 = vcombine.low %v15011_v47, %v15013_v42  ;;  %v13429_v44 = vpop.eup %13428 }
 0x463   :  { %v13431_v54 = vpop.eup %13430  ;;  %v2500_v51 = vadd.f32 1.0, %v13429_v44 }
 0x464   :  { %13434 = vrcp.f32 %v2456_v3  ;;  %v2564_v22 = vrot.slane %v2557_v14, %v14481_v38  ;;  %v2501_v33 = vadd.f32 1.0, %v13431_v54 }
 0x465   :  { %13436 = vrcp.f32 %v2500_v51 }
 0x466   :  { %v2571_v27 = vrot.slane %v2564_v22, %v14481_v38  ;;  %13438 = vrcp.f32 %v2501_v33  ;;  %v16961_v33 = vld [vmem:[#allocation11_spill] sm:$0xff] }
 0x468   :  { %2638 = vmatmul.mubr.f32.vlgmr.msra.gmra.mrb[16].mxu0 %v2571_v27  ;;  %10681 = vmatmul.mubr.f32.vlgmr.msra.gmra.mrb[16].mxu1 %v2571_v27 }
 0x469   :  { %11995 = vmatpush1.bf16.msra.mxu0 %v14204_v23  ;;  %12026 = vmatpush3.bf16.msra.mxu1 %v14277_v56 }
 0x46a   :  { %11997 = vmatprep.subr.bf16.mxu0 %v14207_v24  ;;  %12027 = vmatprep.subr.bf16.mxu1 %v16897_v60 }
 0x46b   :  { %2929 = vmatprep.mubr.f32.mxu0 %v16898_v59  ;;  %10715 = vmatprep.mubr.msk.f32.mxu1 %vm13926_vm0, %v16898_v59 }
 0x46c   :  { %v13433_v1 = vpop.eup %13432 }
 0x46d   :  { %v2531_v0 = vmul.f32 %v13433_v1, %v2521_v55  ;;  %11999 = vmatpush1.bf16.msra.mxu0 %v14233_v35  ;;  %12029 = vmatpush3.bf16.msra.mxu1 %v14306_v11  ;;  %v16959_v55 = vld [vmem:[#allocation4_spill] sm:$0xff]  ;;  %v16962_v1 = vld [vmem:[#allocation6_spill] sm:$0xff] }
 0x46e   :  { %v13435_v7 = vpop.eup %13434  ;;  %12001 = vmatprep.subr.bf16.mxu0 %v14237_v36  ;;  %12030 = vmatprep.subr.bf16.mxu1 %v16897_v60 }
 0x46f   :  { %v2532_v12 = vmul.f32 %v13435_v7, %v2528_v20  ;;  %v2537_v13 = vadd.f32 %v2533_v41, %v2531_v0  ;;  %v13437_v8 = vpop.eup %13436  ;;  %v16960_v41 = vld [vmem:[#allocation5_spill] sm:$0xff]  ;;  %v16963_v20 = vld [vmem:[#allocation7_spill] sm:$0xff]  ;;  %v16964_v0 = vld [vmem:[#allocation14_spill] sm:$0xff] }
 0x470   :  { %v13439_v53 = vpop.eup %13438  ;;  %v2541_v50 = vsub.f32 1.0, %v13437_v8  ;;  %v2545_v22 = vmul.f32 %v13437_v8, %v14910_v28  ;;  %v16966_v7 = vld [vmem:[#allocation9_spill] sm:$0xff]  ;;  %v16970_v8 = vld [vmem:[#allocation18_spill] sm:$0xff] }
 0x471   :  { %v2538_v57 = vadd.f32 %v2534_v2, %v2532_v12  ;;  %13440 = vtanh.f32 %v2537_v13  ;;  %12003 = vmatpush1.bf16.msra.mxu0 %v14262_v48  ;;  %12032 = vmatpush3.bf16.msra.mxu1 %v14336_v30  ;;  %v2542_v3 = vsub.f32 1.0, %v13439_v53  ;;  %v2546_v27 = vmul.f32 %v13439_v53, %v14912_v4  ;;  %v16965_v2 = vld [vmem:[#allocation8_spill] sm:$0xff]  ;;  %v16967_v12 = vld [vmem:[#allocation17_spill] sm:$0xff]  ;;  %v16968_v13 = vld [vmem:[#allocation10_spill] sm:$0xff] }
 0x472   :  { %12005 = vmatprep.subr.bf16.mxu0 %v14265_v49  ;;  %12033 = vmatprep.subr.bf16.mxu1 %v16897_v60  ;;  %v16971_v53 = vld [vmem:[#allocation13_spill] sm:$0xff] }
 0x473   :  { %13442 = vtanh.f32 %v2538_v57  ;;  %v16969_v57 = vld [vmem:[#allocation12_spill] sm:$0xff] }
 0x475   :  { %12007 = vmatpush1.bf16.msra.mxu0 %v14290_v62  ;;  %12035 = vmatpush3.bf16.msra.mxu1 %v14364_v52 }
 0x476   :  { %12009 = vmatprep.subr.bf16.mxu0 %v14294_v63  ;;  %12036 = vmatprep.subr.bf16.mxu1 %v16897_v60 }
 0x479   :  { %12011 = vmatpush1.bf16.msra.mxu0 %v14321_v18  ;;  %12038 = vmatpush3.bf16.msra.mxu1 %v14389_v6 }
 0x47a   :  { %12013 = vmatprep.subr.bf16.mxu0 %v14324_v19  ;;  %12039 = vmatprep.subr.bf16.mxu1 %v16897_v60 }
 0x47b   :  { %v13441_v31 = vpop.eup %13440 }
 0x47c   :  { %v2543_v14 = vmul.f32 %v13441_v31, %v2541_v50  ;;  %v16972_v50 = vld [vmem:[#allocation15_spill] sm:$0xff] }
 0x47d   :  { %v13443_v26 = vpop.eup %13442  ;;  %12015 = vmatpush1.bf16.msra.mxu0 %v14349_v39  ;;  %12041 = vmatpush3.bf16.msra.mxu1 %v14403_v25  ;;  %v16973_v31 = vld [vmem:[#allocation19_spill] sm:$0xff] }
 0x47e   :  { %12017 = vmatprep.subr.bf16.mxu0 %v14352_v40  ;;  %12042 = vmatprep.subr.bf16.mxu1 %v16897_v60  ;;  %v2544_v44 = vmul.f32 %v13443_v26, %v2542_v3  ;;  %v15062_v54 = vadd.f32 %v2545_v22, %v2543_v14  ;;  %v16974_v3 = vld [vmem:[#allocation16_spill] sm:$0xff] }
 0x47f   :  { %v16975_v26 = vld [vmem:[#allocation20_spill] sm:$0xff] }
 0x480   :  { %v15064_v32 = vadd.f32 %v2546_v27, %v2544_v44  ;;  %2549 = vst [vmem:[%s16827_s7 + $0xc] sm:$0x1] %v15062_v54 }
 0x481   :  { %12019 = vmatpush1.bf16.msra.mxu0 %v14377_v58  ;;  %12044 = vmatpush3.bf16.msra.mxu1 %v14416_v34 }
 0x482   :  { %12021 = vmatprep.subr.bf16.mxu0 %v14380_v61  ;;  %12045 = vmatprep.subr.bf16.mxu1 %v16897_v60  ;;  %2550 = vst [vmem:[%s16827_s7 + $0x1c] sm:$0x1] %v15064_v32  ;;  %v2849_v28 = vcombine.low %v15062_v54, %v15064_v32 }
 0x484   :  { %v2856_v4 = vrot.slane %v2849_v28, %v14481_v38 }
 0x485   :  { %12023 = vmatpush1.bf16.msra.mxu0 %v14399_v17  ;;  %12047 = vmatpush3.bf16.msra.mxu1 %v14430_v45 }
 0x486   :  { %v2863_v51 = vrot.slane %v2856_v4, %v14481_v38  ;;  %12049 = vmatprep.subr.bf16.mxu0 %v13981_v5  ;;  %12080 = vmatprep.subr.bf16.mxu1 %v16897_v60  ;;  %v16976_v4 = vld [vmem:[#allocation21_spill] sm:$0xff] }
 0x488   :  { %2930 = vmatmul.mubr.f32.vlgmr.msra.gmra.mrb[18].mxu0 %v2863_v51  ;;  %10716 = vmatmul.mubr.f32.vlgmr.msra.gmra.mrb[18].mxu1 %v2863_v51 }
 0x489   :  { %12051 = vmatpush1.bf16.msra.mxu0 %v13994_v9  ;;  %12082 = vmatpush3.bf16.msra.mxu1 %v14053_v29 }
 0x48a   :  { %12053 = vmatprep.subr.bf16.mxu0 %v13996_v10  ;;  %12083 = vmatprep.subr.bf16.mxu1 %v16897_v60 }
 0x48b   :  { %3221 = vmatprep.mubr.f32.mxu0 %v16898_v59  ;;  %10750 = vmatprep.mubr.msk.f32.mxu1 %vm13926_vm0, %v16898_v59 }
 0x48d   :  { %12055 = vmatpush1.bf16.msra.mxu0 %v14012_v15  ;;  %12085 = vmatpush3.bf16.msra.mxu1 %v14077_v37 }
 0x48e   :  { %12057 = vmatprep.subr.bf16.mxu0 %v14015_v16  ;;  %12086 = vmatprep.subr.bf16.mxu1 %v16897_v60 }
 0x491   :  { %12059 = vmatpush1.bf16.msra.mxu0 %v14030_v21  ;;  %12088 = vmatpush3.bf16.msra.mxu1 %v14105_v46 }
 0x492   :  { %12061 = vmatprep.subr.bf16.mxu0 %v16959_v55  ;;  %12089 = vmatprep.subr.bf16.mxu1 %v16897_v60 }
 0x495   :  { %12063 = vmatpush1.bf16.msra.mxu0 %v16960_v41  ;;  %12091 = vmatpush3.bf16.msra.mxu1 %v16961_v33  ;;  %v16977_v41 = vld [vmem:[#allocation22_spill] sm:$0xff] }
 0x496   :  { %12065 = vmatprep.subr.bf16.mxu0 %v16962_v1  ;;  %12092 = vmatprep.subr.bf16.mxu1 %v16897_v60 }
 0x499   :  { %12067 = vmatpush1.bf16.msra.mxu0 %v16963_v20  ;;  %12094 = vmatpush3.bf16.msra.mxu1 %v16964_v0 }
 0x49a   :  { %12069 = vmatprep.subr.bf16.mxu0 %v16965_v2  ;;  %12095 = vmatprep.subr.bf16.mxu1 %v16897_v60 }
 0x49d   :  { %12071 = vmatpush1.bf16.msra.mxu0 %v16966_v7  ;;  %12097 = vmatpush3.bf16.msra.mxu1 %v16967_v12 }
 0x49e   :  { %12073 = vmatprep.subr.bf16.mxu0 %v16968_v13  ;;  %12098 = vmatprep.subr.bf16.mxu1 %v16897_v60 }
 0x4a1   :  { %12075 = vmatpush1.bf16.msra.mxu0 %v16969_v57  ;;  %12100 = vmatpush3.bf16.msra.mxu1 %v16970_v8 }
 0x4a2   :  { %12077 = vmatprep.subr.bf16.mxu0 %v16971_v53  ;;  %12101 = vmatprep.subr.bf16.mxu1 %v16897_v60  ;;  %v9679_v53 = vld [vmem:[%s16823_s0 + $0x4] ss:$8 sm:$0x7] }
 0x4a5   :  { %12079 = vmatpush1.bf16.msra.mxu0 %v16972_v50  ;;  %12103 = vmatpush3.bf16.msra.mxu1 %v16973_v31 }
 0x4a6   :  { %12105 = vmatprep.subr.bf16.mxu0 %v16974_v3  ;;  %12136 = vmatprep.subr.bf16.mxu1 %v16897_v60  ;;  %v9680_v3 = vld [vmem:[%s16823_s0 + $0x34] ss:$8 sm:$0x7] }
 0x4a7   :  { %v2756_v13 = vrot.slane %v9680_v3, 1 }
 0x53b   :  { %v2639_v14 = vpop.f32.mrb[16].mxu0  ;;  %v2710_v22 = vpop.f32.mrb[16].mxu1 }
 0x53c   :  { %v2640_v44 = vadd.f32 %v2639_v14, %v16975_v26  ;;  %v2641_v27 = vpop.f32.mrb[17].mxu0  ;;  %v10682_v28 = vpop.f32.mrb[17].mxu1  ;;  %v2755_v14 = vrot.slane %v9679_v53, 1 }
 0x53d   :  { %v2642_v51 = vadd.f32 %v2641_v27, %v16976_v4 }
 0x53e   :  { %v2721_v50 = vrot.slane %v2640_v44, %v14481_v38 }
 0x53f   :  { %v2766_v31 = vrot.slane %v2642_v51, %v14481_v38 }
 0x540   :  { %v2722_v8 = vcombine.high %v2721_v50, %v2721_v50  ;;  %v2729_v57 = vrot.slane %v2721_v50, %v14481_v38 }
 0x541   :  { %v2767_v26 = vcombine.high %v2766_v31, %v2766_v31  ;;  %v2774_v28 = vrot.slane %v2766_v31, %v14481_v38 }
 0x542   :  { %v2736_v27 = vrot.slane %v2722_v8, %v14481_v38  ;;  %v2739_v4 = vadd.f32 %v9679_v53, %v2729_v57  ;;  %v2711_v8 = vadd.f32 %v2710_v22, %v16977_v41 }
 0x543   :  { %v2781_v12 = vrot.slane %v2767_v26, %v14481_v38  ;;  %v2784_v2 = vadd.f32 %v2774_v28, %v2755_v14 }
 0x544   :  { %v2740_v44 = vadd.f32 %v9680_v3, %v2736_v27  ;;  %v9681_v7 = vmul.f32 -1.442695, %v2739_v4  ;;  %v2805_v26 = vrot.slane %v2711_v8, %v14481_v38 }
 0x545   :  { %v2785_v20 = vadd.f32 %v2781_v12, %v2756_v13  ;;  %v9683_v51 = vmul.f32 -1.442695, %v2784_v2  ;;  %v16978_v13 = vld [vmem:[#allocation23_spill] sm:$0xff] }
 0x546   :  { %13444 = vpow2.f32 %v9681_v7  ;;  %v9682_v0 = vmul.f32 -1.442695, %v2740_v44  ;;  %v2806_v7 = vcombine.high %v2805_v26, %v2805_v26 }
 0x547   :  { %v9684_v1 = vmul.f32 -1.442695, %v2785_v20  ;;  %v2813_v20 = vrot.slane %v2805_v26, %v14481_v38 }
 0x548   :  { %13446 = vpow2.f32 %v9682_v0  ;;  %v2820_v8 = vrot.slane %v2806_v7, %v14481_v38 }
 0x549   :  { %13448 = vpow2.f32 %v9683_v51 }
 0x54a   :  { %13450 = vpow2.f32 %v9684_v1  ;;  %v2825_v1 = vrot.slane %v9679_v53, 2 }
 0x550   :  { %v13445_v50 = vpop.eup %13444 }
 0x551   :  { %v2747_v33 = vadd.f32 1.0, %v13445_v50  ;;  %v2826_v50 = vrot.slane %v9680_v3, 2  ;;  %v15151_v3 = vld [vmem:[%s16825_s1 + $0x4b] ss:$8 sm:$0x7] }
 0x552   :  { %v13447_v31 = vpop.eup %13446 }
 0x553   :  { %v2748_v57 = vadd.f32 1.0, %v13447_v31  ;;  %13452 = vrcp.f32 %v2747_v33  ;;  %v13449_v4 = vpop.eup %13448  ;;  %v16979_v33 = vld [vmem:[#allocation24_spill] sm:$0xff] }
 0x554   :  { %v13451_v14 = vpop.eup %13450  ;;  %v2792_v28 = vadd.f32 1.0, %v13449_v4  ;;  %v15144_v4 = vld [vmem:[%s16825_s1 + $0x1b] ss:$8 sm:$0x7] }
 0x555   :  { %13454 = vrcp.f32 %v2748_v57  ;;  %v2793_v12 = vadd.f32 1.0, %v13451_v14 }
 0x556   :  { %13456 = vrcp.f32 %v2792_v28 }
 0x557   :  { %13458 = vrcp.f32 %v2793_v12 }
 0x55b   :  { %v2931_v0 = vpop.f32.mrb[18].mxu0  ;;  %v3002_v2 = vpop.f32.mrb[18].mxu1 }
 0x55c   :  { %v2932_v27 = vadd.f32 %v2931_v0, %v16978_v13  ;;  %v2933_v44 = vpop.f32.mrb[19].mxu0  ;;  %v10717_v51 = vpop.f32.mrb[19].mxu1 }
 0x55d   :  { %v13453_v22 = vpop.eup %13452  ;;  %v2934_v31 = vadd.f32 %v2933_v44, %v16979_v33 }
 0x55e   :  { %v2823_v57 = vmul.f32 %v13453_v22, %v2813_v20  ;;  %v3013_v26 = vrot.slane %v2932_v27, %v14481_v38  ;;  %v3047_v20 = vrot.slane %v15144_v4, 1 }
 0x55f   :  { %v13455_v53 = vpop.eup %13454  ;;  %v3058_v14 = vrot.slane %v2934_v31, %v14481_v38 }
 0x560   :  { %v2824_v0 = vmul.f32 %v13455_v53, %v2820_v8  ;;  %v2829_v51 = vadd.f32 %v2825_v1, %v2823_v57  ;;  %v3014_v7 = vcombine.high %v3013_v26, %v3013_v26  ;;  %v3021_v28 = vrot.slane %v3013_v26, %v14481_v38  ;;  %v13457_v41 = vpop.eup %13456 }
 0x561   :  { %v3059_v44 = vcombine.high %v3058_v14, %v3058_v14  ;;  %v3066_v22 = vrot.slane %v3058_v14, %v14481_v38  ;;  %v3048_v1 = vrot.slane %v15151_v3, 1 }
 0x562   :  { %v2830_v27 = vadd.f32 %v2826_v50, %v2824_v0  ;;  %13460 = vtanh.f32 %v2829_v51  ;;  %v3028_v12 = vrot.slane %v3014_v7, %v14481_v38  ;;  %v3031_v31 = vadd.f32 %v15144_v4, %v3021_v28  ;;  %v13459_v50 = vpop.eup %13458 }
 0x563   :  { %v3073_v8 = vrot.slane %v3059_v44, %v14481_v38  ;;  %v3076_v26 = vadd.f32 %v3066_v22, %v3047_v20  ;;  %v2833_v51 = vsub.f32 1.0, %v13457_v41  ;;  %v2834_v28 = vsub.f32 1.0, %v13459_v50 }
 0x564   :  { %13462 = vtanh.f32 %v2830_v27  ;;  %v3032_v57 = vadd.f32 %v15151_v3, %v3028_v12  ;;  %v9687_v53 = vmul.f32 -1.442695, %v3031_v31  ;;  %v2837_v44 = vmul.f32 %v13457_v41, %v15011_v47 }
 0x565   :  { %v3077_v13 = vadd.f32 %v3073_v8, %v3048_v1  ;;  %v9689_v14 = vmul.f32 -1.442695, %v3076_v26  ;;  %v2838_v20 = vmul.f32 %v13459_v50, %v15013_v42  ;;  %v3003_v8 = vadd.f32 %v3002_v2, %v14551_v43 }
 0x566   :  { %13464 = vpow2.f32 %v9687_v53  ;;  %v9688_v33 = vmul.f32 -1.442695, %v3032_v57 }
 0x567   :  { %v9690_v0 = vmul.f32 -1.442695, %v3077_v13  ;;  %v3097_v41 = vrot.slane %v3003_v8, %v14481_v38 }
 0x568   :  { %13466 = vpow2.f32 %v9688_v33 }
 0x569   :  { %13468 = vpow2.f32 %v9689_v14  ;;  %v3098_v2 = vcombine.high %v3097_v41, %v3097_v41  ;;  %v3105_v14 = vrot.slane %v3097_v41, %v14481_v38 }
 0x56a   :  { %13470 = vpow2.f32 %v9690_v0  ;;  %v3117_v0 = vrot.slane %v15144_v4, 2 }
 0x56c   :  { %v13461_v7 = vpop.eup %13460 }
 0x56d   :  { %v2835_v55 = vmul.f32 %v13461_v7, %v2833_v51 }
 0x56e   :  { %v13463_v27 = vpop.eup %13462 }
 0x56f   :  { %v2836_v12 = vmul.f32 %v13463_v27, %v2834_v28  ;;  %v15163_v22 = vadd.f32 %v2837_v44, %v2835_v55  ;;  %v3112_v28 = vrot.slane %v3098_v2, %v14481_v38  ;;  %v3118_v27 = vrot.slane %v15151_v3, 2 }
 0x570   :  { %v13465_v31 = vpop.eup %13464 }
 0x571   :  { %v3039_v1 = vadd.f32 1.0, %v13465_v31  ;;  %v15165_v33 = vadd.f32 %v2838_v20, %v2836_v12  ;;  %2841 = vst [vmem:[%s16826_s6 + $0x4] sm:$0x1] %v15163_v22 }
 0x572   :  { %v13467_v13 = vpop.eup %13466 }
 0x573   :  { %v3040_v47 = vadd.f32 1.0, %v13467_v13  ;;  %13472 = vrcp.f32 %v3039_v1  ;;  %2842 = vst [vmem:[%s16826_s6 + $0x14] sm:$0x1] %v15165_v33  ;;  %v3141_v42 = vcombine.low %v15163_v22, %v15165_v33  ;;  %v13469_v57 = vpop.eup %13468 }
 0x574   :  { %v13471_v26 = vpop.eup %13470  ;;  %v3084_v50 = vadd.f32 1.0, %v13469_v57 }
 0x575   :  { %13474 = vrcp.f32 %v3040_v47  ;;  %v3148_v55 = vrot.slane %v3141_v42, %v14481_v38  ;;  %v3085_v51 = vadd.f32 1.0, %v13471_v26 }
 0x576   :  { %13476 = vrcp.f32 %v3084_v50 }
 0x577   :  { %v3155_v53 = vrot.slane %v3148_v55, %v14481_v38  ;;  %13478 = vrcp.f32 %v3085_v51  ;;  %v16982_v51 = vld [vmem:[#allocation11_spill] sm:$0xff] }
 0x579   :  { %3222 = vmatmul.mubr.f32.vlgmr.msra.gmra.mrb[20].mxu0 %v3155_v53  ;;  %10751 = vmatmul.mubr.f32.vlgmr.msra.gmra.mrb[20].mxu1 %v3155_v53 }
 0x57a   :  { %12107 = vmatpush1.bf16.msra.mxu0 %v14204_v23  ;;  %12138 = vmatpush3.bf16.msra.mxu1 %v14277_v56 }
 0x57b   :  { %12109 = vmatprep.subr.bf16.mxu0 %v14207_v24  ;;  %12139 = vmatprep.subr.bf16.mxu1 %v16897_v60 }
 0x57c   :  { %3513 = vmatprep.mubr.f32.mxu0 %v16898_v59  ;;  %10785 = vmatprep.mubr.msk.f32.mxu1 %vm13926_vm0, %v16898_v59 }
 0x57d   :  { %v13473_v7 = vpop.eup %13472 }
 0x57e   :  { %v3115_v44 = vmul.f32 %v13473_v7, %v3105_v14  ;;  %12111 = vmatpush1.bf16.msra.mxu0 %v14233_v35  ;;  %12141 = vmatpush3.bf16.msra.mxu1 %v14306_v11  ;;  %v16980_v14 = vld [vmem:[#allocation4_spill] sm:$0xff]  ;;  %v16983_v7 = vld [vmem:[#allocation6_spill] sm:$0xff] }
 0x57f   :  { %v13475_v12 = vpop.eup %13474  ;;  %12113 = vmatprep.subr.bf16.mxu0 %v14237_v36  ;;  %12142 = vmatprep.subr.bf16.mxu1 %v16897_v60 }
 0x580   :  { %v3116_v4 = vmul.f32 %v13475_v12, %v3112_v28  ;;  %v3121_v20 = vadd.f32 %v3117_v0, %v3115_v44  ;;  %v13477_v3 = vpop.eup %13476  ;;  %v16981_v0 = vld [vmem:[#allocation5_spill] sm:$0xff]  ;;  %v16984_v28 = vld [vmem:[#allocation7_spill] sm:$0xff]  ;;  %v16985_v44 = vld [vmem:[#allocation14_spill] sm:$0xff] }
 0x581   :  { %v13479_v1 = vpop.eup %13478  ;;  %v3125_v13 = vsub.f32 1.0, %v13477_v3  ;;  %v3129_v55 = vmul.f32 %v13477_v3, %v15062_v54  ;;  %v16987_v12 = vld [vmem:[#allocation9_spill] sm:$0xff]  ;;  %v16991_v3 = vld [vmem:[#allocation18_spill] sm:$0xff] }
 0x582   :  { %v3122_v31 = vadd.f32 %v3118_v27, %v3116_v4  ;;  %13480 = vtanh.f32 %v3121_v20  ;;  %12115 = vmatpush1.bf16.msra.mxu0 %v14262_v48  ;;  %12144 = vmatpush3.bf16.msra.mxu1 %v14336_v30  ;;  %v3126_v47 = vsub.f32 1.0, %v13479_v1  ;;  %v3130_v53 = vmul.f32 %v13479_v1, %v15064_v32  ;;  %v16986_v27 = vld [vmem:[#allocation8_spill] sm:$0xff]  ;;  %v16988_v4 = vld [vmem:[#allocation17_spill] sm:$0xff]  ;;  %v16989_v20 = vld [vmem:[#allocation10_spill] sm:$0xff] }
 0x583   :  { %12117 = vmatprep.subr.bf16.mxu0 %v14265_v49  ;;  %12145 = vmatprep.subr.bf16.mxu1 %v16897_v60  ;;  %v16992_v1 = vld [vmem:[#allocation13_spill] sm:$0xff] }
 0x584   :  { %13482 = vtanh.f32 %v3122_v31  ;;  %v16990_v31 = vld [vmem:[#allocation12_spill] sm:$0xff] }
 0x586   :  { %12119 = vmatpush1.bf16.msra.mxu0 %v14290_v62  ;;  %12147 = vmatpush3.bf16.msra.mxu1 %v14364_v52 }
 0x587   :  { %12121 = vmatprep.subr.bf16.mxu0 %v14294_v63  ;;  %12148 = vmatprep.subr.bf16.mxu1 %v16897_v60 }
 0x58a   :  { %12123 = vmatpush1.bf16.msra.mxu0 %v14321_v18  ;;  %12150 = vmatpush3.bf16.msra.mxu1 %v14389_v6 }
 0x58b   :  { %12125 = vmatprep.subr.bf16.mxu0 %v14324_v19  ;;  %12151 = vmatprep.subr.bf16.mxu1 %v16897_v60 }
 0x58c   :  { %v13481_v8 = vpop.eup %13480 }
 0x58d   :  { %v3127_v42 = vmul.f32 %v13481_v8, %v3125_v13  ;;  %v16993_v13 = vld [vmem:[#allocation15_spill] sm:$0xff] }
 0x58e   :  { %v13483_v41 = vpop.eup %13482  ;;  %12127 = vmatpush1.bf16.msra.mxu0 %v14349_v39  ;;  %12153 = vmatpush3.bf16.msra.mxu1 %v14403_v25  ;;  %v16994_v8 = vld [vmem:[#allocation19_spill] sm:$0xff] }
 0x58f   :  { %12129 = vmatprep.subr.bf16.mxu0 %v14352_v40  ;;  %12154 = vmatprep.subr.bf16.mxu1 %v16897_v60  ;;  %v3128_v57 = vmul.f32 %v13483_v41, %v3126_v47  ;;  %v15214_v26 = vadd.f32 %v3129_v55, %v3127_v42  ;;  %v16995_v47 = vld [vmem:[#allocation16_spill] sm:$0xff] }
 0x590   :  { %v16996_v41 = vld [vmem:[#allocation20_spill] sm:$0xff] }
 0x591   :  { %v15216_v2 = vadd.f32 %v3130_v53, %v3128_v57  ;;  %3133 = vst [vmem:[%s16827_s7 + $0xb] sm:$0x1] %v15214_v26 }
 0x592   :  { %12131 = vmatpush1.bf16.msra.mxu0 %v14377_v58  ;;  %12156 = vmatpush3.bf16.msra.mxu1 %v14416_v34 }
 0x593   :  { %12133 = vmatprep.subr.bf16.mxu0 %v14380_v61  ;;  %12157 = vmatprep.subr.bf16.mxu1 %v16897_v60  ;;  %3134 = vst [vmem:[%s16827_s7 + $0x1b] sm:$0x1] %v15216_v2  ;;  %v3433_v54 = vcombine.low %v15214_v26, %v15216_v2 }
 0x595   :  { %v3440_v32 = vrot.slane %v3433_v54, %v14481_v38 }
 0x596   :  { %12135 = vmatpush1.bf16.msra.mxu0 %v14399_v17  ;;  %12159 = vmatpush3.bf16.msra.mxu1 %v14430_v45 }
 0x597   :  { %v3447_v50 = vrot.slane %v3440_v32, %v14481_v38  ;;  %12161 = vmatprep.subr.bf16.mxu0 %v13981_v5  ;;  %12192 = vmatprep.subr.bf16.mxu1 %v16897_v60  ;;  %v16997_v32 = vld [vmem:[#allocation21_spill] sm:$0xff] }
 0x599   :  { %3514 = vmatmul.mubr.f32.vlgmr.msra.gmra.mrb[22].mxu0 %v3447_v50  ;;  %10786 = vmatmul.mubr.f32.vlgmr.msra.gmra.mrb[22].mxu1 %v3447_v50 }
 0x59a   :  { %12163 = vmatpush1.bf16.msra.mxu0 %v13994_v9  ;;  %12194 = vmatpush3.bf16.msra.mxu1 %v14053_v29 }
 0x59b   :  { %12165 = vmatprep.subr.bf16.mxu0 %v13996_v10  ;;  %12195 = vmatprep.subr.bf16.mxu1 %v16897_v60 }
 0x59c   :  { %3805 = vmatprep.mubr.f32.mxu0 %v16898_v59  ;;  %10820 = vmatprep.mubr.msk.f32.mxu1 %vm13926_vm0, %v16898_v59 }
 0x59e   :  { %12167 = vmatpush1.bf16.msra.mxu0 %v14012_v15  ;;  %12197 = vmatpush3.bf16.msra.mxu1 %v14077_v37 }
 0x59f   :  { %12169 = vmatprep.subr.bf16.mxu0 %v14015_v16  ;;  %12198 = vmatprep.subr.bf16.mxu1 %v16897_v60 }
 0x5a2   :  { %12171 = vmatpush1.bf16.msra.mxu0 %v14030_v21  ;;  %12200 = vmatpush3.bf16.msra.mxu1 %v14105_v46 }
 0x5a3   :  { %12173 = vmatprep.subr.bf16.mxu0 %v16980_v14  ;;  %12201 = vmatprep.subr.bf16.mxu1 %v16897_v60 }
 0x5a6   :  { %12175 = vmatpush1.bf16.msra.mxu0 %v16981_v0  ;;  %12203 = vmatpush3.bf16.msra.mxu1 %v16982_v51  ;;  %v16998_v0 = vld [vmem:[#allocation22_spill] sm:$0xff] }
 0x5a7   :  { %12177 = vmatprep.subr.bf16.mxu0 %v16983_v7  ;;  %12204 = vmatprep.subr.bf16.mxu1 %v16897_v60 }
 0x5aa   :  { %12179 = vmatpush1.bf16.msra.mxu0 %v16984_v28  ;;  %12206 = vmatpush3.bf16.msra.mxu1 %v16985_v44 }
 0x5ab   :  { %12181 = vmatprep.subr.bf16.mxu0 %v16986_v27  ;;  %12207 = vmatprep.subr.bf16.mxu1 %v16897_v60 }
 0x5ae   :  { %12183 = vmatpush1.bf16.msra.mxu0 %v16987_v12  ;;  %12209 = vmatpush3.bf16.msra.mxu1 %v16988_v4 }
 0x5af   :  { %12185 = vmatprep.subr.bf16.mxu0 %v16989_v20  ;;  %12210 = vmatprep.subr.bf16.mxu1 %v16897_v60 }
 0x5b2   :  { %12187 = vmatpush1.bf16.msra.mxu0 %v16990_v31  ;;  %12212 = vmatpush3.bf16.msra.mxu1 %v16991_v3 }
 0x5b3   :  { %12189 = vmatprep.subr.bf16.mxu0 %v16992_v1  ;;  %12213 = vmatprep.subr.bf16.mxu1 %v16897_v60  ;;  %v9691_v1 = vld [vmem:[%s16823_s0 + $0x5] ss:$8 sm:$0x7] }
 0x5b6   :  { %12191 = vmatpush1.bf16.msra.mxu0 %v16993_v13  ;;  %12215 = vmatpush3.bf16.msra.mxu1 %v16994_v8 }
 0x5b7   :  { %12217 = vmatprep.subr.bf16.mxu0 %v16995_v47  ;;  %12248 = vmatprep.subr.bf16.mxu1 %v16897_v60  ;;  %v9692_v47 = vld [vmem:[%s16823_s0 + $0x35] ss:$8 sm:$0x7] }
 0x5b8   :  { %v3340_v20 = vrot.slane %v9692_v47, 1 }
 0x64c   :  { %v3223_v42 = vpop.f32.mrb[20].mxu0  ;;  %v3294_v55 = vpop.f32.mrb[20].mxu1 }
 0x64d   :  { %v3224_v57 = vadd.f32 %v3223_v42, %v16996_v41  ;;  %v3225_v53 = vpop.f32.mrb[21].mxu0  ;;  %v10752_v54 = vpop.f32.mrb[21].mxu1  ;;  %v3339_v42 = vrot.slane %v9691_v1, 1 }
 0x64e   :  { %v3226_v50 = vadd.f32 %v3225_v53, %v16997_v32 }
 0x64f   :  { %v3305_v13 = vrot.slane %v3224_v57, %v14481_v38 }
 0x650   :  { %v3350_v8 = vrot.slane %v3226_v50, %v14481_v38 }
 0x651   :  { %v3306_v3 = vcombine.high %v3305_v13, %v3305_v13  ;;  %v3313_v31 = vrot.slane %v3305_v13, %v14481_v38 }
 0x652   :  { %v3351_v41 = vcombine.high %v3350_v8, %v3350_v8  ;;  %v3358_v54 = vrot.slane %v3350_v8, %v14481_v38 }
 0x653   :  { %v3320_v53 = vrot.slane %v3306_v3, %v14481_v38  ;;  %v3323_v32 = vadd.f32 %v9691_v1, %v3313_v31  ;;  %v3295_v3 = vadd.f32 %v3294_v55, %v16998_v0 }
 0x654   :  { %v3365_v4 = vrot.slane %v3351_v41, %v14481_v38  ;;  %v3368_v27 = vadd.f32 %v3358_v54, %v3339_v42 }
 0x655   :  { %v3324_v57 = vadd.f32 %v9692_v47, %v3320_v53  ;;  %v9693_v12 = vmul.f32 -1.442695, %v3323_v32  ;;  %v3389_v41 = vrot.slane %v3295_v3, %v14481_v38 }
 0x656   :  { %v3369_v28 = vadd.f32 %v3365_v4, %v3340_v20  ;;  %v9695_v50 = vmul.f32 -1.442695, %v3368_v27  ;;  %v16999_v20 = vld [vmem:[#allocation23_spill] sm:$0xff] }
 0x657   :  { %13484 = vpow2.f32 %v9693_v12  ;;  %v9694_v44 = vmul.f32 -1.442695, %v3324_v57  ;;  %v3390_v12 = vcombine.high %v3389_v41, %v3389_v41 }
 0x658   :  { %v9696_v7 = vmul.f32 -1.442695, %v3369_v28  ;;  %v3397_v28 = vrot.slane %v3389_v41, %v14481_v38 }
 0x659   :  { %13486 = vpow2.f32 %v9694_v44  ;;  %v3404_v3 = vrot.slane %v3390_v12, %v14481_v38 }
 0x65a   :  { %13488 = vpow2.f32 %v9695_v50 }
 0x65b   :  { %13490 = vpow2.f32 %v9696_v7  ;;  %v3409_v7 = vrot.slane %v9691_v1, 2 }
 0x661   :  { %v13485_v13 = vpop.eup %13484 }
 0x662   :  { %v3331_v51 = vadd.f32 1.0, %v13485_v13  ;;  %v3410_v13 = vrot.slane %v9692_v47, 2  ;;  %v15303_v47 = vld [vmem:[%s16825_s1 + $0x4a] ss:$8 sm:$0x7] }
 0x663   :  { %v13487_v8 = vpop.eup %13486 }
 0x664   :  { %v3332_v31 = vadd.f32 1.0, %v13487_v8  ;;  %13492 = vrcp.f32 %v3331_v51  ;;  %v13489_v32 = vpop.eup %13488  ;;  %v17000_v51 = vld [vmem:[#allocation24_spill] sm:$0xff] }
 0x665   :  { %v13491_v42 = vpop.eup %13490  ;;  %v3376_v54 = vadd.f32 1.0, %v13489_v32  ;;  %v15296_v32 = vld [vmem:[%s16825_s1 + $0x1a] ss:$8 sm:$0x7] }
 0x666   :  { %13494 = vrcp.f32 %v3332_v31  ;;  %v3377_v4 = vadd.f32 1.0, %v13491_v42 }
 0x667   :  { %13496 = vrcp.f32 %v3376_v54 }
 0x668   :  { %13498 = vrcp.f32 %v3377_v4 }
 0x66c   :  { %v3515_v44 = vpop.f32.mrb[22].mxu0  ;;  %v3586_v27 = vpop.f32.mrb[22].mxu1 }
 0x66d   :  { %v3516_v53 = vadd.f32 %v3515_v44, %v16999_v20  ;;  %v3517_v57 = vpop.f32.mrb[23].mxu0  ;;  %v10787_v50 = vpop.f32.mrb[23].mxu1 }
 0x66e   :  { %v13493_v55 = vpop.eup %13492  ;;  %v3518_v8 = vadd.f32 %v3517_v57, %v17000_v51 }
 0x66f   :  { %v3407_v31 = vmul.f32 %v13493_v55, %v3397_v28  ;;  %v3597_v41 = vrot.slane %v3516_v53, %v14481_v38  ;;  %v3631_v28 = vrot.slane %v15296_v32, 1 }
 0x670   :  { %v13495_v1 = vpop.eup %13494  ;;  %v3642_v42 = vrot.slane %v3518_v8, %v14481_v38 }
 0x671   :  { %v3408_v44 = vmul.f32 %v13495_v1, %v3404_v3  ;;  %v3413_v50 = vadd.f32 %v3409_v7, %v3407_v31  ;;  %v3598_v12 = vcombine.high %v3597_v41, %v3597_v41  ;;  %v3605_v54 = vrot.slane %v3597_v41, %v14481_v38  ;;  %v13497_v0 = vpop.eup %13496 }
 0x672   :  { %v3643_v57 = vcombine.high %v3642_v42, %v3642_v42  ;;  %v3650_v55 = vrot.slane %v3642_v42, %v14481_v38  ;;  %v3632_v7 = vrot.slane %v15303_v47, 1 }
 0x673   :  { %v3414_v53 = vadd.f32 %v3410_v13, %v3408_v44  ;;  %13500 = vtanh.f32 %v3413_v50  ;;  %v3612_v4 = vrot.slane %v3598_v12, %v14481_v38  ;;  %v3615_v8 = vadd.f32 %v15296_v32, %v3605_v54  ;;  %v13499_v13 = vpop.eup %13498 }
 0x674   :  { %v3657_v3 = vrot.slane %v3643_v57, %v14481_v38  ;;  %v3660_v41 = vadd.f32 %v3650_v55, %v3631_v28  ;;  %v3417_v50 = vsub.f32 1.0, %v13497_v0  ;;  %v3418_v54 = vsub.f32 1.0, %v13499_v13 }
 0x675   :  { %13502 = vtanh.f32 %v3414_v53  ;;  %v3616_v31 = vadd.f32 %v15303_v47, %v3612_v4  ;;  %v9699_v1 = vmul.f32 -1.442695, %v3615_v8  ;;  %v3421_v57 = vmul.f32 %v13497_v0, %v15163_v22 }
 0x676   :  { %v3661_v20 = vadd.f32 %v3657_v3, %v3632_v7  ;;  %v9701_v42 = vmul.f32 -1.442695, %v3660_v41  ;;  %v3422_v28 = vmul.f32 %v13499_v13, %v15165_v33  ;;  %v3587_v3 = vadd.f32 %v3586_v27, %v14551_v43 }
 0x677   :  { %13504 = vpow2.f32 %v9699_v1  ;;  %v9700_v51 = vmul.f32 -1.442695, %v3616_v31 }
 0x678   :  { %v9702_v44 = vmul.f32 -1.442695, %v3661_v20  ;;  %v3681_v0 = vrot.slane %v3587_v3, %v14481_v38 }
 0x679   :  { %13506 = vpow2.f32 %v9700_v51 }
 0x67a   :  { %13508 = vpow2.f32 %v9701_v42  ;;  %v3682_v27 = vcombine.high %v3681_v0, %v3681_v0  ;;  %v3689_v42 = vrot.slane %v3681_v0, %v14481_v38 }
 0x67b   :  { %13510 = vpow2.f32 %v9702_v44  ;;  %v3701_v44 = vrot.slane %v15296_v32, 2 }
 0x67d   :  { %v13501_v12 = vpop.eup %13500 }
 0x67e   :  { %v3419_v14 = vmul.f32 %v13501_v12, %v3417_v50 }
 0x67f   :  { %v13503_v53 = vpop.eup %13502 }
 0x680   :  { %v3420_v4 = vmul.f32 %v13503_v53, %v3418_v54  ;;  %v15315_v55 = vadd.f32 %v3421_v57, %v3419_v14  ;;  %v3696_v54 = vrot.slane %v3682_v27, %v14481_v38  ;;  %v3702_v53 = vrot.slane %v15303_v47, 2 }
 0x681   :  { %v13505_v8 = vpop.eup %13504 }
 0x682   :  { %v3623_v7 = vadd.f32 1.0, %v13505_v8  ;;  %v15317_v51 = vadd.f32 %v3422_v28, %v3420_v4  ;;  %3425 = vst [vmem:[%s16826_s6 + $0x5] sm:$0x1] %v15315_v55 }
 0x683   :  { %v13507_v20 = vpop.eup %13506 }
 0x684   :  { %v3624_v22 = vadd.f32 1.0, %v13507_v20  ;;  %13512 = vrcp.f32 %v3623_v7  ;;  %3426 = vst [vmem:[%s16826_s6 + $0x15] sm:$0x1] %v15317_v51  ;;  %v3725_v33 = vcombine.low %v15315_v55, %v15317_v51  ;;  %v13509_v31 = vpop.eup %13508 }
 0x685   :  { %v13511_v41 = vpop.eup %13510  ;;  %v3668_v13 = vadd.f32 1.0, %v13509_v31 }
 0x686   :  { %13514 = vrcp.f32 %v3624_v22  ;;  %v3732_v14 = vrot.slane %v3725_v33, %v14481_v38  ;;  %v3669_v50 = vadd.f32 1.0, %v13511_v41 }
 0x687   :  { %13516 = vrcp.f32 %v3668_v13 }
 0x688   :  { %v3739_v1 = vrot.slane %v3732_v14, %v14481_v38  ;;  %13518 = vrcp.f32 %v3669_v50  ;;  %v17003_v50 = vld [vmem:[#allocation11_spill] sm:$0xff] }
 0x68a   :  { %3806 = vmatmul.mubr.f32.vlgmr.msra.gmra.mrb[24].mxu0 %v3739_v1  ;;  %10821 = vmatmul.mubr.f32.vlgmr.msra.gmra.mrb[24].mxu1 %v3739_v1 }
 0x68b   :  { %12219 = vmatpush1.bf16.msra.mxu0 %v14204_v23  ;;  %12250 = vmatpush3.bf16.msra.mxu1 %v14277_v56 }
 0x68c   :  { %12221 = vmatprep.subr.bf16.mxu0 %v14207_v24  ;;  %12251 = vmatprep.subr.bf16.mxu1 %v16897_v60 }
 0x68d   :  { %4097 = vmatprep.mubr.f32.mxu0 %v16898_v59  ;;  %10855 = vmatprep.mubr.msk.f32.mxu1 %vm13926_vm0, %v16898_v59 }
 0x68e   :  { %v13513_v12 = vpop.eup %13512 }
 0x68f   :  { %v3699_v57 = vmul.f32 %v13513_v12, %v3689_v42  ;;  %12223 = vmatpush1.bf16.msra.mxu0 %v14233_v35  ;;  %12253 = vmatpush3.bf16.msra.mxu1 %v14306_v11  ;;  %v17001_v42 = vld [vmem:[#allocation4_spill] sm:$0xff]  ;;  %v17004_v12 = vld [vmem:[#allocation6_spill] sm:$0xff] }
 0x690   :  { %v13515_v4 = vpop.eup %13514  ;;  %12225 = vmatprep.subr.bf16.mxu0 %v14237_v36  ;;  %12254 = vmatprep.subr.bf16.mxu1 %v16897_v60 }
 0x691   :  { %v3700_v32 = vmul.f32 %v13515_v4, %v3696_v54  ;;  %v3705_v28 = vadd.f32 %v3701_v44, %v3699_v57  ;;  %v13517_v47 = vpop.eup %13516  ;;  %v17002_v44 = vld [vmem:[#allocation5_spill] sm:$0xff]  ;;  %v17005_v54 = vld [vmem:[#allocation7_spill] sm:$0xff]  ;;  %v17006_v57 = vld [vmem:[#allocation14_spill] sm:$0xff] }
 0x692   :  { %v13519_v7 = vpop.eup %13518  ;;  %v3709_v20 = vsub.f32 1.0, %v13517_v47  ;;  %v3713_v14 = vmul.f32 %v13517_v47, %v15214_v26  ;;  %v17008_v4 = vld [vmem:[#allocation9_spill] sm:$0xff]  ;;  %v17012_v47 = vld [vmem:[#allocation18_spill] sm:$0xff] }
 0x693   :  { %v3706_v8 = vadd.f32 %v3702_v53, %v3700_v32  ;;  %13520 = vtanh.f32 %v3705_v28  ;;  %12227 = vmatpush1.bf16.msra.mxu0 %v14262_v48  ;;  %12256 = vmatpush3.bf16.msra.mxu1 %v14336_v30  ;;  %v3710_v22 = vsub.f32 1.0, %v13519_v7  ;;  %v3714_v1 = vmul.f32 %v13519_v7, %v15216_v2  ;;  %v17007_v53 = vld [vmem:[#allocation8_spill] sm:$0xff]  ;;  %v17009_v32 = vld [vmem:[#allocation17_spill] sm:$0xff]  ;;  %v17010_v28 = vld [vmem:[#allocation10_spill] sm:$0xff] }
 0x694   :  { %12229 = vmatprep.subr.bf16.mxu0 %v14265_v49  ;;  %12257 = vmatprep.subr.bf16.mxu1 %v16897_v60  ;;  %v17013_v7 = vld [vmem:[#allocation13_spill] sm:$0xff] }
 0x695   :  { %13522 = vtanh.f32 %v3706_v8  ;;  %v17011_v8 = vld [vmem:[#allocation12_spill] sm:$0xff] }
 0x697   :  { %12231 = vmatpush1.bf16.msra.mxu0 %v14290_v62  ;;  %12259 = vmatpush3.bf16.msra.mxu1 %v14364_v52 }
 0x698   :  { %12233 = vmatprep.subr.bf16.mxu0 %v14294_v63  ;;  %12260 = vmatprep.subr.bf16.mxu1 %v16897_v60 }
 0x69b   :  { %12235 = vmatpush1.bf16.msra.mxu0 %v14321_v18  ;;  %12262 = vmatpush3.bf16.msra.mxu1 %v14389_v6 }
 0x69c   :  { %12237 = vmatprep.subr.bf16.mxu0 %v14324_v19  ;;  %12263 = vmatprep.subr.bf16.mxu1 %v16897_v60 }
 0x69d   :  { %v13521_v3 = vpop.eup %13520 }
 0x69e   :  { %v3711_v33 = vmul.f32 %v13521_v3, %v3709_v20  ;;  %v17014_v20 = vld [vmem:[#allocation15_spill] sm:$0xff] }
 0x69f   :  { %v13523_v0 = vpop.eup %13522  ;;  %12239 = vmatpush1.bf16.msra.mxu0 %v14349_v39  ;;  %12265 = vmatpush3.bf16.msra.mxu1 %v14403_v25  ;;  %v17015_v3 = vld [vmem:[#allocation19_spill] sm:$0xff] }
 0x6a0   :  { %12241 = vmatprep.subr.bf16.mxu0 %v14352_v40  ;;  %12266 = vmatprep.subr.bf16.mxu1 %v16897_v60  ;;  %v3712_v31 = vmul.f32 %v13523_v0, %v3710_v22  ;;  %v15366_v41 = vadd.f32 %v3713_v14, %v3711_v33  ;;  %v17016_v22 = vld [vmem:[#allocation16_spill] sm:$0xff] }
 0x6a1   :  { %v17017_v0 = vld [vmem:[#allocation20_spill] sm:$0xff] }
 0x6a2   :  { %v15368_v27 = vadd.f32 %v3714_v1, %v3712_v31  ;;  %3717 = vst [vmem:[%s16827_s7 + $0xa] sm:$0x1] %v15366_v41 }
 0x6a3   :  { %12243 = vmatpush1.bf16.msra.mxu0 %v14377_v58  ;;  %12268 = vmatpush3.bf16.msra.mxu1 %v14416_v34 }
 0x6a4   :  { %12245 = vmatprep.subr.bf16.mxu0 %v14380_v61  ;;  %12269 = vmatprep.subr.bf16.mxu1 %v16897_v60  ;;  %3718 = vst [vmem:[%s16827_s7 + $0x1a] sm:$0x1] %v15368_v27  ;;  %v4017_v26 = vcombine.low %v15366_v41, %v15368_v27 }
 0x6a6   :  { %v4024_v2 = vrot.slane %v4017_v26, %v14481_v38 }
 0x6a7   :  { %12247 = vmatpush1.bf16.msra.mxu0 %v14399_v17  ;;  %12271 = vmatpush3.bf16.msra.mxu1 %v14430_v45 }
 0x6a8   :  { %v4031_v13 = vrot.slane %v4024_v2, %v14481_v38  ;;  %12273 = vmatprep.subr.bf16.mxu0 %v13981_v5  ;;  %12304 = vmatprep.subr.bf16.mxu1 %v16897_v60  ;;  %v17018_v2 = vld [vmem:[#allocation21_spill] sm:$0xff] }
 0x6aa   :  { %4098 = vmatmul.mubr.f32.vlgmr.msra.gmra.mrb[26].mxu0 %v4031_v13  ;;  %10856 = vmatmul.mubr.f32.vlgmr.msra.gmra.mrb[26].mxu1 %v4031_v13 }
 0x6ab   :  { %12275 = vmatpush1.bf16.msra.mxu0 %v13994_v9  ;;  %12306 = vmatpush3.bf16.msra.mxu1 %v14053_v29 }
 0x6ac   :  { %12277 = vmatprep.subr.bf16.mxu0 %v13996_v10  ;;  %12307 = vmatprep.subr.bf16.mxu1 %v16897_v60 }
 0x6ad   :  { %4389 = vmatprep.mubr.f32.mxu0 %v16898_v59  ;;  %10890 = vmatprep.mubr.msk.f32.mxu1 %vm13926_vm0, %v16898_v59 }
 0x6af   :  { %12279 = vmatpush1.bf16.msra.mxu0 %v14012_v15  ;;  %12309 = vmatpush3.bf16.msra.mxu1 %v14077_v37 }
 0x6b0   :  { %12281 = vmatprep.subr.bf16.mxu0 %v14015_v16  ;;  %12310 = vmatprep.subr.bf16.mxu1 %v16897_v60 }
 0x6b3   :  { %12283 = vmatpush1.bf16.msra.mxu0 %v14030_v21  ;;  %12312 = vmatpush3.bf16.msra.mxu1 %v14105_v46 }
 0x6b4   :  { %12285 = vmatprep.subr.bf16.mxu0 %v17001_v42  ;;  %12313 = vmatprep.subr.bf16.mxu1 %v16897_v60 }
 0x6b7   :  { %12287 = vmatpush1.bf16.msra.mxu0 %v17002_v44  ;;  %12315 = vmatpush3.bf16.msra.mxu1 %v17003_v50  ;;  %v17019_v44 = vld [vmem:[#allocation22_spill] sm:$0xff] }
 0x6b8   :  { %12289 = vmatprep.subr.bf16.mxu0 %v17004_v12  ;;  %12316 = vmatprep.subr.bf16.mxu1 %v16897_v60 }
 0x6bb   :  { %12291 = vmatpush1.bf16.msra.mxu0 %v17005_v54  ;;  %12318 = vmatpush3.bf16.msra.mxu1 %v17006_v57 }
 0x6bc   :  { %12293 = vmatprep.subr.bf16.mxu0 %v17007_v53  ;;  %12319 = vmatprep.subr.bf16.mxu1 %v16897_v60 }
 0x6bf   :  { %12295 = vmatpush1.bf16.msra.mxu0 %v17008_v4  ;;  %12321 = vmatpush3.bf16.msra.mxu1 %v17009_v32 }
 0x6c0   :  { %12297 = vmatprep.subr.bf16.mxu0 %v17010_v28  ;;  %12322 = vmatprep.subr.bf16.mxu1 %v16897_v60 }
 0x6c3   :  { %12299 = vmatpush1.bf16.msra.mxu0 %v17011_v8  ;;  %12324 = vmatpush3.bf16.msra.mxu1 %v17012_v47 }
 0x6c4   :  { %12301 = vmatprep.subr.bf16.mxu0 %v17013_v7  ;;  %12325 = vmatprep.subr.bf16.mxu1 %v16897_v60  ;;  %v9703_v7 = vld [vmem:[%s16823_s0 + $0x6] ss:$8 sm:$0x7] }
 0x6c7   :  { %12303 = vmatpush1.bf16.msra.mxu0 %v17014_v20  ;;  %12327 = vmatpush3.bf16.msra.mxu1 %v17015_v3 }
 0x6c8   :  { %12329 = vmatprep.subr.bf16.mxu0 %v17016_v22  ;;  %12360 = vmatprep.subr.bf16.mxu1 %v16897_v60  ;;  %v9704_v22 = vld [vmem:[%s16823_s0 + $0x36] ss:$8 sm:$0x7] }
 0x6c9   :  { %v3924_v28 = vrot.slane %v9704_v22, 1 }
 0x75d   :  { %v3807_v33 = vpop.f32.mrb[24].mxu0  ;;  %v3878_v14 = vpop.f32.mrb[24].mxu1 }
 0x75e   :  { %v3808_v31 = vadd.f32 %v3807_v33, %v17017_v0  ;;  %v3809_v1 = vpop.f32.mrb[25].mxu0  ;;  %v10822_v26 = vpop.f32.mrb[25].mxu1  ;;  %v3923_v33 = vrot.slane %v9703_v7, 1 }
 0x75f   :  { %v3810_v13 = vadd.f32 %v3809_v1, %v17018_v2 }
 0x760   :  { %v3889_v20 = vrot.slane %v3808_v31, %v14481_v38 }
 0x761   :  { %v3934_v3 = vrot.slane %v3810_v13, %v14481_v38 }
 0x762   :  { %v3890_v47 = vcombine.high %v3889_v20, %v3889_v20  ;;  %v3897_v8 = vrot.slane %v3889_v20, %v14481_v38 }
 0x763   :  { %v3935_v0 = vcombine.high %v3934_v3, %v3934_v3  ;;  %v3942_v26 = vrot.slane %v3934_v3, %v14481_v38 }
 0x764   :  { %v3904_v1 = vrot.slane %v3890_v47, %v14481_v38  ;;  %v3907_v2 = vadd.f32 %v9703_v7, %v3897_v8  ;;  %v3879_v47 = vadd.f32 %v3878_v14, %v17019_v44 }
 0x765   :  { %v3949_v32 = vrot.slane %v3935_v0, %v14481_v38  ;;  %v3952_v53 = vadd.f32 %v3942_v26, %v3923_v33 }
 0x766   :  { %v3908_v31 = vadd.f32 %v9704_v22, %v3904_v1  ;;  %v9705_v4 = vmul.f32 -1.442695, %v3907_v2  ;;  %v3973_v0 = vrot.slane %v3879_v47, %v14481_v38 }
 0x767   :  { %v3953_v54 = vadd.f32 %v3949_v32, %v3924_v28  ;;  %v9707_v13 = vmul.f32 -1.442695, %v3952_v53  ;;  %v17020_v28 = vld [vmem:[#allocation23_spill] sm:$0xff] }
 0x768   :  { %13524 = vpow2.f32 %v9705_v4  ;;  %v9706_v57 = vmul.f32 -1.442695, %v3908_v31  ;;  %v3974_v4 = vcombine.high %v3973_v0, %v3973_v0 }
 0x769   :  { %v9708_v12 = vmul.f32 -1.442695, %v3953_v54  ;;  %v3981_v54 = vrot.slane %v3973_v0, %v14481_v38 }
 0x76a   :  { %13526 = vpow2.f32 %v9706_v57  ;;  %v3988_v47 = vrot.slane %v3974_v4, %v14481_v38 }
 0x76b   :  { %13528 = vpow2.f32 %v9707_v13 }
 0x76c   :  { %13530 = vpow2.f32 %v9708_v12  ;;  %v3993_v12 = vrot.slane %v9703_v7, 2 }
 0x772   :  { %v13525_v20 = vpop.eup %13524 }
 0x773   :  { %v3915_v50 = vadd.f32 1.0, %v13525_v20  ;;  %v3994_v20 = vrot.slane %v9704_v22, 2  ;;  %v15455_v22 = vld [vmem:[%s16825_s1 + $0x49] ss:$8 sm:$0x7] }
 0x774   :  { %v13527_v3 = vpop.eup %13526 }
 0x775   :  { %v3916_v8 = vadd.f32 1.0, %v13527_v3  ;;  %13532 = vrcp.f32 %v3915_v50  ;;  %v13529_v2 = vpop.eup %13528  ;;  %v17021_v50 = vld [vmem:[#allocation24_spill] sm:$0xff] }
 0x776   :  { %v13531_v33 = vpop.eup %13530  ;;  %v3960_v26 = vadd.f32 1.0, %v13529_v2  ;;  %v15448_v2 = vld [vmem:[%s16825_s1 + $0x19] ss:$8 sm:$0x7] }
 0x777   :  { %13534 = vrcp.f32 %v3916_v8  ;;  %v3961_v32 = vadd.f32 1.0, %v13531_v33 }
 0x778   :  { %13536 = vrcp.f32 %v3960_v26 }
 0x779   :  { %13538 = vrcp.f32 %v3961_v32 }
 0x77d   :  { %v4099_v57 = vpop.f32.mrb[26].mxu0  ;;  %v4170_v53 = vpop.f32.mrb[26].mxu1 }
 0x77e   :  { %v4100_v1 = vadd.f32 %v4099_v57, %v17020_v28  ;;  %v4101_v31 = vpop.f32.mrb[27].mxu0  ;;  %v10857_v13 = vpop.f32.mrb[27].mxu1 }
 0x77f   :  { %v13533_v14 = vpop.eup %13532  ;;  %v4102_v3 = vadd.f32 %v4101_v31, %v17021_v50 }
 0x780   :  { %v3991_v8 = vmul.f32 %v13533_v14, %v3981_v54  ;;  %v4181_v0 = vrot.slane %v4100_v1, %v14481_v38  ;;  %v4215_v54 = vrot.slane %v15448_v2, 1 }
 0x781   :  { %v13535_v7 = vpop.eup %13534  ;;  %v4226_v33 = vrot.slane %v4102_v3, %v14481_v38 }
 0x782   :  { %v3992_v57 = vmul.f32 %v13535_v7, %v3988_v47  ;;  %v3997_v13 = vadd.f32 %v3993_v12, %v3991_v8  ;;  %v4182_v4 = vcombine.high %v4181_v0, %v4181_v0  ;;  %v4189_v26 = vrot.slane %v4181_v0, %v14481_v38  ;;  %v13537_v44 = vpop.eup %13536 }
 0x783   :  { %v4227_v31 = vcombine.high %v4226_v33, %v4226_v33  ;;  %v4234_v14 = vrot.slane %v4226_v33, %v14481_v38  ;;  %v4216_v12 = vrot.slane %v15455_v22, 1 }
 0x784   :  { %v3998_v1 = vadd.f32 %v3994_v20, %v3992_v57  ;;  %13540 = vtanh.f32 %v3997_v13  ;;  %v4196_v32 = vrot.slane %v4182_v4, %v14481_v38  ;;  %v4199_v3 = vadd.f32 %v15448_v2, %v4189_v26  ;;  %v13539_v20 = vpop.eup %13538 }
 0x785   :  { %v4241_v47 = vrot.slane %v4227_v31, %v14481_v38  ;;  %v4244_v0 = vadd.f32 %v4234_v14, %v4215_v54  ;;  %v4001_v13 = vsub.f32 1.0, %v13537_v44  ;;  %v4002_v26 = vsub.f32 1.0, %v13539_v20 }
 0x786   :  { %13542 = vtanh.f32 %v3998_v1  ;;  %v4200_v8 = vadd.f32 %v15455_v22, %v4196_v32  ;;  %v9711_v7 = vmul.f32 -1.442695, %v4199_v3  ;;  %v4005_v31 = vmul.f32 %v13537_v44, %v15315_v55 }
 0x787   :  { %v4245_v28 = vadd.f32 %v4241_v47, %v4216_v12  ;;  %v9713_v33 = vmul.f32 -1.442695, %v4244_v0  ;;  %v4006_v54 = vmul.f32 %v13539_v20, %v15317_v51  ;;  %v4171_v47 = vadd.f32 %v4170_v53, %v14551_v43 }
 0x788   :  { %13544 = vpow2.f32 %v9711_v7  ;;  %v9712_v50 = vmul.f32 -1.442695, %v4200_v8 }
 0x789   :  { %v9714_v57 = vmul.f32 -1.442695, %v4245_v28  ;;  %v4265_v44 = vrot.slane %v4171_v47, %v14481_v38 }
 0x78a   :  { %13546 = vpow2.f32 %v9712_v50 }
 0x78b   :  { %13548 = vpow2.f32 %v9713_v33  ;;  %v4266_v53 = vcombine.high %v4265_v44, %v4265_v44  ;;  %v4273_v33 = vrot.slane %v4265_v44, %v14481_v38 }
 0x78c   :  { %13550 = vpow2.f32 %v9714_v57  ;;  %v4285_v57 = vrot.slane %v15448_v2, 2 }
 0x78e   :  { %v13541_v4 = vpop.eup %13540 }
 0x78f   :  { %v4003_v42 = vmul.f32 %v13541_v4, %v4001_v13 }
 0x790   :  { %v13543_v1 = vpop.eup %13542 }
 0x791   :  { %v4004_v32 = vmul.f32 %v13543_v1, %v4002_v26  ;;  %v15467_v14 = vadd.f32 %v4005_v31, %v4003_v42  ;;  %v4280_v26 = vrot.slane %v4266_v53, %v14481_v38  ;;  %v4286_v1 = vrot.slane %v15455_v22, 2 }
 0x792   :  { %v13545_v3 = vpop.eup %13544 }
 0x793   :  { %v4207_v12 = vadd.f32 1.0, %v13545_v3  ;;  %v15469_v50 = vadd.f32 %v4006_v54, %v4004_v32  ;;  %4009 = vst [vmem:[%s16826_s6 + $0x6] sm:$0x1] %v15467_v14 }
 0x794   :  { %v13547_v28 = vpop.eup %13546 }
 0x795   :  { %v4208_v55 = vadd.f32 1.0, %v13547_v28  ;;  %13552 = vrcp.f32 %v4207_v12  ;;  %4010 = vst [vmem:[%s16826_s6 + $0x16] sm:$0x1] %v15469_v50  ;;  %v4309_v51 = vcombine.low %v15467_v14, %v15469_v50  ;;  %v13549_v8 = vpop.eup %13548 }
 0x796   :  { %v13551_v0 = vpop.eup %13550  ;;  %v4252_v20 = vadd.f32 1.0, %v13549_v8 }
 0x797   :  { %13554 = vrcp.f32 %v4208_v55  ;;  %v4316_v42 = vrot.slane %v4309_v51, %v14481_v38  ;;  %v4253_v13 = vadd.f32 1.0, %v13551_v0 }
 0x798   :  { %13556 = vrcp.f32 %v4252_v20 }
 0x799   :  { %v4323_v7 = vrot.slane %v4316_v42, %v14481_v38  ;;  %13558 = vrcp.f32 %v4253_v13  ;;  %v17024_v13 = vld [vmem:[#allocation11_spill] sm:$0xff] }
 0x79b   :  { %4390 = vmatmul.mubr.f32.vlgmr.msra.gmra.mrb[28].mxu0 %v4323_v7  ;;  %10891 = vmatmul.mubr.f32.vlgmr.msra.gmra.mrb[28].mxu1 %v4323_v7 }
 0x79c   :  { %12331 = vmatpush1.bf16.msra.mxu0 %v14204_v23  ;;  %12362 = vmatpush3.bf16.msra.mxu1 %v14277_v56 }
 0x79d   :  { %12333 = vmatprep.subr.bf16.mxu0 %v14207_v24  ;;  %12363 = vmatprep.subr.bf16.mxu1 %v16897_v60 }
 0x79e   :  { %4681 = vmatprep.mubr.f32.mxu0 %v16898_v59  ;;  %10925 = vmatprep.mubr.msk.f32.mxu1 %vm13926_vm0, %v16898_v59 }
 0x79f   :  { %v13553_v4 = vpop.eup %13552 }
 0x7a0   :  { %v4283_v31 = vmul.f32 %v13553_v4, %v4273_v33  ;;  %12335 = vmatpush1.bf16.msra.mxu0 %v14233_v35  ;;  %12365 = vmatpush3.bf16.msra.mxu1 %v14306_v11  ;;  %v17022_v33 = vld [vmem:[#allocation4_spill] sm:$0xff]  ;;  %v17025_v4 = vld [vmem:[#allocation6_spill] sm:$0xff] }
 0x7a1   :  { %v13555_v32 = vpop.eup %13554  ;;  %12337 = vmatprep.subr.bf16.mxu0 %v14237_v36  ;;  %12366 = vmatprep.subr.bf16.mxu1 %v16897_v60 }
 0x7a2   :  { %v4284_v2 = vmul.f32 %v13555_v32, %v4280_v26  ;;  %v4289_v54 = vadd.f32 %v4285_v57, %v4283_v31  ;;  %v13557_v22 = vpop.eup %13556  ;;  %v17023_v57 = vld [vmem:[#allocation5_spill] sm:$0xff]  ;;  %v17026_v26 = vld [vmem:[#allocation7_spill] sm:$0xff]  ;;  %v17027_v31 = vld [vmem:[#allocation14_spill] sm:$0xff] }
 0x7a3   :  { %v13559_v12 = vpop.eup %13558  ;;  %v4293_v28 = vsub.f32 1.0, %v13557_v22  ;;  %v4297_v42 = vmul.f32 %v13557_v22, %v15366_v41  ;;  %v17029_v32 = vld [vmem:[#allocation9_spill] sm:$0xff]  ;;  %v17033_v22 = vld [vmem:[#allocation18_spill] sm:$0xff] }
 0x7a4   :  { %v4290_v3 = vadd.f32 %v4286_v1, %v4284_v2  ;;  %13560 = vtanh.f32 %v4289_v54  ;;  %12339 = vmatpush1.bf16.msra.mxu0 %v14262_v48  ;;  %12368 = vmatpush3.bf16.msra.mxu1 %v14336_v30  ;;  %v4294_v55 = vsub.f32 1.0, %v13559_v12  ;;  %v4298_v7 = vmul.f32 %v13559_v12, %v15368_v27  ;;  %v17028_v1 = vld [vmem:[#allocation8_spill] sm:$0xff]  ;;  %v17030_v2 = vld [vmem:[#allocation17_spill] sm:$0xff]  ;;  %v17031_v54 = vld [vmem:[#allocation10_spill] sm:$0xff] }
 0x7a5   :  { %12341 = vmatprep.subr.bf16.mxu0 %v14265_v49  ;;  %12369 = vmatprep.subr.bf16.mxu1 %v16897_v60  ;;  %v17034_v12 = vld [vmem:[#allocation13_spill] sm:$0xff] }
 0x7a6   :  { %13562 = vtanh.f32 %v4290_v3  ;;  %v17032_v3 = vld [vmem:[#allocation12_spill] sm:$0xff] }
 0x7a8   :  { %12343 = vmatpush1.bf16.msra.mxu0 %v14290_v62  ;;  %12371 = vmatpush3.bf16.msra.mxu1 %v14364_v52 }
 0x7a9   :  { %12345 = vmatprep.subr.bf16.mxu0 %v14294_v63  ;;  %12372 = vmatprep.subr.bf16.mxu1 %v16897_v60 }
 0x7ac   :  { %12347 = vmatpush1.bf16.msra.mxu0 %v14321_v18  ;;  %12374 = vmatpush3.bf16.msra.mxu1 %v14389_v6 }
 0x7ad   :  { %12349 = vmatprep.subr.bf16.mxu0 %v14324_v19  ;;  %12375 = vmatprep.subr.bf16.mxu1 %v16897_v60 }
 0x7ae   :  { %v13561_v47 = vpop.eup %13560 }
 0x7af   :  { %v4295_v51 = vmul.f32 %v13561_v47, %v4293_v28  ;;  %v17035_v28 = vld [vmem:[#allocation15_spill] sm:$0xff] }
 0x7b0   :  { %v13563_v44 = vpop.eup %13562  ;;  %12351 = vmatpush1.bf16.msra.mxu0 %v14349_v39  ;;  %12377 = vmatpush3.bf16.msra.mxu1 %v14403_v25  ;;  %v17036_v47 = vld [vmem:[#allocation19_spill] sm:$0xff] }
 0x7b1   :  { %12353 = vmatprep.subr.bf16.mxu0 %v14352_v40  ;;  %12378 = vmatprep.subr.bf16.mxu1 %v16897_v60  ;;  %v4296_v8 = vmul.f32 %v13563_v44, %v4294_v55  ;;  %v15518_v0 = vadd.f32 %v4297_v42, %v4295_v51  ;;  %v17037_v55 = vld [vmem:[#allocation16_spill] sm:$0xff] }
 0x7b2   :  { %v17038_v44 = vld [vmem:[#allocation20_spill] sm:$0xff] }
 0x7b3   :  { %v15520_v53 = vadd.f32 %v4298_v7, %v4296_v8  ;;  %4301 = vst [vmem:[%s16827_s7 + $0x9] sm:$0x1] %v15518_v0 }
 0x7b4   :  { %12355 = vmatpush1.bf16.msra.mxu0 %v14377_v58  ;;  %12380 = vmatpush3.bf16.msra.mxu1 %v14416_v34 }
 0x7b5   :  { %12357 = vmatprep.subr.bf16.mxu0 %v14380_v61  ;;  %12381 = vmatprep.subr.bf16.mxu1 %v16897_v60  ;;  %4302 = vst [vmem:[%s16827_s7 + $0x19] sm:$0x1] %v15520_v53  ;;  %v4601_v41 = vcombine.low %v15518_v0, %v15520_v53 }
 0x7b7   :  { %v4608_v27 = vrot.slane %v4601_v41, %v14481_v38 }
 0x7b8   :  { %12359 = vmatpush1.bf16.msra.mxu0 %v14399_v17  ;;  %12383 = vmatpush3.bf16.msra.mxu1 %v14430_v45 }
 0x7b9   :  { %v4615_v20 = vrot.slane %v4608_v27, %v14481_v38  ;;  %12385 = vmatprep.subr.bf16.mxu0 %v13981_v5  ;;  %12416 = vmatprep.subr.bf16.mxu1 %v16897_v60  ;;  %v17039_v27 = vld [vmem:[#allocation21_spill] sm:$0xff] }
 0x7bb   :  { %4682 = vmatmul.mubr.f32.vlgmr.msra.gmra.mrb[30].mxu0 %v4615_v20  ;;  %10926 = vmatmul.mubr.f32.vlgmr.msra.gmra.mrb[30].mxu1 %v4615_v20 }
 0x7bc   :  { %12387 = vmatpush1.bf16.msra.mxu0 %v13994_v9  ;;  %12418 = vmatpush3.bf16.msra.mxu1 %v14053_v29 }
 0x7bd   :  { %12389 = vmatprep.subr.bf16.mxu0 %v13996_v10  ;;  %12419 = vmatprep.subr.bf16.mxu1 %v16897_v60 }
 0x7be   :  { %4973 = vmatprep.mubr.f32.mxu0 %v16898_v59  ;;  %10960 = vmatprep.mubr.msk.f32.mxu1 %vm13926_vm0, %v16898_v59 }
 0x7c0   :  { %12391 = vmatpush1.bf16.msra.mxu0 %v14012_v15  ;;  %12421 = vmatpush3.bf16.msra.mxu1 %v14077_v37 }
 0x7c1   :  { %12393 = vmatprep.subr.bf16.mxu0 %v14015_v16  ;;  %12422 = vmatprep.subr.bf16.mxu1 %v16897_v60 }
 0x7c4   :  { %12395 = vmatpush1.bf16.msra.mxu0 %v14030_v21  ;;  %12424 = vmatpush3.bf16.msra.mxu1 %v14105_v46 }
 0x7c5   :  { %12397 = vmatprep.subr.bf16.mxu0 %v17022_v33  ;;  %12425 = vmatprep.subr.bf16.mxu1 %v16897_v60 }
 0x7c8   :  { %12399 = vmatpush1.bf16.msra.mxu0 %v17023_v57  ;;  %12427 = vmatpush3.bf16.msra.mxu1 %v17024_v13  ;;  %v17040_v57 = vld [vmem:[#allocation22_spill] sm:$0xff] }
 0x7c9   :  { %12401 = vmatprep.subr.bf16.mxu0 %v17025_v4  ;;  %12428 = vmatprep.subr.bf16.mxu1 %v16897_v60 }
 0x7cc   :  { %12403 = vmatpush1.bf16.msra.mxu0 %v17026_v26  ;;  %12430 = vmatpush3.bf16.msra.mxu1 %v17027_v31 }
 0x7cd   :  { %12405 = vmatprep.subr.bf16.mxu0 %v17028_v1  ;;  %12431 = vmatprep.subr.bf16.mxu1 %v16897_v60 }
 0x7d0   :  { %12407 = vmatpush1.bf16.msra.mxu0 %v17029_v32  ;;  %12433 = vmatpush3.bf16.msra.mxu1 %v17030_v2 }
 0x7d1   :  { %12409 = vmatprep.subr.bf16.mxu0 %v17031_v54  ;;  %12434 = vmatprep.subr.bf16.mxu1 %v16897_v60 }
 0x7d4   :  { %12411 = vmatpush1.bf16.msra.mxu0 %v17032_v3  ;;  %12436 = vmatpush3.bf16.msra.mxu1 %v17033_v22 }
 0x7d5   :  { %12413 = vmatprep.subr.bf16.mxu0 %v17034_v12  ;;  %12437 = vmatprep.subr.bf16.mxu1 %v16897_v60  ;;  %v9715_v12 = vld [vmem:[%s16823_s0 + $0x7] ss:$8 sm:$0x7] }
 0x7d8   :  { %12415 = vmatpush1.bf16.msra.mxu0 %v17035_v28  ;;  %12439 = vmatpush3.bf16.msra.mxu1 %v17036_v47 }
 0x7d9   :  { %12441 = vmatprep.subr.bf16.mxu0 %v17037_v55  ;;  %12472 = vmatprep.subr.bf16.mxu1 %v16897_v60  ;;  %v9716_v55 = vld [vmem:[%s16823_s0 + $0x37] ss:$8 sm:$0x7] }
 0x7da   :  { %v4508_v54 = vrot.slane %v9716_v55, 1 }
 0x86e   :  { %v4391_v51 = vpop.f32.mrb[28].mxu0  ;;  %v4462_v42 = vpop.f32.mrb[28].mxu1 }
 0x86f   :  { %v4392_v8 = vadd.f32 %v4391_v51, %v17038_v44  ;;  %v4393_v7 = vpop.f32.mrb[29].mxu0  ;;  %v10892_v41 = vpop.f32.mrb[29].mxu1  ;;  %v4507_v51 = vrot.slane %v9715_v12, 1 }
 0x870   :  { %v4394_v20 = vadd.f32 %v4393_v7, %v17039_v27 }
 0x871   :  { %v4473_v28 = vrot.slane %v4392_v8, %v14481_v38 }
 0x872   :  { %v4518_v47 = vrot.slane %v4394_v20, %v14481_v38 }
 0x873   :  { %v4474_v22 = vcombine.high %v4473_v28, %v4473_v28  ;;  %v4481_v3 = vrot.slane %v4473_v28, %v14481_v38 }
 0x874   :  { %v4519_v44 = vcombine.high %v4518_v47, %v4518_v47  ;;  %v4526_v41 = vrot.slane %v4518_v47, %v14481_v38 }
 0x875   :  { %v4488_v7 = vrot.slane %v4474_v22, %v14481_v38  ;;  %v4491_v27 = vadd.f32 %v9715_v12, %v4481_v3  ;;  %v4463_v22 = vadd.f32 %v4462_v42, %v17040_v57 }
 0x876   :  { %v4533_v2 = vrot.slane %v4519_v44, %v14481_v38  ;;  %v4536_v1 = vadd.f32 %v4526_v41, %v4507_v51 }
 0x877   :  { %v4492_v8 = vadd.f32 %v9716_v55, %v4488_v7  ;;  %v9717_v32 = vmul.f32 -1.442695, %v4491_v27  ;;  %v4557_v44 = vrot.slane %v4463_v22, %v14481_v38 }
 0x878   :  { %v4537_v26 = vadd.f32 %v4533_v2, %v4508_v54  ;;  %v9719_v20 = vmul.f32 -1.442695, %v4536_v1  ;;  %v17041_v54 = vld [vmem:[#allocation23_spill] sm:$0xff] }
 0x879   :  { %13564 = vpow2.f32 %v9717_v32  ;;  %v9718_v31 = vmul.f32 -1.442695, %v4492_v8  ;;  %v4558_v32 = vcombine.high %v4557_v44, %v4557_v44 }
 0x87a   :  { %v9720_v4 = vmul.f32 -1.442695, %v4537_v26  ;;  %v4565_v26 = vrot.slane %v4557_v44, %v14481_v38 }
 0x87b   :  { %13566 = vpow2.f32 %v9718_v31  ;;  %v4572_v22 = vrot.slane %v4558_v32, %v14481_v38 }
 0x87c   :  { %13568 = vpow2.f32 %v9719_v20 }
 0x87d   :  { %13570 = vpow2.f32 %v9720_v4  ;;  %v4577_v4 = vrot.slane %v9715_v12, 2 }
 0x883   :  { %v13565_v28 = vpop.eup %13564 }
 0x884   :  { %v4499_v13 = vadd.f32 1.0, %v13565_v28  ;;  %v4578_v28 = vrot.slane %v9716_v55, 2  ;;  %v15607_v55 = vld [vmem:[%s16825_s1 + $0x48] ss:$8 sm:$0x7] }
 0x885   :  { %v13567_v47 = vpop.eup %13566 }
 0x886   :  { %v4500_v3 = vadd.f32 1.0, %v13567_v47  ;;  %13572 = vrcp.f32 %v4499_v13  ;;  %v13569_v27 = vpop.eup %13568  ;;  %v17042_v13 = vld [vmem:[#allocation24_spill] sm:$0xff] }
 0x887   :  { %v13571_v51 = vpop.eup %13570  ;;  %v4544_v41 = vadd.f32 1.0, %v13569_v27  ;;  %v15600_v27 = vld [vmem:[%s16825_s1 + $0x18] ss:$8 sm:$0x7] }
 0x888   :  { %13574 = vrcp.f32 %v4500_v3  ;;  %v4545_v2 = vadd.f32 1.0, %v13571_v51 }
 0x889   :  { %13576 = vrcp.f32 %v4544_v41 }
 0x88a   :  { %13578 = vrcp.f32 %v4545_v2 }
 0x88e   :  { %v4683_v31 = vpop.f32.mrb[30].mxu0  ;;  %v4754_v1 = vpop.f32.mrb[30].mxu1 }
 0x88f   :  { %v4684_v7 = vadd.f32 %v4683_v31, %v17041_v54  ;;  %v4685_v8 = vpop.f32.mrb[31].mxu0  ;;  %v10927_v20 = vpop.f32.mrb[31].mxu1 }
 0x890   :  { %v13573_v42 = vpop.eup %13572  ;;  %v4686_v47 = vadd.f32 %v4685_v8, %v17042_v13 }
 0x891   :  { %v4575_v3 = vmul.f32 %v13573_v42, %v4565_v26  ;;  %v4765_v44 = vrot.slane %v4684_v7, %v14481_v38  ;;  %v4799_v26 = vrot.slane %v15600_v27, 1 }
 0x892   :  { %v13575_v12 = vpop.eup %13574  ;;  %v4810_v51 = vrot.slane %v4686_v47, %v14481_v38 }
 0x893   :  { %v4576_v31 = vmul.f32 %v13575_v12, %v4572_v22  ;;  %v4581_v20 = vadd.f32 %v4577_v4, %v4575_v3  ;;  %v4766_v32 = vcombine.high %v4765_v44, %v4765_v44  ;;  %v4773_v41 = vrot.slane %v4765_v44, %v14481_v38  ;;  %v13577_v57 = vpop.eup %13576 }
 0x894   :  { %v4811_v8 = vcombine.high %v4810_v51, %v4810_v51  ;;  %v4818_v42 = vrot.slane %v4810_v51, %v14481_v38  ;;  %v4800_v4 = vrot.slane %v15607_v55, 1 }
 0x895   :  { %v4582_v7 = vadd.f32 %v4578_v28, %v4576_v31  ;;  %13580 = vtanh.f32 %v4581_v20  ;;  %v4780_v2 = vrot.slane %v4766_v32, %v14481_v38  ;;  %v4783_v47 = vadd.f32 %v15600_v27, %v4773_v41  ;;  %v13579_v28 = vpop.eup %13578 }
 0x896   :  { %v4825_v22 = vrot.slane %v4811_v8, %v14481_v38  ;;  %v4828_v44 = vadd.f32 %v4818_v42, %v4799_v26  ;;  %v4585_v20 = vsub.f32 1.0, %v13577_v57  ;;  %v4586_v41 = vsub.f32 1.0, %v13579_v28 }
 0x897   :  { %13582 = vtanh.f32 %v4582_v7  ;;  %v4784_v3 = vadd.f32 %v15607_v55, %v4780_v2  ;;  %v9723_v12 = vmul.f32 -1.442695, %v4783_v47  ;;  %v4589_v8 = vmul.f32 %v13577_v57, %v15467_v14 }
 0x898   :  { %v4829_v54 = vadd.f32 %v4825_v22, %v4800_v4  ;;  %v9725_v51 = vmul.f32 -1.442695, %v4828_v44  ;;  %v4590_v26 = vmul.f32 %v13579_v28, %v15469_v50  ;;  %v4755_v22 = vadd.f32 %v4754_v1, %v14551_v43 }
 0x899   :  { %13584 = vpow2.f32 %v9723_v12  ;;  %v9724_v13 = vmul.f32 -1.442695, %v4784_v3 }
 0x89a   :  { %v9726_v31 = vmul.f32 -1.442695, %v4829_v54  ;;  %v4849_v57 = vrot.slane %v4755_v22, %v14481_v38 }
 0x89b   :  { %13586 = vpow2.f32 %v9724_v13 }
 0x89c   :  { %13588 = vpow2.f32 %v9725_v51  ;;  %v4850_v1 = vcombine.high %v4849_v57, %v4849_v57  ;;  %v4857_v51 = vrot.slane %v4849_v57, %v14481_v38 }
 0x89d   :  { %13590 = vpow2.f32 %v9726_v31  ;;  %v4869_v31 = vrot.slane %v15600_v27, 2 }
 0x89f   :  { %v13581_v32 = vpop.eup %13580 }
 0x8a0   :  { %v4587_v33 = vmul.f32 %v13581_v32, %v4585_v20 }
 0x8a1   :  { %v13583_v7 = vpop.eup %13582 }
 0x8a2   :  { %v4588_v2 = vmul.f32 %v13583_v7, %v4586_v41  ;;  %v15619_v42 = vadd.f32 %v4589_v8, %v4587_v33  ;;  %v4864_v41 = vrot.slane %v4850_v1, %v14481_v38  ;;  %v4870_v7 = vrot.slane %v15607_v55, 2 }
 0x8a3   :  { %v13585_v47 = vpop.eup %13584 }
 0x8a4   :  { %v4791_v4 = vadd.f32 1.0, %v13585_v47  ;;  %v15621_v13 = vadd.f32 %v4590_v26, %v4588_v2  ;;  %4593 = vst [vmem:[%s16826_s6 + $0x7] sm:$0x1] %v15619_v42 }
 0x8a5   :  { %v13587_v54 = vpop.eup %13586 }
 0x8a6   :  { %v4792_v14 = vadd.f32 1.0, %v13587_v54  ;;  %13592 = vrcp.f32 %v4791_v4  ;;  %4594 = vst [vmem:[%s16826_s6 + $0x17] sm:$0x1] %v15621_v13  ;;  %v4893_v50 = vcombine.low %v15619_v42, %v15621_v13  ;;  %v13589_v3 = vpop.eup %13588 }
 0x8a7   :  { %v13591_v44 = vpop.eup %13590  ;;  %v4836_v28 = vadd.f32 1.0, %v13589_v3 }
 0x8a8   :  { %13594 = vrcp.f32 %v4792_v14  ;;  %v4900_v33 = vrot.slane %v4893_v50, %v14481_v38  ;;  %v4837_v20 = vadd.f32 1.0, %v13591_v44 }
 0x8a9   :  { %13596 = vrcp.f32 %v4836_v28 }
 0x8aa   :  { %v4907_v12 = vrot.slane %v4900_v33, %v14481_v38  ;;  %13598 = vrcp.f32 %v4837_v20  ;;  %v17045_v20 = vld [vmem:[#allocation11_spill] sm:$0xff] }
 0x8ac   :  { %4974 = vmatmul.mubr.f32.vlgmr.msra.gmra.mrb[32].mxu0 %v4907_v12  ;;  %10961 = vmatmul.mubr.f32.vlgmr.msra.gmra.mrb[32].mxu1 %v4907_v12 }
 0x8ad   :  { %12443 = vmatpush1.bf16.msra.mxu0 %v14204_v23  ;;  %12474 = vmatpush3.bf16.msra.mxu1 %v14277_v56 }
 0x8ae   :  { %12445 = vmatprep.subr.bf16.mxu0 %v14207_v24  ;;  %12475 = vmatprep.subr.bf16.mxu1 %v16897_v60 }
 0x8af   :  { %5265 = vmatprep.mubr.f32.mxu0 %v16898_v59  ;;  %10995 = vmatprep.mubr.msk.f32.mxu1 %vm13926_vm0, %v16898_v59 }
 0x8b0   :  { %v13593_v32 = vpop.eup %13592 }
 0x8b1   :  { %v4867_v8 = vmul.f32 %v13593_v32, %v4857_v51  ;;  %12447 = vmatpush1.bf16.msra.mxu0 %v14233_v35  ;;  %12477 = vmatpush3.bf16.msra.mxu1 %v14306_v11  ;;  %v17043_v51 = vld [vmem:[#allocation4_spill] sm:$0xff]  ;;  %v17046_v32 = vld [vmem:[#allocation6_spill] sm:$0xff] }
 0x8b2   :  { %v13595_v2 = vpop.eup %13594  ;;  %12449 = vmatprep.subr.bf16.mxu0 %v14237_v36  ;;  %12478 = vmatprep.subr.bf16.mxu1 %v16897_v60 }
 0x8b3   :  { %v4868_v27 = vmul.f32 %v13595_v2, %v4864_v41  ;;  %v4873_v26 = vadd.f32 %v4869_v31, %v4867_v8  ;;  %v13597_v55 = vpop.eup %13596  ;;  %v17044_v31 = vld [vmem:[#allocation5_spill] sm:$0xff]  ;;  %v17047_v41 = vld [vmem:[#allocation7_spill] sm:$0xff]  ;;  %v17048_v8 = vld [vmem:[#allocation14_spill] sm:$0xff] }
 0x8b4   :  { %v13599_v4 = vpop.eup %13598  ;;  %v4877_v54 = vsub.f32 1.0, %v13597_v55  ;;  %v4881_v33 = vmul.f32 %v13597_v55, %v15518_v0  ;;  %v17050_v2 = vld [vmem:[#allocation9_spill] sm:$0xff]  ;;  %v17054_v55 = vld [vmem:[#allocation18_spill] sm:$0xff] }
 0x8b5   :  { %v4874_v47 = vadd.f32 %v4870_v7, %v4868_v27  ;;  %13600 = vtanh.f32 %v4873_v26  ;;  %12451 = vmatpush1.bf16.msra.mxu0 %v14262_v48  ;;  %12480 = vmatpush3.bf16.msra.mxu1 %v14336_v30  ;;  %v4878_v14 = vsub.f32 1.0, %v13599_v4  ;;  %v4882_v12 = vmul.f32 %v13599_v4, %v15520_v53  ;;  %v17049_v7 = vld [vmem:[#allocation8_spill] sm:$0xff]  ;;  %v17051_v27 = vld [vmem:[#allocation17_spill] sm:$0xff]  ;;  %v17052_v26 = vld [vmem:[#allocation10_spill] sm:$0xff] }
 0x8b6   :  { %12453 = vmatprep.subr.bf16.mxu0 %v14265_v49  ;;  %12481 = vmatprep.subr.bf16.mxu1 %v16897_v60  ;;  %v17055_v4 = vld [vmem:[#allocation13_spill] sm:$0xff] }
 0x8b7   :  { %13602 = vtanh.f32 %v4874_v47  ;;  %v17053_v47 = vld [vmem:[#allocation12_spill] sm:$0xff] }
 0x8b9   :  { %12455 = vmatpush1.bf16.msra.mxu0 %v14290_v62  ;;  %12483 = vmatpush3.bf16.msra.mxu1 %v14364_v52 }
 0x8ba   :  { %12457 = vmatprep.subr.bf16.mxu0 %v14294_v63  ;;  %12484 = vmatprep.subr.bf16.mxu1 %v16897_v60 }
 0x8bd   :  { %12459 = vmatpush1.bf16.msra.mxu0 %v14321_v18  ;;  %12486 = vmatpush3.bf16.msra.mxu1 %v14389_v6 }
 0x8be   :  { %12461 = vmatprep.subr.bf16.mxu0 %v14324_v19  ;;  %12487 = vmatprep.subr.bf16.mxu1 %v16897_v60 }
 0x8bf   :  { %v13601_v22 = vpop.eup %13600 }
 0x8c0   :  { %v4879_v50 = vmul.f32 %v13601_v22, %v4877_v54  ;;  %v17056_v54 = vld [vmem:[#allocation15_spill] sm:$0xff] }
 0x8c1   :  { %v13603_v57 = vpop.eup %13602  ;;  %12463 = vmatpush1.bf16.msra.mxu0 %v14349_v39  ;;  %12489 = vmatpush3.bf16.msra.mxu1 %v14403_v25  ;;  %v17057_v22 = vld [vmem:[#allocation19_spill] sm:$0xff] }
 0x8c2   :  { %12465 = vmatprep.subr.bf16.mxu0 %v14352_v40  ;;  %12490 = vmatprep.subr.bf16.mxu1 %v16897_v60  ;;  %v4880_v3 = vmul.f32 %v13603_v57, %v4878_v14  ;;  %v15670_v44 = vadd.f32 %v4881_v33, %v4879_v50  ;;  %v17058_v14 = vld [vmem:[#allocation16_spill] sm:$0xff] }
 0x8c3   :  { %v17059_v57 = vld [vmem:[#allocation20_spill] sm:$0xff] }
 0x8c4   :  { %v15672_v1 = vadd.f32 %v4882_v12, %v4880_v3  ;;  %4885 = vst [vmem:[%s16827_s7 + $0x8] sm:$0x1] %v15670_v44 }
 0x8c5   :  { %12467 = vmatpush1.bf16.msra.mxu0 %v14377_v58  ;;  %12492 = vmatpush3.bf16.msra.mxu1 %v14416_v34 }
 0x8c6   :  { %12469 = vmatprep.subr.bf16.mxu0 %v14380_v61  ;;  %12493 = vmatprep.subr.bf16.mxu1 %v16897_v60  ;;  %4886 = vst [vmem:[%s16827_s7 + $0x18] sm:$0x1] %v15672_v1  ;;  %v5185_v0 = vcombine.low %v15670_v44, %v15672_v1 }
 0x8c8   :  { %v5192_v53 = vrot.slane %v5185_v0, %v14481_v38 }
 0x8c9   :  { %12471 = vmatpush1.bf16.msra.mxu0 %v14399_v17  ;;  %12495 = vmatpush3.bf16.msra.mxu1 %v14430_v45 }
 0x8ca   :  { %v5199_v28 = vrot.slane %v5192_v53, %v14481_v38  ;;  %12497 = vmatprep.subr.bf16.mxu0 %v13981_v5  ;;  %12528 = vmatprep.subr.bf16.mxu1 %v16897_v60  ;;  %v17060_v53 = vld [vmem:[#allocation21_spill] sm:$0xff] }
 0x8cc   :  { %5266 = vmatmul.mubr.f32.vlgmr.msra.gmra.mrb[34].mxu0 %v5199_v28  ;;  %10996 = vmatmul.mubr.f32.vlgmr.msra.gmra.mrb[34].mxu1 %v5199_v28 }
 0x8cd   :  { %12499 = vmatpush1.bf16.msra.mxu0 %v13994_v9  ;;  %12530 = vmatpush3.bf16.msra.mxu1 %v14053_v29 }
 0x8ce   :  { %12501 = vmatprep.subr.bf16.mxu0 %v13996_v10  ;;  %12531 = vmatprep.subr.bf16.mxu1 %v16897_v60 }
 0x8cf   :  { %5557 = vmatprep.mubr.f32.mxu0 %v16898_v59  ;;  %11030 = vmatprep.mubr.msk.f32.mxu1 %vm13926_vm0, %v16898_v59 }
 0x8d1   :  { %12503 = vmatpush1.bf16.msra.mxu0 %v14012_v15  ;;  %12533 = vmatpush3.bf16.msra.mxu1 %v14077_v37 }
 0x8d2   :  { %12505 = vmatprep.subr.bf16.mxu0 %v14015_v16  ;;  %12534 = vmatprep.subr.bf16.mxu1 %v16897_v60 }
 0x8d5   :  { %12507 = vmatpush1.bf16.msra.mxu0 %v14030_v21  ;;  %12536 = vmatpush3.bf16.msra.mxu1 %v14105_v46 }
 0x8d6   :  { %12509 = vmatprep.subr.bf16.mxu0 %v17043_v51  ;;  %12537 = vmatprep.subr.bf16.mxu1 %v16897_v60 }
 0x8d9   :  { %12511 = vmatpush1.bf16.msra.mxu0 %v17044_v31  ;;  %12539 = vmatpush3.bf16.msra.mxu1 %v17045_v20  ;;  %v17061_v31 = vld [vmem:[#allocation22_spill] sm:$0xff] }
 0x8da   :  { %12513 = vmatprep.subr.bf16.mxu0 %v17046_v32  ;;  %12540 = vmatprep.subr.bf16.mxu1 %v16897_v60 }
 0x8dd   :  { %12515 = vmatpush1.bf16.msra.mxu0 %v17047_v41  ;;  %12542 = vmatpush3.bf16.msra.mxu1 %v17048_v8 }
 0x8de   :  { %12517 = vmatprep.subr.bf16.mxu0 %v17049_v7  ;;  %12543 = vmatprep.subr.bf16.mxu1 %v16897_v60 }
 0x8e1   :  { %12519 = vmatpush1.bf16.msra.mxu0 %v17050_v2  ;;  %12545 = vmatpush3.bf16.msra.mxu1 %v17051_v27 }
 0x8e2   :  { %12521 = vmatprep.subr.bf16.mxu0 %v17052_v26  ;;  %12546 = vmatprep.subr.bf16.mxu1 %v16897_v60 }
 0x8e5   :  { %12523 = vmatpush1.bf16.msra.mxu0 %v17053_v47  ;;  %12548 = vmatpush3.bf16.msra.mxu1 %v17054_v55 }
 0x8e6   :  { %12525 = vmatprep.subr.bf16.mxu0 %v17055_v4  ;;  %12549 = vmatprep.subr.bf16.mxu1 %v16897_v60  ;;  %v9727_v4 = vld [vmem:[%s16823_s0 + $0x18] ss:$8 sm:$0x7] }
 0x8e9   :  { %12527 = vmatpush1.bf16.msra.mxu0 %v17056_v54  ;;  %12551 = vmatpush3.bf16.msra.mxu1 %v17057_v22 }
 0x8ea   :  { %12553 = vmatprep.subr.bf16.mxu0 %v17058_v14  ;;  %12584 = vmatprep.subr.bf16.mxu1 %v16897_v60  ;;  %v9728_v14 = vld [vmem:[%s16823_s0 + $0x48] ss:$8 sm:$0x7] }
 0x8eb   :  { %v5092_v26 = vrot.slane %v9728_v14, 1 }
 0x97f   :  { %v4975_v50 = vpop.f32.mrb[32].mxu0  ;;  %v5046_v33 = vpop.f32.mrb[32].mxu1 }
 0x980   :  { %v4976_v3 = vadd.f32 %v4975_v50, %v17059_v57  ;;  %v4977_v12 = vpop.f32.mrb[33].mxu0  ;;  %v10962_v0 = vpop.f32.mrb[33].mxu1  ;;  %v5091_v50 = vrot.slane %v9727_v4, 1 }
 0x981   :  { %v4978_v28 = vadd.f32 %v4977_v12, %v17060_v53 }
 0x982   :  { %v5057_v54 = vrot.slane %v4976_v3, %v14481_v38 }
 0x983   :  { %v5102_v22 = vrot.slane %v4978_v28, %v14481_v38 }
 0x984   :  { %v5058_v55 = vcombine.high %v5057_v54, %v5057_v54  ;;  %v5065_v47 = vrot.slane %v5057_v54, %v14481_v38 }
 0x985   :  { %v5103_v57 = vcombine.high %v5102_v22, %v5102_v22  ;;  %v5110_v0 = vrot.slane %v5102_v22, %v14481_v38 }
 0x986   :  { %v5072_v12 = vrot.slane %v5058_v55, %v14481_v38  ;;  %v5075_v53 = vadd.f32 %v9727_v4, %v5065_v47  ;;  %v5047_v55 = vadd.f32 %v5046_v33, %v17061_v31 }
 0x987   :  { %v5117_v27 = vrot.slane %v5103_v57, %v14481_v38  ;;  %v5120_v7 = vadd.f32 %v5110_v0, %v5091_v50 }
 0x988   :  { %v5076_v3 = vadd.f32 %v9728_v14, %v5072_v12  ;;  %v9729_v2 = vmul.f32 -1.442695, %v5075_v53  ;;  %v5141_v57 = vrot.slane %v5047_v55, %v14481_v38 }
 0x989   :  { %v5121_v41 = vadd.f32 %v5117_v27, %v5092_v26  ;;  %v9731_v28 = vmul.f32 -1.442695, %v5120_v7  ;;  %v17062_v26 = vld [vmem:[#allocation23_spill] sm:$0xff] }
 0x98a   :  { %13604 = vpow2.f32 %v9729_v2  ;;  %v9730_v8 = vmul.f32 -1.442695, %v5076_v3  ;;  %v5142_v2 = vcombine.high %v5141_v57, %v5141_v57 }
 0x98b   :  { %v9732_v32 = vmul.f32 -1.442695, %v5121_v41  ;;  %v5149_v41 = vrot.slane %v5141_v57, %v14481_v38 }
 0x98c   :  { %13606 = vpow2.f32 %v9730_v8  ;;  %v5156_v55 = vrot.slane %v5142_v2, %v14481_v38 }
 0x98d   :  { %13608 = vpow2.f32 %v9731_v28 }
 0x98e   :  { %13610 = vpow2.f32 %v9732_v32  ;;  %v5161_v32 = vrot.slane %v9727_v4, 2 }
 0x994   :  { %v13605_v54 = vpop.eup %13604 }
 0x995   :  { %v5083_v20 = vadd.f32 1.0, %v13605_v54  ;;  %v5162_v54 = vrot.slane %v9728_v14, 2  ;;  %v15759_v14 = vld [vmem:[%s16825_s1 + $0x37] ss:$8 sm:$0x7] }
 0x996   :  { %v13607_v22 = vpop.eup %13606 }
 0x997   :  { %v5084_v47 = vadd.f32 1.0, %v13607_v22  ;;  %13612 = vrcp.f32 %v5083_v20  ;;  %v13609_v53 = vpop.eup %13608  ;;  %v17063_v20 = vld [vmem:[#allocation24_spill] sm:$0xff] }
 0x998   :  { %v13611_v50 = vpop.eup %13610  ;;  %v5128_v0 = vadd.f32 1.0, %v13609_v53  ;;  %v15752_v53 = vld [vmem:[%s16825_s1 + $0x7] ss:$8 sm:$0x7] }
 0x999   :  { %13614 = vrcp.f32 %v5084_v47  ;;  %v5129_v27 = vadd.f32 1.0, %v13611_v50 }
 0x99a   :  { %13616 = vrcp.f32 %v5128_v0 }
 0x99b   :  { %13618 = vrcp.f32 %v5129_v27 }
 0x99f   :  { %v5267_v8 = vpop.f32.mrb[34].mxu0  ;;  %v5338_v7 = vpop.f32.mrb[34].mxu1 }
 0x9a0   :  { %v5268_v12 = vadd.f32 %v5267_v8, %v17062_v26  ;;  %v5269_v3 = vpop.f32.mrb[35].mxu0  ;;  %v10997_v28 = vpop.f32.mrb[35].mxu1 }
 0x9a1   :  { %v13613_v33 = vpop.eup %13612  ;;  %v5270_v22 = vadd.f32 %v5269_v3, %v17063_v20 }
 0x9a2   :  { %v5159_v47 = vmul.f32 %v13613_v33, %v5149_v41  ;;  %v5349_v57 = vrot.slane %v5268_v12, %v14481_v38  ;;  %v5383_v41 = vrot.slane %v15752_v53, 1 }
 0x9a3   :  { %v13615_v4 = vpop.eup %13614  ;;  %v5394_v50 = vrot.slane %v5270_v22, %v14481_v38 }
 0x9a4   :  { %v5160_v8 = vmul.f32 %v13615_v4, %v5156_v55  ;;  %v5165_v28 = vadd.f32 %v5161_v32, %v5159_v47  ;;  %v5350_v2 = vcombine.high %v5349_v57, %v5349_v57  ;;  %v5357_v0 = vrot.slane %v5349_v57, %v14481_v38  ;;  %v13617_v31 = vpop.eup %13616 }
 0x9a5   :  { %v5395_v3 = vcombine.high %v5394_v50, %v5394_v50  ;;  %v5402_v33 = vrot.slane %v5394_v50, %v14481_v38  ;;  %v5384_v32 = vrot.slane %v15759_v14, 1 }
 0x9a6   :  { %v5166_v12 = vadd.f32 %v5162_v54, %v5160_v8  ;;  %13620 = vtanh.f32 %v5165_v28  ;;  %v5364_v27 = vrot.slane %v5350_v2, %v14481_v38  ;;  %v5367_v22 = vadd.f32 %v15752_v53, %v5357_v0  ;;  %v13619_v54 = vpop.eup %13618 }
 0x9a7   :  { %v5409_v55 = vrot.slane %v5395_v3, %v14481_v38  ;;  %v5412_v57 = vadd.f32 %v5402_v33, %v5383_v41  ;;  %v5169_v28 = vsub.f32 1.0, %v13617_v31  ;;  %v5170_v0 = vsub.f32 1.0, %v13619_v54 }
 0x9a8   :  { %13622 = vtanh.f32 %v5166_v12  ;;  %v5368_v47 = vadd.f32 %v15759_v14, %v5364_v27  ;;  %v9735_v4 = vmul.f32 -1.442695, %v5367_v22  ;;  %v5173_v3 = vmul.f32 %v13617_v31, %v15619_v42 }
 0x9a9   :  { %v5413_v26 = vadd.f32 %v5409_v55, %v5384_v32  ;;  %v9737_v50 = vmul.f32 -1.442695, %v5412_v57  ;;  %v5174_v41 = vmul.f32 %v13619_v54, %v15621_v13  ;;  %v5339_v55 = vadd.f32 %v5338_v7, %v14551_v43 }
 0x9aa   :  { %13624 = vpow2.f32 %v9735_v4  ;;  %v9736_v20 = vmul.f32 -1.442695, %v5368_v47 }
 0x9ab   :  { %v9738_v8 = vmul.f32 -1.442695, %v5413_v26  ;;  %v5433_v31 = vrot.slane %v5339_v55, %v14481_v38 }
 0x9ac   :  { %13626 = vpow2.f32 %v9736_v20 }
 0x9ad   :  { %13628 = vpow2.f32 %v9737_v50  ;;  %v5434_v7 = vcombine.high %v5433_v31, %v5433_v31  ;;  %v5441_v50 = vrot.slane %v5433_v31, %v14481_v38 }
 0x9ae   :  { %13630 = vpow2.f32 %v9738_v8  ;;  %v5453_v8 = vrot.slane %v15752_v53, 2 }
 0x9b0   :  { %v13621_v2 = vpop.eup %13620 }
 0x9b1   :  { %v5171_v51 = vmul.f32 %v13621_v2, %v5169_v28 }
 0x9b2   :  { %v13623_v12 = vpop.eup %13622 }
 0x9b3   :  { %v5172_v27 = vmul.f32 %v13623_v12, %v5170_v0  ;;  %v15771_v33 = vadd.f32 %v5173_v3, %v5171_v51  ;;  %v5448_v0 = vrot.slane %v5434_v7, %v14481_v38  ;;  %v5454_v12 = vrot.slane %v15759_v14, 2 }
 0x9b4   :  { %v13625_v22 = vpop.eup %13624 }
 0x9b5   :  { %v5375_v32 = vadd.f32 1.0, %v13625_v22  ;;  %v15773_v20 = vadd.f32 %v5174_v41, %v5172_v27  ;;  %5177 = vst [vmem:[%s16826_s6 + $0x8] sm:$0x1] %v15771_v33 }
 0x9b6   :  { %v13627_v26 = vpop.eup %13626 }
 0x9b7   :  { %v5376_v42 = vadd.f32 1.0, %v13627_v26  ;;  %13632 = vrcp.f32 %v5375_v32  ;;  %5178 = vst [vmem:[%s16826_s6 + $0x18] sm:$0x1] %v15773_v20  ;;  %v5477_v13 = vcombine.low %v15771_v33, %v15773_v20  ;;  %v13629_v47 = vpop.eup %13628 }
 0x9b8   :  { %v13631_v57 = vpop.eup %13630  ;;  %v5420_v54 = vadd.f32 1.0, %v13629_v47 }
 0x9b9   :  { %13634 = vrcp.f32 %v5376_v42  ;;  %v5484_v51 = vrot.slane %v5477_v13, %v14481_v38  ;;  %v5421_v28 = vadd.f32 1.0, %v13631_v57 }
 0x9ba   :  { %13636 = vrcp.f32 %v5420_v54 }
 0x9bb   :  { %v5491_v4 = vrot.slane %v5484_v51, %v14481_v38  ;;  %13638 = vrcp.f32 %v5421_v28  ;;  %v17066_v28 = vld [vmem:[#allocation11_spill] sm:$0xff] }
 0x9bd   :  { %5558 = vmatmul.mubr.f32.vlgmr.msra.gmra.mrb[36].mxu0 %v5491_v4  ;;  %11031 = vmatmul.mubr.f32.vlgmr.msra.gmra.mrb[36].mxu1 %v5491_v4 }
 0x9be   :  { %12555 = vmatpush1.bf16.msra.mxu0 %v14204_v23  ;;  %12586 = vmatpush3.bf16.msra.mxu1 %v14277_v56 }
 0x9bf   :  { %12557 = vmatprep.subr.bf16.mxu0 %v14207_v24  ;;  %12587 = vmatprep.subr.bf16.mxu1 %v16897_v60 }
 0x9c0   :  { %5849 = vmatprep.mubr.f32.mxu0 %v16898_v59  ;;  %11065 = vmatprep.mubr.msk.f32.mxu1 %vm13926_vm0, %v16898_v59 }
 0x9c1   :  { %v13633_v2 = vpop.eup %13632 }
 0x9c2   :  { %v5451_v3 = vmul.f32 %v13633_v2, %v5441_v50  ;;  %12559 = vmatpush1.bf16.msra.mxu0 %v14233_v35  ;;  %12589 = vmatpush3.bf16.msra.mxu1 %v14306_v11  ;;  %v17064_v50 = vld [vmem:[#allocation4_spill] sm:$0xff]  ;;  %v17067_v2 = vld [vmem:[#allocation6_spill] sm:$0xff] }
 0x9c3   :  { %v13635_v27 = vpop.eup %13634  ;;  %12561 = vmatprep.subr.bf16.mxu0 %v14237_v36  ;;  %12590 = vmatprep.subr.bf16.mxu1 %v16897_v60 }
 0x9c4   :  { %v5452_v53 = vmul.f32 %v13635_v27, %v5448_v0  ;;  %v5457_v41 = vadd.f32 %v5453_v8, %v5451_v3  ;;  %v13637_v14 = vpop.eup %13636  ;;  %v17065_v8 = vld [vmem:[#allocation5_spill] sm:$0xff]  ;;  %v17068_v0 = vld [vmem:[#allocation7_spill] sm:$0xff]  ;;  %v17069_v3 = vld [vmem:[#allocation14_spill] sm:$0xff] }
 0x9c5   :  { %v13639_v32 = vpop.eup %13638  ;;  %v5461_v26 = vsub.f32 1.0, %v13637_v14  ;;  %v5465_v51 = vmul.f32 %v13637_v14, %v15670_v44  ;;  %v17071_v27 = vld [vmem:[#allocation9_spill] sm:$0xff]  ;;  %v17075_v14 = vld [vmem:[#allocation18_spill] sm:$0xff] }
 0x9c6   :  { %v5458_v22 = vadd.f32 %v5454_v12, %v5452_v53  ;;  %13640 = vtanh.f32 %v5457_v41  ;;  %12563 = vmatpush1.bf16.msra.mxu0 %v14262_v48  ;;  %12592 = vmatpush3.bf16.msra.mxu1 %v14336_v30  ;;  %v5462_v42 = vsub.f32 1.0, %v13639_v32  ;;  %v5466_v4 = vmul.f32 %v13639_v32, %v15672_v1  ;;  %v17070_v12 = vld [vmem:[#allocation8_spill] sm:$0xff]  ;;  %v17072_v53 = vld [vmem:[#allocation17_spill] sm:$0xff]  ;;  %v17073_v41 = vld [vmem:[#allocation10_spill] sm:$0xff] }
 0x9c7   :  { %12565 = vmatprep.subr.bf16.mxu0 %v14265_v49  ;;  %12593 = vmatprep.subr.bf16.mxu1 %v16897_v60  ;;  %v17076_v32 = vld [vmem:[#allocation13_spill] sm:$0xff] }
 0x9c8   :  { %13642 = vtanh.f32 %v5458_v22  ;;  %v17074_v22 = vld [vmem:[#allocation12_spill] sm:$0xff] }
 0x9ca   :  { %12567 = vmatpush1.bf16.msra.mxu0 %v14290_v62  ;;  %12595 = vmatpush3.bf16.msra.mxu1 %v14364_v52 }
 0x9cb   :  { %12569 = vmatprep.subr.bf16.mxu0 %v14294_v63  ;;  %12596 = vmatprep.subr.bf16.mxu1 %v16897_v60 }
 0x9ce   :  { %12571 = vmatpush1.bf16.msra.mxu0 %v14321_v18  ;;  %12598 = vmatpush3.bf16.msra.mxu1 %v14389_v6 }
 0x9cf   :  { %12573 = vmatprep.subr.bf16.mxu0 %v14324_v19  ;;  %12599 = vmatprep.subr.bf16.mxu1 %v16897_v60 }
 0x9d0   :  { %v13641_v55 = vpop.eup %13640 }
 0x9d1   :  { %v5463_v13 = vmul.f32 %v13641_v55, %v5461_v26  ;;  %v17077_v26 = vld [vmem:[#allocation15_spill] sm:$0xff] }
 0x9d2   :  { %v13643_v31 = vpop.eup %13642  ;;  %12575 = vmatpush1.bf16.msra.mxu0 %v14349_v39  ;;  %12601 = vmatpush3.bf16.msra.mxu1 %v14403_v25  ;;  %v17078_v55 = vld [vmem:[#allocation19_spill] sm:$0xff] }
 0x9d3   :  { %12577 = vmatprep.subr.bf16.mxu0 %v14352_v40  ;;  %12602 = vmatprep.subr.bf16.mxu1 %v16897_v60  ;;  %v5464_v47 = vmul.f32 %v13643_v31, %v5462_v42  ;;  %v15822_v57 = vadd.f32 %v5465_v51, %v5463_v13  ;;  %v17079_v42 = vld [vmem:[#allocation16_spill] sm:$0xff] }
 0x9d4   :  { %v17080_v31 = vld [vmem:[#allocation20_spill] sm:$0xff] }
 0x9d5   :  { %v15824_v7 = vadd.f32 %v5466_v4, %v5464_v47  ;;  %5469 = vst [vmem:[%s16827_s7 + $0x7] sm:$0x1] %v15822_v57 }
 0x9d6   :  { %12579 = vmatpush1.bf16.msra.mxu0 %v14377_v58  ;;  %12604 = vmatpush3.bf16.msra.mxu1 %v14416_v34 }
 0x9d7   :  { %12581 = vmatprep.subr.bf16.mxu0 %v14380_v61  ;;  %12605 = vmatprep.subr.bf16.mxu1 %v16897_v60  ;;  %5470 = vst [vmem:[%s16827_s7 + $0x17] sm:$0x1] %v15824_v7  ;;  %v5769_v44 = vcombine.low %v15822_v57, %v15824_v7 }
 0x9d9   :  { %v5776_v1 = vrot.slane %v5769_v44, %v14481_v38 }
 0x9da   :  { %12583 = vmatpush1.bf16.msra.mxu0 %v14399_v17  ;;  %12607 = vmatpush3.bf16.msra.mxu1 %v14430_v45 }
 0x9db   :  { %v5783_v54 = vrot.slane %v5776_v1, %v14481_v38  ;;  %12609 = vmatprep.subr.bf16.mxu0 %v13981_v5  ;;  %12640 = vmatprep.subr.bf16.mxu1 %v16897_v60  ;;  %v17081_v1 = vld [vmem:[#allocation21_spill] sm:$0xff] }
 0x9dd   :  { %5850 = vmatmul.mubr.f32.vlgmr.msra.gmra.mrb[38].mxu0 %v5783_v54  ;;  %11066 = vmatmul.mubr.f32.vlgmr.msra.gmra.mrb[38].mxu1 %v5783_v54 }
 0x9de   :  { %12611 = vmatpush1.bf16.msra.mxu0 %v13994_v9  ;;  %12642 = vmatpush3.bf16.msra.mxu1 %v14053_v29 }
 0x9df   :  { %12613 = vmatprep.subr.bf16.mxu0 %v13996_v10  ;;  %12643 = vmatprep.subr.bf16.mxu1 %v16897_v60 }
 0x9e0   :  { %6141 = vmatprep.mubr.f32.mxu0 %v16898_v59  ;;  %11100 = vmatprep.mubr.msk.f32.mxu1 %vm13926_vm0, %v16898_v59 }
 0x9e2   :  { %12615 = vmatpush1.bf16.msra.mxu0 %v14012_v15  ;;  %12645 = vmatpush3.bf16.msra.mxu1 %v14077_v37 }
 0x9e3   :  { %12617 = vmatprep.subr.bf16.mxu0 %v14015_v16  ;;  %12646 = vmatprep.subr.bf16.mxu1 %v16897_v60 }
 0x9e6   :  { %12619 = vmatpush1.bf16.msra.mxu0 %v14030_v21  ;;  %12648 = vmatpush3.bf16.msra.mxu1 %v14105_v46 }
 0x9e7   :  { %12621 = vmatprep.subr.bf16.mxu0 %v17064_v50  ;;  %12649 = vmatprep.subr.bf16.mxu1 %v16897_v60 }
 0x9ea   :  { %12623 = vmatpush1.bf16.msra.mxu0 %v17065_v8  ;;  %12651 = vmatpush3.bf16.msra.mxu1 %v17066_v28  ;;  %v17082_v8 = vld [vmem:[#allocation22_spill] sm:$0xff] }
 0x9eb   :  { %12625 = vmatprep.subr.bf16.mxu0 %v17067_v2  ;;  %12652 = vmatprep.subr.bf16.mxu1 %v16897_v60 }
 0x9ee   :  { %12627 = vmatpush1.bf16.msra.mxu0 %v17068_v0  ;;  %12654 = vmatpush3.bf16.msra.mxu1 %v17069_v3 }
 0x9ef   :  { %12629 = vmatprep.subr.bf16.mxu0 %v17070_v12  ;;  %12655 = vmatprep.subr.bf16.mxu1 %v16897_v60 }
 0x9f2   :  { %12631 = vmatpush1.bf16.msra.mxu0 %v17071_v27  ;;  %12657 = vmatpush3.bf16.msra.mxu1 %v17072_v53 }
 0x9f3   :  { %12633 = vmatprep.subr.bf16.mxu0 %v17073_v41  ;;  %12658 = vmatprep.subr.bf16.mxu1 %v16897_v60 }
 0x9f6   :  { %12635 = vmatpush1.bf16.msra.mxu0 %v17074_v22  ;;  %12660 = vmatpush3.bf16.msra.mxu1 %v17075_v14 }
 0x9f7   :  { %12637 = vmatprep.subr.bf16.mxu0 %v17076_v32  ;;  %12661 = vmatprep.subr.bf16.mxu1 %v16897_v60  ;;  %v9739_v32 = vld [vmem:[%s16823_s0 + $0x19] ss:$8 sm:$0x7] }
 0x9fa   :  { %12639 = vmatpush1.bf16.msra.mxu0 %v17077_v26  ;;  %12663 = vmatpush3.bf16.msra.mxu1 %v17078_v55 }
 0x9fb   :  { %12665 = vmatprep.subr.bf16.mxu0 %v17079_v42  ;;  %12696 = vmatprep.subr.bf16.mxu1 %v16897_v60  ;;  %v9740_v42 = vld [vmem:[%s16823_s0 + $0x49] ss:$8 sm:$0x7] }
 0x9fc   :  { %v5676_v41 = vrot.slane %v9740_v42, 1 }
 0xa90   :  { %v5559_v13 = vpop.f32.mrb[36].mxu0  ;;  %v5630_v51 = vpop.f32.mrb[36].mxu1 }
 0xa91   :  { %v5560_v47 = vadd.f32 %v5559_v13, %v17080_v31  ;;  %v5561_v4 = vpop.f32.mrb[37].mxu0  ;;  %v11032_v44 = vpop.f32.mrb[37].mxu1  ;;  %v5675_v13 = vrot.slane %v9739_v32, 1 }
 0xa92   :  { %v5562_v54 = vadd.f32 %v5561_v4, %v17081_v1 }
 0xa93   :  { %v5641_v26 = vrot.slane %v5560_v47, %v14481_v38 }
 0xa94   :  { %v5686_v55 = vrot.slane %v5562_v54, %v14481_v38 }
 0xa95   :  { %v5642_v14 = vcombine.high %v5641_v26, %v5641_v26  ;;  %v5649_v22 = vrot.slane %v5641_v26, %v14481_v38 }
 0xa96   :  { %v5687_v31 = vcombine.high %v5686_v55, %v5686_v55  ;;  %v5694_v44 = vrot.slane %v5686_v55, %v14481_v38 }
 0xa97   :  { %v5656_v4 = vrot.slane %v5642_v14, %v14481_v38  ;;  %v5659_v1 = vadd.f32 %v9739_v32, %v5649_v22  ;;  %v5631_v14 = vadd.f32 %v5630_v51, %v17082_v8 }
 0xa98   :  { %v5701_v53 = vrot.slane %v5687_v31, %v14481_v38  ;;  %v5704_v12 = vadd.f32 %v5694_v44, %v5675_v13 }
 0xa99   :  { %v5660_v47 = vadd.f32 %v9740_v42, %v5656_v4  ;;  %v9741_v27 = vmul.f32 -1.442695, %v5659_v1  ;;  %v5725_v31 = vrot.slane %v5631_v14, %v14481_v38 }
 0xa9a   :  { %v5705_v0 = vadd.f32 %v5701_v53, %v5676_v41  ;;  %v9743_v54 = vmul.f32 -1.442695, %v5704_v12  ;;  %v17083_v41 = vld [vmem:[#allocation23_spill] sm:$0xff] }
 0xa9b   :  { %13644 = vpow2.f32 %v9741_v27  ;;  %v9742_v3 = vmul.f32 -1.442695, %v5660_v47  ;;  %v5726_v27 = vcombine.high %v5725_v31, %v5725_v31 }
 0xa9c   :  { %v9744_v2 = vmul.f32 -1.442695, %v5705_v0  ;;  %v5733_v0 = vrot.slane %v5725_v31, %v14481_v38 }
 0xa9d   :  { %13646 = vpow2.f32 %v9742_v3  ;;  %v5740_v14 = vrot.slane %v5726_v27, %v14481_v38 }
 0xa9e   :  { %13648 = vpow2.f32 %v9743_v54 }
 0xa9f   :  { %13650 = vpow2.f32 %v9744_v2  ;;  %v5745_v2 = vrot.slane %v9739_v32, 2 }
 0xaa5   :  { %v13645_v26 = vpop.eup %13644 }
 0xaa6   :  { %v5667_v28 = vadd.f32 1.0, %v13645_v26  ;;  %v5746_v26 = vrot.slane %v9740_v42, 2  ;;  %v15911_v42 = vld [vmem:[%s16825_s1 + $0x36] ss:$8 sm:$0x7] }
 0xaa7   :  { %v13647_v55 = vpop.eup %13646 }
 0xaa8   :  { %v5668_v22 = vadd.f32 1.0, %v13647_v55  ;;  %13652 = vrcp.f32 %v5667_v28  ;;  %v13649_v1 = vpop.eup %13648  ;;  %v17084_v28 = vld [vmem:[#allocation24_spill] sm:$0xff] }
 0xaa9   :  { %v13651_v13 = vpop.eup %13650  ;;  %v5712_v44 = vadd.f32 1.0, %v13649_v1  ;;  %v15904_v1 = vld [vmem:[%s16825_s1 + $0x6] ss:$8 sm:$0x7] }
 0xaaa   :  { %13654 = vrcp.f32 %v5668_v22  ;;  %v5713_v53 = vadd.f32 1.0, %v13651_v13 }
 0xaab   :  { %13656 = vrcp.f32 %v5712_v44 }
 0xaac   :  { %13658 = vrcp.f32 %v5713_v53 }
 0xab0   :  { %v5851_v3 = vpop.f32.mrb[38].mxu0  ;;  %v5922_v12 = vpop.f32.mrb[38].mxu1 }
 0xab1   :  { %v5852_v4 = vadd.f32 %v5851_v3, %v17083_v41  ;;  %v5853_v47 = vpop.f32.mrb[39].mxu0  ;;  %v11067_v54 = vpop.f32.mrb[39].mxu1 }
 0xab2   :  { %v13653_v51 = vpop.eup %13652  ;;  %v5854_v55 = vadd.f32 %v5853_v47, %v17084_v28 }
 0xab3   :  { %v5743_v22 = vmul.f32 %v13653_v51, %v5733_v0  ;;  %v5933_v31 = vrot.slane %v5852_v4, %v14481_v38  ;;  %v5967_v0 = vrot.slane %v15904_v1, 1 }
 0xab4   :  { %v13655_v32 = vpop.eup %13654  ;;  %v5978_v13 = vrot.slane %v5854_v55, %v14481_v38 }
 0xab5   :  { %v5744_v3 = vmul.f32 %v13655_v32, %v5740_v14  ;;  %v5749_v54 = vadd.f32 %v5745_v2, %v5743_v22  ;;  %v5934_v27 = vcombine.high %v5933_v31, %v5933_v31  ;;  %v5941_v44 = vrot.slane %v5933_v31, %v14481_v38  ;;  %v13657_v8 = vpop.eup %13656 }
 0xab6   :  { %v5979_v47 = vcombine.high %v5978_v13, %v5978_v13  ;;  %v5986_v51 = vrot.slane %v5978_v13, %v14481_v38  ;;  %v5968_v2 = vrot.slane %v15911_v42, 1 }
 0xab7   :  { %v5750_v4 = vadd.f32 %v5746_v26, %v5744_v3  ;;  %13660 = vtanh.f32 %v5749_v54  ;;  %v5948_v53 = vrot.slane %v5934_v27, %v14481_v38  ;;  %v5951_v55 = vadd.f32 %v15904_v1, %v5941_v44  ;;  %v13659_v26 = vpop.eup %13658 }
 0xab8   :  { %v5993_v14 = vrot.slane %v5979_v47, %v14481_v38  ;;  %v5996_v31 = vadd.f32 %v5986_v51, %v5967_v0  ;;  %v5753_v54 = vsub.f32 1.0, %v13657_v8  ;;  %v5754_v44 = vsub.f32 1.0, %v13659_v26 }
 0xab9   :  { %13662 = vtanh.f32 %v5750_v4  ;;  %v5952_v22 = vadd.f32 %v15911_v42, %v5948_v53  ;;  %v9747_v32 = vmul.f32 -1.442695, %v5951_v55  ;;  %v5757_v47 = vmul.f32 %v13657_v8, %v15771_v33 }
 0xaba   :  { %v5997_v41 = vadd.f32 %v5993_v14, %v5968_v2  ;;  %v9749_v13 = vmul.f32 -1.442695, %v5996_v31  ;;  %v5758_v0 = vmul.f32 %v13659_v26, %v15773_v20  ;;  %v5923_v14 = vadd.f32 %v5922_v12, %v14551_v43 }
 0xabb   :  { %13664 = vpow2.f32 %v9747_v32  ;;  %v9748_v28 = vmul.f32 -1.442695, %v5952_v22 }
 0xabc   :  { %v9750_v3 = vmul.f32 -1.442695, %v5997_v41  ;;  %v6017_v8 = vrot.slane %v5923_v14, %v14481_v38 }
 0xabd   :  { %13666 = vpow2.f32 %v9748_v28 }
 0xabe   :  { %13668 = vpow2.f32 %v9749_v13  ;;  %v6018_v12 = vcombine.high %v6017_v8, %v6017_v8  ;;  %v6025_v13 = vrot.slane %v6017_v8, %v14481_v38 }
 0xabf   :  { %13670 = vpow2.f32 %v9750_v3  ;;  %v6037_v3 = vrot.slane %v15904_v1, 2 }
 0xac1   :  { %v13661_v27 = vpop.eup %13660 }
 0xac2   :  { %v5755_v50 = vmul.f32 %v13661_v27, %v5753_v54 }
 0xac3   :  { %v13663_v4 = vpop.eup %13662 }
 0xac4   :  { %v5756_v53 = vmul.f32 %v13663_v4, %v5754_v44  ;;  %v15923_v51 = vadd.f32 %v5757_v47, %v5755_v50  ;;  %v6032_v44 = vrot.slane %v6018_v12, %v14481_v38  ;;  %v6038_v4 = vrot.slane %v15911_v42, 2 }
 0xac5   :  { %v13665_v55 = vpop.eup %13664 }
 0xac6   :  { %v5959_v2 = vadd.f32 1.0, %v13665_v55  ;;  %v15925_v28 = vadd.f32 %v5758_v0, %v5756_v53  ;;  %5761 = vst [vmem:[%s16826_s6 + $0x9] sm:$0x1] %v15923_v51 }
 0xac7   :  { %v13667_v41 = vpop.eup %13666 }
 0xac8   :  { %v5960_v33 = vadd.f32 1.0, %v13667_v41  ;;  %13672 = vrcp.f32 %v5959_v2  ;;  %5762 = vst [vmem:[%s16826_s6 + $0x19] sm:$0x1] %v15925_v28  ;;  %v6061_v20 = vcombine.low %v15923_v51, %v15925_v28  ;;  %v13669_v22 = vpop.eup %13668 }
 0xac9   :  { %v13671_v31 = vpop.eup %13670  ;;  %v6004_v26 = vadd.f32 1.0, %v13669_v22 }
 0xaca   :  { %13674 = vrcp.f32 %v5960_v33  ;;  %v6068_v50 = vrot.slane %v6061_v20, %v14481_v38  ;;  %v6005_v54 = vadd.f32 1.0, %v13671_v31 }
 0xacb   :  { %13676 = vrcp.f32 %v6004_v26 }
 0xacc   :  { %v6075_v32 = vrot.slane %v6068_v50, %v14481_v38  ;;  %13678 = vrcp.f32 %v6005_v54  ;;  %v17087_v54 = vld [vmem:[#allocation11_spill] sm:$0xff] }
 0xace   :  { %6142 = vmatmul.mubr.f32.vlgmr.msra.gmra.mrb[40].mxu0 %v6075_v32  ;;  %11101 = vmatmul.mubr.f32.vlgmr.msra.gmra.mrb[40].mxu1 %v6075_v32 }
 0xacf   :  { %12667 = vmatpush1.bf16.msra.mxu0 %v14204_v23  ;;  %12698 = vmatpush3.bf16.msra.mxu1 %v14277_v56 }
 0xad0   :  { %12669 = vmatprep.subr.bf16.mxu0 %v14207_v24  ;;  %12699 = vmatprep.subr.bf16.mxu1 %v16897_v60 }
 0xad1   :  { %6433 = vmatprep.mubr.f32.mxu0 %v16898_v59  ;;  %11135 = vmatprep.mubr.msk.f32.mxu1 %vm13926_vm0, %v16898_v59 }
 0xad2   :  { %v13673_v27 = vpop.eup %13672 }
 0xad3   :  { %v6035_v47 = vmul.f32 %v13673_v27, %v6025_v13  ;;  %12671 = vmatpush1.bf16.msra.mxu0 %v14233_v35  ;;  %12701 = vmatpush3.bf16.msra.mxu1 %v14306_v11  ;;  %v17085_v13 = vld [vmem:[#allocation4_spill] sm:$0xff]  ;;  %v17088_v27 = vld [vmem:[#allocation6_spill] sm:$0xff] }
 0xad4   :  { %v13675_v53 = vpop.eup %13674  ;;  %12673 = vmatprep.subr.bf16.mxu0 %v14237_v36  ;;  %12702 = vmatprep.subr.bf16.mxu1 %v16897_v60 }
 0xad5   :  { %v6036_v1 = vmul.f32 %v13675_v53, %v6032_v44  ;;  %v6041_v0 = vadd.f32 %v6037_v3, %v6035_v47  ;;  %v13677_v42 = vpop.eup %13676  ;;  %v17086_v3 = vld [vmem:[#allocation5_spill] sm:$0xff]  ;;  %v17089_v44 = vld [vmem:[#allocation7_spill] sm:$0xff]  ;;  %v17090_v47 = vld [vmem:[#allocation14_spill] sm:$0xff] }
 0xad6   :  { %v13679_v2 = vpop.eup %13678  ;;  %v6045_v41 = vsub.f32 1.0, %v13677_v42  ;;  %v6049_v50 = vmul.f32 %v13677_v42, %v15822_v57  ;;  %v17092_v53 = vld [vmem:[#allocation9_spill] sm:$0xff]  ;;  %v17096_v42 = vld [vmem:[#allocation18_spill] sm:$0xff] }
 0xad7   :  { %v6042_v55 = vadd.f32 %v6038_v4, %v6036_v1  ;;  %13680 = vtanh.f32 %v6041_v0  ;;  %12675 = vmatpush1.bf16.msra.mxu0 %v14262_v48  ;;  %12704 = vmatpush3.bf16.msra.mxu1 %v14336_v30  ;;  %v6046_v33 = vsub.f32 1.0, %v13679_v2  ;;  %v6050_v32 = vmul.f32 %v13679_v2, %v15824_v7  ;;  %v17091_v4 = vld [vmem:[#allocation8_spill] sm:$0xff]  ;;  %v17093_v1 = vld [vmem:[#allocation17_spill] sm:$0xff]  ;;  %v17094_v0 = vld [vmem:[#allocation10_spill] sm:$0xff] }
 0xad8   :  { %12677 = vmatprep.subr.bf16.mxu0 %v14265_v49  ;;  %12705 = vmatprep.subr.bf16.mxu1 %v16897_v60  ;;  %v17097_v2 = vld [vmem:[#allocation13_spill] sm:$0xff] }
 0xad9   :  { %13682 = vtanh.f32 %v6042_v55  ;;  %v17095_v55 = vld [vmem:[#allocation12_spill] sm:$0xff] }
 0xadb   :  { %12679 = vmatpush1.bf16.msra.mxu0 %v14290_v62  ;;  %12707 = vmatpush3.bf16.msra.mxu1 %v14364_v52 }
 0xadc   :  { %12681 = vmatprep.subr.bf16.mxu0 %v14294_v63  ;;  %12708 = vmatprep.subr.bf16.mxu1 %v16897_v60 }
 0xadf   :  { %12683 = vmatpush1.bf16.msra.mxu0 %v14321_v18  ;;  %12710 = vmatpush3.bf16.msra.mxu1 %v14389_v6 }
 0xae0   :  { %12685 = vmatprep.subr.bf16.mxu0 %v14324_v19  ;;  %12711 = vmatprep.subr.bf16.mxu1 %v16897_v60 }
 0xae1   :  { %v13681_v14 = vpop.eup %13680 }
 0xae2   :  { %v6047_v20 = vmul.f32 %v13681_v14, %v6045_v41  ;;  %v17098_v41 = vld [vmem:[#allocation15_spill] sm:$0xff] }
 0xae3   :  { %v13683_v8 = vpop.eup %13682  ;;  %12687 = vmatpush1.bf16.msra.mxu0 %v14349_v39  ;;  %12713 = vmatpush3.bf16.msra.mxu1 %v14403_v25  ;;  %v17099_v14 = vld [vmem:[#allocation19_spill] sm:$0xff] }
 0xae4   :  { %12689 = vmatprep.subr.bf16.mxu0 %v14352_v40  ;;  %12714 = vmatprep.subr.bf16.mxu1 %v16897_v60  ;;  %v6048_v22 = vmul.f32 %v13683_v8, %v6046_v33  ;;  %v15974_v31 = vadd.f32 %v6049_v50, %v6047_v20  ;;  %v17100_v33 = vld [vmem:[#allocation16_spill] sm:$0xff] }
 0xae5   :  { %v17101_v8 = vld [vmem:[#allocation20_spill] sm:$0xff] }
 0xae6   :  { %v15976_v12 = vadd.f32 %v6050_v32, %v6048_v22  ;;  %6053 = vst [vmem:[%s16827_s7 + $0x6] sm:$0x1] %v15974_v31 }
 0xae7   :  { %12691 = vmatpush1.bf16.msra.mxu0 %v14377_v58  ;;  %12716 = vmatpush3.bf16.msra.mxu1 %v14416_v34 }
 0xae8   :  { %12693 = vmatprep.subr.bf16.mxu0 %v14380_v61  ;;  %12717 = vmatprep.subr.bf16.mxu1 %v16897_v60  ;;  %6054 = vst [vmem:[%s16827_s7 + $0x16] sm:$0x1] %v15976_v12  ;;  %v6353_v57 = vcombine.low %v15974_v31, %v15976_v12 }
 0xaea   :  { %v6360_v7 = vrot.slane %v6353_v57, %v14481_v38 }
 0xaeb   :  { %12695 = vmatpush1.bf16.msra.mxu0 %v14399_v17  ;;  %12719 = vmatpush3.bf16.msra.mxu1 %v14430_v45 }
 0xaec   :  { %v6367_v26 = vrot.slane %v6360_v7, %v14481_v38  ;;  %12721 = vmatprep.subr.bf16.mxu0 %v13981_v5  ;;  %12752 = vmatprep.subr.bf16.mxu1 %v16897_v60  ;;  %v17102_v7 = vld [vmem:[#allocation21_spill] sm:$0xff] }
 0xaee   :  { %6434 = vmatmul.mubr.f32.vlgmr.msra.gmra.mrb[42].mxu0 %v6367_v26  ;;  %11136 = vmatmul.mubr.f32.vlgmr.msra.gmra.mrb[42].mxu1 %v6367_v26 }
 0xaef   :  { %12723 = vmatpush1.bf16.msra.mxu0 %v13994_v9  ;;  %12754 = vmatpush3.bf16.msra.mxu1 %v14053_v29 }
 0xaf0   :  { %12725 = vmatprep.subr.bf16.mxu0 %v13996_v10  ;;  %12755 = vmatprep.subr.bf16.mxu1 %v16897_v60 }
 0xaf1   :  { %6725 = vmatprep.mubr.f32.mxu0 %v16898_v59  ;;  %11170 = vmatprep.mubr.msk.f32.mxu1 %vm13926_vm0, %v16898_v59 }
 0xaf3   :  { %12727 = vmatpush1.bf16.msra.mxu0 %v14012_v15  ;;  %12757 = vmatpush3.bf16.msra.mxu1 %v14077_v37 }
 0xaf4   :  { %12729 = vmatprep.subr.bf16.mxu0 %v14015_v16  ;;  %12758 = vmatprep.subr.bf16.mxu1 %v16897_v60 }
 0xaf7   :  { %12731 = vmatpush1.bf16.msra.mxu0 %v14030_v21  ;;  %12760 = vmatpush3.bf16.msra.mxu1 %v14105_v46 }
 0xaf8   :  { %12733 = vmatprep.subr.bf16.mxu0 %v17085_v13  ;;  %12761 = vmatprep.subr.bf16.mxu1 %v16897_v60 }
 0xafb   :  { %12735 = vmatpush1.bf16.msra.mxu0 %v17086_v3  ;;  %12763 = vmatpush3.bf16.msra.mxu1 %v17087_v54  ;;  %v17103_v3 = vld [vmem:[#allocation22_spill] sm:$0xff] }
 0xafc   :  { %12737 = vmatprep.subr.bf16.mxu0 %v17088_v27  ;;  %12764 = vmatprep.subr.bf16.mxu1 %v16897_v60 }
 0xaff   :  { %12739 = vmatpush1.bf16.msra.mxu0 %v17089_v44  ;;  %12766 = vmatpush3.bf16.msra.mxu1 %v17090_v47 }
 0xb00   :  { %12741 = vmatprep.subr.bf16.mxu0 %v17091_v4  ;;  %12767 = vmatprep.subr.bf16.mxu1 %v16897_v60 }
 0xb03   :  { %12743 = vmatpush1.bf16.msra.mxu0 %v17092_v53  ;;  %12769 = vmatpush3.bf16.msra.mxu1 %v17093_v1 }
 0xb04   :  { %12745 = vmatprep.subr.bf16.mxu0 %v17094_v0  ;;  %12770 = vmatprep.subr.bf16.mxu1 %v16897_v60 }
 0xb07   :  { %12747 = vmatpush1.bf16.msra.mxu0 %v17095_v55  ;;  %12772 = vmatpush3.bf16.msra.mxu1 %v17096_v42 }
 0xb08   :  { %12749 = vmatprep.subr.bf16.mxu0 %v17097_v2  ;;  %12773 = vmatprep.subr.bf16.mxu1 %v16897_v60  ;;  %v9751_v2 = vld [vmem:[%s16823_s0 + $0x1a] ss:$8 sm:$0x7] }
 0xb0b   :  { %12751 = vmatpush1.bf16.msra.mxu0 %v17098_v41  ;;  %12775 = vmatpush3.bf16.msra.mxu1 %v17099_v14 }
 0xb0c   :  { %12777 = vmatprep.subr.bf16.mxu0 %v17100_v33  ;;  %12808 = vmatprep.subr.bf16.mxu1 %v16897_v60  ;;  %v9752_v33 = vld [vmem:[%s16823_s0 + $0x4a] ss:$8 sm:$0x7] }
 0xb0d   :  { %v6260_v0 = vrot.slane %v9752_v33, 1 }
 0xba1   :  { %v6143_v20 = vpop.f32.mrb[40].mxu0  ;;  %v6214_v50 = vpop.f32.mrb[40].mxu1 }
 0xba2   :  { %v6144_v22 = vadd.f32 %v6143_v20, %v17101_v8  ;;  %v6145_v32 = vpop.f32.mrb[41].mxu0  ;;  %v11102_v57 = vpop.f32.mrb[41].mxu1  ;;  %v6259_v20 = vrot.slane %v9751_v2, 1 }
 0xba3   :  { %v6146_v26 = vadd.f32 %v6145_v32, %v17102_v7 }
 0xba4   :  { %v6225_v41 = vrot.slane %v6144_v22, %v14481_v38 }
 0xba5   :  { %v6270_v14 = vrot.slane %v6146_v26, %v14481_v38 }
 0xba6   :  { %v6226_v42 = vcombine.high %v6225_v41, %v6225_v41  ;;  %v6233_v55 = vrot.slane %v6225_v41, %v14481_v38 }
 0xba7   :  { %v6271_v8 = vcombine.high %v6270_v14, %v6270_v14  ;;  %v6278_v57 = vrot.slane %v6270_v14, %v14481_v38 }
 0xba8   :  { %v6240_v32 = vrot.slane %v6226_v42, %v14481_v38  ;;  %v6243_v7 = vadd.f32 %v9751_v2, %v6233_v55  ;;  %v6215_v42 = vadd.f32 %v6214_v50, %v17103_v3 }
 0xba9   :  { %v6285_v1 = vrot.slane %v6271_v8, %v14481_v38  ;;  %v6288_v4 = vadd.f32 %v6278_v57, %v6259_v20 }
 0xbaa   :  { %v6244_v22 = vadd.f32 %v9752_v33, %v6240_v32  ;;  %v9753_v53 = vmul.f32 -1.442695, %v6243_v7  ;;  %v6309_v8 = vrot.slane %v6215_v42, %v14481_v38 }
 0xbab   :  { %v6289_v44 = vadd.f32 %v6285_v1, %v6260_v0  ;;  %v9755_v26 = vmul.f32 -1.442695, %v6288_v4  ;;  %v17104_v0 = vld [vmem:[#allocation23_spill] sm:$0xff] }
 0xbac   :  { %13684 = vpow2.f32 %v9753_v53  ;;  %v9754_v47 = vmul.f32 -1.442695, %v6244_v22  ;;  %v6310_v53 = vcombine.high %v6309_v8, %v6309_v8 }
 0xbad   :  { %v9756_v27 = vmul.f32 -1.442695, %v6289_v44  ;;  %v6317_v44 = vrot.slane %v6309_v8, %v14481_v38 }
 0xbae   :  { %13686 = vpow2.f32 %v9754_v47  ;;  %v6324_v42 = vrot.slane %v6310_v53, %v14481_v38 }
 0xbaf   :  { %13688 = vpow2.f32 %v9755_v26 }
 0xbb0   :  { %13690 = vpow2.f32 %v9756_v27  ;;  %v6329_v27 = vrot.slane %v9751_v2, 2 }
 0xbb6   :  { %v13685_v41 = vpop.eup %13684 }
 0xbb7   :  { %v6251_v54 = vadd.f32 1.0, %v13685_v41  ;;  %v6330_v41 = vrot.slane %v9752_v33, 2  ;;  %v16063_v33 = vld [vmem:[%s16825_s1 + $0x35] ss:$8 sm:$0x7] }
 0xbb8   :  { %v13687_v14 = vpop.eup %13686 }
 0xbb9   :  { %v6252_v55 = vadd.f32 1.0, %v13687_v14  ;;  %13692 = vrcp.f32 %v6251_v54  ;;  %v13689_v7 = vpop.eup %13688  ;;  %v17105_v54 = vld [vmem:[#allocation24_spill] sm:$0xff] }
 0xbba   :  { %v13691_v20 = vpop.eup %13690  ;;  %v6296_v57 = vadd.f32 1.0, %v13689_v7  ;;  %v16056_v7 = vld [vmem:[%s16825_s1 + $0x5] ss:$8 sm:$0x7] }
 0xbbb   :  { %13694 = vrcp.f32 %v6252_v55  ;;  %v6297_v1 = vadd.f32 1.0, %v13691_v20 }
 0xbbc   :  { %13696 = vrcp.f32 %v6296_v57 }
 0xbbd   :  { %13698 = vrcp.f32 %v6297_v1 }
 0xbc1   :  { %v6435_v47 = vpop.f32.mrb[42].mxu0  ;;  %v6506_v4 = vpop.f32.mrb[42].mxu1 }
 0xbc2   :  { %v6436_v32 = vadd.f32 %v6435_v47, %v17104_v0  ;;  %v6437_v22 = vpop.f32.mrb[43].mxu0  ;;  %v11137_v26 = vpop.f32.mrb[43].mxu1 }
 0xbc3   :  { %v13693_v50 = vpop.eup %13692  ;;  %v6438_v14 = vadd.f32 %v6437_v22, %v17105_v54 }
 0xbc4   :  { %v6327_v55 = vmul.f32 %v13693_v50, %v6317_v44  ;;  %v6517_v8 = vrot.slane %v6436_v32, %v14481_v38  ;;  %v6551_v44 = vrot.slane %v16056_v7, 1 }
 0xbc5   :  { %v13695_v2 = vpop.eup %13694  ;;  %v6562_v20 = vrot.slane %v6438_v14, %v14481_v38 }
 0xbc6   :  { %v6328_v47 = vmul.f32 %v13695_v2, %v6324_v42  ;;  %v6333_v26 = vadd.f32 %v6329_v27, %v6327_v55  ;;  %v6518_v53 = vcombine.high %v6517_v8, %v6517_v8  ;;  %v6525_v57 = vrot.slane %v6517_v8, %v14481_v38  ;;  %v13697_v3 = vpop.eup %13696 }
 0xbc7   :  { %v6563_v22 = vcombine.high %v6562_v20, %v6562_v20  ;;  %v6570_v50 = vrot.slane %v6562_v20, %v14481_v38  ;;  %v6552_v27 = vrot.slane %v16063_v33, 1 }
 0xbc8   :  { %v6334_v32 = vadd.f32 %v6330_v41, %v6328_v47  ;;  %13700 = vtanh.f32 %v6333_v26  ;;  %v6532_v1 = vrot.slane %v6518_v53, %v14481_v38  ;;  %v6535_v14 = vadd.f32 %v16056_v7, %v6525_v57  ;;  %v13699_v41 = vpop.eup %13698 }
 0xbc9   :  { %v6577_v42 = vrot.slane %v6563_v22, %v14481_v38  ;;  %v6580_v8 = vadd.f32 %v6570_v50, %v6551_v44  ;;  %v6337_v26 = vsub.f32 1.0, %v13697_v3  ;;  %v6338_v57 = vsub.f32 1.0, %v13699_v41 }
 0xbca   :  { %13702 = vtanh.f32 %v6334_v32  ;;  %v6536_v55 = vadd.f32 %v16063_v33, %v6532_v1  ;;  %v9759_v2 = vmul.f32 -1.442695, %v6535_v14  ;;  %v6341_v22 = vmul.f32 %v13697_v3, %v15923_v51 }
 0xbcb   :  { %v6581_v0 = vadd.f32 %v6577_v42, %v6552_v27  ;;  %v9761_v20 = vmul.f32 -1.442695, %v6580_v8  ;;  %v6342_v44 = vmul.f32 %v13699_v41, %v15925_v28  ;;  %v6507_v42 = vadd.f32 %v6506_v4, %v14551_v43 }
 0xbcc   :  { %13704 = vpow2.f32 %v9759_v2  ;;  %v9760_v54 = vmul.f32 -1.442695, %v6536_v55 }
 0xbcd   :  { %v9762_v47 = vmul.f32 -1.442695, %v6581_v0  ;;  %v6601_v3 = vrot.slane %v6507_v42, %v14481_v38 }
 0xbce   :  { %13706 = vpow2.f32 %v9760_v54 }
 0xbcf   :  { %13708 = vpow2.f32 %v9761_v20  ;;  %v6602_v4 = vcombine.high %v6601_v3, %v6601_v3  ;;  %v6609_v20 = vrot.slane %v6601_v3, %v14481_v38 }
 0xbd0   :  { %13710 = vpow2.f32 %v9762_v47  ;;  %v6621_v47 = vrot.slane %v16056_v7, 2 }
 0xbd2   :  { %v13701_v53 = vpop.eup %13700 }
 0xbd3   :  { %v6339_v13 = vmul.f32 %v13701_v53, %v6337_v26 }
 0xbd4   :  { %v13703_v32 = vpop.eup %13702 }
 0xbd5   :  { %v6340_v1 = vmul.f32 %v13703_v32, %v6338_v57  ;;  %v16075_v50 = vadd.f32 %v6341_v22, %v6339_v13  ;;  %v6616_v57 = vrot.slane %v6602_v4, %v14481_v38  ;;  %v6622_v32 = vrot.slane %v16063_v33, 2 }
 0xbd6   :  { %v13705_v14 = vpop.eup %13704 }
 0xbd7   :  { %v6543_v27 = vadd.f32 1.0, %v13705_v14  ;;  %v16077_v54 = vadd.f32 %v6342_v44, %v6340_v1  ;;  %6345 = vst [vmem:[%s16826_s6 + $0xa] sm:$0x1] %v16075_v50 }
 0xbd8   :  { %v13707_v0 = vpop.eup %13706 }
 0xbd9   :  { %v6544_v51 = vadd.f32 1.0, %v13707_v0  ;;  %13712 = vrcp.f32 %v6543_v27  ;;  %6346 = vst [vmem:[%s16826_s6 + $0x1a] sm:$0x1] %v16077_v54  ;;  %v6645_v28 = vcombine.low %v16075_v50, %v16077_v54  ;;  %v13709_v55 = vpop.eup %13708 }
 0xbda   :  { %v13711_v8 = vpop.eup %13710  ;;  %v6588_v41 = vadd.f32 1.0, %v13709_v55 }
 0xbdb   :  { %13714 = vrcp.f32 %v6544_v51  ;;  %v6652_v13 = vrot.slane %v6645_v28, %v14481_v38  ;;  %v6589_v26 = vadd.f32 1.0, %v13711_v8 }
 0xbdc   :  { %13716 = vrcp.f32 %v6588_v41 }
 0xbdd   :  { %v6659_v2 = vrot.slane %v6652_v13, %v14481_v38  ;;  %13718 = vrcp.f32 %v6589_v26  ;;  %v17108_v26 = vld [vmem:[#allocation11_spill] sm:$0xff] }
 0xbdf   :  { %6726 = vmatmul.mubr.f32.vlgmr.msra.gmra.mrb[44].mxu0 %v6659_v2  ;;  %11171 = vmatmul.mubr.f32.vlgmr.msra.gmra.mrb[44].mxu1 %v6659_v2 }
 0xbe0   :  { %12779 = vmatpush1.bf16.msra.mxu0 %v14204_v23  ;;  %12810 = vmatpush3.bf16.msra.mxu1 %v14277_v56 }
 0xbe1   :  { %12781 = vmatprep.subr.bf16.mxu0 %v14207_v24  ;;  %12811 = vmatprep.subr.bf16.mxu1 %v16897_v60 }
 0xbe2   :  { %7017 = vmatprep.mubr.f32.mxu0 %v16898_v59  ;;  %11205 = vmatprep.mubr.msk.f32.mxu1 %vm13926_vm0, %v16898_v59 }
 0xbe3   :  { %v13713_v53 = vpop.eup %13712 }
 0xbe4   :  { %v6619_v22 = vmul.f32 %v13713_v53, %v6609_v20  ;;  %12783 = vmatpush1.bf16.msra.mxu0 %v14233_v35  ;;  %12813 = vmatpush3.bf16.msra.mxu1 %v14306_v11  ;;  %v17106_v20 = vld [vmem:[#allocation4_spill] sm:$0xff]  ;;  %v17109_v53 = vld [vmem:[#allocation6_spill] sm:$0xff] }
 0xbe5   :  { %v13715_v1 = vpop.eup %13714  ;;  %12785 = vmatprep.subr.bf16.mxu0 %v14237_v36  ;;  %12814 = vmatprep.subr.bf16.mxu1 %v16897_v60 }
 0xbe6   :  { %v6620_v7 = vmul.f32 %v13715_v1, %v6616_v57  ;;  %v6625_v44 = vadd.f32 %v6621_v47, %v6619_v22  ;;  %v13717_v33 = vpop.eup %13716  ;;  %v17107_v47 = vld [vmem:[#allocation5_spill] sm:$0xff]  ;;  %v17110_v57 = vld [vmem:[#allocation7_spill] sm:$0xff]  ;;  %v17111_v22 = vld [vmem:[#allocation14_spill] sm:$0xff] }
 0xbe7   :  { %v13719_v27 = vpop.eup %13718  ;;  %v6629_v0 = vsub.f32 1.0, %v13717_v33  ;;  %v6633_v13 = vmul.f32 %v13717_v33, %v15974_v31  ;;  %v17113_v1 = vld [vmem:[#allocation9_spill] sm:$0xff]  ;;  %v17117_v33 = vld [vmem:[#allocation18_spill] sm:$0xff] }
 0xbe8   :  { %v6626_v14 = vadd.f32 %v6622_v32, %v6620_v7  ;;  %13720 = vtanh.f32 %v6625_v44  ;;  %12787 = vmatpush1.bf16.msra.mxu0 %v14262_v48  ;;  %12816 = vmatpush3.bf16.msra.mxu1 %v14336_v30  ;;  %v6630_v51 = vsub.f32 1.0, %v13719_v27  ;;  %v6634_v2 = vmul.f32 %v13719_v27, %v15976_v12  ;;  %v17112_v32 = vld [vmem:[#allocation8_spill] sm:$0xff]  ;;  %v17114_v7 = vld [vmem:[#allocation17_spill] sm:$0xff]  ;;  %v17115_v44 = vld [vmem:[#allocation10_spill] sm:$0xff] }
 0xbe9   :  { %12789 = vmatprep.subr.bf16.mxu0 %v14265_v49  ;;  %12817 = vmatprep.subr.bf16.mxu1 %v16897_v60  ;;  %v17118_v27 = vld [vmem:[#allocation13_spill] sm:$0xff] }
 0xbea   :  { %13722 = vtanh.f32 %v6626_v14  ;;  %v17116_v14 = vld [vmem:[#allocation12_spill] sm:$0xff] }
 0xbec   :  { %12791 = vmatpush1.bf16.msra.mxu0 %v14290_v62  ;;  %12819 = vmatpush3.bf16.msra.mxu1 %v14364_v52 }
 0xbed   :  { %12793 = vmatprep.subr.bf16.mxu0 %v14294_v63  ;;  %12820 = vmatprep.subr.bf16.mxu1 %v16897_v60 }
 0xbf0   :  { %12795 = vmatpush1.bf16.msra.mxu0 %v14321_v18  ;;  %12822 = vmatpush3.bf16.msra.mxu1 %v14389_v6 }
 0xbf1   :  { %12797 = vmatprep.subr.bf16.mxu0 %v14324_v19  ;;  %12823 = vmatprep.subr.bf16.mxu1 %v16897_v60 }
 0xbf2   :  { %v13721_v42 = vpop.eup %13720 }
 0xbf3   :  { %v6631_v28 = vmul.f32 %v13721_v42, %v6629_v0  ;;  %v17119_v0 = vld [vmem:[#allocation15_spill] sm:$0xff] }
 0xbf4   :  { %v13723_v3 = vpop.eup %13722  ;;  %12799 = vmatpush1.bf16.msra.mxu0 %v14349_v39  ;;  %12825 = vmatpush3.bf16.msra.mxu1 %v14403_v25  ;;  %v17120_v42 = vld [vmem:[#allocation19_spill] sm:$0xff] }
 0xbf5   :  { %12801 = vmatprep.subr.bf16.mxu0 %v14352_v40  ;;  %12826 = vmatprep.subr.bf16.mxu1 %v16897_v60  ;;  %v6632_v55 = vmul.f32 %v13723_v3, %v6630_v51  ;;  %v16126_v8 = vadd.f32 %v6633_v13, %v6631_v28  ;;  %v17121_v51 = vld [vmem:[#allocation16_spill] sm:$0xff] }
 0xbf6   :  { %v17122_v3 = vld [vmem:[#allocation20_spill] sm:$0xff] }
 0xbf7   :  { %v16128_v4 = vadd.f32 %v6634_v2, %v6632_v55  ;;  %6637 = vst [vmem:[%s16827_s7 + $0x5] sm:$0x1] %v16126_v8 }
 0xbf8   :  { %12803 = vmatpush1.bf16.msra.mxu0 %v14377_v58  ;;  %12828 = vmatpush3.bf16.msra.mxu1 %v14416_v34 }
 0xbf9   :  { %12805 = vmatprep.subr.bf16.mxu0 %v14380_v61  ;;  %12829 = vmatprep.subr.bf16.mxu1 %v16897_v60  ;;  %6638 = vst [vmem:[%s16827_s7 + $0x15] sm:$0x1] %v16128_v4  ;;  %v6937_v31 = vcombine.low %v16126_v8, %v16128_v4 }
 0xbfb   :  { %v6944_v12 = vrot.slane %v6937_v31, %v14481_v38 }
 0xbfc   :  { %12807 = vmatpush1.bf16.msra.mxu0 %v14399_v17  ;;  %12831 = vmatpush3.bf16.msra.mxu1 %v14430_v45 }
 0xbfd   :  { %v6951_v41 = vrot.slane %v6944_v12, %v14481_v38  ;;  %12833 = vmatprep.subr.bf16.mxu0 %v13981_v5  ;;  %12864 = vmatprep.subr.bf16.mxu1 %v16897_v60  ;;  %v17123_v12 = vld [vmem:[#allocation21_spill] sm:$0xff] }
 0xbff   :  { %7018 = vmatmul.mubr.f32.vlgmr.msra.gmra.mrb[46].mxu0 %v6951_v41  ;;  %11206 = vmatmul.mubr.f32.vlgmr.msra.gmra.mrb[46].mxu1 %v6951_v41 }
 0xc00   :  { %12835 = vmatpush1.bf16.msra.mxu0 %v13994_v9  ;;  %12866 = vmatpush3.bf16.msra.mxu1 %v14053_v29 }
 0xc01   :  { %12837 = vmatprep.subr.bf16.mxu0 %v13996_v10  ;;  %12867 = vmatprep.subr.bf16.mxu1 %v16897_v60 }
 0xc02   :  { %7309 = vmatprep.mubr.f32.mxu0 %v16898_v59  ;;  %11240 = vmatprep.mubr.msk.f32.mxu1 %vm13926_vm0, %v16898_v59 }
 0xc04   :  { %12839 = vmatpush1.bf16.msra.mxu0 %v14012_v15  ;;  %12869 = vmatpush3.bf16.msra.mxu1 %v14077_v37 }
 0xc05   :  { %12841 = vmatprep.subr.bf16.mxu0 %v14015_v16  ;;  %12870 = vmatprep.subr.bf16.mxu1 %v16897_v60 }
 0xc08   :  { %12843 = vmatpush1.bf16.msra.mxu0 %v14030_v21  ;;  %12872 = vmatpush3.bf16.msra.mxu1 %v14105_v46 }
 0xc09   :  { %12845 = vmatprep.subr.bf16.mxu0 %v17106_v20  ;;  %12873 = vmatprep.subr.bf16.mxu1 %v16897_v60 }
 0xc0c   :  { %12847 = vmatpush1.bf16.msra.mxu0 %v17107_v47  ;;  %12875 = vmatpush3.bf16.msra.mxu1 %v17108_v26  ;;  %v17124_v47 = vld [vmem:[#allocation22_spill] sm:$0xff] }
 0xc0d   :  { %12849 = vmatprep.subr.bf16.mxu0 %v17109_v53  ;;  %12876 = vmatprep.subr.bf16.mxu1 %v16897_v60 }
 0xc10   :  { %12851 = vmatpush1.bf16.msra.mxu0 %v17110_v57  ;;  %12878 = vmatpush3.bf16.msra.mxu1 %v17111_v22 }
 0xc11   :  { %12853 = vmatprep.subr.bf16.mxu0 %v17112_v32  ;;  %12879 = vmatprep.subr.bf16.mxu1 %v16897_v60 }
 0xc14   :  { %12855 = vmatpush1.bf16.msra.mxu0 %v17113_v1  ;;  %12881 = vmatpush3.bf16.msra.mxu1 %v17114_v7 }
 0xc15   :  { %12857 = vmatprep.subr.bf16.mxu0 %v17115_v44  ;;  %12882 = vmatprep.subr.bf16.mxu1 %v16897_v60 }
 0xc18   :  { %12859 = vmatpush1.bf16.msra.mxu0 %v17116_v14  ;;  %12884 = vmatpush3.bf16.msra.mxu1 %v17117_v33 }
 0xc19   :  { %12861 = vmatprep.subr.bf16.mxu0 %v17118_v27  ;;  %12885 = vmatprep.subr.bf16.mxu1 %v16897_v60  ;;  %v9763_v27 = vld [vmem:[%s16823_s0 + $0x1b] ss:$8 sm:$0x7] }
 0xc1c   :  { %12863 = vmatpush1.bf16.msra.mxu0 %v17119_v0  ;;  %12887 = vmatpush3.bf16.msra.mxu1 %v17120_v42 }
 0xc1d   :  { %12889 = vmatprep.subr.bf16.mxu0 %v17121_v51  ;;  %12920 = vmatprep.subr.bf16.mxu1 %v16897_v60  ;;  %v9764_v51 = vld [vmem:[%s16823_s0 + $0x4b] ss:$8 sm:$0x7] }
 0xc1e   :  { %v6844_v44 = vrot.slane %v9764_v51, 1 }
 0xcb2   :  { %v6727_v28 = vpop.f32.mrb[44].mxu0  ;;  %v6798_v13 = vpop.f32.mrb[44].mxu1 }
 0xcb3   :  { %v6728_v55 = vadd.f32 %v6727_v28, %v17122_v3  ;;  %v6729_v2 = vpop.f32.mrb[45].mxu0  ;;  %v11172_v31 = vpop.f32.mrb[45].mxu1  ;;  %v6843_v28 = vrot.slane %v9763_v27, 1 }
 0xcb4   :  { %v6730_v41 = vadd.f32 %v6729_v2, %v17123_v12 }
 0xcb5   :  { %v6809_v0 = vrot.slane %v6728_v55, %v14481_v38 }
 0xcb6   :  { %v6854_v42 = vrot.slane %v6730_v41, %v14481_v38 }
 0xcb7   :  { %v6810_v33 = vcombine.high %v6809_v0, %v6809_v0  ;;  %v6817_v14 = vrot.slane %v6809_v0, %v14481_v38 }
 0xcb8   :  { %v6855_v3 = vcombine.high %v6854_v42, %v6854_v42  ;;  %v6862_v31 = vrot.slane %v6854_v42, %v14481_v38 }
 0xcb9   :  { %v6824_v2 = vrot.slane %v6810_v33, %v14481_v38  ;;  %v6827_v12 = vadd.f32 %v9763_v27, %v6817_v14  ;;  %v6799_v33 = vadd.f32 %v6798_v13, %v17124_v47 }
 0xcba   :  { %v6869_v7 = vrot.slane %v6855_v3, %v14481_v38  ;;  %v6872_v32 = vadd.f32 %v6862_v31, %v6843_v28 }
 0xcbb   :  { %v6828_v55 = vadd.f32 %v9764_v51, %v6824_v2  ;;  %v9765_v1 = vmul.f32 -1.442695, %v6827_v12  ;;  %v6893_v3 = vrot.slane %v6799_v33, %v14481_v38 }
 0xcbc   :  { %v6873_v57 = vadd.f32 %v6869_v7, %v6844_v44  ;;  %v9767_v41 = vmul.f32 -1.442695, %v6872_v32  ;;  %v17125_v44 = vld [vmem:[#allocation23_spill] sm:$0xff] }
 0xcbd   :  { %13724 = vpow2.f32 %v9765_v1  ;;  %v9766_v22 = vmul.f32 -1.442695, %v6828_v55  ;;  %v6894_v1 = vcombine.high %v6893_v3, %v6893_v3 }
 0xcbe   :  { %v9768_v53 = vmul.f32 -1.442695, %v6873_v57  ;;  %v6901_v57 = vrot.slane %v6893_v3, %v14481_v38 }
 0xcbf   :  { %13726 = vpow2.f32 %v9766_v22  ;;  %v6908_v33 = vrot.slane %v6894_v1, %v14481_v38 }
 0xcc0   :  { %13728 = vpow2.f32 %v9767_v41 }
 0xcc1   :  { %13730 = vpow2.f32 %v9768_v53  ;;  %v6913_v53 = vrot.slane %v9763_v27, 2 }
 0xcc7   :  { %v13725_v0 = vpop.eup %13724 }
 0xcc8   :  { %v6835_v26 = vadd.f32 1.0, %v13725_v0  ;;  %v6914_v0 = vrot.slane %v9764_v51, 2  ;;  %v16215_v51 = vld [vmem:[%s16825_s1 + $0x34] ss:$8 sm:$0x7] }
 0xcc9   :  { %v13727_v42 = vpop.eup %13726 }
 0xcca   :  { %v6836_v14 = vadd.f32 1.0, %v13727_v42  ;;  %13732 = vrcp.f32 %v6835_v26  ;;  %v13729_v12 = vpop.eup %13728  ;;  %v17126_v26 = vld [vmem:[#allocation24_spill] sm:$0xff] }
 0xccb   :  { %v13731_v28 = vpop.eup %13730  ;;  %v6880_v31 = vadd.f32 1.0, %v13729_v12  ;;  %v16208_v12 = vld [vmem:[%s16825_s1 + $0x4] ss:$8 sm:$0x7] }
 0xccc   :  { %13734 = vrcp.f32 %v6836_v14  ;;  %v6881_v7 = vadd.f32 1.0, %v13731_v28 }
 0xccd   :  { %13736 = vrcp.f32 %v6880_v31 }
 0xcce   :  { %13738 = vrcp.f32 %v6881_v7 }
 0xcd2   :  { %v7019_v22 = vpop.f32.mrb[46].mxu0  ;;  %v7090_v32 = vpop.f32.mrb[46].mxu1 }
 0xcd3   :  { %v7020_v2 = vadd.f32 %v7019_v22, %v17125_v44  ;;  %v7021_v55 = vpop.f32.mrb[47].mxu0  ;;  %v11207_v41 = vpop.f32.mrb[47].mxu1 }
 0xcd4   :  { %v13733_v13 = vpop.eup %13732  ;;  %v7022_v42 = vadd.f32 %v7021_v55, %v17126_v26 }
 0xcd5   :  { %v6911_v14 = vmul.f32 %v13733_v13, %v6901_v57  ;;  %v7101_v3 = vrot.slane %v7020_v2, %v14481_v38  ;;  %v7135_v57 = vrot.slane %v16208_v12, 1 }
 0xcd6   :  { %v13735_v27 = vpop.eup %13734  ;;  %v7146_v28 = vrot.slane %v7022_v42, %v14481_v38 }
 0xcd7   :  { %v6912_v22 = vmul.f32 %v13735_v27, %v6908_v33  ;;  %v6917_v41 = vadd.f32 %v6913_v53, %v6911_v14  ;;  %v7102_v1 = vcombine.high %v7101_v3, %v7101_v3  ;;  %v7109_v31 = vrot.slane %v7101_v3, %v14481_v38  ;;  %v13737_v47 = vpop.eup %13736 }
 0xcd8   :  { %v7147_v55 = vcombine.high %v7146_v28, %v7146_v28  ;;  %v7154_v13 = vrot.slane %v7146_v28, %v14481_v38  ;;  %v7136_v53 = vrot.slane %v16215_v51, 1 }
 0xcd9   :  { %v6918_v2 = vadd.f32 %v6914_v0, %v6912_v22  ;;  %13740 = vtanh.f32 %v6917_v41  ;;  %v7116_v7 = vrot.slane %v7102_v1, %v14481_v38  ;;  %v7119_v42 = vadd.f32 %v16208_v12, %v7109_v31  ;;  %v13739_v0 = vpop.eup %13738 }
 0xcda   :  { %v7161_v33 = vrot.slane %v7147_v55, %v14481_v38  ;;  %v7164_v3 = vadd.f32 %v7154_v13, %v7135_v57  ;;  %v6921_v41 = vsub.f32 1.0, %v13737_v47  ;;  %v6922_v31 = vsub.f32 1.0, %v13739_v0 }
 0xcdb   :  { %13742 = vtanh.f32 %v6918_v2  ;;  %v7120_v14 = vadd.f32 %v16215_v51, %v7116_v7  ;;  %v9771_v27 = vmul.f32 -1.442695, %v7119_v42  ;;  %v6925_v55 = vmul.f32 %v13737_v47, %v16075_v50 }
 0xcdc   :  { %v7165_v44 = vadd.f32 %v7161_v33, %v7136_v53  ;;  %v9773_v28 = vmul.f32 -1.442695, %v7164_v3  ;;  %v6926_v57 = vmul.f32 %v13739_v0, %v16077_v54  ;;  %v7091_v33 = vadd.f32 %v7090_v32, %v14551_v43 }
 0xcdd   :  { %13744 = vpow2.f32 %v9771_v27  ;;  %v9772_v26 = vmul.f32 -1.442695, %v7120_v14 }
 0xcde   :  { %v9774_v22 = vmul.f32 -1.442695, %v7165_v44  ;;  %v7185_v47 = vrot.slane %v7091_v33, %v14481_v38 }
 0xcdf   :  { %13746 = vpow2.f32 %v9772_v26 }
 0xce0   :  { %13748 = vpow2.f32 %v9773_v28  ;;  %v7186_v32 = vcombine.high %v7185_v47, %v7185_v47  ;;  %v7193_v28 = vrot.slane %v7185_v47, %v14481_v38 }
 0xce1   :  { %13750 = vpow2.f32 %v9774_v22  ;;  %v7205_v22 = vrot.slane %v16208_v12, 2 }
 0xce3   :  { %v13741_v1 = vpop.eup %13740 }
 0xce4   :  { %v6923_v20 = vmul.f32 %v13741_v1, %v6921_v41 }
 0xce5   :  { %v13743_v2 = vpop.eup %13742 }
 0xce6   :  { %v6924_v7 = vmul.f32 %v13743_v2, %v6922_v31  ;;  %v16227_v13 = vadd.f32 %v6925_v55, %v6923_v20  ;;  %v7200_v31 = vrot.slane %v7186_v32, %v14481_v38  ;;  %v7206_v2 = vrot.slane %v16215_v51, 2 }
 0xce7   :  { %v13745_v42 = vpop.eup %13744 }
 0xce8   :  { %v7127_v53 = vadd.f32 1.0, %v13745_v42  ;;  %v16229_v26 = vadd.f32 %v6926_v57, %v6924_v7  ;;  %6929 = vst [vmem:[%s16826_s6 + $0xb] sm:$0x1] %v16227_v13 }
 0xce9   :  { %v13747_v44 = vpop.eup %13746 }
 0xcea   :  { %v7128_v50 = vadd.f32 1.0, %v13747_v44  ;;  %13752 = vrcp.f32 %v7127_v53  ;;  %6930 = vst [vmem:[%s16826_s6 + $0x1b] sm:$0x1] %v16229_v26  ;;  %v7229_v54 = vcombine.low %v16227_v13, %v16229_v26  ;;  %v13749_v14 = vpop.eup %13748 }
 0xceb   :  { %v13751_v3 = vpop.eup %13750  ;;  %v7172_v0 = vadd.f32 1.0, %v13749_v14 }
 0xcec   :  { %13754 = vrcp.f32 %v7128_v50  ;;  %v7236_v20 = vrot.slane %v7229_v54, %v14481_v38  ;;  %v7173_v41 = vadd.f32 1.0, %v13751_v3 }
 0xced   :  { %13756 = vrcp.f32 %v7172_v0 }
 0xcee   :  { %v7243_v27 = vrot.slane %v7236_v20, %v14481_v38  ;;  %13758 = vrcp.f32 %v7173_v41  ;;  %v17129_v41 = vld [vmem:[#allocation11_spill] sm:$0xff] }
 0xcf0   :  { %7310 = vmatmul.mubr.f32.vlgmr.msra.gmra.mrb[48].mxu0 %v7243_v27  ;;  %11241 = vmatmul.mubr.f32.vlgmr.msra.gmra.mrb[48].mxu1 %v7243_v27 }
 0xcf1   :  { %12891 = vmatpush1.bf16.msra.mxu0 %v14204_v23  ;;  %12922 = vmatpush3.bf16.msra.mxu1 %v14277_v56 }
 0xcf2   :  { %12893 = vmatprep.subr.bf16.mxu0 %v14207_v24  ;;  %12923 = vmatprep.subr.bf16.mxu1 %v16897_v60 }
 0xcf3   :  { %7601 = vmatprep.mubr.f32.mxu0 %v16898_v59  ;;  %11275 = vmatprep.mubr.msk.f32.mxu1 %vm13926_vm0, %v16898_v59 }
 0xcf4   :  { %v13753_v1 = vpop.eup %13752 }
 0xcf5   :  { %v7203_v55 = vmul.f32 %v13753_v1, %v7193_v28  ;;  %12895 = vmatpush1.bf16.msra.mxu0 %v14233_v35  ;;  %12925 = vmatpush3.bf16.msra.mxu1 %v14306_v11  ;;  %v17127_v28 = vld [vmem:[#allocation4_spill] sm:$0xff]  ;;  %v17130_v1 = vld [vmem:[#allocation6_spill] sm:$0xff] }
 0xcf6   :  { %v13755_v7 = vpop.eup %13754  ;;  %12897 = vmatprep.subr.bf16.mxu0 %v14237_v36  ;;  %12926 = vmatprep.subr.bf16.mxu1 %v16897_v60 }
 0xcf7   :  { %v7204_v12 = vmul.f32 %v13755_v7, %v7200_v31  ;;  %v7209_v57 = vadd.f32 %v7205_v22, %v7203_v55  ;;  %v13757_v51 = vpop.eup %13756  ;;  %v17128_v22 = vld [vmem:[#allocation5_spill] sm:$0xff]  ;;  %v17131_v31 = vld [vmem:[#allocation7_spill] sm:$0xff]  ;;  %v17132_v55 = vld [vmem:[#allocation14_spill] sm:$0xff] }
 0xcf8   :  { %v13759_v53 = vpop.eup %13758  ;;  %v7213_v44 = vsub.f32 1.0, %v13757_v51  ;;  %v7217_v20 = vmul.f32 %v13757_v51, %v16126_v8  ;;  %v17134_v7 = vld [vmem:[#allocation9_spill] sm:$0xff]  ;;  %v17138_v51 = vld [vmem:[#allocation18_spill] sm:$0xff] }
 0xcf9   :  { %v7210_v42 = vadd.f32 %v7206_v2, %v7204_v12  ;;  %13760 = vtanh.f32 %v7209_v57  ;;  %12899 = vmatpush1.bf16.msra.mxu0 %v14262_v48  ;;  %12928 = vmatpush3.bf16.msra.mxu1 %v14336_v30  ;;  %v7214_v50 = vsub.f32 1.0, %v13759_v53  ;;  %v7218_v27 = vmul.f32 %v13759_v53, %v16128_v4  ;;  %v17133_v2 = vld [vmem:[#allocation8_spill] sm:$0xff]  ;;  %v17135_v12 = vld [vmem:[#allocation17_spill] sm:$0xff]  ;;  %v17136_v57 = vld [vmem:[#allocation10_spill] sm:$0xff] }
 0xcfa   :  { %12901 = vmatprep.subr.bf16.mxu0 %v14265_v49  ;;  %12929 = vmatprep.subr.bf16.mxu1 %v16897_v60  ;;  %v17139_v53 = vld [vmem:[#allocation13_spill] sm:$0xff] }
 0xcfb   :  { %13762 = vtanh.f32 %v7210_v42  ;;  %v17137_v42 = vld [vmem:[#allocation12_spill] sm:$0xff] }
 0xcfd   :  { %12903 = vmatpush1.bf16.msra.mxu0 %v14290_v62  ;;  %12931 = vmatpush3.bf16.msra.mxu1 %v14364_v52 }
 0xcfe   :  { %12905 = vmatprep.subr.bf16.mxu0 %v14294_v63  ;;  %12932 = vmatprep.subr.bf16.mxu1 %v16897_v60 }
 0xd01   :  { %12907 = vmatpush1.bf16.msra.mxu0 %v14321_v18  ;;  %12934 = vmatpush3.bf16.msra.mxu1 %v14389_v6 }
 0xd02   :  { %12909 = vmatprep.subr.bf16.mxu0 %v14324_v19  ;;  %12935 = vmatprep.subr.bf16.mxu1 %v16897_v60 }
 0xd03   :  { %v13761_v33 = vpop.eup %13760 }
 0xd04   :  { %v7215_v54 = vmul.f32 %v13761_v33, %v7213_v44  ;;  %v17140_v44 = vld [vmem:[#allocation15_spill] sm:$0xff] }
 0xd05   :  { %v13763_v47 = vpop.eup %13762  ;;  %12911 = vmatpush1.bf16.msra.mxu0 %v14349_v39  ;;  %12937 = vmatpush3.bf16.msra.mxu1 %v14403_v25  ;;  %v17141_v33 = vld [vmem:[#allocation19_spill] sm:$0xff] }
 0xd06   :  { %12913 = vmatprep.subr.bf16.mxu0 %v14352_v40  ;;  %12938 = vmatprep.subr.bf16.mxu1 %v16897_v60  ;;  %v7216_v14 = vmul.f32 %v13763_v47, %v7214_v50  ;;  %v16278_v3 = vadd.f32 %v7217_v20, %v7215_v54  ;;  %v17142_v50 = vld [vmem:[#allocation16_spill] sm:$0xff] }
 0xd07   :  { %v17143_v47 = vld [vmem:[#allocation20_spill] sm:$0xff] }
 0xd08   :  { %v16280_v32 = vadd.f32 %v7218_v27, %v7216_v14  ;;  %7221 = vst [vmem:[%s16827_s7 + $0x4] sm:$0x1] %v16278_v3 }
 0xd09   :  { %12915 = vmatpush1.bf16.msra.mxu0 %v14377_v58  ;;  %12940 = vmatpush3.bf16.msra.mxu1 %v14416_v34 }
 0xd0a   :  { %12917 = vmatprep.subr.bf16.mxu0 %v14380_v61  ;;  %12941 = vmatprep.subr.bf16.mxu1 %v16897_v60  ;;  %7222 = vst [vmem:[%s16827_s7 + $0x14] sm:$0x1] %v16280_v32  ;;  %v7521_v8 = vcombine.low %v16278_v3, %v16280_v32 }
 0xd0c   :  { %v7528_v4 = vrot.slane %v7521_v8, %v14481_v38 }
 0xd0d   :  { %12919 = vmatpush1.bf16.msra.mxu0 %v14399_v17  ;;  %12943 = vmatpush3.bf16.msra.mxu1 %v14430_v45 }
 0xd0e   :  { %v7535_v0 = vrot.slane %v7528_v4, %v14481_v38  ;;  %12945 = vmatprep.subr.bf16.mxu0 %v13981_v5  ;;  %12976 = vmatprep.subr.bf16.mxu1 %v16897_v60  ;;  %v17144_v4 = vld [vmem:[#allocation21_spill] sm:$0xff] }
 0xd10   :  { %7602 = vmatmul.mubr.f32.vlgmr.msra.gmra.mrb[50].mxu0 %v7535_v0  ;;  %11276 = vmatmul.mubr.f32.vlgmr.msra.gmra.mrb[50].mxu1 %v7535_v0 }
 0xd11   :  { %12947 = vmatpush1.bf16.msra.mxu0 %v13994_v9  ;;  %12978 = vmatpush3.bf16.msra.mxu1 %v14053_v29 }
 0xd12   :  { %12949 = vmatprep.subr.bf16.mxu0 %v13996_v10  ;;  %12979 = vmatprep.subr.bf16.mxu1 %v16897_v60 }
 0xd13   :  { %7893 = vmatprep.mubr.f32.mxu0 %v16898_v59  ;;  %11310 = vmatprep.mubr.msk.f32.mxu1 %vm13926_vm0, %v16898_v59 }
 0xd15   :  { %12951 = vmatpush1.bf16.msra.mxu0 %v14012_v15  ;;  %12981 = vmatpush3.bf16.msra.mxu1 %v14077_v37 }
 0xd16   :  { %12953 = vmatprep.subr.bf16.mxu0 %v14015_v16  ;;  %12982 = vmatprep.subr.bf16.mxu1 %v16897_v60 }
 0xd19   :  { %12955 = vmatpush1.bf16.msra.mxu0 %v14030_v21  ;;  %12984 = vmatpush3.bf16.msra.mxu1 %v14105_v46 }
 0xd1a   :  { %12957 = vmatprep.subr.bf16.mxu0 %v17127_v28  ;;  %12985 = vmatprep.subr.bf16.mxu1 %v16897_v60 }
 0xd1d   :  { %12959 = vmatpush1.bf16.msra.mxu0 %v17128_v22  ;;  %12987 = vmatpush3.bf16.msra.mxu1 %v17129_v41  ;;  %v17145_v22 = vld [vmem:[#allocation22_spill] sm:$0xff] }
 0xd1e   :  { %12961 = vmatprep.subr.bf16.mxu0 %v17130_v1  ;;  %12988 = vmatprep.subr.bf16.mxu1 %v16897_v60 }
 0xd21   :  { %12963 = vmatpush1.bf16.msra.mxu0 %v17131_v31  ;;  %12990 = vmatpush3.bf16.msra.mxu1 %v17132_v55 }
 0xd22   :  { %12965 = vmatprep.subr.bf16.mxu0 %v17133_v2  ;;  %12991 = vmatprep.subr.bf16.mxu1 %v16897_v60 }
 0xd25   :  { %12967 = vmatpush1.bf16.msra.mxu0 %v17134_v7  ;;  %12993 = vmatpush3.bf16.msra.mxu1 %v17135_v12 }
 0xd26   :  { %12969 = vmatprep.subr.bf16.mxu0 %v17136_v57  ;;  %12994 = vmatprep.subr.bf16.mxu1 %v16897_v60 }
 0xd29   :  { %12971 = vmatpush1.bf16.msra.mxu0 %v17137_v42  ;;  %12996 = vmatpush3.bf16.msra.mxu1 %v17138_v51 }
 0xd2a   :  { %12973 = vmatprep.subr.bf16.mxu0 %v17139_v53  ;;  %12997 = vmatprep.subr.bf16.mxu1 %v16897_v60  ;;  %v9775_v53 = vld [vmem:[%s16823_s0 + $0x1c] ss:$8 sm:$0x7] }
 0xd2d   :  { %12975 = vmatpush1.bf16.msra.mxu0 %v17140_v44  ;;  %12999 = vmatpush3.bf16.msra.mxu1 %v17141_v33 }
 0xd2e   :  { %13001 = vmatprep.subr.bf16.mxu0 %v17142_v50  ;;  %13032 = vmatprep.subr.bf16.mxu1 %v16897_v60  ;;  %v9776_v50 = vld [vmem:[%s16823_s0 + $0x4c] ss:$8 sm:$0x7] }
 0xd2f   :  { %v7428_v57 = vrot.slane %v9776_v50, 1 }
 0xdc3   :  { %v7311_v54 = vpop.f32.mrb[48].mxu0  ;;  %v7382_v20 = vpop.f32.mrb[48].mxu1 }
 0xdc4   :  { %v7312_v14 = vadd.f32 %v7311_v54, %v17143_v47  ;;  %v7313_v27 = vpop.f32.mrb[49].mxu0  ;;  %v11242_v8 = vpop.f32.mrb[49].mxu1  ;;  %v7427_v54 = vrot.slane %v9775_v53, 1 }
 0xdc5   :  { %v7314_v0 = vadd.f32 %v7313_v27, %v17144_v4 }
 0xdc6   :  { %v7393_v44 = vrot.slane %v7312_v14, %v14481_v38 }
 0xdc7   :  { %v7438_v33 = vrot.slane %v7314_v0, %v14481_v38 }
 0xdc8   :  { %v7394_v51 = vcombine.high %v7393_v44, %v7393_v44  ;;  %v7401_v42 = vrot.slane %v7393_v44, %v14481_v38 }
 0xdc9   :  { %v7439_v47 = vcombine.high %v7438_v33, %v7438_v33  ;;  %v7446_v8 = vrot.slane %v7438_v33, %v14481_v38 }
 0xdca   :  { %v7408_v27 = vrot.slane %v7394_v51, %v14481_v38  ;;  %v7411_v4 = vadd.f32 %v9775_v53, %v7401_v42  ;;  %v7383_v51 = vadd.f32 %v7382_v20, %v17145_v22 }
 0xdcb   :  { %v7453_v12 = vrot.slane %v7439_v47, %v14481_v38  ;;  %v7456_v2 = vadd.f32 %v7446_v8, %v7427_v54 }
 0xdcc   :  { %v7412_v14 = vadd.f32 %v9776_v50, %v7408_v27  ;;  %v9777_v7 = vmul.f32 -1.442695, %v7411_v4  ;;  %v7477_v47 = vrot.slane %v7383_v51, %v14481_v38 }
 0xdcd   :  { %v7457_v31 = vadd.f32 %v7453_v12, %v7428_v57  ;;  %v9779_v0 = vmul.f32 -1.442695, %v7456_v2  ;;  %v17146_v57 = vld [vmem:[#allocation23_spill] sm:$0xff] }
 0xdce   :  { %13764 = vpow2.f32 %v9777_v7  ;;  %v9778_v55 = vmul.f32 -1.442695, %v7412_v14  ;;  %v7478_v7 = vcombine.high %v7477_v47, %v7477_v47 }
 0xdcf   :  { %v9780_v1 = vmul.f32 -1.442695, %v7457_v31  ;;  %v7485_v31 = vrot.slane %v7477_v47, %v14481_v38 }
 0xdd0   :  { %13766 = vpow2.f32 %v9778_v55  ;;  %v7492_v51 = vrot.slane %v7478_v7, %v14481_v38 }
 0xdd1   :  { %13768 = vpow2.f32 %v9779_v0 }
 0xdd2   :  { %13770 = vpow2.f32 %v9780_v1  ;;  %v7497_v1 = vrot.slane %v9775_v53, 2 }
 0xdd8   :  { %v13765_v44 = vpop.eup %13764 }
 0xdd9   :  { %v7419_v41 = vadd.f32 1.0, %v13765_v44  ;;  %v7498_v44 = vrot.slane %v9776_v50, 2  ;;  %v16367_v50 = vld [vmem:[%s16825_s1 + $0x33] ss:$8 sm:$0x7] }
 0xdda   :  { %v13767_v33 = vpop.eup %13766 }
 0xddb   :  { %v7420_v42 = vadd.f32 1.0, %v13767_v33  ;;  %13772 = vrcp.f32 %v7419_v41  ;;  %v13769_v4 = vpop.eup %13768  ;;  %v17147_v41 = vld [vmem:[#allocation24_spill] sm:$0xff] }
 0xddc   :  { %v13771_v54 = vpop.eup %13770  ;;  %v7464_v8 = vadd.f32 1.0, %v13769_v4  ;;  %v16360_v4 = vld [vmem:[%s16825_s1 + $0x3] ss:$8 sm:$0x7] }
 0xddd   :  { %13774 = vrcp.f32 %v7420_v42  ;;  %v7465_v12 = vadd.f32 1.0, %v13771_v54 }
 0xdde   :  { %13776 = vrcp.f32 %v7464_v8 }
 0xddf   :  { %13778 = vrcp.f32 %v7465_v12 }
 0xde3   :  { %v7603_v55 = vpop.f32.mrb[50].mxu0  ;;  %v7674_v2 = vpop.f32.mrb[50].mxu1 }
 0xde4   :  { %v7604_v27 = vadd.f32 %v7603_v55, %v17146_v57  ;;  %v7605_v14 = vpop.f32.mrb[51].mxu0  ;;  %v11277_v0 = vpop.f32.mrb[51].mxu1 }
 0xde5   :  { %v13773_v20 = vpop.eup %13772  ;;  %v7606_v33 = vadd.f32 %v7605_v14, %v17147_v41 }
 0xde6   :  { %v7495_v42 = vmul.f32 %v13773_v20, %v7485_v31  ;;  %v7685_v47 = vrot.slane %v7604_v27, %v14481_v38  ;;  %v7719_v31 = vrot.slane %v16360_v4, 1 }
 0xde7   :  { %v13775_v53 = vpop.eup %13774  ;;  %v7730_v54 = vrot.slane %v7606_v33, %v14481_v38 }
 0xde8   :  { %v7496_v55 = vmul.f32 %v13775_v53, %v7492_v51  ;;  %v7501_v0 = vadd.f32 %v7497_v1, %v7495_v42  ;;  %v7686_v7 = vcombine.high %v7685_v47, %v7685_v47  ;;  %v7693_v8 = vrot.slane %v7685_v47, %v14481_v38  ;;  %v13777_v22 = vpop.eup %13776 }
 0xde9   :  { %v7731_v14 = vcombine.high %v7730_v54, %v7730_v54  ;;  %v7738_v20 = vrot.slane %v7730_v54, %v14481_v38  ;;  %v7720_v1 = vrot.slane %v16367_v50, 1 }
 0xdea   :  { %v7502_v27 = vadd.f32 %v7498_v44, %v7496_v55  ;;  %13780 = vtanh.f32 %v7501_v0  ;;  %v7700_v12 = vrot.slane %v7686_v7, %v14481_v38  ;;  %v7703_v33 = vadd.f32 %v16360_v4, %v7693_v8  ;;  %v13779_v44 = vpop.eup %13778 }
 0xdeb   :  { %v7745_v51 = vrot.slane %v7731_v14, %v14481_v38  ;;  %v7748_v47 = vadd.f32 %v7738_v20, %v7719_v31  ;;  %v7505_v0 = vsub.f32 1.0, %v13777_v22  ;;  %v7506_v8 = vsub.f32 1.0, %v13779_v44 }
 0xdec   :  { %13782 = vtanh.f32 %v7502_v27  ;;  %v7704_v42 = vadd.f32 %v16367_v50, %v7700_v12  ;;  %v9783_v53 = vmul.f32 -1.442695, %v7703_v33  ;;  %v7509_v14 = vmul.f32 %v13777_v22, %v16227_v13 }
 0xded   :  { %v7749_v57 = vadd.f32 %v7745_v51, %v7720_v1  ;;  %v9785_v54 = vmul.f32 -1.442695, %v7748_v47  ;;  %v7510_v31 = vmul.f32 %v13779_v44, %v16229_v26  ;;  %v7675_v51 = vadd.f32 %v7674_v2, %v14551_v43 }
 0xdee   :  { %13784 = vpow2.f32 %v9783_v53  ;;  %v9784_v41 = vmul.f32 -1.442695, %v7704_v42 }
 0xdef   :  { %v9786_v55 = vmul.f32 -1.442695, %v7749_v57  ;;  %v7769_v22 = vrot.slane %v7675_v51, %v14481_v38 }
 0xdf0   :  { %13786 = vpow2.f32 %v9784_v41 }
 0xdf1   :  { %13788 = vpow2.f32 %v9785_v54  ;;  %v7770_v2 = vcombine.high %v7769_v22, %v7769_v22  ;;  %v7777_v54 = vrot.slane %v7769_v22, %v14481_v38 }
 0xdf2   :  { %13790 = vpow2.f32 %v9786_v55  ;;  %v7789_v55 = vrot.slane %v16360_v4, 2 }
 0xdf4   :  { %v13781_v7 = vpop.eup %13780 }
 0xdf5   :  { %v7507_v28 = vmul.f32 %v13781_v7, %v7505_v0 }
 0xdf6   :  { %v13783_v27 = vpop.eup %13782 }
 0xdf7   :  { %v7508_v12 = vmul.f32 %v13783_v27, %v7506_v8  ;;  %v16379_v20 = vadd.f32 %v7509_v14, %v7507_v28  ;;  %v7784_v8 = vrot.slane %v7770_v2, %v14481_v38  ;;  %v7790_v27 = vrot.slane %v16367_v50, 2 }
 0xdf8   :  { %v13785_v33 = vpop.eup %13784 }
 0xdf9   :  { %v7711_v1 = vadd.f32 1.0, %v13785_v33  ;;  %v16381_v41 = vadd.f32 %v7510_v31, %v7508_v12  ;;  %7513 = vst [vmem:[%s16826_s6 + $0xc] sm:$0x1] %v16379_v20 }
 0xdfa   :  { %v13787_v57 = vpop.eup %13786 }
 0xdfb   :  { %v7712_v13 = vadd.f32 1.0, %v13787_v57  ;;  %13792 = vrcp.f32 %v7711_v1  ;;  %7514 = vst [vmem:[%s16826_s6 + $0x1c] sm:$0x1] %v16381_v41  ;;  %v7813_v26 = vcombine.low %v16379_v20, %v16381_v41  ;;  %v13789_v42 = vpop.eup %13788 }
 0xdfc   :  { %v13791_v47 = vpop.eup %13790  ;;  %v7756_v44 = vadd.f32 1.0, %v13789_v42 }
 0xdfd   :  { %13794 = vrcp.f32 %v7712_v13  ;;  %v7820_v28 = vrot.slane %v7813_v26, %v14481_v38  ;;  %v7757_v0 = vadd.f32 1.0, %v13791_v47 }
 0xdfe   :  { %13796 = vrcp.f32 %v7756_v44 }
 0xdff   :  { %v7827_v53 = vrot.slane %v7820_v28, %v14481_v38  ;;  %13798 = vrcp.f32 %v7757_v0  ;;  %v17150_v0 = vld [vmem:[#allocation11_spill] sm:$0xff] }
 0xe01   :  { %7894 = vmatmul.mubr.f32.vlgmr.msra.gmra.mrb[52].mxu0 %v7827_v53  ;;  %11311 = vmatmul.mubr.f32.vlgmr.msra.gmra.mrb[52].mxu1 %v7827_v53 }
 0xe02   :  { %13003 = vmatpush1.bf16.msra.mxu0 %v14204_v23  ;;  %13034 = vmatpush3.bf16.msra.mxu1 %v14277_v56 }
 0xe03   :  { %13005 = vmatprep.subr.bf16.mxu0 %v14207_v24  ;;  %13035 = vmatprep.subr.bf16.mxu1 %v16897_v60 }
 0xe04   :  { %8185 = vmatprep.mubr.f32.mxu0 %v16898_v59  ;;  %11345 = vmatprep.mubr.msk.f32.mxu1 %vm13926_vm0, %v16898_v59 }
 0xe05   :  { %v13793_v7 = vpop.eup %13792 }
 0xe06   :  { %v7787_v14 = vmul.f32 %v13793_v7, %v7777_v54  ;;  %13007 = vmatpush1.bf16.msra.mxu0 %v14233_v35  ;;  %13037 = vmatpush3.bf16.msra.mxu1 %v14306_v11  ;;  %v17148_v54 = vld [vmem:[#allocation4_spill] sm:$0xff]  ;;  %v17151_v7 = vld [vmem:[#allocation6_spill] sm:$0xff] }
 0xe07   :  { %v13795_v12 = vpop.eup %13794  ;;  %13009 = vmatprep.subr.bf16.mxu0 %v14237_v36  ;;  %13038 = vmatprep.subr.bf16.mxu1 %v16897_v60 }
 0xe08   :  { %v7788_v4 = vmul.f32 %v13795_v12, %v7784_v8  ;;  %v7793_v31 = vadd.f32 %v7789_v55, %v7787_v14  ;;  %v13797_v50 = vpop.eup %13796  ;;  %v17149_v55 = vld [vmem:[#allocation5_spill] sm:$0xff]  ;;  %v17152_v8 = vld [vmem:[#allocation7_spill] sm:$0xff]  ;;  %v17153_v14 = vld [vmem:[#allocation14_spill] sm:$0xff] }
 0xe09   :  { %v13799_v1 = vpop.eup %13798  ;;  %v7797_v57 = vsub.f32 1.0, %v13797_v50  ;;  %v7801_v28 = vmul.f32 %v13797_v50, %v16278_v3  ;;  %v17155_v12 = vld [vmem:[#allocation9_spill] sm:$0xff]  ;;  %v17159_v50 = vld [vmem:[#allocation18_spill] sm:$0xff] }
 0xe0a   :  { %v7794_v33 = vadd.f32 %v7790_v27, %v7788_v4  ;;  %13800 = vtanh.f32 %v7793_v31  ;;  %13011 = vmatpush1.bf16.msra.mxu0 %v14262_v48  ;;  %13040 = vmatpush3.bf16.msra.mxu1 %v14336_v30  ;;  %v7798_v13 = vsub.f32 1.0, %v13799_v1  ;;  %v7802_v53 = vmul.f32 %v13799_v1, %v16280_v32  ;;  %v17154_v27 = vld [vmem:[#allocation8_spill] sm:$0xff]  ;;  %v17156_v4 = vld [vmem:[#allocation17_spill] sm:$0xff]  ;;  %v17157_v31 = vld [vmem:[#allocation10_spill] sm:$0xff] }
 0xe0b   :  { %13013 = vmatprep.subr.bf16.mxu0 %v14265_v49  ;;  %13041 = vmatprep.subr.bf16.mxu1 %v16897_v60  ;;  %v17160_v1 = vld [vmem:[#allocation13_spill] sm:$0xff] }
 0xe0c   :  { %13802 = vtanh.f32 %v7794_v33  ;;  %v17158_v33 = vld [vmem:[#allocation12_spill] sm:$0xff] }
 0xe0e   :  { %13015 = vmatpush1.bf16.msra.mxu0 %v14290_v62  ;;  %13043 = vmatpush3.bf16.msra.mxu1 %v14364_v52 }
 0xe0f   :  { %13017 = vmatprep.subr.bf16.mxu0 %v14294_v63  ;;  %13044 = vmatprep.subr.bf16.mxu1 %v16897_v60 }
 0xe12   :  { %13019 = vmatpush1.bf16.msra.mxu0 %v14321_v18  ;;  %13046 = vmatpush3.bf16.msra.mxu1 %v14389_v6 }
 0xe13   :  { %13021 = vmatprep.subr.bf16.mxu0 %v14324_v19  ;;  %13047 = vmatprep.subr.bf16.mxu1 %v16897_v60 }
 0xe14   :  { %v13801_v51 = vpop.eup %13800 }
 0xe15   :  { %v7799_v26 = vmul.f32 %v13801_v51, %v7797_v57  ;;  %v17161_v57 = vld [vmem:[#allocation15_spill] sm:$0xff] }
 0xe16   :  { %v13803_v22 = vpop.eup %13802  ;;  %13023 = vmatpush1.bf16.msra.mxu0 %v14349_v39  ;;  %13049 = vmatpush3.bf16.msra.mxu1 %v14403_v25  ;;  %v17162_v51 = vld [vmem:[#allocation19_spill] sm:$0xff] }
 0xe17   :  { %13025 = vmatprep.subr.bf16.mxu0 %v14352_v40  ;;  %13050 = vmatprep.subr.bf16.mxu1 %v16897_v60  ;;  %v7800_v42 = vmul.f32 %v13803_v22, %v7798_v13  ;;  %v16430_v47 = vadd.f32 %v7801_v28, %v7799_v26  ;;  %v17163_v13 = vld [vmem:[#allocation16_spill] sm:$0xff] }
 0xe18   :  { %v17164_v22 = vld [vmem:[#allocation20_spill] sm:$0xff] }
 0xe19   :  { %v16432_v2 = vadd.f32 %v7802_v53, %v7800_v42  ;;  %7805 = vst [vmem:[%s16827_s7 + $0x3] sm:$0x1] %v16430_v47 }
 0xe1a   :  { %13027 = vmatpush1.bf16.msra.mxu0 %v14377_v58  ;;  %13052 = vmatpush3.bf16.msra.mxu1 %v14416_v34 }
 0xe1b   :  { %13029 = vmatprep.subr.bf16.mxu0 %v14380_v61  ;;  %13053 = vmatprep.subr.bf16.mxu1 %v16897_v60  ;;  %7806 = vst [vmem:[%s16827_s7 + $0x13] sm:$0x1] %v16432_v2  ;;  %v8105_v3 = vcombine.low %v16430_v47, %v16432_v2 }
 0xe1d   :  { %v8112_v32 = vrot.slane %v8105_v3, %v14481_v38 }
 0xe1e   :  { %13031 = vmatpush1.bf16.msra.mxu0 %v14399_v17  ;;  %13055 = vmatpush3.bf16.msra.mxu1 %v14430_v45 }
 0xe1f   :  { %v8119_v44 = vrot.slane %v8112_v32, %v14481_v38  ;;  %13057 = vmatprep.subr.bf16.mxu0 %v13981_v5  ;;  %13088 = vmatprep.subr.bf16.mxu1 %v16897_v60  ;;  %v17165_v32 = vld [vmem:[#allocation21_spill] sm:$0xff] }
 0xe21   :  { %8186 = vmatmul.mubr.f32.vlgmr.msra.gmra.mrb[54].mxu0 %v8119_v44  ;;  %11346 = vmatmul.mubr.f32.vlgmr.msra.gmra.mrb[54].mxu1 %v8119_v44 }
 0xe22   :  { %13059 = vmatpush1.bf16.msra.mxu0 %v13994_v9  ;;  %13090 = vmatpush3.bf16.msra.mxu1 %v14053_v29 }
 0xe23   :  { %13061 = vmatprep.subr.bf16.mxu0 %v13996_v10  ;;  %13091 = vmatprep.subr.bf16.mxu1 %v16897_v60 }
 0xe24   :  { %8477 = vmatprep.mubr.f32.mxu0 %v16898_v59  ;;  %11380 = vmatprep.mubr.msk.f32.mxu1 %vm13926_vm0, %v16898_v59 }
 0xe26   :  { %13063 = vmatpush1.bf16.msra.mxu0 %v14012_v15  ;;  %13093 = vmatpush3.bf16.msra.mxu1 %v14077_v37 }
 0xe27   :  { %13065 = vmatprep.subr.bf16.mxu0 %v14015_v16  ;;  %13094 = vmatprep.subr.bf16.mxu1 %v16897_v60 }
 0xe2a   :  { %13067 = vmatpush1.bf16.msra.mxu0 %v14030_v21  ;;  %13096 = vmatpush3.bf16.msra.mxu1 %v14105_v46 }
 0xe2b   :  { %13069 = vmatprep.subr.bf16.mxu0 %v17148_v54  ;;  %13097 = vmatprep.subr.bf16.mxu1 %v16897_v60 }
 0xe2e   :  { %13071 = vmatpush1.bf16.msra.mxu0 %v17149_v55  ;;  %13099 = vmatpush3.bf16.msra.mxu1 %v17150_v0  ;;  %v17166_v55 = vld [vmem:[#allocation22_spill] sm:$0xff] }
 0xe2f   :  { %13073 = vmatprep.subr.bf16.mxu0 %v17151_v7  ;;  %13100 = vmatprep.subr.bf16.mxu1 %v16897_v60 }
 0xe32   :  { %13075 = vmatpush1.bf16.msra.mxu0 %v17152_v8  ;;  %13102 = vmatpush3.bf16.msra.mxu1 %v17153_v14 }
 0xe33   :  { %13077 = vmatprep.subr.bf16.mxu0 %v17154_v27  ;;  %13103 = vmatprep.subr.bf16.mxu1 %v16897_v60 }
 0xe36   :  { %13079 = vmatpush1.bf16.msra.mxu0 %v17155_v12  ;;  %13105 = vmatpush3.bf16.msra.mxu1 %v17156_v4 }
 0xe37   :  { %13081 = vmatprep.subr.bf16.mxu0 %v17157_v31  ;;  %13106 = vmatprep.subr.bf16.mxu1 %v16897_v60 }
 0xe3a   :  { %13083 = vmatpush1.bf16.msra.mxu0 %v17158_v33  ;;  %13108 = vmatpush3.bf16.msra.mxu1 %v17159_v50 }
 0xe3b   :  { %13085 = vmatprep.subr.bf16.mxu0 %v17160_v1  ;;  %13109 = vmatprep.subr.bf16.mxu1 %v16897_v60  ;;  %v9787_v1 = vld [vmem:[%s16823_s0 + $0x1d] ss:$8 sm:$0x7] }
 0xe3e   :  { %13087 = vmatpush1.bf16.msra.mxu0 %v17161_v57  ;;  %13111 = vmatpush3.bf16.msra.mxu1 %v17162_v51 }
 0xe3f   :  { %13113 = vmatprep.subr.bf16.mxu0 %v17163_v13  ;;  %13144 = vmatprep.subr.bf16.mxu1 %v16897_v60  ;;  %v9788_v13 = vld [vmem:[%s16823_s0 + $0x4d] ss:$8 sm:$0x7] }
 0xe40   :  { %v8012_v31 = vrot.slane %v9788_v13, 1 }
 0xed4   :  { %v7895_v26 = vpop.f32.mrb[52].mxu0  ;;  %v7966_v28 = vpop.f32.mrb[52].mxu1 }
 0xed5   :  { %v7896_v42 = vadd.f32 %v7895_v26, %v17164_v22  ;;  %v7897_v53 = vpop.f32.mrb[53].mxu0  ;;  %v11312_v3 = vpop.f32.mrb[53].mxu1  ;;  %v8011_v26 = vrot.slane %v9787_v1, 1 }
 0xed6   :  { %v7898_v44 = vadd.f32 %v7897_v53, %v17165_v32 }
 0xed7   :  { %v7977_v57 = vrot.slane %v7896_v42, %v14481_v38 }
 0xed8   :  { %v8022_v51 = vrot.slane %v7898_v44, %v14481_v38 }
 0xed9   :  { %v7978_v50 = vcombine.high %v7977_v57, %v7977_v57  ;;  %v7985_v33 = vrot.slane %v7977_v57, %v14481_v38 }
 0xeda   :  { %v8023_v22 = vcombine.high %v8022_v51, %v8022_v51  ;;  %v8030_v3 = vrot.slane %v8022_v51, %v14481_v38 }
 0xedb   :  { %v7992_v53 = vrot.slane %v7978_v50, %v14481_v38  ;;  %v7995_v32 = vadd.f32 %v9787_v1, %v7985_v33  ;;  %v7967_v50 = vadd.f32 %v7966_v28, %v17166_v55 }
 0xedc   :  { %v8037_v4 = vrot.slane %v8023_v22, %v14481_v38  ;;  %v8040_v27 = vadd.f32 %v8030_v3, %v8011_v26 }
 0xedd   :  { %v7996_v42 = vadd.f32 %v9788_v13, %v7992_v53  ;;  %v9789_v12 = vmul.f32 -1.442695, %v7995_v32  ;;  %v8061_v22 = vrot.slane %v7967_v50, %v14481_v38 }
 0xede   :  { %v8041_v8 = vadd.f32 %v8037_v4, %v8012_v31  ;;  %v9791_v44 = vmul.f32 -1.442695, %v8040_v27  ;;  %v17167_v31 = vld [vmem:[#allocation23_spill] sm:$0xff] }
 0xedf   :  { %13804 = vpow2.f32 %v9789_v12  ;;  %v9790_v14 = vmul.f32 -1.442695, %v7996_v42  ;;  %v8062_v12 = vcombine.high %v8061_v22, %v8061_v22 }
 0xee0   :  { %v9792_v7 = vmul.f32 -1.442695, %v8041_v8  ;;  %v8069_v8 = vrot.slane %v8061_v22, %v14481_v38 }
 0xee1   :  { %13806 = vpow2.f32 %v9790_v14  ;;  %v8076_v50 = vrot.slane %v8062_v12, %v14481_v38 }
 0xee2   :  { %13808 = vpow2.f32 %v9791_v44 }
 0xee3   :  { %13810 = vpow2.f32 %v9792_v7  ;;  %v8081_v7 = vrot.slane %v9787_v1, 2 }
 0xee9   :  { %v13805_v57 = vpop.eup %13804 }
 0xeea   :  { %v8003_v0 = vadd.f32 1.0, %v13805_v57  ;;  %v8082_v57 = vrot.slane %v9788_v13, 2  ;;  %v16519_v13 = vld [vmem:[%s16825_s1 + $0x32] ss:$8 sm:$0x7] }
 0xeeb   :  { %v13807_v51 = vpop.eup %13806 }
 0xeec   :  { %v8004_v33 = vadd.f32 1.0, %v13807_v51  ;;  %13812 = vrcp.f32 %v8003_v0  ;;  %v13809_v32 = vpop.eup %13808  ;;  %v17168_v0 = vld [vmem:[#allocation24_spill] sm:$0xff] }
 0xeed   :  { %v13811_v26 = vpop.eup %13810  ;;  %v8048_v3 = vadd.f32 1.0, %v13809_v32  ;;  %v16512_v32 = vld [vmem:[%s16825_s1 + $0x2] ss:$8 sm:$0x7] }
 0xeee   :  { %13814 = vrcp.f32 %v8004_v33  ;;  %v8049_v4 = vadd.f32 1.0, %v13811_v26 }
 0xeef   :  { %13816 = vrcp.f32 %v8048_v3 }
 0xef0   :  { %13818 = vrcp.f32 %v8049_v4 }
 0xef4   :  { %v8187_v14 = vpop.f32.mrb[54].mxu0  ;;  %v8258_v27 = vpop.f32.mrb[54].mxu1 }
 0xef5   :  { %v8188_v53 = vadd.f32 %v8187_v14, %v17167_v31  ;;  %v8189_v42 = vpop.f32.mrb[55].mxu0  ;;  %v11347_v44 = vpop.f32.mrb[55].mxu1 }
 0xef6   :  { %v13813_v28 = vpop.eup %13812  ;;  %v8190_v51 = vadd.f32 %v8189_v42, %v17168_v0 }
 0xef7   :  { %v8079_v33 = vmul.f32 %v13813_v28, %v8069_v8  ;;  %v8269_v22 = vrot.slane %v8188_v53, %v14481_v38  ;;  %v8303_v8 = vrot.slane %v16512_v32, 1 }
 0xef8   :  { %v13815_v1 = vpop.eup %13814  ;;  %v8314_v26 = vrot.slane %v8190_v51, %v14481_v38 }
 0xef9   :  { %v8080_v14 = vmul.f32 %v13815_v1, %v8076_v50  ;;  %v8085_v44 = vadd.f32 %v8081_v7, %v8079_v33  ;;  %v8270_v12 = vcombine.high %v8269_v22, %v8269_v22  ;;  %v8277_v3 = vrot.slane %v8269_v22, %v14481_v38  ;;  %v13817_v55 = vpop.eup %13816 }
 0xefa   :  { %v8315_v42 = vcombine.high %v8314_v26, %v8314_v26  ;;  %v8322_v28 = vrot.slane %v8314_v26, %v14481_v38  ;;  %v8304_v7 = vrot.slane %v16519_v13, 1 }
 0xefb   :  { %v8086_v53 = vadd.f32 %v8082_v57, %v8080_v14  ;;  %13820 = vtanh.f32 %v8085_v44  ;;  %v8284_v4 = vrot.slane %v8270_v12, %v14481_v38  ;;  %v8287_v51 = vadd.f32 %v16512_v32, %v8277_v3  ;;  %v13819_v57 = vpop.eup %13818 }
 0xefc   :  { %v8329_v50 = vrot.slane %v8315_v42, %v14481_v38  ;;  %v8332_v22 = vadd.f32 %v8322_v28, %v8303_v8  ;;  %v8089_v44 = vsub.f32 1.0, %v13817_v55  ;;  %v8090_v3 = vsub.f32 1.0, %v13819_v57 }
 0xefd   :  { %13822 = vtanh.f32 %v8086_v53  ;;  %v8288_v33 = vadd.f32 %v16519_v13, %v8284_v4  ;;  %v9795_v1 = vmul.f32 -1.442695, %v8287_v51  ;;  %v8093_v42 = vmul.f32 %v13817_v55, %v16379_v20 }
 0xefe   :  { %v8333_v31 = vadd.f32 %v8329_v50, %v8304_v7  ;;  %v9797_v26 = vmul.f32 -1.442695, %v8332_v22  ;;  %v8094_v8 = vmul.f32 %v13819_v57, %v16381_v41  ;;  %v8259_v50 = vadd.f32 %v8258_v27, %v14551_v43 }
 0xeff   :  { %13824 = vpow2.f32 %v9795_v1  ;;  %v9796_v0 = vmul.f32 -1.442695, %v8288_v33 }
 0xf00   :  { %v9798_v14 = vmul.f32 -1.442695, %v8333_v31  ;;  %v8353_v55 = vrot.slane %v8259_v50, %v14481_v38 }
 0xf01   :  { %13826 = vpow2.f32 %v9796_v0 }
 0xf02   :  { %13828 = vpow2.f32 %v9797_v26  ;;  %v8354_v27 = vcombine.high %v8353_v55, %v8353_v55  ;;  %v8361_v26 = vrot.slane %v8353_v55, %v14481_v38 }
 0xf03   :  { %13830 = vpow2.f32 %v9798_v14  ;;  %v8373_v14 = vrot.slane %v16512_v32, 2 }
 0xf05   :  { %v13821_v12 = vpop.eup %13820 }
 0xf06   :  { %v8091_v54 = vmul.f32 %v13821_v12, %v8089_v44 }
 0xf07   :  { %v13823_v53 = vpop.eup %13822 }
 0xf08   :  { %v8092_v4 = vmul.f32 %v13823_v53, %v8090_v3  ;;  %v16531_v28 = vadd.f32 %v8093_v42, %v8091_v54  ;;  %v8368_v3 = vrot.slane %v8354_v27, %v14481_v38  ;;  %v8374_v53 = vrot.slane %v16519_v13, 2 }
 0xf09   :  { %v13825_v51 = vpop.eup %13824 }
 0xf0a   :  { %v8295_v7 = vadd.f32 1.0, %v13825_v51  ;;  %v16533_v0 = vadd.f32 %v8094_v8, %v8092_v4  ;;  %8097 = vst [vmem:[%s16826_s6 + $0xd] sm:$0x1] %v16531_v28 }
 0xf0b   :  { %v13827_v31 = vpop.eup %13826 }
 0xf0c   :  { %v8296_v20 = vadd.f32 1.0, %v13827_v31  ;;  %13832 = vrcp.f32 %v8295_v7  ;;  %8098 = vst [vmem:[%s16826_s6 + $0x1d] sm:$0x1] %v16533_v0  ;;  %v8397_v41 = vcombine.low %v16531_v28, %v16533_v0  ;;  %v13829_v33 = vpop.eup %13828 }
 0xf0d   :  { %v13831_v22 = vpop.eup %13830  ;;  %v8340_v57 = vadd.f32 1.0, %v13829_v33 }
 0xf0e   :  { %13834 = vrcp.f32 %v8296_v20  ;;  %v8404_v54 = vrot.slane %v8397_v41, %v14481_v38  ;;  %v8341_v44 = vadd.f32 1.0, %v13831_v22 }
 0xf0f   :  { %13836 = vrcp.f32 %v8340_v57 }
 0xf10   :  { %v8411_v1 = vrot.slane %v8404_v54, %v14481_v38  ;;  %13838 = vrcp.f32 %v8341_v44  ;;  %v17180_v44 = vld [vmem:[#allocation18_spill] sm:$0xff] }
 0xf12   :  { %8478 = vmatmul.mubr.f32.vlgmr.msra.gmra.mrb[56].mxu0 %v8411_v1  ;;  %11381 = vmatmul.mubr.f32.vlgmr.msra.gmra.mrb[56].mxu1 %v8411_v1 }
 0xf13   :  { %13115 = vmatpush1.bf16.msra.mxu0 %v14204_v23  ;;  %13146 = vmatpush3.bf16.msra.mxu1 %v14277_v56 }
 0xf14   :  { %13117 = vmatprep.subr.bf16.mxu0 %v14207_v24  ;;  %13147 = vmatprep.subr.bf16.mxu1 %v16897_v60 }
 0xf15   :  { %8769 = vmatprep.mubr.f32.mxu0 %v16898_v59  ;;  %11415 = vmatprep.mubr.msk.f32.mxu1 %vm13926_vm0, %v16898_v59 }
 0xf16   :  { %v13833_v12 = vpop.eup %13832 }
 0xf17   :  { %v8371_v42 = vmul.f32 %v13833_v12, %v8361_v26  ;;  %13119 = vmatpush1.bf16.msra.mxu0 %v14233_v35  ;;  %13149 = vmatpush3.bf16.msra.mxu1 %v14306_v11  ;;  %v17178_v26 = vld [vmem:[#allocation10_spill] sm:$0xff]  ;;  %v17181_v12 = vld [vmem:[#allocation13_spill] sm:$0xff] }
 0xf18   :  { %v13835_v4 = vpop.eup %13834  ;;  %13121 = vmatprep.subr.bf16.mxu0 %v14237_v36  ;;  %13150 = vmatprep.subr.bf16.mxu1 %v16897_v60 }
 0xf19   :  { %v8372_v32 = vmul.f32 %v13835_v4, %v8368_v3  ;;  %v8377_v8 = vadd.f32 %v8373_v14, %v8371_v42  ;;  %v13837_v13 = vpop.eup %13836  ;;  %v17179_v14 = vld [vmem:[#allocation12_spill] sm:$0xff]  ;;  %v17182_v3 = vld [vmem:[#allocation15_spill] sm:$0xff] }
 0xf1a   :  { %v13839_v7 = vpop.eup %13838  ;;  %v8381_v31 = vsub.f32 1.0, %v13837_v13  ;;  %v8385_v54 = vmul.f32 %v13837_v13, %v16430_v47  ;;  %v17183_v42 = vld [vmem:[#allocation19_spill] sm:$0xff] }
 0xf1b   :  { %v8378_v51 = vadd.f32 %v8374_v53, %v8372_v32  ;;  %13840 = vtanh.f32 %v8377_v8  ;;  %13123 = vmatpush1.bf16.msra.mxu0 %v14262_v48  ;;  %13152 = vmatpush3.bf16.msra.mxu1 %v14336_v30  ;;  %v8382_v20 = vsub.f32 1.0, %v13839_v7  ;;  %v8386_v1 = vmul.f32 %v13839_v7, %v16432_v2  ;;  %v17184_v53 = vld [vmem:[#allocation16_spill] sm:$0xff] }
 0xf1c   :  { %13125 = vmatprep.subr.bf16.mxu0 %v14265_v49  ;;  %13153 = vmatprep.subr.bf16.mxu1 %v16897_v60  ;;  %v17185_v8 = vld [vmem:[#allocation20_spill] sm:$0xff] }
 0xf1d   :  { %13842 = vtanh.f32 %v8378_v51 }
 0xf1f   :  { %13127 = vmatpush1.bf16.msra.mxu0 %v14290_v62  ;;  %13155 = vmatpush3.bf16.msra.mxu1 %v14364_v52 }
 0xf20   :  { %13129 = vmatprep.subr.bf16.mxu0 %v14294_v63  ;;  %13156 = vmatprep.subr.bf16.mxu1 %v16897_v60 }
 0xf23   :  { %13131 = vmatpush1.bf16.msra.mxu0 %v14321_v18  ;;  %13158 = vmatpush3.bf16.msra.mxu1 %v14389_v6 }
 0xf24   :  { %13133 = vmatprep.subr.bf16.mxu0 %v14324_v19  ;;  %13159 = vmatprep.subr.bf16.mxu1 %v16897_v60 }
 0xf25   :  { %v13841_v50 = vpop.eup %13840 }
 0xf26   :  { %v8383_v41 = vmul.f32 %v13841_v50, %v8381_v31  ;;  %v17186_v31 = vld [vmem:[#allocation21_spill] sm:$0xff] }
 0xf27   :  { %v13843_v55 = vpop.eup %13842  ;;  %13135 = vmatpush1.bf16.msra.mxu0 %v14349_v39  ;;  %13161 = vmatpush3.bf16.msra.mxu1 %v14403_v25 }
 0xf28   :  { %13137 = vmatprep.subr.bf16.mxu0 %v14352_v40  ;;  %13162 = vmatprep.subr.bf16.mxu1 %v16897_v60  ;;  %v8384_v33 = vmul.f32 %v13843_v55, %v8382_v20  ;;  %v16582_v22 = vadd.f32 %v8385_v54, %v8383_v41  ;;  %v9799_v20 = vld [vmem:[%s16823_s0 + $0x1e] ss:$8 sm:$0x7] }
 0xf29   :  { %v9800_v54 = vld [vmem:[%s16823_s0 + $0x4e] ss:$8 sm:$0x7] }
 0xf2a   :  { %v16584_v27 = vadd.f32 %v8386_v1, %v8384_v33  ;;  %8389 = vst [vmem:[%s16827_s7 + $0x2] sm:$0x1] %v16582_v22 }
 0xf2b   :  { %13139 = vmatpush1.bf16.msra.mxu0 %v14377_v58  ;;  %13164 = vmatpush3.bf16.msra.mxu1 %v14416_v34 }
 0xf2c   :  { %13141 = vmatprep.subr.bf16.mxu0 %v14380_v61  ;;  %13165 = vmatprep.subr.bf16.mxu1 %v16897_v60  ;;  %8390 = vst [vmem:[%s16827_s7 + $0x12] sm:$0x1] %v16584_v27  ;;  %v8689_v47 = vcombine.low %v16582_v22, %v16584_v27 }
 0xf2e   :  { %v8696_v2 = vrot.slane %v8689_v47, %v14481_v38  ;;  %v8595_v47 = vrot.slane %v9799_v20, 1 }
 0xf2f   :  { %13143 = vmatpush1.bf16.msra.mxu0 %v14399_v17  ;;  %13167 = vmatpush3.bf16.msra.mxu1 %v14430_v45 }
 0xf30   :  { %v8703_v57 = vrot.slane %v8696_v2, %v14481_v38  ;;  %13169 = vmatprep.subr.bf16.mxu0 %v13981_v5  ;;  %13200 = vmatprep.subr.bf16.mxu1 %v16897_v60  ;;  %v17169_v5 = vld [vmem:[#allocation4_spill] sm:$0xff] }
 0xf32   :  { %8770 = vmatmul.mubr.f32.vlgmr.msra.gmra.mrb[58].mxu0 %v8703_v57  ;;  %11416 = vmatmul.mubr.f32.vlgmr.msra.gmra.mrb[58].mxu1 %v8703_v57 }
 0xf33   :  { %13171 = vmatpush1.bf16.msra.mxu0 %v13994_v9  ;;  %13202 = vmatpush3.bf16.msra.mxu1 %v14053_v29  ;;  %v17170_v9 = vld [vmem:[#allocation5_spill] sm:$0xff]  ;;  %v17172_v29 = vld [vmem:[#allocation6_spill] sm:$0xff] }
 0xf34   :  { %13173 = vmatprep.subr.bf16.mxu0 %v13996_v10  ;;  %13203 = vmatprep.subr.bf16.mxu1 %v16897_v60  ;;  %v17171_v10 = vld [vmem:[#allocation11_spill] sm:$0xff] }
 0xf35   :  { %9061 = vmatprep.mubr.f32.mxu0 %v16898_v59  ;;  %11450 = vmatprep.mubr.msk.f32.mxu1 %vm13926_vm0, %v16898_v59 }
 0xf37   :  { %13175 = vmatpush1.bf16.msra.mxu0 %v14012_v15  ;;  %13205 = vmatpush3.bf16.msra.mxu1 %v14077_v37  ;;  %v17173_v15 = vld [vmem:[#allocation7_spill] sm:$0xff]  ;;  %v17175_v37 = vld [vmem:[#allocation8_spill] sm:$0xff] }
 0xf38   :  { %13177 = vmatprep.subr.bf16.mxu0 %v14015_v16  ;;  %13206 = vmatprep.subr.bf16.mxu1 %v16897_v60  ;;  %v17174_v16 = vld [vmem:[#allocation14_spill] sm:$0xff] }
 0xf3b   :  { %13179 = vmatpush1.bf16.msra.mxu0 %v14030_v21  ;;  %13208 = vmatpush3.bf16.msra.mxu1 %v14105_v46  ;;  %v17176_v21 = vld [vmem:[#allocation9_spill] sm:$0xff] }
 0xf3c   :  { %13181 = vmatprep.subr.bf16.mxu0 %v17169_v5  ;;  %13209 = vmatprep.subr.bf16.mxu1 %v16897_v60  ;;  %v17177_v46 = vld [vmem:[#allocation17_spill] sm:$0xff] }
 0xf3f   :  { %13183 = vmatpush1.bf16.msra.mxu0 %v17170_v9  ;;  %13211 = vmatpush3.bf16.msra.mxu1 %v17171_v10  ;;  %v8596_v10 = vrot.slane %v9800_v54, 1 }
 0xf40   :  { %13185 = vmatprep.subr.bf16.mxu0 %v17172_v29  ;;  %13212 = vmatprep.subr.bf16.mxu1 %v16897_v60 }
 0xf43   :  { %13187 = vmatpush1.bf16.msra.mxu0 %v17173_v15  ;;  %13214 = vmatpush3.bf16.msra.mxu1 %v17174_v16 }
 0xf44   :  { %13189 = vmatprep.subr.bf16.mxu0 %v17175_v37  ;;  %13215 = vmatprep.subr.bf16.mxu1 %v16897_v60 }
 0xf47   :  { %13191 = vmatpush1.bf16.msra.mxu0 %v17176_v21  ;;  %13217 = vmatpush3.bf16.msra.mxu1 %v17177_v46 }
 0xf48   :  { %13193 = vmatprep.subr.bf16.mxu0 %v17178_v26  ;;  %13218 = vmatprep.subr.bf16.mxu1 %v16897_v60 }
 0xf4b   :  { %13195 = vmatpush1.bf16.msra.mxu0 %v17179_v14  ;;  %13220 = vmatpush3.bf16.msra.mxu1 %v17180_v44 }
 0xf4c   :  { %13197 = vmatprep.subr.bf16.mxu0 %v17181_v12  ;;  %13221 = vmatprep.subr.bf16.mxu1 %v16897_v60 }
 0xf4f   :  { %13199 = vmatpush1.bf16.msra.mxu0 %v17182_v3  ;;  %13223 = vmatpush3.bf16.msra.mxu1 %v17183_v42  ;;  %v17187_v42 = vld [vmem:[#allocation22_spill] sm:$0xff] }
 0xf50   :  { %13225 = vmatprep.subr.bf16.mxu0 %v17184_v53  ;;  %13256 = vmatprep.subr.bf16.mxu1 %v16897_v60 }
 0xfe5   :  { %v8479_v4 = vpop.f32.mrb[56].mxu0  ;;  %v8550_v32 = vpop.f32.mrb[56].mxu1 }
 0xfe6   :  { %v8480_v51 = vadd.f32 %v8479_v4, %v17185_v8  ;;  %v8481_v13 = vpop.f32.mrb[57].mxu0  ;;  %v11382_v7 = vpop.f32.mrb[57].mxu1  ;;  %v8551_v53 = vadd.f32 %v8550_v32, %v17187_v42 }
 0xfe7   :  { %v8482_v50 = vadd.f32 %v8481_v13, %v17186_v31 }
 0xfe8   :  { %v8561_v41 = vrot.slane %v8480_v51, %v14481_v38  ;;  %v8645_v51 = vrot.slane %v8551_v53, %v14481_v38 }
 0xfe9   :  { %v8606_v55 = vrot.slane %v8482_v50, %v14481_v38 }
 0xfea   :  { %v8562_v33 = vcombine.high %v8561_v41, %v8561_v41  ;;  %v8569_v1 = vrot.slane %v8561_v41, %v14481_v38  ;;  %v8646_v50 = vcombine.high %v8645_v51, %v8645_v51 }
 0xfeb   :  { %v8607_v2 = vcombine.high %v8606_v55, %v8606_v55  ;;  %v8614_v57 = vrot.slane %v8606_v55, %v14481_v38 }
 0xfec   :  { %v8576_v5 = vrot.slane %v8562_v33, %v14481_v38  ;;  %v8579_v9 = vadd.f32 %v9799_v20, %v8569_v1 }
 0xfed   :  { %v8621_v29 = vrot.slane %v8607_v2, %v14481_v38  ;;  %v8624_v37 = vadd.f32 %v8614_v57, %v8595_v47  ;;  %v8653_v47 = vrot.slane %v8645_v51, %v14481_v38  ;;  %v8665_v2 = vrot.slane %v9799_v20, 2  ;;  %v17188_v57 = vld [vmem:[#allocation23_spill] sm:$0xff] }
 0xfee   :  { %v8580_v15 = vadd.f32 %v9800_v54, %v8576_v5  ;;  %v9801_v16 = vmul.f32 -1.442695, %v8579_v9 }
 0xfef   :  { %v8625_v46 = vadd.f32 %v8621_v29, %v8596_v10  ;;  %v9803_v26 = vmul.f32 -1.442695, %v8624_v37  ;;  %v8666_v29 = vrot.slane %v9800_v54, 2  ;;  %v8660_v37 = vrot.slane %v8646_v50, %v14481_v38  ;;  %v16671_v54 = vld [vmem:[%s16825_s1 + $0x31] ss:$8 sm:$0x7] }
 0xff0   :  { %13844 = vpow2.f32 %v9801_v16  ;;  %v9802_v21 = vmul.f32 -1.442695, %v8580_v15  ;;  %v17189_v15 = vld [vmem:[#allocation24_spill] sm:$0xff] }
 0xff1   :  { %v9804_v14 = vmul.f32 -1.442695, %v8625_v46  ;;  %v16664_v46 = vld [vmem:[%s16825_s1 + $0x1] ss:$8 sm:$0x7] }
 0xff2   :  { %13846 = vpow2.f32 %v9802_v21 }
 0xff3   :  { %13848 = vpow2.f32 %v9803_v26 }
 0xff4   :  { %13850 = vpow2.f32 %v9804_v14 }
 0xffa   :  { %v13845_v44 = vpop.eup %13844 }
 0xffb   :  { %v8587_v12 = vadd.f32 1.0, %v13845_v44 }
 0xffc   :  { %v13847_v3 = vpop.eup %13846 }
 0xffd   :  { %v8588_v4 = vadd.f32 1.0, %v13847_v3  ;;  %13852 = vrcp.f32 %v8587_v12  ;;  %v13849_v13 = vpop.eup %13848 }
 0xffe   :  { %v13851_v7 = vpop.eup %13850  ;;  %v8632_v41 = vadd.f32 1.0, %v13849_v13 }
 0xfff   :  { %13854 = vrcp.f32 %v8588_v4  ;;  %v8633_v55 = vadd.f32 1.0, %v13851_v7  ;;  %v8887_v4 = vrot.slane %v16664_v46, 1 }
0x1000   :  { %13856 = vrcp.f32 %v8632_v41 }
0x1001   :  { %13858 = vrcp.f32 %v8633_v55  ;;  %v8888_v55 = vrot.slane %v16671_v54, 1 }
0x1005   :  { %v8771_v33 = vpop.f32.mrb[58].mxu0  ;;  %v8842_v1 = vpop.f32.mrb[58].mxu1 }
0x1006   :  { %v8772_v5 = vadd.f32 %v8771_v33, %v17188_v57  ;;  %v8773_v9 = vpop.f32.mrb[59].mxu0  ;;  %v11417_v10 = vpop.f32.mrb[59].mxu1 }
0x1007   :  { %v13853_v32 = vpop.eup %13852  ;;  %v8774_v16 = vadd.f32 %v8773_v9, %v17189_v15 }
0x1008   :  { %v8663_v21 = vmul.f32 %v13853_v32, %v8653_v47  ;;  %v8853_v26 = vrot.slane %v8772_v5, %v14481_v38 }
0x1009   :  { %v13855_v20 = vpop.eup %13854  ;;  %v8898_v14 = vrot.slane %v8774_v16, %v14481_v38 }
0x100a   :  { %v8664_v44 = vmul.f32 %v13855_v20, %v8660_v37  ;;  %v8669_v12 = vadd.f32 %v8665_v2, %v8663_v21  ;;  %v8854_v3 = vcombine.high %v8853_v26, %v8853_v26  ;;  %v8861_v53 = vrot.slane %v8853_v26, %v14481_v38  ;;  %v13857_v32 = vpop.eup %13856 }
0x100b   :  { %v8899_v51 = vcombine.high %v8898_v14, %v8898_v14  ;;  %v8906_v13 = vrot.slane %v8898_v14, %v14481_v38  ;;  %v8673_v21 = vsub.f32 1.0, %v13857_v32 }
0x100c   :  { %v8670_v7 = vadd.f32 %v8666_v29, %v8664_v44  ;;  %13860 = vtanh.f32 %v8669_v12  ;;  %v8868_v50 = vrot.slane %v8854_v3, %v14481_v38  ;;  %v8871_v41 = vadd.f32 %v16664_v46, %v8861_v53  ;;  %v13859_v29 = vpop.eup %13858 }
0x100d   :  { %v8913_v33 = vrot.slane %v8899_v51, %v14481_v38  ;;  %v8916_v5 = vadd.f32 %v8906_v13, %v8887_v4  ;;  %v8674_v20 = vsub.f32 1.0, %v13859_v29  ;;  %v8677_v44 = vmul.f32 %v13857_v32, %v16531_v28 }
0x100e   :  { %13862 = vtanh.f32 %v8670_v7  ;;  %v8872_v47 = vadd.f32 %v16671_v54, %v8868_v50  ;;  %v9807_v2 = vmul.f32 -1.442695, %v8871_v41  ;;  %v8678_v53 = vmul.f32 %v13859_v29, %v16533_v0 }
0x100f   :  { %v8917_v10 = vadd.f32 %v8913_v33, %v8888_v55  ;;  %v9809_v16 = vmul.f32 -1.442695, %v8916_v5  ;;  %v8843_v41 = vadd.f32 %v8842_v1, %v14551_v43  ;;  %v8957_v32 = vrot.slane %v16664_v46, 2 }
0x1010   :  { %13864 = vpow2.f32 %v9807_v2  ;;  %v9808_v9 = vmul.f32 -1.442695, %v8872_v47 }
0x1011   :  { %v9810_v37 = vmul.f32 -1.442695, %v8917_v10  ;;  %v8937_v33 = vrot.slane %v8843_v41, %v14481_v38 }
0x1012   :  { %13866 = vpow2.f32 %v9808_v9 }
0x1013   :  { %13868 = vpow2.f32 %v9809_v16  ;;  %v8938_v1 = vcombine.high %v8937_v33, %v8937_v33  ;;  %v8945_v10 = vrot.slane %v8937_v33, %v14481_v38 }
0x1014   :  { %13870 = vpow2.f32 %v9810_v37 }
0x1015   :  { %v8952_v37 = vrot.slane %v8938_v1, %v14481_v38 }
0x1016   :  { %v13861_v26 = vpop.eup %13860 }
0x1017   :  { %v8675_v14 = vmul.f32 %v13861_v26, %v8673_v21 }
0x1018   :  { %v13863_v12 = vpop.eup %13862 }
0x1019   :  { %v8676_v3 = vmul.f32 %v13863_v12, %v8674_v20  ;;  %v16683_v4 = vadd.f32 %v8677_v44, %v8675_v14 }
0x101a   :  { %v13865_v51 = vpop.eup %13864 }
0x101b   :  { %v8879_v13 = vadd.f32 1.0, %v13865_v51  ;;  %v16685_v7 = vadd.f32 %v8678_v53, %v8676_v3  ;;  %8681 = vst [vmem:[%s16826_s6 + $0xe] sm:$0x1] %v16683_v4 }
0x101c   :  { %v13867_v50 = vpop.eup %13866 }
0x101d   :  { %v8880_v28 = vadd.f32 1.0, %v13867_v50  ;;  %13872 = vrcp.f32 %v8879_v13  ;;  %8682 = vst [vmem:[%s16826_s6 + $0x1e] sm:$0x1] %v16685_v7  ;;  %v8981_v0 = vcombine.low %v16683_v4, %v16685_v7  ;;  %v13869_v47 = vpop.eup %13868 }
0x101e   :  { %v13871_v5 = vpop.eup %13870  ;;  %v8924_v9 = vadd.f32 1.0, %v13869_v47 }
0x101f   :  { %13874 = vrcp.f32 %v8880_v28  ;;  %v8988_v55 = vrot.slane %v8981_v0, %v14481_v38  ;;  %v8925_v29 = vadd.f32 1.0, %v13871_v5 }
0x1020   :  { %13876 = vrcp.f32 %v8924_v9 }
0x1021   :  { %v8995_v2 = vrot.slane %v8988_v55, %v14481_v38  ;;  %13878 = vrcp.f32 %v8925_v29 }
0x1023   :  { %9062 = vmatmul.mubr.f32.vlgmr.msra.gmra.mrb[60].mxu0 %v8995_v2  ;;  %11451 = vmatmul.mubr.f32.vlgmr.msra.gmra.mrb[60].mxu1 %v8995_v2 }
0x1024   :  { %13227 = vmatpush1.bf16.msra.mxu0 %v14204_v23  ;;  %13258 = vmatpush3.bf16.msra.mxu1 %v14277_v56  ;;  %v8958_v56 = vrot.slane %v16671_v54, 2  ;;  %v9811_v54 = vld [vmem:[%s16823_s0 + $0x1f] ss:$8 sm:$0x7] }
0x1025   :  { %13229 = vmatprep.subr.bf16.mxu0 %v14207_v24  ;;  %13259 = vmatprep.subr.bf16.mxu1 %v16897_v60 }
0x1026   :  { %9352 = vmatprep.mubr.f32.mxu0 %v16898_v59  ;;  %11485 = vmatprep.mubr.msk.f32.mxu1 %vm13926_vm0, %v16898_v59 }
0x1027   :  { %v13873_v16 = vpop.eup %13872 }
0x1028   :  { %v8955_v23 = vmul.f32 %v13873_v16, %v8945_v10  ;;  %13231 = vmatpush1.bf16.msra.mxu0 %v14233_v35  ;;  %13261 = vmatpush3.bf16.msra.mxu1 %v14306_v11 }
0x1029   :  { %v13875_v24 = vpop.eup %13874  ;;  %13233 = vmatprep.subr.bf16.mxu0 %v14237_v36  ;;  %13262 = vmatprep.subr.bf16.mxu1 %v16897_v60 }
0x102a   :  { %v8956_v46 = vmul.f32 %v13875_v24, %v8952_v37  ;;  %v8961_v21 = vadd.f32 %v8957_v32, %v8955_v23  ;;  %v13877_v35 = vpop.eup %13876 }
0x102b   :  { %v13879_v36 = vpop.eup %13878 }
0x102c   :  { %v8962_v59 = vadd.f32 %v8958_v56, %v8956_v46  ;;  %13880 = vtanh.f32 %v8961_v21  ;;  %13235 = vmatpush1.bf16.msra.mxu0 %v14262_v48  ;;  %13264 = vmatpush3.bf16.msra.mxu1 %v14336_v30  ;;  %v8965_v48 = vsub.f32 1.0, %v13877_v35  ;;  %v8966_v11 = vsub.f32 1.0, %v13879_v36 }
0x102d   :  { %13237 = vmatprep.subr.bf16.mxu0 %v14265_v49  ;;  %13265 = vmatprep.subr.bf16.mxu1 %v16897_v60  ;;  %v8969_v30 = vmul.f32 %v13877_v35, %v16582_v22  ;;  %v9249_v21 = vrot.slane %v9811_v54, 2 }
0x102e   :  { %13882 = vtanh.f32 %v8962_v59 }
0x1030   :  { %13239 = vmatpush1.bf16.msra.mxu0 %v14290_v62  ;;  %13267 = vmatpush3.bf16.msra.mxu1 %v14364_v52 }
0x1031   :  { %13241 = vmatprep.subr.bf16.mxu0 %v14294_v63  ;;  %13268 = vmatprep.subr.bf16.mxu1 %v16897_v60 }
0x1034   :  { %13243 = vmatpush1.bf16.msra.mxu0 %v14321_v18  ;;  %13270 = vmatpush3.bf16.msra.mxu1 %v14389_v6  ;;  %v8970_v18 = vmul.f32 %v13879_v36, %v16584_v27 }
0x1035   :  { %13245 = vmatprep.subr.bf16.mxu0 %v14324_v19  ;;  %13271 = vmatprep.subr.bf16.mxu1 %v16897_v60 }
0x1036   :  { %v13881_v49 = vpop.eup %13880 }
0x1037   :  { %v8967_v62 = vmul.f32 %v13881_v49, %v8965_v48 }
0x1038   :  { %v13883_v52 = vpop.eup %13882  ;;  %13247 = vmatpush1.bf16.msra.mxu0 %v14349_v39  ;;  %13273 = vmatpush3.bf16.msra.mxu1 %v14403_v25 }
0x1039   :  { %13249 = vmatprep.subr.bf16.mxu0 %v14352_v40  ;;  %13274 = vmatprep.subr.bf16.mxu1 %v16897_v60  ;;  %v8968_v63 = vmul.f32 %v13883_v52, %v8966_v11  ;;  %v16734_v19 = vadd.f32 %v8969_v30, %v8967_v62  ;;  %v16779_v30 = vld [vmem:[%s16825_s1] ss:$8 sm:$0x7] }
0x103b   :  { %v16736_v6 = vadd.f32 %v8970_v18, %v8968_v63  ;;  %8973 = vst [vmem:[%s16827_s7 + $0x1] sm:$0x1] %v16734_v19 }
0x103c   :  { %13251 = vmatpush1.bf16.msra.mxu0 %v14377_v58  ;;  %13276 = vmatpush3.bf16.msra.mxu1 %v14416_v34 }
0x103d   :  { %13253 = vmatprep.subr.bf16.mxu0 %v14380_v61  ;;  %13277 = vmatprep.subr.bf16.mxu1 %v16897_v60  ;;  %8974 = vst [vmem:[%s16827_s7 + $0x11] sm:$0x1] %v16736_v6  ;;  %v9272_v39 = vcombine.low %v16734_v19, %v16736_v6 }
0x103f   :  { %v9279_v40 = vrot.slane %v9272_v39, %v14481_v38 }
0x1040   :  { %13255 = vmatpush1.bf16.msra.mxu0 %v14399_v17  ;;  %13279 = vmatpush3.bf16.msra.mxu1 %v14430_v45  ;;  %v9812_v45 = vld [vmem:[%s16823_s0 + $0x4f] ss:$8 sm:$0x7] }
0x1041   :  { %v9286_v58 = vrot.slane %v9279_v40, %v14481_v38  ;;  %v9180_v53 = vrot.slane %v9812_v45, 1  ;;  %v9250_v48 = vrot.slane %v9812_v45, 2 }
0x1043   :  { %9353 = vmatmul.mubr.f32.vlgmr.msra.gmra.mrb[62].mxu0 %v9286_v58  ;;  %11486 = vmatmul.mubr.f32.vlgmr.msra.gmra.mrb[62].mxu1 %v9286_v58 }
0x10f6   :  { %v9063_v61 = vpop.f32.mrb[60].mxu0  ;;  %v9134_v25 = vpop.f32.mrb[60].mxu1 }
0x10f7   :  { %v9064_v34 = vadd.f32 %v9063_v61, %v17185_v8  ;;  %v9065_v60 = vpop.f32.mrb[61].mxu0  ;;  %v11452_v22 = vpop.f32.mrb[61].mxu1  ;;  %v9179_v8 = vrot.slane %v9811_v54, 1  ;;  %v9135_v1 = vadd.f32 %v9134_v25, %v17187_v42  ;;  %v9470_v61 = vrot.slane %v16779_v30, 1 }
0x10f8   :  { %v9066_v27 = vadd.f32 %v9065_v60, %v17186_v31 }
0x10f9   :  { %v9145_v17 = vrot.slane %v9064_v34, %v14481_v38  ;;  %v9229_v10 = vrot.slane %v9135_v1, %v14481_v38 }
0x10fa   :  { %v9190_v26 = vrot.slane %v9066_v27, %v14481_v38 }
0x10fb   :  { %v9146_v20 = vcombine.high %v9145_v17, %v9145_v17  ;;  %v9153_v14 = vrot.slane %v9145_v17, %v14481_v38  ;;  %v9230_v16 = vcombine.high %v9229_v10, %v9229_v10  ;;  %v9237_v46 = vrot.slane %v9229_v10, %v14481_v38 }
0x10fc   :  { %v9191_v44 = vcombine.high %v9190_v26, %v9190_v26  ;;  %v9198_v12 = vrot.slane %v9190_v26, %v14481_v38 }
0x10fd   :  { %v9160_v31 = vrot.slane %v9146_v20, %v14481_v38  ;;  %v9163_v3 = vadd.f32 %v9811_v54, %v9153_v14  ;;  %v9244_v11 = vrot.slane %v9230_v16, %v14481_v38 }
0x10fe   :  { %v9205_v51 = vrot.slane %v9191_v44, %v14481_v38  ;;  %v9208_v41 = vadd.f32 %v9198_v12, %v9179_v8 }
0x10ff   :  { %v9164_v13 = vadd.f32 %v9812_v45, %v9160_v31  ;;  %v9813_v50 = vmul.f32 -1.442695, %v9163_v3 }
0x1100   :  { %v9209_v0 = vadd.f32 %v9205_v51, %v9180_v53  ;;  %v9815_v55 = vmul.f32 -1.442695, %v9208_v41 }
0x1101   :  { %13884 = vpow2.f32 %v9813_v50  ;;  %v9814_v28 = vmul.f32 -1.442695, %v9164_v13 }
0x1102   :  { %v9816_v33 = vmul.f32 -1.442695, %v9209_v0 }
0x1103   :  { %13886 = vpow2.f32 %v9814_v28 }
0x1104   :  { %13888 = vpow2.f32 %v9815_v55 }
0x1105   :  { %13890 = vpow2.f32 %v9816_v33 }
0x110b   :  { %v13885_v47 = vpop.eup %13884 }
0x110c   :  { %v9171_v2 = vadd.f32 1.0, %v13885_v47 }
0x110d   :  { %v13887_v5 = vpop.eup %13886 }
0x110e   :  { %v9172_v9 = vadd.f32 1.0, %v13887_v5  ;;  %13892 = vrcp.f32 %v9171_v2  ;;  %v13889_v32 = vpop.eup %13888 }
0x110f   :  { %v13891_v29 = vpop.eup %13890  ;;  %v9216_v37 = vadd.f32 1.0, %v13889_v32 }
0x1110   :  { %13894 = vrcp.f32 %v9172_v9  ;;  %v9217_v23 = vadd.f32 1.0, %v13891_v29 }
0x1111   :  { %13896 = vrcp.f32 %v9216_v37 }
0x1112   :  { %13898 = vrcp.f32 %v9217_v23 }
0x1116   :  { %v9354_v56 = vpop.f32.mrb[62].mxu0  ;;  %v9425_v24 = vpop.f32.mrb[62].mxu1 }
0x1117   :  { %v9355_v59 = vadd.f32 %v9354_v56, %v17188_v57  ;;  %v9356_v35 = vpop.f32.mrb[63].mxu0  ;;  %v11487_v36 = vpop.f32.mrb[63].mxu1  ;;  %v9426_v9 = vadd.f32 %v9425_v24, %v14551_v43  ;;  %v9540_v43 = vrot.slane %v16779_v30, 2 }
0x1118   :  { %v13893_v42 = vpop.eup %13892  ;;  %v9357_v49 = vadd.f32 %v9356_v35, %v17189_v15  ;;  %v16786_v15 = vld [vmem:[%s16825_s1 + $0x30] ss:$8 sm:$0x7] }
0x1119   :  { %v9247_v62 = vmul.f32 %v13893_v42, %v9237_v46  ;;  %v9436_v52 = vrot.slane %v9355_v59, %v14481_v38  ;;  %v9471_v22 = vrot.slane %v16786_v15, 1  ;;  %v9520_v32 = vrot.slane %v9426_v9, %v14481_v38 }
0x111a   :  { %v13895_v63 = vpop.eup %13894  ;;  %v9481_v57 = vrot.slane %v9357_v49, %v14481_v38  ;;  %v9541_v35 = vrot.slane %v16786_v15, 2 }
0x111b   :  { %v9248_v18 = vmul.f32 %v13895_v63, %v9244_v11  ;;  %v9253_v39 = vadd.f32 %v9249_v21, %v9247_v62  ;;  %v9437_v40 = vcombine.high %v9436_v52, %v9436_v52  ;;  %v9444_v58 = vrot.slane %v9436_v52, %v14481_v38  ;;  %v13897_v44 = vpop.eup %13896 }
0x111c   :  { %v9482_v27 = vcombine.high %v9481_v57, %v9481_v57  ;;  %v9489_v54 = vrot.slane %v9481_v57, %v14481_v38  ;;  %v13899_v12 = vpop.eup %13898  ;;  %v9257_v3 = vsub.f32 1.0, %v13897_v44  ;;  %v9261_v41 = vmul.f32 %v13897_v44, %v16683_v4 }
0x111d   :  { %v9254_v25 = vadd.f32 %v9250_v48, %v9248_v18  ;;  %13900 = vtanh.f32 %v9253_v39  ;;  %v9451_v34 = vrot.slane %v9437_v40, %v14481_v38  ;;  %v9454_v60 = vadd.f32 %v9444_v58, %v16779_v30 }
0x111e   :  { %v9496_v26 = vrot.slane %v9482_v27, %v14481_v38  ;;  %v9499_v20 = vadd.f32 %v9489_v54, %v9470_v61  ;;  %v9258_v13 = vsub.f32 1.0, %v13899_v12  ;;  %v9262_v55 = vmul.f32 %v13899_v12, %v16685_v7 }
0x111f   :  { %13902 = vtanh.f32 %v9254_v25  ;;  %v9455_v17 = vadd.f32 %v16786_v15, %v9451_v34  ;;  %v9818_v45 = vmul.f32 -1.442695, %v9454_v60  ;;  %v9521_v37 = vcombine.high %v9520_v32, %v9520_v32 }
0x1120   :  { %v9500_v8 = vadd.f32 %v9496_v26, %v9471_v22  ;;  %v9820_v31 = vmul.f32 -1.442695, %v9499_v20  ;;  %v9528_v56 = vrot.slane %v9520_v32, %v14481_v38 }
0x1121   :  { %13904 = vpow2.f32 %v9818_v45  ;;  %v9819_v14 = vmul.f32 -1.442695, %v9455_v17  ;;  %v9535_v21 = vrot.slane %v9521_v37, %v14481_v38 }
0x1122   :  { %v9821_v53 = vmul.f32 -1.442695, %v9500_v8 }
0x1123   :  { %13906 = vpow2.f32 %v9819_v14 }
0x1124   :  { %13908 = vpow2.f32 %v9820_v31 }
0x1125   :  { %13910 = vpow2.f32 %v9821_v53 }
0x1127   :  { %v13901_v51 = vpop.eup %13900 }
0x1128   :  { %v9259_v50 = vmul.f32 %v13901_v51, %v9257_v3 }
0x1129   :  { %v13903_v28 = vpop.eup %13902 }
0x112a   :  { %v9260_v0 = vmul.f32 %v13903_v28, %v9258_v13  ;;  %v9263_v33 = vadd.f32 %v9261_v41, %v9259_v50 }
0x112b   :  { %v13905_v47 = vpop.eup %13904 }
0x112c   :  { %v9264_v2 = vadd.f32 %v9262_v55, %v9260_v0  ;;  %9265 = vst [vmem:[%s16826_s6 + $0xf] sm:$0x1] %v9263_v33  ;;  %v9462_v5 = vadd.f32 1.0, %v13905_v47 }
0x112d   :  { %v13907_v1 = vpop.eup %13906 }
0x112e   :  { %9266 = vst [vmem:[%s16826_s6 + $0x1f] sm:$0x1] %v9264_v2  ;;  %v9560_v4 = vcombine.low %v9263_v33, %v9264_v2  ;;  %v9463_v10 = vadd.f32 1.0, %v13907_v1  ;;  %13912 = vrcp.f32 %v9462_v5  ;;  %v13909_v29 = vpop.eup %13908 }
0x112f   :  { %v13911_v16 = vpop.eup %13910  ;;  %v9507_v23 = vadd.f32 1.0, %v13909_v29 }
0x1130   :  { %v9567_v7 = vrot.slane %v9560_v4, %v14481_v38  ;;  %13914 = vrcp.f32 %v9463_v10  ;;  %v9508_v24 = vadd.f32 1.0, %v13911_v16 }
0x1131   :  { %13916 = vrcp.f32 %v9507_v23 }
0x1132   :  { %9822 = vst.sshfl [vmem:[#allocation2] sm:$0x5 pattern:$0x73625140] %v9567_v7  ;;  %13918 = vrcp.f32 %v9508_v24 }
0x1138   :  { %v13913_v46 = vpop.eup %13912 }
0x1139   :  { %v9538_v59 = vmul.f32 %v13913_v46, %v9528_v56 }
0x113a   :  { %v13915_v36 = vpop.eup %13914 }
0x113b   :  { %v9539_v42 = vmul.f32 %v13915_v36, %v9535_v21  ;;  %v9544_v48 = vadd.f32 %v9540_v43, %v9538_v59  ;;  %v13917_v11 = vpop.eup %13916 }
0x113c   :  { %v13919_v62 = vpop.eup %13918  ;;  %v9548_v52 = vsub.f32 1.0, %v13917_v11  ;;  %v9552_v18 = vmul.f32 %v13917_v11, %v16734_v19 }
0x113d   :  { %v9545_v49 = vadd.f32 %v9541_v35, %v9539_v42  ;;  %13920 = vtanh.f32 %v9544_v48  ;;  %v9549_v30 = vsub.f32 1.0, %v13919_v62  ;;  %v9553_v15 = vmul.f32 %v13919_v62, %v16736_v6 }
0x113f   :  { %13922 = vtanh.f32 %v9545_v49 }
0x1147   :  { %v13921_v63 = vpop.eup %13920 }
0x1148   :  { %v9550_v57 = vmul.f32 %v13921_v63, %v9548_v52 }
0x1149   :  { %v13923_v39 = vpop.eup %13922 }
0x114a   :  { %v9551_v40 = vmul.f32 %v13923_v39, %v9549_v30  ;;  %v9554_v58 = vadd.f32 %v9552_v18, %v9550_v57 }
0x114c   :  { %v9555_v61 = vadd.f32 %v9553_v15, %v9551_v40  ;;  %9556 = vst [vmem:[%s16827_s7] sm:$0x1] %v9554_v58 }
0x114e   :  { %9557 = vst [vmem:[%s16827_s7 + $0x10] sm:$0x1] %v9555_v61  ;;  %v9579_v25 = vcombine.low %v9554_v58, %v9555_v61 }
0x1150   :  { %v9586_v34 = vrot.slane %v9579_v25, %v14481_v38 }
0x1152   :  { %9823 = vst.sshfl [vmem:[#allocation3] sm:$0x5 pattern:$0x73625140] %v9586_v34 }

</bundles_post_ra>
